<compile_context>
chip_gen: v6e
topology: v6e:2x2x1
jax: 0.10.0
libtpu: 0.0.40
codegen_flags: <defaults>
</compile_context>

<pallas_src>
import functools

import jax
import jax.numpy as jnp
from jax.experimental import pallas as pl
from jax.experimental.pallas import tpu as pltpu


# ------------------------- fused Pallas kernel -------------------------

def dwconv2d_kernel(x_ref, w1_ref, b1_ref, wdw_ref, w3_ref, b3_ref, o_ref,
                    tpad_ref, *, H, C, PAD):
    """Fused 1x1 conv -> +b1 -> ReLU -> 3x3 depthwise -> 1x1 conv -> +b3_eff
    -> +identity shortcut -> ReLU on a lane-dense (Nb*H, W*C) slab."""
    R = x_ref.shape[0]                       # Nb * H rows
    WCc = w1_ref.shape[1]                    # W * conv_channels (lane-dense)

    # ---- stage 1: 1x1 conv as a lane-blocked (block-diagonal) MXU matmul ----
    xw = x_ref[...]                                           # (R, W*Cin)
    t = jnp.dot(xw, w1_ref[...], preferred_element_type=jnp.float32)
    t = jnp.maximum(t + b1_ref[...], 0.0)                     # (R, W*Cc) f32

    # Row-padded f32 copy so the dy = +/-1 taps are in-bounds row-offset loads.
    # Only the two halo strips are zeroed (the h-edge masks below make them
    # don't-care); the interior store is sublane-aligned (PAD % 8 == 0).
    tpad_ref[:PAD, :] = jnp.zeros((PAD, WCc), jnp.float32)
    tpad_ref[PAD + R:, :] = jnp.zeros((PAD, WCc), jnp.float32)
    tpad_ref[PAD:PAD + R, :] = t

    # ---- stage 2: 3x3 depthwise on the VPU, fully lane-dense ----
    # wdw_ref[ky*3+kx] = tap weight * BN2 scale, tiled across w, with the
    # w-edge zeros for kx != 1 already folded in host-side.  dx shifts are
    # lane rotations (XLU); dy shifts are row-offset loads from tpad_ref.
    wdw = wdw_ref[...]                                        # (9, W*Cc) f32
    row = jax.lax.broadcasted_iota(jnp.int32, (R, 1), 0)
    h_pos = row % H
    dw = jnp.zeros((R, WCc), jnp.float32)
    for ky, oy in enumerate((-1, 0, 1)):
        rows = t if oy == 0 else tpad_ref[PAD + oy:PAD + oy + R, :]
        part = rows * wdw[3 * ky + 1:3 * ky + 2, :]                       # dx =  0
        part = part + (pltpu.roll(rows, WCc - C, axis=1)
                       * wdw[3 * ky + 2:3 * ky + 3, :])                   # dx = +1
        part = part + (pltpu.roll(rows, C, axis=1)
                       * wdw[3 * ky:3 * ky + 1, :])                       # dx = -1
        if oy == -1:
            part = jnp.where(h_pos >= 1, part, 0.0)
        elif oy == 1:
            part = jnp.where(h_pos <= H - 2, part, 0.0)
        dw = dw + part

    # ---- stage 3: 1x1 conv (block-diag MXU matmul) + bias + shortcut + ReLU ----
    y = jnp.dot(dw.astype(w3_ref.dtype), w3_ref[...],
                preferred_element_type=jnp.float32)
    y = y + b3_ref[...] + xw.astype(jnp.float32)              # identity shortcut
    o_ref[...] = jnp.maximum(y, 0.0).astype(o_ref.dtype)


# ------------------------- host-side folding -------------------------

def fold_params(W1, Wd, W3, s1, b1, s2, b2, s3, b3, W):
    """Fold eval-mode BN into the weights and build the lane-dense forms."""
    Cc, Cin = W1.shape
    Cout = W3.shape[0]
    w1f = W1.T * s1[None, :]                   # (Cin, Cc), BN1 scale folded
    w3f = W3.T * s3[None, :]                   # (Cc, Cout), BN3 scale folded

    def block_diag(m):
        ci, co = m.shape
        eye = jnp.eye(W, dtype=m.dtype)
        return jnp.einsum('wv,io->wivo', eye, m).reshape(W * ci, W * co)

    w1bd = block_diag(w1f)                     # (W*Cin, W*Cc)
    w3bd = block_diag(w3f)                     # (W*Cc, W*Cout)
    b1w = jnp.tile(b1, W).reshape(1, W * Cc)
    b3_eff = b3 + b2 @ w3f                     # BN2 bias pushed through conv3
    b3w = jnp.tile(b3_eff, W).reshape(1, W * Cout)

    # depthwise taps: BN2 scale folded, tiled across w, w-edge zeros folded in
    wd_s2 = Wd * s2[:, None, None]             # (Cc, 3, 3)
    w_idx = jnp.arange(W)
    rows = []
    for ky in range(3):
        for kx in range(3):
            lane_w = jnp.tile(wd_s2[:, ky, kx], W)            # (W*Cc,)
            if kx == 0:
                valid = (w_idx >= 1)
            elif kx == 2:
                valid = (w_idx <= W - 2)
            else:
                valid = jnp.ones((W,), dtype=bool)
            lane_w = lane_w * jnp.repeat(valid.astype(jnp.float32), Cc)
            rows.append(lane_w)
    wdw_wide = jnp.stack(rows, axis=0)         # (9, W*Cc)
    return w1bd, b1w, wdw_wide, w3bd, b3w


# ------------------------- wrapper (NHWC in / NHWC out) -------------------------

def dwconv2d_forward(x_nhwc, w1bd, b1w, wdw_wide, w3bd, b3w, *,
                     conv_channels, batch_block=4,
                     compute_dtype=jnp.float32,
                     vmem_limit_bytes=32 * 1024 * 1024):
    """x_nhwc: (N,H,W,Cin).  Folded lane-dense params from fold_params()."""
    N, H, W, Cin = x_nhwc.shape
    Cc = conv_channels
    WCin, WCc = w1bd.shape
    WCout = w3bd.shape[1]
    Cout = WCout // W
    assert WCin == W * Cin and WCc == W * Cc
    assert Cout == Cin, "identity shortcut requires in_channels == out_channels"
    assert N % batch_block == 0
    Nb = batch_block
    R = Nb * H
    PAD = 8
    assert R % 8 == 0 and WCin % 128 == 0 and WCc % 128 == 0 and WCout % 128 == 0

    cd = compute_dtype
    x2 = x_nhwc.reshape(N * H, WCin).astype(cd)     # lane-dense (N*H, W*Cin)

    kernel = functools.partial(dwconv2d_kernel, H=H, C=Cc, PAD=PAD)
    out = pl.pallas_call(
        kernel,
        out_shape=jax.ShapeDtypeStruct((N * H, WCout), cd),
        grid=(N // Nb,),
        in_specs=[
            pl.BlockSpec((R, WCin), lambda n: (n, 0)),
            pl.BlockSpec((WCin, WCc), lambda n: (0, 0)),
            pl.BlockSpec((1, WCc), lambda n: (0, 0)),
            pl.BlockSpec((9, WCc), lambda n: (0, 0)),
            pl.BlockSpec((WCc, WCout), lambda n: (0, 0)),
            pl.BlockSpec((1, WCout), lambda n: (0, 0)),
        ],
        out_specs=pl.BlockSpec((R, WCout), lambda n: (n, 0)),
        scratch_shapes=[pltpu.VMEM((R + 2 * PAD, WCc), jnp.float32)],
        compiler_params=pltpu.CompilerParams(
            dimension_semantics=("parallel",),
            vmem_limit_bytes=vmem_limit_bytes),
    )(x2, w1bd.astype(cd), b1w.astype(jnp.float32),
      wdw_wide.astype(jnp.float32), w3bd.astype(cd), b3w.astype(jnp.float32))
    return out.reshape(N, H, W, Cout)


# ------------------------- reference (plain JAX, NCHW, unfolded) -------------------------

def ref_forward(x, W1, Wd, W3, s1, b1, s2, b2, s3, b3):
    N, Cin, H, W = x.shape
    t = jnp.einsum('nihw,oi->nohw', x, W1)
    t = jnp.maximum(t * s1[None, :, None, None] + b1[None, :, None, None], 0.0)
    tp = jnp.pad(t, ((0, 0), (0, 0), (1, 1), (1, 1)))
    acc = jnp.zeros_like(t)
    for dy in range(3):
        for dx in range(3):
            acc = acc + tp[:, :, dy:dy + H, dx:dx + W] * Wd[None, :, dy, dx, None, None]
    u = acc * s2[None, :, None, None] + b2[None, :, None, None]
    y = jnp.einsum('nihw,oi->nohw', u, W3)
    y = y * s3[None, :, None, None] + b3[None, :, None, None]
    return jnp.maximum(y + x, 0.0)


# ------------------------- main -------------------------

if __name__ == "__main__":
    N, Cin, H, W = 16, 32, 16, 16
    Cout = Cin          # default: out_channels == in_channels, stride=1 -> identity shortcut
    Cc = Cout           # reduction = 1
    eps = 1e-5

    key = jax.random.PRNGKey(0)
    ks = jax.random.split(key, 16)

    x_nchw = jax.random.normal(ks[0], (N, Cin, H, W), jnp.float32)
    x_nhwc = jnp.transpose(x_nchw, (0, 2, 3, 1))   # one-time boundary layout change

    # PyTorch-shaped weights (kernel dims squeezed), deterministic init
    W1 = 0.1 * jax.random.normal(ks[1], (Cc, Cin), jnp.float32)      # conv1: (Cc, Cin, 1, 1)
    Wd = 0.1 * jax.random.normal(ks[2], (Cc, 3, 3), jnp.float32)     # depth: (Cc, 1, 3, 3)
    W3 = 0.1 * jax.random.normal(ks[3], (Cout, Cc), jnp.float32)     # conv3: (Cout, Cc, 1, 1)

    def bn_fold(kg, kb, km, kv, C):
        gamma = jax.random.uniform(kg, (C,), jnp.float32, 0.5, 1.5)
        beta = 0.1 * jax.random.normal(kb, (C,), jnp.float32)
        mean = 0.1 * jax.random.normal(km, (C,), jnp.float32)
        var = jax.random.uniform(kv, (C,), jnp.float32, 0.5, 1.5)
        scale = gamma / jnp.sqrt(var + eps)
        bias = beta - mean * scale
        return scale, bias

    s1, b1 = bn_fold(ks[4], ks[5], ks[6], ks[7], Cc)
    s2, b2 = bn_fold(ks[8], ks[9], ks[10], ks[11], Cc)
    s3, b3 = bn_fold(ks[12], ks[13], ks[14], ks[15], Cout)

    ref = jax.block_until_ready(
        ref_forward(x_nchw, W1, Wd, W3, s1, b1, s2, b2, s3, b3))
    ref_nhwc = jnp.transpose(ref, (0, 2, 3, 1))

    params = fold_params(W1, Wd, W3, s1, b1, s2, b2, s3, b3, W)

    # f32 path (v5e keeps all VPU math in f32); grid = 4 steps (2 per v7x core)
    out = dwconv2d_forward(x_nhwc, *params, conv_channels=Cc,
                           batch_block=4, compute_dtype=jnp.float32)
    out = jax.block_until_ready(out)
    assert out.shape == (N, H, W, Cout)
    assert jnp.allclose(out, ref_nhwc, rtol=2e-3, atol=2e-3), \
        float(jnp.max(jnp.abs(out - ref_nhwc)))

    # bf16 activation/matmul path (v6e/v7x): bigger batch block, f32 MXU accum
    out_bf16 = dwconv2d_forward(x_nhwc, *params, conv_channels=Cc,
                                batch_block=8, compute_dtype=jnp.bfloat16)
    out_bf16 = jax.block_until_ready(out_bf16)
    assert jnp.allclose(out_bf16.astype(jnp.float32), ref_nhwc,
                        rtol=3e-2, atol=5e-2), \
        float(jnp.max(jnp.abs(out_bf16.astype(jnp.float32) - ref_nhwc)))

    print("KERNEL_OK")
</pallas_src>

<mosaic_0001>
module attributes {stable_mosaic.version = 11 : i64} {
  func.func @dwconv2d_kernel(%arg0: i32, %arg1: memref<64x512xf32, #tpu.memory_space<vmem>>, %arg2: memref<512x512xf32, #tpu.memory_space<vmem>>, %arg3: memref<1x512xf32, #tpu.memory_space<vmem>>, %arg4: memref<9x512xf32, #tpu.memory_space<vmem>>, %arg5: memref<512x512xf32, #tpu.memory_space<vmem>>, %arg6: memref<1x512xf32, #tpu.memory_space<vmem>>, %arg7: memref<64x512xf32, #tpu.memory_space<vmem>>, %arg8: memref<80x512xf32, #tpu.memory_space<vmem>>) attributes {dimension_semantics = [#tpu.dimension_semantics<parallel>], iteration_bounds = array<i64: 4>, scalar_prefetch = 0 : i64, scratch_operands = 1 : i64, tpu.core_type = #tpu.core_type<tc>, window_params = [{transform_indices = @transform_0, window_bounds = array<i64: 64, 512>}, {pipeline_mode = #tpu.pipeline_mode<synchronous>, transform_indices = @transform_1, window_bounds = array<i64: 512, 512>}, {pipeline_mode = #tpu.pipeline_mode<synchronous>, transform_indices = @transform_2, window_bounds = array<i64: 1, 512>}, {pipeline_mode = #tpu.pipeline_mode<synchronous>, transform_indices = @transform_3, window_bounds = array<i64: 9, 512>}, {pipeline_mode = #tpu.pipeline_mode<synchronous>, transform_indices = @transform_4, window_bounds = array<i64: 512, 512>}, {pipeline_mode = #tpu.pipeline_mode<synchronous>, transform_indices = @transform_5, window_bounds = array<i64: 1, 512>}, {transform_indices = @transform_6, window_bounds = array<i64: 64, 512>}]} {
    %c0 = arith.constant 0 : index
    %c0_0 = arith.constant 0 : index
    %0 = vector.load %arg1[%c0, %c0_0] : memref<64x512xf32, #tpu.memory_space<vmem>>, vector<64x512xf32>
    %c0_1 = arith.constant 0 : index
    %c0_2 = arith.constant 0 : index
    %1 = vector.load %arg2[%c0_1, %c0_2] : memref<512x512xf32, #tpu.memory_space<vmem>>, vector<512x512xf32>
    %cst = arith.constant dense<0.000000e+00> : vector<64x512xf32>
    %2 = tpu.matmul %0, %1, %cst {dimension_numbers = #tpu.dot_dimension_numbers<[1], [0], [0], [1], [0, 0, 1, 1], [], []>} : vector<64x512xf32>, vector<512x512xf32>, vector<64x512xf32> -> vector<64x512xf32>
    %c0_3 = arith.constant 0 : index
    %c0_4 = arith.constant 0 : index
    %3 = vector.load %arg3[%c0_3, %c0_4] : memref<1x512xf32, #tpu.memory_space<vmem>>, vector<1x512xf32>
    %4 = vector.broadcast %3 : vector<1x512xf32> to vector<64x512xf32>
    %5 = arith.addf %2, %4 : vector<64x512xf32>
    %cst_5 = arith.constant 0.000000e+00 : f32
    %6 = vector.broadcast %cst_5 : f32 to vector<64x512xf32>
    %7 = arith.maximumf %5, %6 : vector<64x512xf32>
    %cst_6 = arith.constant 0.000000e+00 : f32
    %8 = vector.broadcast %cst_6 : f32 to vector<8x512xf32>
    %c0_7 = arith.constant 0 : index
    %c0_8 = arith.constant 0 : index
    %9 = vector.load %arg8[%c0_7, %c0_8] : memref<80x512xf32, #tpu.memory_space<vmem>>, vector<8x512xf32>
    tpu.vector_store %arg8[%c0_7, %c0_8], %8 {strides = array<i32>} : memref<80x512xf32, #tpu.memory_space<vmem>>, vector<8x512xf32>,
    %cst_9 = arith.constant 0.000000e+00 : f32
    %10 = vector.broadcast %cst_9 : f32 to vector<8x512xf32>
    %c72 = arith.constant 72 : index
    %c0_10 = arith.constant 0 : index
    %11 = vector.load %arg8[%c72, %c0_10] : memref<80x512xf32, #tpu.memory_space<vmem>>, vector<8x512xf32>
    tpu.vector_store %arg8[%c72, %c0_10], %10 {strides = array<i32>} : memref<80x512xf32, #tpu.memory_space<vmem>>, vector<8x512xf32>,
    %c8 = arith.constant 8 : index
    %c0_11 = arith.constant 0 : index
    %12 = vector.load %arg8[%c8, %c0_11] : memref<80x512xf32, #tpu.memory_space<vmem>>, vector<64x512xf32>
    tpu.vector_store %arg8[%c8, %c0_11], %7 {strides = array<i32>} : memref<80x512xf32, #tpu.memory_space<vmem>>, vector<64x512xf32>,
    %c0_12 = arith.constant 0 : index
    %c0_13 = arith.constant 0 : index
    %13 = vector.load %arg4[%c0_12, %c0_13] : memref<9x512xf32, #tpu.memory_space<vmem>>, vector<9x512xf32>
    %14 = tpu.iota {dimensions = array<i32: 0>} : vector<64x1xi32>
    %c16_i32 = arith.constant 16 : i32
    %c0_i32 = arith.constant 0 : i32
    %15 = arith.cmpi eq, %c16_i32, %c0_i32 : i32
    %c1_i32 = arith.constant 1 : i32
    %16 = arith.select %15, %c1_i32, %c16_i32 : i32
    %17 = vector.broadcast %16 : i32 to vector<64x1xi32>
    %18 = arith.remsi %14, %17 : vector<64x1xi32>
    %c0_i32_14 = arith.constant 0 : i32
    %19 = vector.broadcast %c0_i32_14 : i32 to vector<64x1xi32>
    %20 = arith.cmpi ne, %18, %19 : vector<64x1xi32>
    %c0_i32_15 = arith.constant 0 : i32
    %21 = vector.broadcast %c0_i32_15 : i32 to vector<64x1xi32>
    %22 = arith.cmpi slt, %18, %21 : vector<64x1xi32>
    %c0_i32_16 = arith.constant 0 : i32
    %23 = arith.cmpi slt, %16, %c0_i32_16 : i32
    %24 = vector.broadcast %23 : i1 to vector<64x1xi1>
    %25 = vector.broadcast %24 : vector<64x1xi1> to vector<64x1xi1>
    %26 = arith.xori %22, %25 : vector<64x1xi1>
    %27 = arith.andi %26, %20 : vector<64x1xi1>
    %28 = vector.broadcast %16 : i32 to vector<64x1xi32>
    %29 = arith.addi %18, %28 : vector<64x1xi32>
    %30 = arith.select %27, %29, %18 : vector<64x1xi1>, vector<64x1xi32>
    %cst_17 = arith.constant 0.000000e+00 : f32
    %31 = vector.broadcast %cst_17 : f32 to vector<64x512xf32>
    %c7 = arith.constant 7 : index
    %c0_18 = arith.constant 0 : index
    %32 = vector.load %arg8[%c7, %c0_18] : memref<80x512xf32, #tpu.memory_space<vmem>>, vector<64x512xf32>
    %33 = vector.extract_strided_slice %13 {offsets = [1, 0], sizes = [1, 512], strides = [1, 1]} : vector<9x512xf32> to vector<1x512xf32>
    %34 = vector.broadcast %33 : vector<1x512xf32> to vector<64x512xf32>
    %35 = arith.mulf %32, %34 : vector<64x512xf32>
    %c480_i32 = arith.constant 480 : i32
    %36 = tpu.dynamic_rotate %32 by %c480_i32 dim 1 : vector<64x512xf32>, i32 -> vector<64x512xf32>
    %37 = vector.extract_strided_slice %13 {offsets = [2, 0], sizes = [1, 512], strides = [1, 1]} : vector<9x512xf32> to vector<1x512xf32>
    %38 = vector.broadcast %37 : vector<1x512xf32> to vector<64x512xf32>
    %39 = arith.mulf %36, %38 : vector<64x512xf32>
    %40 = arith.addf %35, %39 : vector<64x512xf32>
    %c32_i32 = arith.constant 32 : i32
    %41 = tpu.dynamic_rotate %32 by %c32_i32 dim 1 : vector<64x512xf32>, i32 -> vector<64x512xf32>
    %42 = vector.extract_strided_slice %13 {offsets = [0, 0], sizes = [1, 512], strides = [1, 1]} : vector<9x512xf32> to vector<1x512xf32>
    %43 = vector.broadcast %42 : vector<1x512xf32> to vector<64x512xf32>
    %44 = arith.mulf %41, %43 : vector<64x512xf32>
    %45 = arith.addf %40, %44 : vector<64x512xf32>
    %c1_i32_19 = arith.constant 1 : i32
    %46 = vector.broadcast %c1_i32_19 : i32 to vector<64x1xi32>
    %47 = arith.cmpi sge, %30, %46 : vector<64x1xi32>
    %cst_20 = arith.constant 0.000000e+00 : f32
    %48 = vector.shape_cast %47 : vector<64x1xi1> to vector<64x1xi1>
    %49 = vector.broadcast %48 : vector<64x1xi1> to vector<64x512xi1>
    %50 = vector.broadcast %cst_20 : f32 to vector<64x512xf32>
    %51 = arith.select %49, %45, %50 : vector<64x512xi1>, vector<64x512xf32>
    %52 = arith.addf %31, %51 : vector<64x512xf32>
    %53 = vector.extract_strided_slice %13 {offsets = [4, 0], sizes = [1, 512], strides = [1, 1]} : vector<9x512xf32> to vector<1x512xf32>
    %54 = vector.broadcast %53 : vector<1x512xf32> to vector<64x512xf32>
    %55 = arith.mulf %7, %54 : vector<64x512xf32>
    %c480_i32_21 = arith.constant 480 : i32
    %56 = tpu.dynamic_rotate %7 by %c480_i32_21 dim 1 : vector<64x512xf32>, i32 -> vector<64x512xf32>
    %57 = vector.extract_strided_slice %13 {offsets = [5, 0], sizes = [1, 512], strides = [1, 1]} : vector<9x512xf32> to vector<1x512xf32>
    %58 = vector.broadcast %57 : vector<1x512xf32> to vector<64x512xf32>
    %59 = arith.mulf %56, %58 : vector<64x512xf32>
    %60 = arith.addf %55, %59 : vector<64x512xf32>
    %c32_i32_22 = arith.constant 32 : i32
    %61 = tpu.dynamic_rotate %7 by %c32_i32_22 dim 1 : vector<64x512xf32>, i32 -> vector<64x512xf32>
    %62 = vector.extract_strided_slice %13 {offsets = [3, 0], sizes = [1, 512], strides = [1, 1]} : vector<9x512xf32> to vector<1x512xf32>
    %63 = vector.broadcast %62 : vector<1x512xf32> to vector<64x512xf32>
    %64 = arith.mulf %61, %63 : vector<64x512xf32>
    %65 = arith.addf %60, %64 : vector<64x512xf32>
    %66 = arith.addf %52, %65 : vector<64x512xf32>
    %c9 = arith.constant 9 : index
    %c0_23 = arith.constant 0 : index
    %67 = vector.load %arg8[%c9, %c0_23] : memref<80x512xf32, #tpu.memory_space<vmem>>, vector<64x512xf32>
    %68 = vector.extract_strided_slice %13 {offsets = [7, 0], sizes = [1, 512], strides = [1, 1]} : vector<9x512xf32> to vector<1x512xf32>
    %69 = vector.broadcast %68 : vector<1x512xf32> to vector<64x512xf32>
    %70 = arith.mulf %67, %69 : vector<64x512xf32>
    %c480_i32_24 = arith.constant 480 : i32
    %71 = tpu.dynamic_rotate %67 by %c480_i32_24 dim 1 : vector<64x512xf32>, i32 -> vector<64x512xf32>
    %72 = vector.extract_strided_slice %13 {offsets = [8, 0], sizes = [1, 512], strides = [1, 1]} : vector<9x512xf32> to vector<1x512xf32>
    %73 = vector.broadcast %72 : vector<1x512xf32> to vector<64x512xf32>
    %74 = arith.mulf %71, %73 : vector<64x512xf32>
    %75 = arith.addf %70, %74 : vector<64x512xf32>
    %c32_i32_25 = arith.constant 32 : i32
    %76 = tpu.dynamic_rotate %67 by %c32_i32_25 dim 1 : vector<64x512xf32>, i32 -> vector<64x512xf32>
    %77 = vector.extract_strided_slice %13 {offsets = [6, 0], sizes = [1, 512], strides = [1, 1]} : vector<9x512xf32> to vector<1x512xf32>
    %78 = vector.broadcast %77 : vector<1x512xf32> to vector<64x512xf32>
    %79 = arith.mulf %76, %78 : vector<64x512xf32>
    %80 = arith.addf %75, %79 : vector<64x512xf32>
    %c14_i32 = arith.constant 14 : i32
    %81 = vector.broadcast %c14_i32 : i32 to vector<64x1xi32>
    %82 = arith.cmpi sle, %30, %81 : vector<64x1xi32>
    %cst_26 = arith.constant 0.000000e+00 : f32
    %83 = vector.shape_cast %82 : vector<64x1xi1> to vector<64x1xi1>
    %84 = vector.broadcast %83 : vector<64x1xi1> to vector<64x512xi1>
    %85 = vector.broadcast %cst_26 : f32 to vector<64x512xf32>
    %86 = arith.select %84, %80, %85 : vector<64x512xi1>, vector<64x512xf32>
    %87 = arith.addf %66, %86 : vector<64x512xf32>
    %c0_27 = arith.constant 0 : index
    %c0_28 = arith.constant 0 : index
    %88 = vector.load %arg5[%c0_27, %c0_28] : memref<512x512xf32, #tpu.memory_space<vmem>>, vector<512x512xf32>
    %cst_29 = arith.constant dense<0.000000e+00> : vector<64x512xf32>
    %89 = tpu.matmul %87, %88, %cst_29 {dimension_numbers = #tpu.dot_dimension_numbers<[1], [0], [0], [1], [0, 0, 1, 1], [], []>} : vector<64x512xf32>, vector<512x512xf32>, vector<64x512xf32> -> vector<64x512xf32>
    %c0_30 = arith.constant 0 : index
    %c0_31 = arith.constant 0 : index
    %90 = vector.load %arg6[%c0_30, %c0_31] : memref<1x512xf32, #tpu.memory_space<vmem>>, vector<1x512xf32>
    %91 = vector.broadcast %90 : vector<1x512xf32> to vector<64x512xf32>
    %92 = arith.addf %89, %91 : vector<64x512xf32>
    %93 = arith.addf %92, %0 : vector<64x512xf32>
    %cst_32 = arith.constant 0.000000e+00 : f32
    %94 = vector.broadcast %cst_32 : f32 to vector<64x512xf32>
    %95 = arith.maximumf %93, %94 : vector<64x512xf32>
    %c0_33 = arith.constant 0 : index
    %c0_34 = arith.constant 0 : index
    %96 = vector.load %arg7[%c0_33, %c0_34] : memref<64x512xf32, #tpu.memory_space<vmem>>, vector<64x512xf32>
    tpu.vector_store %arg7[%c0_33, %c0_34], %95 {strides = array<i32>} : memref<64x512xf32, #tpu.memory_space<vmem>>, vector<64x512xf32>,
    return
  }
  func.func @transform_0(%arg0: i32) -> (i32, i32) {
    %c0_i32 = arith.constant 0 : i32
    %c0_i32_0 = arith.constant 0 : i32
    return %arg0, %c0_i32 : i32, i32
  }
  func.func @transform_1(%arg0: i32) -> (i32, i32) {
    %c0_i32 = arith.constant 0 : i32
    %c0_i32_0 = arith.constant 0 : i32
    %c0_i32_1 = arith.constant 0 : i32
    return %c0_i32, %c0_i32_0 : i32, i32
  }
  func.func @transform_2(%arg0: i32) -> (i32, i32) {
    %c0_i32 = arith.constant 0 : i32
    %c0_i32_0 = arith.constant 0 : i32
    %c0_i32_1 = arith.constant 0 : i32
    return %c0_i32, %c0_i32_0 : i32, i32
  }
  func.func @transform_3(%arg0: i32) -> (i32, i32) {
    %c0_i32 = arith.constant 0 : i32
    %c0_i32_0 = arith.constant 0 : i32
    %c0_i32_1 = arith.constant 0 : i32
    return %c0_i32, %c0_i32_0 : i32, i32
  }
  func.func @transform_4(%arg0: i32) -> (i32, i32) {
    %c0_i32 = arith.constant 0 : i32
    %c0_i32_0 = arith.constant 0 : i32
    %c0_i32_1 = arith.constant 0 : i32
    return %c0_i32, %c0_i32_0 : i32, i32
  }
  func.func @transform_5(%arg0: i32) -> (i32, i32) {
    %c0_i32 = arith.constant 0 : i32
    %c0_i32_0 = arith.constant 0 : i32
    %c0_i32_1 = arith.constant 0 : i32
    return %c0_i32, %c0_i32_0 : i32, i32
  }
  func.func @transform_6(%arg0: i32) -> (i32, i32) {
    %c0_i32 = arith.constant 0 : i32
    %c0_i32_0 = arith.constant 0 : i32
    return %arg0, %c0_i32 : i32, i32
  }
}

</mosaic_0001>

<bundles_post_ra>
// kernel: tpu_custom_call.1
= control target key start
LH: loop header
LB: loop body
LE: loop exit
PB: predicated region body
PF: predicated region fallthrough
CT: control target
= control target key end

     0   :  { %11 = vsyncpa [#allocation4], 0  ;;  %s10157_s0 = inlined_call_operand.hbm [shape: f32[256,512], index: 0, kind: input, shape index: {}]   ;;  %s10158_s1 = inlined_call_operand.hbm [shape: f32[512,512], index: 1, kind: input, shape index: {}]   ;;  %s10159_s2 = inlined_call_operand.hbm [shape: f32[1,512], index: 2, kind: input, shape index: {}]   ;;  %s10160_s3 = inlined_call_operand.hbm [shape: f32[9,512], index: 3, kind: input, shape index: {}]   ;;  %s10161_s4 = inlined_call_operand.hbm [shape: f32[512,512], index: 4, kind: input, shape index: {}]   ;;  %s10162_s5 = inlined_call_operand.vmem [shape: f32[1,512], index: 5, kind: input, shape index: {}]   ;;  %s10163_s6 = inlined_call_operand.hbm [shape: f32[256,512], index: 6, kind: output, shape index: {}]  }
   0x1   :  { %13 = vsyncpa [#allocation4 + $0x1], 0 }
   0x2   :  { %14 = vsyncpa [#allocation7], 0 }
   0x3   :  { %15 = vsyncpa [#allocation10], 0 }
   0x4   :  { %16 = vsyncpa [#allocation5], 0 }
   0x5   :  { %18 = vsyncpa [#allocation5 + $0x1], 0  ;;  %s5233_s21 = smov 0   ;;  %s5235_s22 = smov 0  }
   0x6   :  { %s5237_s23 = smov 0   ;;  %s5239_s24 = smov 0  }
   0x7 LB: > { %s5254_s25 = sadd.s32 4294967295, %s5184_s24   ;;  %s4794_s26 = sadd.s32 4294967294, %s5184_s24   ;;  %s5184_s24 = sphi %s5239_s24, %s11582_s24   ;;  %s5180_s23 = sphi %s5237_s23, %s11581_s23   ;;  %s5176_s22 = sphi %s5235_s22, %s11580_s22   ;;  %s5172_s21 = sphi %s5233_s21, %s11579_s21  }
   0x8   : > { %p44_p0 = scmp.ne.s32.totalorder %s5176_s22, %s5172_s21  ;;  %p10164_p1 = scmp.eq.s32.totalorder %s5254_s25, 0 }
   0x9   : > { %p179_p3 = scmp.eq.s32.totalorder %s4794_s26, 3  ;;  %p4795_p5 = scmp.ge.s32.totalorder %s5184_s24, 1 }
   0xa   : > { %p5263_p4 = por %p10164_p1, %p44_p0  ;;  %p186_p7 = scmp.lt.s32.totalorder %s5184_s24, 5 }
   0xb   : > { %p5268_p6 = por %p179_p3, %p44_p0  ;;  %s5186_s30 = smov [#allocation6]  }
   0xc   : > { %s10455_s27 = scalar_select %p5263_p4, 1, 0 }
   0xd   : > { %s10456_s28 = scalar_select %p5268_p6, 1, 0 }
   0xe   : > { %p5273_p8 = pnand %p4795_p5, %p186_p7  ;;  %s198_s7 = sshll.u32 %s5186_s30, 4  ;;  %s199_s7 = int_to_ptr.vmem [resolvable:$true] %s198_s7 }
   0xf   : > { %s5187_s9 = smov [#allocation9]   ;;  %s5188_s11 = smov [#allocation8]  }
  0x10   : > { %s10457_s29 = scalar_select %p5273_p8, 1, 0 }
  0x11   : > { %p4846_p9 = pneg %p5273_p8  ;;  %s222_s10 = sshll.u32 %s5187_s9, 4  ;;  %s223_s10 = int_to_ptr.vmem [resolvable:$true] %s222_s10 }
  0x12   : > { %s212_s12 = sshll.u32 %s5188_s11, 4  ;;  %s4991_s13 = scalar_lea.vmem %s199_s7, 32768  ;;  %s213_s12 = int_to_ptr.vmem [resolvable:$true] %s212_s12 }
  0x13   : > { %p5281_p10 = pnand %p4846_p9, %p10164_p1  ;;  %p4992_p12 = scmp.ne.s32.totalorder %s199_s7, %s4991_s13 }
  0x14   : > { %p4999_p3 = scmp.lt.s32.totalorder %s199_s7, %s199_s7  ;;  %p5000_p5 = scmp.lt.s32.totalorder %s4991_s13, %s4991_s13 }
  0x15   : > { %p4982_p11 = pneg %p5281_p10 }
  0x16   : > { %p5001_p7 = por %p5000_p5, %p4999_p3 }
  0x17   : > { %p4994_p13 = pnand %p4992_p12, %p4982_p11 }
  0x19   : > { %p4995_p0 = pneg %p4994_p13 }
  0x1b   : > { %p5002_p9 = pnand %p5001_p7, %p4995_p0 }
  0x1d   : > { %5005 = shalt.err (!%p5002_p9)
}
  0x1e   : > { %s10165_s14 = smov 512   ;;  %s10166_s15 = smov 32  }
  0x1f   : > { %4849 = dma.hbm_to_vmem [thread:$0]  (!%p5281_p10), %s10158_s1, 32768, %s199_s7, [#allocation7], %s10165_s14, %s10165_s14, %s10166_s15  }
  0x20   : > { %s5017_s18 = scalar_lea.vmem %s223_s10, 1024  ;;  %p5025_p0 = scmp.lt.s32.totalorder %s223_s10, %s223_s10 }
  0x21   : > { %p5018_p12 = scmp.ne.s32.totalorder %s223_s10, %s5017_s18  ;;  %p5026_p5 = scmp.lt.s32.totalorder %s5017_s18, %s5017_s18 }
  0x23   : > { %p5020_p13 = pnand %p5018_p12, %p4982_p11  ;;  %p5027_p7 = por %p5026_p5, %p5025_p0 }
  0x25   : > { %p5021_p3 = pneg %p5020_p13 }
  0x27   : > { %p5028_p9 = pnand %p5027_p7, %p5021_p3 }
  0x29   : > { %5031 = shalt.err (!%p5028_p9)
}
  0x2a   : > { %4855 = dma.hbm_to_vmem [thread:$0]  (!%p5281_p10), %s10160_s3, 1024, %s223_s10, [#allocation10], %s10165_s14, %s10165_s14, %s10166_s15  }
  0x2b   : > { %s5043_s26 = scalar_lea.vmem %s213_s12, 64  ;;  %p5051_p0 = scmp.lt.s32.totalorder %s213_s12, %s213_s12 }
  0x2c   : > { %p5044_p1 = scmp.ne.s32.totalorder %s213_s12, %s5043_s26  ;;  %p5052_p3 = scmp.lt.s32.totalorder %s5043_s26, %s5043_s26 }
  0x2e   : > { %p5046_p12 = pnand %p5044_p1, %p4982_p11  ;;  %p5053_p5 = por %p5052_p3, %p5051_p0 }
  0x30   : > { %p5047_p13 = pneg %p5046_p12 }
  0x32   : > { %p5054_p7 = pnand %p5053_p5, %p5047_p13 }
  0x34   : > { %5057 = shalt.err (!%p5054_p7)
}
  0x35   : > { %4852 = dma.hbm_to_vmem [thread:$0]  (!%p5281_p10), %s10159_s2, 64, %s213_s12, [#allocation7]  }
  0x36   : > { %s5191_s9 = smov [#allocation11]  }
  0x37   : > { %s235_s10 = sshll.u32 %s5191_s9, 4  ;;  %s236_s10 = int_to_ptr.vmem [resolvable:$true] %s235_s10 }
  0x38   : > { %s5069_s11 = scalar_lea.vmem %s236_s10, 32768  ;;  %p5077_p2 = scmp.lt.s32.totalorder %s236_s10, %s236_s10 }
  0x39   : > { %p5070_p9 = scmp.ne.s32.totalorder %s236_s10, %s5069_s11  ;;  %p5078_p0 = scmp.lt.s32.totalorder %s5069_s11, %s5069_s11 }
  0x3b   : > { %p5072_p1 = pnand %p5070_p9, %p4982_p11  ;;  %p5079_p13 = por %p5078_p0, %p5077_p2 }
  0x3d   : > { %p5073_p12 = pneg %p5072_p1 }
  0x3f   : > { %p5080_p3 = pnand %p5079_p13, %p5073_p12 }
  0x41   : > { %5083 = shalt.err (!%p5080_p3)
}
  0x42   : > { %4858 = dma.hbm_to_vmem [thread:$0]  (!%p5281_p10), %s10161_s4, 32768, %s236_s10, [#allocation10], %s10165_s14, %s10165_s14, %s10166_s15  }
  0x43   : > { %s5329_s16 = sadd.s32 1, %s5184_s24   ;;  %s31_s8 = sadd.s32 1, %s5180_s23 }
  0x44   : > { %s28_s17 = ssub.s32 %s5184_s24, %s5329_s16  ;;  %p38_p2 = scmp.ne.s32.totalorder %s5180_s23, %s5176_s22 }
  0x45   : > { %p29_p11 = scmp.eq.s32.totalorder %s28_s17, 0  ;;  %p39_p5 = scmp.eq.s32.totalorder %s5184_s24, 0 }
  0x46   : > { %p10459_p7 = scmp.eq.s32.totalorder %s5254_s25, 3  ;;  %p4871_p1 = scmp.lt.s32.totalorder %s5184_s24, 4 }
  0x47   : > { %s5345_s19 = scalar_select %p29_p11, %s5180_s23, %s31_s8  }
  0x48   : > { %p5339_p9 = por %p10459_p7, %p38_p2  ;;  %p40_p12 = por %p39_p5, %p38_p2 }
  0x49   : > { %s252_s20 = sand.u32 1, %s5180_s23   ;;  %s4823_s30 = sshll.u32 %s5184_s24, 12 }
  0x4a   : > { %s10460_s18 = scalar_select %p5339_p9, 1, 0 }
  0x4b   : > { %s4801_s26 = sshll.u32 %s252_s20, 8  ;;  %s5352_s10 = scalar_lea.hbm %s10157_s0, %s4823_s30 }
  0x4c   : > { %s256_s11 = scalar_lea.vmem [#allocation3], %s4801_s26  ;;  %p5356_p10 = pnand %p4871_p1, %p40_p12 }
  0x4d   : > { %s264_s12 = sshll.u32 %s256_s11, 4  ;;  %s5360_s8 = scalar_lea.sflag [#allocation4], %s252_s20  ;;  %s5354_s12 = int_to_ptr.vmem [resolvable:$true] %s264_s12 }
  0x4e   : > { %s5084_s17 = scalar_lea.hbm %s5352_s10, 4096  ;;  %p5086_p13 = pneg %p5356_p10 }
  0x4f   : > { %p5085_p0 = scmp.ne.s32.totalorder %s5352_s10, %s5084_s17  ;;  %s5089_s26 = scalar_lea.hbm %s10157_s0, 16384 }
  0x50   : > { %p5090_p11 = scmp.lt.s32.totalorder %s5352_s10, %s10157_s0  ;;  %p5091_p5 = scmp.lt.s32.totalorder %s5089_s26, %s5084_s17 }
  0x51   : > { %p5087_p3 = pnand %p5086_p13, %p5085_p0 }
  0x52   : > { %p5092_p7 = por %p5091_p5, %p5090_p11 }
  0x53   : > { %p5088_p2 = pneg %p5087_p3 }
  0x55   : > { %p5093_p1 = pnand %p5092_p7, %p5088_p2 }
  0x57   : > { %5096 = shalt.err (!%p5093_p1)
}
  0x58   : > { %s5097_s20 = scalar_lea.vmem %s5354_s12, 4096  ;;  %s5192_s14 = smov [#allocation3]  }
  0x59   : > { %p5098_p12 = scmp.ne.s32.totalorder %s5354_s12, %s5097_s20  ;;  %s5102_s15 = sshll.u32 %s5192_s14, 4  ;;  %s5103_s15 = int_to_ptr.vmem [resolvable:$false] %s5102_s15 }
  0x5a   : > { %s5104_s30 = scalar_lea.vmem %s5103_s15, 8192  ;;  %p5105_p3 = scmp.lt.s32.totalorder %s5354_s12, %s5103_s15 }
  0x5b   : > { %p5100_p6 = pnand %p5098_p12, %p5086_p13  ;;  %p5106_p9 = scmp.lt.s32.totalorder %s5104_s30, %s5097_s20 }
  0x5d   : > { %p5101_p0 = pneg %p5100_p6  ;;  %p5107_p4 = por %p5106_p9, %p5105_p3 }
  0x5f   : > { %p5108_p8 = pnand %p5107_p4, %p5101_p0 }
  0x61   : > { %5111 = shalt.err (!%p5108_p8)
}
  0x62   : > { %s10462_s17 = smov 32   ;;  %s10463_s7 = smov 512  }
  0x63   : > { %4862 = dma.hbm_to_vmem [thread:$0]  (!%p5356_p10), %s5352_s10, 4096, %s5354_s12, %s5360_s8, %s10463_s7, %s10463_s7, %s10462_s17  }
  0x64   : > { %p10464_p6 = scmp.ne.s32.totalorder %s10457_s29, 0 }
  0x66   : > { %276 = sbr.rel (%p10464_p6) target bundleno = 1265 (0x4f1), region = 44 }
  0x6b   : > { %s5387_s14 = sand.u32 1, %s5176_s22   ;;  %p10465_p4 = scmp.ne.s32.totalorder %s10455_s27, 0 }
  0x6c   : > { %s4806_s15 = sshll.u32 %s5387_s14, 8  ;;  %s279_s26 = scalar_lea.sflag [#allocation4], %s5387_s14 }
  0x6d   : > { %s5393_s13 = scalar_lea.vmem [#allocation3], %s4806_s15 }
  0x6e   : > { %5155 = dma.done.wait (%p10465_p4), %s279_s26, 4096  }
  0x6f   : > { %5157 = vsyncadd (%p10465_p4), %s279_s26, 4294963200  ;;  %p10466_p8 = scmp.eq.s32.totalorder %s5254_s25, 0 }
  0x71   : > { %5159 = dma.done.wait (%p10466_p8), [#allocation7], 32832   ;;  %p10467_p9 = pmov %p10466_p8 }
  0x72   : > { %p10468_p10 = pmov %p10466_p8 }
  0x73   : > { %5161 = vsyncadd (%p10467_p9), [#allocation7], 4294934464 }
  0x74   : > { %5163 = dma.done.wait (%p10468_p10), [#allocation10], 33792   ;;  %p10469_p13 = pmov %p10466_p8 }
  0x75   : > { %v422_v0 = vld [vmem:[#allocation6 + $0x1e8] sm:$0xff]  ;;  %v421_v2 = vld [vmem:[#allocation6 + $0x1e0] sm:$0xff]  ;;  %s5194_s27 = smov 96   ;;  %s5195_s29 = smov 32   ;;  %vm1400_vm0 = vcmask 1040384   ;;  %vm1680_vm1 = vcmask 1046528  }
  0x76   : > { %5165 = vsyncadd (%p10469_p13), [#allocation10], 4294933504  ;;  %v550_v1 = vld [vmem:[#allocation6 + $0x5e8] sm:$0xff]  ;;  %639 = vmatprep.subr.mxu0 %v422_v0  ;;  %v549_v3 = vld [vmem:[#allocation6 + $0x5e0] sm:$0xff]  ;;  %s10005_s8 = scalar_lea.vmem [#allocation12], %s4806_s15  ;;  %s4825_s9 = sshll.u32 %s5254_s25, 12 }
  0x77   : > { %752 = vmatprep.subr.mxu1 %v550_v1  ;;  %v418_v4 = vld [vmem:[#allocation6 + $0x1c8] sm:$0xff]  ;;  %640 = vmatpush1.msra.mxu0 %v421_v2  ;;  %v417_v6 = vld [vmem:[#allocation6 + $0x1c0] sm:$0xff]  ;;  %s4683_s11 = sshll.u32 %s10005_s8, 4  ;;  %s10110_s17 = scalar_lea.hbm %s10163_s6, %s4825_s9  ;;  %s10113_s11 = int_to_ptr.vmem [resolvable:$true] %s4683_s11 }
  0x78   : > { %v546_v5 = vld [vmem:[#allocation6 + $0x5c8] sm:$0xff]  ;;  %753 = vmatpush1.msra.mxu1 %v549_v3  ;;  %v545_v7 = vld [vmem:[#allocation6 + $0x5c0] sm:$0xff]  ;;  %641 = vmatprep.subr.mxu0 %v418_v4  ;;  %s4669_s7 = scalar_lea.sflag [#allocation5], %s5387_s14  ;;  %s5112_s25 = scalar_lea.vmem %s10113_s11, 4096 }
  0x79   : > { %v414_v8 = vld [vmem:[#allocation6 + $0x1a8] sm:$0xff]  ;;  %754 = vmatprep.subr.mxu1 %v546_v5  ;;  %v413_v10 = vld [vmem:[#allocation6 + $0x1a0] sm:$0xff]  ;;  %642 = vmatpush1.msra.mxu0 %v417_v6  ;;  %p5113_p2 = scmp.ne.s32.totalorder %s10113_s11, %s5112_s25  ;;  %p11577_p11 = scmp.ne.s32.totalorder %s10460_s18, 0 }
  0x7a   : > { %v542_v9 = vld [vmem:[#allocation6 + $0x5a8] sm:$0xff]  ;;  %v541_v11 = vld [vmem:[#allocation6 + $0x5a0] sm:$0xff]  ;;  %755 = vmatpush1.msra.mxu1 %v545_v7  ;;  %643 = vmatprep.subr.mxu0 %v414_v8  ;;  %s5196_s15 = smov [#allocation12]  }
  0x7b   : > { %v410_v12 = vld [vmem:[#allocation6 + $0x188] sm:$0xff]  ;;  %756 = vmatprep.subr.mxu1 %v542_v9  ;;  %v409_v14 = vld [vmem:[#allocation6 + $0x180] sm:$0xff]  ;;  %644 = vmatpush1.msra.mxu0 %v413_v10  ;;  %p5114_p5 = pnand %p5113_p2, %p11577_p11  ;;  %s5116_s26 = sshll.u32 %s5196_s15, 4  ;;  %s5117_s26 = int_to_ptr.vmem [resolvable:$false] %s5116_s26 }
  0x7c   : > { %v538_v13 = vld [vmem:[#allocation6 + $0x588] sm:$0xff]  ;;  %v537_v15 = vld [vmem:[#allocation6 + $0x580] sm:$0xff]  ;;  %757 = vmatpush1.msra.mxu1 %v541_v11  ;;  %645 = vmatprep.subr.mxu0 %v410_v12  ;;  %p5119_p1 = scmp.lt.s32.totalorder %s10113_s11, %s5117_s26 }
  0x7d   : > { %v406_v16 = vld [vmem:[#allocation6 + $0x168] sm:$0xff]  ;;  %758 = vmatprep.subr.mxu1 %v538_v13  ;;  %v405_v18 = vld [vmem:[#allocation6 + $0x160] sm:$0xff]  ;;  %646 = vmatpush1.msra.mxu0 %v409_v14  ;;  %p5115_p7 = pneg %p5114_p5 }
  0x7e   : > { %v534_v17 = vld [vmem:[#allocation6 + $0x568] sm:$0xff]  ;;  %v533_v19 = vld [vmem:[#allocation6 + $0x560] sm:$0xff]  ;;  %759 = vmatpush1.msra.mxu1 %v537_v15  ;;  %647 = vmatprep.subr.mxu0 %v406_v16 }
  0x7f   : > { %v402_v20 = vld [vmem:[#allocation6 + $0x148] sm:$0xff]  ;;  %760 = vmatprep.subr.mxu1 %v534_v17  ;;  %v401_v22 = vld [vmem:[#allocation6 + $0x140] sm:$0xff]  ;;  %648 = vmatpush1.msra.mxu0 %v405_v18 }
  0x80   : > { %v530_v21 = vld [vmem:[#allocation6 + $0x548] sm:$0xff]  ;;  %v529_v23 = vld [vmem:[#allocation6 + $0x540] sm:$0xff]  ;;  %761 = vmatpush1.msra.mxu1 %v533_v19  ;;  %649 = vmatprep.subr.mxu0 %v402_v20 }
  0x81   : > { %v398_v24 = vld [vmem:[#allocation6 + $0x128] sm:$0xff]  ;;  %762 = vmatprep.subr.mxu1 %v530_v21  ;;  %v397_v26 = vld [vmem:[#allocation6 + $0x120] sm:$0xff]  ;;  %650 = vmatpush1.msra.mxu0 %v401_v22 }
  0x82   : > { %v526_v25 = vld [vmem:[#allocation6 + $0x528] sm:$0xff]  ;;  %v525_v27 = vld [vmem:[#allocation6 + $0x520] sm:$0xff]  ;;  %763 = vmatpush1.msra.mxu1 %v529_v23  ;;  %651 = vmatprep.subr.mxu0 %v398_v24 }
  0x83   : > { %v394_v28 = vld [vmem:[#allocation6 + $0x108] sm:$0xff]  ;;  %764 = vmatprep.subr.mxu1 %v526_v25  ;;  %v393_v30 = vld [vmem:[#allocation6 + $0x100] sm:$0xff]  ;;  %652 = vmatpush1.msra.mxu0 %v397_v26 }
  0x84   : > { %v522_v29 = vld [vmem:[#allocation6 + $0x508] sm:$0xff]  ;;  %v521_v31 = vld [vmem:[#allocation6 + $0x500] sm:$0xff]  ;;  %765 = vmatpush1.msra.mxu1 %v525_v27  ;;  %653 = vmatprep.subr.mxu0 %v394_v28 }
  0x85   : > { %v390_v32 = vld [vmem:[#allocation6 + $0xe8] sm:$0xff]  ;;  %766 = vmatprep.subr.mxu1 %v522_v29  ;;  %v389_v34 = vld [vmem:[#allocation6 + $0xe0] sm:$0xff]  ;;  %654 = vmatpush1.msra.mxu0 %v393_v30 }
  0x86   : > { %v518_v33 = vld [vmem:[#allocation6 + $0x4e8] sm:$0xff]  ;;  %v517_v35 = vld [vmem:[#allocation6 + $0x4e0] sm:$0xff]  ;;  %767 = vmatpush1.msra.mxu1 %v521_v31  ;;  %655 = vmatprep.subr.mxu0 %v390_v32 }
  0x87   : > { %v386_v36 = vld [vmem:[#allocation6 + $0xc8] sm:$0xff]  ;;  %768 = vmatprep.subr.mxu1 %v518_v33  ;;  %v385_v38 = vld [vmem:[#allocation6 + $0xc0] sm:$0xff]  ;;  %656 = vmatpush1.msra.mxu0 %v389_v34 }
  0x88   : > { %v514_v37 = vld [vmem:[#allocation6 + $0x4c8] sm:$0xff]  ;;  %v513_v39 = vld [vmem:[#allocation6 + $0x4c0] sm:$0xff]  ;;  %769 = vmatpush1.msra.mxu1 %v517_v35  ;;  %657 = vmatprep.subr.mxu0 %v386_v36 }
  0x89   : > { %v382_v40 = vld [vmem:[#allocation6 + $0xa8] sm:$0xff]  ;;  %770 = vmatprep.subr.mxu1 %v514_v37  ;;  %v381_v42 = vld [vmem:[#allocation6 + $0xa0] sm:$0xff]  ;;  %658 = vmatpush1.msra.mxu0 %v385_v38 }
  0x8a   : > { %v510_v41 = vld [vmem:[#allocation6 + $0x4a8] sm:$0xff]  ;;  %v509_v43 = vld [vmem:[#allocation6 + $0x4a0] sm:$0xff]  ;;  %771 = vmatpush1.msra.mxu1 %v513_v39  ;;  %659 = vmatprep.subr.mxu0 %v382_v40 }
  0x8b   : > { %v378_v44 = vld [vmem:[#allocation6 + $0x88] sm:$0xff]  ;;  %772 = vmatprep.subr.mxu1 %v510_v41  ;;  %v377_v46 = vld [vmem:[#allocation6 + $0x80] sm:$0xff]  ;;  %660 = vmatpush1.msra.mxu0 %v381_v42 }
  0x8c   : > { %v506_v45 = vld [vmem:[#allocation6 + $0x488] sm:$0xff]  ;;  %v505_v47 = vld [vmem:[#allocation6 + $0x480] sm:$0xff]  ;;  %773 = vmatpush1.msra.mxu1 %v509_v43  ;;  %661 = vmatprep.subr.mxu0 %v378_v44 }
  0x8d   : > { %v374_v48 = vld [vmem:[#allocation6 + $0x68] sm:$0xff]  ;;  %774 = vmatprep.subr.mxu1 %v506_v45  ;;  %v373_v50 = vld [vmem:[#allocation6 + $0x60] sm:$0xff]  ;;  %662 = vmatpush1.msra.mxu0 %v377_v46 }
  0x8e   : > { %v502_v49 = vld [vmem:[#allocation6 + $0x468] sm:$0xff]  ;;  %v501_v51 = vld [vmem:[#allocation6 + $0x460] sm:$0xff]  ;;  %775 = vmatpush1.msra.mxu1 %v505_v47  ;;  %663 = vmatprep.subr.mxu0 %v374_v48 }
  0x8f   : > { %v370_v52 = vld [vmem:[#allocation6 + $0x48] sm:$0xff]  ;;  %776 = vmatprep.subr.mxu1 %v502_v49  ;;  %v369_v54 = vld [vmem:[#allocation6 + $0x40] sm:$0xff]  ;;  %664 = vmatpush1.msra.mxu0 %v373_v50 }
  0x90   : > { %v498_v53 = vld [vmem:[#allocation6 + $0x448] sm:$0xff]  ;;  %v497_v55 = vld [vmem:[#allocation6 + $0x440] sm:$0xff]  ;;  %777 = vmatpush1.msra.mxu1 %v501_v51  ;;  %665 = vmatprep.subr.mxu0 %v370_v52 }
  0x91   : > { %v366_v56 = vld [vmem:[#allocation6 + $0x28] sm:$0xff]  ;;  %778 = vmatprep.subr.mxu1 %v498_v53  ;;  %v365_v58 = vld [vmem:[#allocation6 + $0x20] sm:$0xff]  ;;  %666 = vmatpush1.msra.mxu0 %v369_v54 }
  0x92   : > { %v494_v57 = vld [vmem:[#allocation6 + $0x428] sm:$0xff]  ;;  %v493_v59 = vld [vmem:[#allocation6 + $0x420] sm:$0xff]  ;;  %779 = vmatpush1.msra.mxu1 %v497_v55  ;;  %667 = vmatprep.subr.mxu0 %v366_v56 }
  0x93   : > { %v362_v60 = vld [vmem:[#allocation6 + $0x8] sm:$0xff]  ;;  %780 = vmatprep.subr.mxu1 %v494_v57  ;;  %v361_v62 = vld [vmem:[#allocation6] sm:$0xff]  ;;  %668 = vmatpush1.msra.mxu0 %v365_v58 }
  0x94   : > { %v490_v61 = vld [vmem:[#allocation6 + $0x408] sm:$0xff]  ;;  %v489_v63 = vld [vmem:[#allocation6 + $0x400] sm:$0xff]  ;;  %781 = vmatpush1.msra.mxu1 %v493_v59  ;;  %669 = vmatprep.subr.mxu0 %v362_v60 }
  0x95   : > { %v486_v0 = vld [vmem:[#allocation6 + $0x3e8] sm:$0xff]  ;;  %782 = vmatprep.subr.mxu1 %v490_v61  ;;  %v485_v2 = vld [vmem:[#allocation6 + $0x3e0] sm:$0xff]  ;;  %670 = vmatpush1.msra.mxu0 %v361_v62 }
  0x96   : > { %v614_v1 = vld [vmem:[#allocation6 + $0x7e8] sm:$0xff]  ;;  %v613_v3 = vld [vmem:[#allocation6 + $0x7e0] sm:$0xff]  ;;  %783 = vmatpush1.msra.mxu1 %v489_v63  ;;  %671 = vmatprep.subr.mxu0 %v486_v0 }
  0x97   : > { %v482_v4 = vld [vmem:[#allocation6 + $0x3c8] sm:$0xff]  ;;  %784 = vmatprep.subr.mxu1 %v614_v1  ;;  %v481_v6 = vld [vmem:[#allocation6 + $0x3c0] sm:$0xff]  ;;  %672 = vmatpush2.msra.mxu0 %v485_v2  ;;  %v5411_v1 = vld [vmem:[%s5393_s13 + $0x18] sm:$0xff] }
  0x98   : > { %v610_v5 = vld [vmem:[#allocation6 + $0x7c8] sm:$0xff]  ;;  %v609_v7 = vld [vmem:[#allocation6 + $0x7c0] sm:$0xff]  ;;  %785 = vmatpush2.msra.mxu1 %v613_v3  ;;  %673 = vmatprep.subr.mxu0 %v482_v4  ;;  %v5417_v3 = vld [vmem:[%s5393_s13 + $0x10] sm:$0xff] }
  0x99   : > { %v478_v8 = vld [vmem:[#allocation6 + $0x3a8] sm:$0xff]  ;;  %786 = vmatprep.subr.mxu1 %v610_v5  ;;  %v477_v10 = vld [vmem:[#allocation6 + $0x3a0] sm:$0xff]  ;;  %674 = vmatpush2.msra.mxu0 %v481_v6  ;;  %v5424_v5 = vld [vmem:[%s5393_s13 + $0x38] sm:$0xff] }
  0x9a   : > { %v606_v9 = vld [vmem:[#allocation6 + $0x7a8] sm:$0xff]  ;;  %v605_v11 = vld [vmem:[#allocation6 + $0x7a0] sm:$0xff]  ;;  %787 = vmatpush2.msra.mxu1 %v609_v7  ;;  %675 = vmatprep.subr.mxu0 %v478_v8  ;;  %v424_v6 = vld [vmem:[#allocation6 + $0x1f8] sm:$0xff] }
  0x9b   : > { %v474_v12 = vld [vmem:[#allocation6 + $0x388] sm:$0xff]  ;;  %788 = vmatprep.subr.mxu1 %v606_v9  ;;  %v473_v14 = vld [vmem:[#allocation6 + $0x380] sm:$0xff]  ;;  %676 = vmatpush2.msra.mxu0 %v477_v10  ;;  %v552_v7 = vld [vmem:[#allocation6 + $0x5f8] sm:$0xff] }
  0x9c   : > { %v602_v13 = vld [vmem:[#allocation6 + $0x788] sm:$0xff]  ;;  %v601_v15 = vld [vmem:[#allocation6 + $0x780] sm:$0xff]  ;;  %789 = vmatpush2.msra.mxu1 %v605_v11  ;;  %677 = vmatprep.subr.mxu0 %v474_v12  ;;  %v423_v8 = vld [vmem:[#allocation6 + $0x1f0] sm:$0xff] }
  0x9d   : > { %v470_v16 = vld [vmem:[#allocation6 + $0x368] sm:$0xff]  ;;  %790 = vmatprep.subr.mxu1 %v602_v13  ;;  %v469_v18 = vld [vmem:[#allocation6 + $0x360] sm:$0xff]  ;;  %678 = vmatpush2.msra.mxu0 %v473_v14  ;;  %v551_v9 = vld [vmem:[#allocation6 + $0x5f0] sm:$0xff] }
  0x9e   : > { %v598_v17 = vld [vmem:[#allocation6 + $0x768] sm:$0xff]  ;;  %v597_v19 = vld [vmem:[#allocation6 + $0x760] sm:$0xff]  ;;  %791 = vmatpush2.msra.mxu1 %v601_v15  ;;  %679 = vmatprep.subr.mxu0 %v470_v16  ;;  %v5435_v11 = vld [vmem:[%s5393_s13 + $0x30] sm:$0xff] }
  0x9f   : > { %v466_v20 = vld [vmem:[#allocation6 + $0x348] sm:$0xff]  ;;  %792 = vmatprep.subr.mxu1 %v598_v17  ;;  %v465_v22 = vld [vmem:[#allocation6 + $0x340] sm:$0xff]  ;;  %680 = vmatpush2.msra.mxu0 %v469_v18  ;;  %v5441_v13 = vld [vmem:[%s5393_s13 + $0x58] sm:$0xff] }
  0xa0   : > { %v594_v21 = vld [vmem:[#allocation6 + $0x748] sm:$0xff]  ;;  %v593_v23 = vld [vmem:[#allocation6 + $0x740] sm:$0xff]  ;;  %793 = vmatpush2.msra.mxu1 %v597_v19  ;;  %681 = vmatprep.subr.mxu0 %v466_v20  ;;  %v420_v14 = vld [vmem:[#allocation6 + $0x1d8] sm:$0xff] }
  0xa1   : > { %v462_v24 = vld [vmem:[#allocation6 + $0x328] sm:$0xff]  ;;  %794 = vmatprep.subr.mxu1 %v594_v21  ;;  %v461_v26 = vld [vmem:[#allocation6 + $0x320] sm:$0xff]  ;;  %682 = vmatpush2.msra.mxu0 %v465_v22  ;;  %v548_v15 = vld [vmem:[#allocation6 + $0x5d8] sm:$0xff] }
  0xa2   : > { %v590_v25 = vld [vmem:[#allocation6 + $0x728] sm:$0xff]  ;;  %v589_v27 = vld [vmem:[#allocation6 + $0x720] sm:$0xff]  ;;  %795 = vmatpush2.msra.mxu1 %v593_v23  ;;  %683 = vmatprep.subr.mxu0 %v462_v24  ;;  %v419_v16 = vld [vmem:[#allocation6 + $0x1d0] sm:$0xff] }
  0xa3   : > { %v458_v28 = vld [vmem:[#allocation6 + $0x308] sm:$0xff]  ;;  %796 = vmatprep.subr.mxu1 %v590_v25  ;;  %v457_v30 = vld [vmem:[#allocation6 + $0x300] sm:$0xff]  ;;  %684 = vmatpush2.msra.mxu0 %v461_v26  ;;  %v547_v17 = vld [vmem:[#allocation6 + $0x5d0] sm:$0xff] }
  0xa4   : > { %v586_v29 = vld [vmem:[#allocation6 + $0x708] sm:$0xff]  ;;  %v585_v31 = vld [vmem:[#allocation6 + $0x700] sm:$0xff]  ;;  %797 = vmatpush2.msra.mxu1 %v589_v27  ;;  %685 = vmatprep.subr.mxu0 %v458_v28  ;;  %v5451_v19 = vld [vmem:[%s5393_s13 + $0x50] sm:$0xff] }
  0xa5   : > { %v454_v32 = vld [vmem:[#allocation6 + $0x2e8] sm:$0xff]  ;;  %798 = vmatprep.subr.mxu1 %v586_v29  ;;  %v453_v34 = vld [vmem:[#allocation6 + $0x2e0] sm:$0xff]  ;;  %686 = vmatpush2.msra.mxu0 %v457_v30  ;;  %v5457_v21 = vld [vmem:[%s5393_s13 + $0x78] sm:$0xff] }
  0xa6   : > { %v582_v33 = vld [vmem:[#allocation6 + $0x6e8] sm:$0xff]  ;;  %v581_v35 = vld [vmem:[#allocation6 + $0x6e0] sm:$0xff]  ;;  %799 = vmatpush2.msra.mxu1 %v585_v31  ;;  %687 = vmatprep.subr.mxu0 %v454_v32  ;;  %v416_v22 = vld [vmem:[#allocation6 + $0x1b8] sm:$0xff] }
  0xa7   : > { %v450_v36 = vld [vmem:[#allocation6 + $0x2c8] sm:$0xff]  ;;  %800 = vmatprep.subr.mxu1 %v582_v33  ;;  %v449_v38 = vld [vmem:[#allocation6 + $0x2c0] sm:$0xff]  ;;  %688 = vmatpush2.msra.mxu0 %v453_v34  ;;  %v544_v23 = vld [vmem:[#allocation6 + $0x5b8] sm:$0xff] }
  0xa8   : > { %v578_v37 = vld [vmem:[#allocation6 + $0x6c8] sm:$0xff]  ;;  %v577_v39 = vld [vmem:[#allocation6 + $0x6c0] sm:$0xff]  ;;  %801 = vmatpush2.msra.mxu1 %v581_v35  ;;  %689 = vmatprep.subr.mxu0 %v450_v36  ;;  %v415_v24 = vld [vmem:[#allocation6 + $0x1b0] sm:$0xff] }
  0xa9   : > { %v446_v40 = vld [vmem:[#allocation6 + $0x2a8] sm:$0xff]  ;;  %802 = vmatprep.subr.mxu1 %v578_v37  ;;  %v445_v42 = vld [vmem:[#allocation6 + $0x2a0] sm:$0xff]  ;;  %690 = vmatpush2.msra.mxu0 %v449_v38  ;;  %v543_v25 = vld [vmem:[#allocation6 + $0x5b0] sm:$0xff] }
  0xaa   : > { %v574_v41 = vld [vmem:[#allocation6 + $0x6a8] sm:$0xff]  ;;  %v573_v43 = vld [vmem:[#allocation6 + $0x6a0] sm:$0xff]  ;;  %803 = vmatpush2.msra.mxu1 %v577_v39  ;;  %691 = vmatprep.subr.mxu0 %v446_v40  ;;  %v5467_v27 = vld [vmem:[%s5393_s13 + $0x70] sm:$0xff] }
  0xab   : > { %v442_v44 = vld [vmem:[#allocation6 + $0x288] sm:$0xff]  ;;  %804 = vmatprep.subr.mxu1 %v574_v41  ;;  %v441_v46 = vld [vmem:[#allocation6 + $0x280] sm:$0xff]  ;;  %692 = vmatpush2.msra.mxu0 %v445_v42  ;;  %v5473_v29 = vld [vmem:[%s5393_s13 + $0x98] sm:$0xff] }
  0xac   : > { %v570_v45 = vld [vmem:[#allocation6 + $0x688] sm:$0xff]  ;;  %v569_v47 = vld [vmem:[#allocation6 + $0x680] sm:$0xff]  ;;  %805 = vmatpush2.msra.mxu1 %v573_v43  ;;  %693 = vmatprep.subr.mxu0 %v442_v44  ;;  %v412_v30 = vld [vmem:[#allocation6 + $0x198] sm:$0xff] }
  0xad   : > { %v438_v48 = vld [vmem:[#allocation6 + $0x268] sm:$0xff]  ;;  %806 = vmatprep.subr.mxu1 %v570_v45  ;;  %v437_v50 = vld [vmem:[#allocation6 + $0x260] sm:$0xff]  ;;  %694 = vmatpush2.msra.mxu0 %v441_v46  ;;  %v540_v31 = vld [vmem:[#allocation6 + $0x598] sm:$0xff] }
  0xae   : > { %v566_v49 = vld [vmem:[#allocation6 + $0x668] sm:$0xff]  ;;  %v565_v51 = vld [vmem:[#allocation6 + $0x660] sm:$0xff]  ;;  %807 = vmatpush2.msra.mxu1 %v569_v47  ;;  %695 = vmatprep.subr.mxu0 %v438_v48  ;;  %v411_v32 = vld [vmem:[#allocation6 + $0x190] sm:$0xff] }
  0xaf   : > { %v434_v52 = vld [vmem:[#allocation6 + $0x248] sm:$0xff]  ;;  %808 = vmatprep.subr.mxu1 %v566_v49  ;;  %v433_v54 = vld [vmem:[#allocation6 + $0x240] sm:$0xff]  ;;  %696 = vmatpush2.msra.mxu0 %v437_v50  ;;  %v539_v33 = vld [vmem:[#allocation6 + $0x590] sm:$0xff] }
  0xb0   : > { %v562_v53 = vld [vmem:[#allocation6 + $0x648] sm:$0xff]  ;;  %v561_v55 = vld [vmem:[#allocation6 + $0x640] sm:$0xff]  ;;  %809 = vmatpush2.msra.mxu1 %v565_v51  ;;  %697 = vmatprep.subr.mxu0 %v434_v52  ;;  %v5483_v35 = vld [vmem:[%s5393_s13 + $0x90] sm:$0xff] }
  0xb1   : > { %v430_v56 = vld [vmem:[#allocation6 + $0x228] sm:$0xff]  ;;  %810 = vmatprep.subr.mxu1 %v562_v53  ;;  %v429_v58 = vld [vmem:[#allocation6 + $0x220] sm:$0xff]  ;;  %698 = vmatpush2.msra.mxu0 %v433_v54  ;;  %v5489_v37 = vld [vmem:[%s5393_s13 + $0xb8] sm:$0xff] }
  0xb2   : > { %v558_v57 = vld [vmem:[#allocation6 + $0x628] sm:$0xff]  ;;  %v557_v59 = vld [vmem:[#allocation6 + $0x620] sm:$0xff]  ;;  %811 = vmatpush2.msra.mxu1 %v561_v55  ;;  %699 = vmatprep.subr.mxu0 %v430_v56  ;;  %v408_v38 = vld [vmem:[#allocation6 + $0x178] sm:$0xff] }
  0xb3   : > { %v426_v60 = vld [vmem:[#allocation6 + $0x208] sm:$0xff]  ;;  %812 = vmatprep.subr.mxu1 %v558_v57  ;;  %v425_v62 = vld [vmem:[#allocation6 + $0x200] sm:$0xff]  ;;  %700 = vmatpush2.msra.mxu0 %v429_v58  ;;  %v536_v39 = vld [vmem:[#allocation6 + $0x578] sm:$0xff] }
  0xb4   : > { %v554_v61 = vld [vmem:[#allocation6 + $0x608] sm:$0xff]  ;;  %813 = vmatpush2.msra.mxu1 %v557_v59  ;;  %v553_v0 = vld [vmem:[#allocation6 + $0x600] sm:$0xff]  ;;  %701 = vmatprep.subr.mxu0 %v426_v60  ;;  %v407_v40 = vld [vmem:[#allocation6 + $0x170] sm:$0xff] }
  0xb5   : > { %v5408_v63 = vld [vmem:[%s5393_s13 + $0x8] sm:$0xff]  ;;  %814 = vmatprep.subr.mxu1 %v554_v61  ;;  %v5414_v2 = vld [vmem:[%s5393_s13] sm:$0xff]  ;;  %702 = vmatpush2.msra.mxu0 %v425_v62  ;;  %v535_v41 = vld [vmem:[#allocation6 + $0x570] sm:$0xff] }
  0xb6   : > { %703 = vmatprep.mubr.f32.mxu0 %v5408_v63  ;;  %v5421_v4 = vld [vmem:[%s5393_s13 + $0x28] sm:$0xff]  ;;  %815 = vmatpush2.msra.mxu1 %v553_v0  ;;  %v5431_v10 = vld [vmem:[%s5393_s13 + $0x20] sm:$0xff]  ;;  %v5499_v43 = vld [vmem:[%s5393_s13 + $0xb0] sm:$0xff] }
  0xb7   : > { %816 = vmatprep.mubr.f32.mxu1 %v5411_v1  ;;  %704 = vmatmul.mubr.f32.vlgmr.msra.gmra.mxu0 %v5414_v2  ;;  %v5438_v12 = vld [vmem:[%s5393_s13 + $0x48] sm:$0xff]  ;;  %v5447_v18 = vld [vmem:[%s5393_s13 + $0x40] sm:$0xff]  ;;  %v5505_v45 = vld [vmem:[%s5393_s13 + $0xd8] sm:$0xff] }
  0xb8   : > { %817 = vmatmul.mubr.f32.vlgmr.msra.gmra.mxu1 %v5417_v3  ;;  %709 = vmatprep.mubr.f32.mxu0 %v5421_v4  ;;  %v5454_v20 = vld [vmem:[%s5393_s13 + $0x68] sm:$0xff]  ;;  %v5463_v26 = vld [vmem:[%s5393_s13 + $0x60] sm:$0xff]  ;;  %v404_v46 = vld [vmem:[#allocation6 + $0x158] sm:$0xff] }
  0xb9   : > { %822 = vmatprep.mubr.f32.mxu1 %v5424_v5  ;;  %865 = vmatprep.subr.mxu0 %v424_v6  ;;  %v5470_v28 = vld [vmem:[%s5393_s13 + $0x88] sm:$0xff]  ;;  %v5479_v34 = vld [vmem:[%s5393_s13 + $0x80] sm:$0xff]  ;;  %v532_v47 = vld [vmem:[#allocation6 + $0x558] sm:$0xff] }
  0xba   : > { %978 = vmatprep.subr.mxu1 %v552_v7  ;;  %866 = vmatpush1.msra.mxu0 %v423_v8  ;;  %v5486_v36 = vld [vmem:[%s5393_s13 + $0xa8] sm:$0xff]  ;;  %v5495_v42 = vld [vmem:[%s5393_s13 + $0xa0] sm:$0xff]  ;;  %v403_v48 = vld [vmem:[#allocation6 + $0x150] sm:$0xff] }
  0xbb   : > { %979 = vmatpush1.msra.mxu1 %v551_v9  ;;  %710 = vmatmul.mubr.f32.gmra.mxu0 %v5431_v10  ;;  %v5502_v44 = vld [vmem:[%s5393_s13 + $0xc8] sm:$0xff]  ;;  %v531_v49 = vld [vmem:[#allocation6 + $0x550] sm:$0xff]  ;;  %v5511_v50 = vld [vmem:[%s5393_s13 + $0xc0] sm:$0xff] }
  0xbc   : > { %823 = vmatmul.mubr.f32.gmra.mxu1 %v5435_v11  ;;  %715 = vmatprep.mubr.f32.mxu0 %v5438_v12  ;;  %v5515_v51 = vld [vmem:[%s5393_s13 + $0xd0] sm:$0xff]  ;;  %v5518_v52 = vld [vmem:[%s5393_s13 + $0xe8] sm:$0xff]  ;;  %v5521_v53 = vld [vmem:[%s5393_s13 + $0xf8] sm:$0xff] }
  0xbd   : > { %828 = vmatprep.mubr.f32.mxu1 %v5441_v13  ;;  %867 = vmatprep.subr.mxu0 %v420_v14  ;;  %v400_v54 = vld [vmem:[#allocation6 + $0x138] sm:$0xff]  ;;  %v399_v56 = vld [vmem:[#allocation6 + $0x130] sm:$0xff]  ;;  %v5527_v58 = vld [vmem:[%s5393_s13 + $0xe0] sm:$0xff] }
  0xbe   : > { %980 = vmatprep.subr.mxu1 %v548_v15  ;;  %868 = vmatpush1.msra.mxu0 %v419_v16  ;;  %v528_v55 = vld [vmem:[#allocation6 + $0x538] sm:$0xff]  ;;  %v527_v57 = vld [vmem:[#allocation6 + $0x530] sm:$0xff] }
  0xbf   : > { %981 = vmatpush1.msra.mxu1 %v547_v17  ;;  %716 = vmatmul.mubr.f32.gmra.mxu0 %v5447_v18  ;;  %v5531_v59 = vld [vmem:[%s5393_s13 + $0xf0] sm:$0xff]  ;;  %v396_v60 = vld [vmem:[#allocation6 + $0x118] sm:$0xff] }
  0xc0   : > { %829 = vmatmul.mubr.f32.gmra.mxu1 %v5451_v19  ;;  %721 = vmatprep.mubr.f32.mxu0 %v5454_v20  ;;  %v524_v61 = vld [vmem:[#allocation6 + $0x518] sm:$0xff]  ;;  %v395_v62 = vld [vmem:[#allocation6 + $0x110] sm:$0xff] }
  0xc1   : > { %834 = vmatprep.mubr.f32.mxu1 %v5457_v21  ;;  %869 = vmatprep.subr.mxu0 %v416_v22  ;;  %v523_v0 = vld [vmem:[#allocation6 + $0x510] sm:$0xff]  ;;  %v392_v6 = vld [vmem:[#allocation6 + $0xf8] sm:$0xff] }
  0xc2   : > { %982 = vmatprep.subr.mxu1 %v544_v23  ;;  %870 = vmatpush1.msra.mxu0 %v415_v24  ;;  %v520_v7 = vld [vmem:[#allocation6 + $0x4f8] sm:$0xff]  ;;  %v391_v8 = vld [vmem:[#allocation6 + $0xf0] sm:$0xff] }
  0xc3   : > { %983 = vmatpush1.msra.mxu1 %v543_v25  ;;  %722 = vmatmul.mubr.f32.gmra.mxu0 %v5463_v26  ;;  %v519_v9 = vld [vmem:[#allocation6 + $0x4f0] sm:$0xff]  ;;  %v388_v14 = vld [vmem:[#allocation6 + $0xd8] sm:$0xff] }
  0xc4   : > { %835 = vmatmul.mubr.f32.gmra.mxu1 %v5467_v27  ;;  %727 = vmatprep.mubr.f32.mxu0 %v5470_v28  ;;  %v516_v15 = vld [vmem:[#allocation6 + $0x4d8] sm:$0xff]  ;;  %v387_v16 = vld [vmem:[#allocation6 + $0xd0] sm:$0xff] }
  0xc5   : > { %840 = vmatprep.mubr.f32.mxu1 %v5473_v29  ;;  %871 = vmatprep.subr.mxu0 %v412_v30  ;;  %v515_v17 = vld [vmem:[#allocation6 + $0x4d0] sm:$0xff]  ;;  %v384_v22 = vld [vmem:[#allocation6 + $0xb8] sm:$0xff] }
  0xc6   : > { %984 = vmatprep.subr.mxu1 %v540_v31  ;;  %872 = vmatpush1.msra.mxu0 %v411_v32  ;;  %v512_v23 = vld [vmem:[#allocation6 + $0x4b8] sm:$0xff]  ;;  %v383_v24 = vld [vmem:[#allocation6 + $0xb0] sm:$0xff] }
  0xc7   : > { %985 = vmatpush1.msra.mxu1 %v539_v33  ;;  %728 = vmatmul.mubr.f32.gmra.mxu0 %v5479_v34  ;;  %v511_v25 = vld [vmem:[#allocation6 + $0x4b0] sm:$0xff]  ;;  %v380_v30 = vld [vmem:[#allocation6 + $0x98] sm:$0xff] }
  0xc8   : > { %841 = vmatmul.mubr.f32.gmra.mxu1 %v5483_v35  ;;  %733 = vmatprep.mubr.f32.mxu0 %v5486_v36  ;;  %v508_v31 = vld [vmem:[#allocation6 + $0x498] sm:$0xff]  ;;  %v379_v32 = vld [vmem:[#allocation6 + $0x90] sm:$0xff] }
  0xc9   : > { %846 = vmatprep.mubr.f32.mxu1 %v5489_v37  ;;  %873 = vmatprep.subr.mxu0 %v408_v38  ;;  %v507_v33 = vld [vmem:[#allocation6 + $0x490] sm:$0xff]  ;;  %v376_v38 = vld [vmem:[#allocation6 + $0x78] sm:$0xff] }
  0xca   : > { %986 = vmatprep.subr.mxu1 %v536_v39  ;;  %874 = vmatpush1.msra.mxu0 %v407_v40  ;;  %v504_v39 = vld [vmem:[#allocation6 + $0x478] sm:$0xff]  ;;  %v375_v40 = vld [vmem:[#allocation6 + $0x70] sm:$0xff] }
  0xcb   : > { %987 = vmatpush1.msra.mxu1 %v535_v41  ;;  %734 = vmatmul.mubr.f32.gmra.mxu0 %v5495_v42  ;;  %v503_v41 = vld [vmem:[#allocation6 + $0x470] sm:$0xff] }
  0xcc   : > { %847 = vmatmul.mubr.f32.gmra.mxu1 %v5499_v43  ;;  %739 = vmatprep.mubr.f32.mxu0 %v5502_v44 }
  0xcd   : > { %852 = vmatprep.mubr.f32.mxu1 %v5505_v45  ;;  %875 = vmatprep.subr.mxu0 %v404_v46  ;;  %v372_v46 = vld [vmem:[#allocation6 + $0x58] sm:$0xff] }
  0xce   : > { %988 = vmatprep.subr.mxu1 %v532_v47  ;;  %876 = vmatpush1.msra.mxu0 %v403_v48  ;;  %v500_v47 = vld [vmem:[#allocation6 + $0x458] sm:$0xff]  ;;  %v371_v48 = vld [vmem:[#allocation6 + $0x50] sm:$0xff] }
  0xcf   : > { %989 = vmatpush1.msra.mxu1 %v531_v49  ;;  %740 = vmatmul.mubr.f32.gmra.mxu0 %v5511_v50  ;;  %v499_v49 = vld [vmem:[#allocation6 + $0x450] sm:$0xff] }
  0xd0   : > { %853 = vmatmul.mubr.f32.gmra.mxu1 %v5515_v51  ;;  %745 = vmatprep.mubr.f32.mxu0 %v5518_v52 }
  0xd1   : > { %858 = vmatprep.mubr.f32.mxu1 %v5521_v53  ;;  %877 = vmatprep.subr.mxu0 %v400_v54  ;;  %v368_v54 = vld [vmem:[#allocation6 + $0x38] sm:$0xff] }
  0xd2   : > { %990 = vmatprep.subr.mxu1 %v528_v55  ;;  %878 = vmatpush1.msra.mxu0 %v399_v56  ;;  %v496_v55 = vld [vmem:[#allocation6 + $0x438] sm:$0xff]  ;;  %v367_v56 = vld [vmem:[#allocation6 + $0x30] sm:$0xff] }
  0xd3   : > { %991 = vmatpush1.msra.mxu1 %v527_v57  ;;  %746 = vmatmul.mubr.f32.gmra.mxu0 %v5527_v58  ;;  %v495_v57 = vld [vmem:[#allocation6 + $0x430] sm:$0xff] }
  0xd4   : > { %859 = vmatmul.mubr.f32.gmra.mxu1 %v5531_v59  ;;  %879 = vmatprep.subr.mxu0 %v396_v60  ;;  %v364_v60 = vld [vmem:[#allocation6 + $0x18] sm:$0xff] }
  0xd5   : > { %992 = vmatprep.subr.mxu1 %v524_v61  ;;  %880 = vmatpush1.msra.mxu0 %v395_v62  ;;  %v492_v61 = vld [vmem:[#allocation6 + $0x418] sm:$0xff]  ;;  %v363_v62 = vld [vmem:[#allocation6 + $0x10] sm:$0xff] }
  0xd6   : > { %993 = vmatpush1.msra.mxu1 %v523_v0  ;;  %881 = vmatprep.subr.mxu0 %v392_v6  ;;  %v491_v0 = vld [vmem:[#allocation6 + $0x410] sm:$0xff]  ;;  %v488_v6 = vld [vmem:[#allocation6 + $0x3f8] sm:$0xff] }
  0xd7   : > { %994 = vmatprep.subr.mxu1 %v520_v7  ;;  %882 = vmatpush1.msra.mxu0 %v391_v8  ;;  %v616_v7 = vld [vmem:[#allocation6 + $0x7f8] sm:$0xff]  ;;  %v487_v8 = vld [vmem:[#allocation6 + $0x3f0] sm:$0xff] }
  0xd8   : > { %995 = vmatpush1.msra.mxu1 %v519_v9  ;;  %883 = vmatprep.subr.mxu0 %v388_v14  ;;  %v615_v9 = vld [vmem:[#allocation6 + $0x7f0] sm:$0xff]  ;;  %v484_v14 = vld [vmem:[#allocation6 + $0x3d8] sm:$0xff] }
  0xd9   : > { %996 = vmatprep.subr.mxu1 %v516_v15  ;;  %884 = vmatpush1.msra.mxu0 %v387_v16  ;;  %v612_v15 = vld [vmem:[#allocation6 + $0x7d8] sm:$0xff]  ;;  %v483_v16 = vld [vmem:[#allocation6 + $0x3d0] sm:$0xff] }
  0xda   : > { %997 = vmatpush1.msra.mxu1 %v515_v17  ;;  %885 = vmatprep.subr.mxu0 %v384_v22  ;;  %v611_v17 = vld [vmem:[#allocation6 + $0x7d0] sm:$0xff]  ;;  %v480_v22 = vld [vmem:[#allocation6 + $0x3b8] sm:$0xff] }
  0xdb   : > { %998 = vmatprep.subr.mxu1 %v512_v23  ;;  %886 = vmatpush1.msra.mxu0 %v383_v24  ;;  %v608_v23 = vld [vmem:[#allocation6 + $0x7b8] sm:$0xff]  ;;  %v479_v24 = vld [vmem:[#allocation6 + $0x3b0] sm:$0xff] }
  0xdc   : > { %999 = vmatpush1.msra.mxu1 %v511_v25  ;;  %887 = vmatprep.subr.mxu0 %v380_v30  ;;  %v607_v25 = vld [vmem:[#allocation6 + $0x7b0] sm:$0xff]  ;;  %v476_v30 = vld [vmem:[#allocation6 + $0x398] sm:$0xff] }
  0xdd   : > { %1000 = vmatprep.subr.mxu1 %v508_v31  ;;  %888 = vmatpush1.msra.mxu0 %v379_v32  ;;  %v604_v31 = vld [vmem:[#allocation6 + $0x798] sm:$0xff]  ;;  %v475_v32 = vld [vmem:[#allocation6 + $0x390] sm:$0xff] }
  0xde   : > { %1001 = vmatpush1.msra.mxu1 %v507_v33  ;;  %889 = vmatprep.subr.mxu0 %v376_v38  ;;  %v603_v33 = vld [vmem:[#allocation6 + $0x790] sm:$0xff]  ;;  %v472_v38 = vld [vmem:[#allocation6 + $0x378] sm:$0xff] }
  0xdf   : > { %1002 = vmatprep.subr.mxu1 %v504_v39  ;;  %890 = vmatpush1.msra.mxu0 %v375_v40  ;;  %v600_v39 = vld [vmem:[#allocation6 + $0x778] sm:$0xff]  ;;  %v471_v40 = vld [vmem:[#allocation6 + $0x370] sm:$0xff] }
  0xe0   : > { %1003 = vmatpush1.msra.mxu1 %v503_v41  ;;  %891 = vmatprep.subr.mxu0 %v372_v46  ;;  %v599_v41 = vld [vmem:[#allocation6 + $0x770] sm:$0xff]  ;;  %v468_v46 = vld [vmem:[#allocation6 + $0x358] sm:$0xff] }
  0xe1   : > { %1004 = vmatprep.subr.mxu1 %v500_v47  ;;  %892 = vmatpush1.msra.mxu0 %v371_v48  ;;  %v596_v47 = vld [vmem:[#allocation6 + $0x758] sm:$0xff]  ;;  %v467_v48 = vld [vmem:[#allocation6 + $0x350] sm:$0xff] }
  0xe2   : > { %1005 = vmatpush1.msra.mxu1 %v499_v49  ;;  %893 = vmatprep.subr.mxu0 %v368_v54  ;;  %v595_v49 = vld [vmem:[#allocation6 + $0x750] sm:$0xff]  ;;  %v464_v54 = vld [vmem:[#allocation6 + $0x338] sm:$0xff] }
  0xe3   : > { %1006 = vmatprep.subr.mxu1 %v496_v55  ;;  %894 = vmatpush1.msra.mxu0 %v367_v56  ;;  %v592_v55 = vld [vmem:[#allocation6 + $0x738] sm:$0xff]  ;;  %v463_v56 = vld [vmem:[#allocation6 + $0x330] sm:$0xff] }
  0xe4   : > { %1007 = vmatpush1.msra.mxu1 %v495_v57  ;;  %895 = vmatprep.subr.mxu0 %v364_v60  ;;  %v591_v57 = vld [vmem:[#allocation6 + $0x730] sm:$0xff]  ;;  %v460_v60 = vld [vmem:[#allocation6 + $0x318] sm:$0xff] }
  0xe5   : > { %1008 = vmatprep.subr.mxu1 %v492_v61  ;;  %896 = vmatpush1.msra.mxu0 %v363_v62  ;;  %v588_v61 = vld [vmem:[#allocation6 + $0x718] sm:$0xff]  ;;  %v459_v62 = vld [vmem:[#allocation6 + $0x310] sm:$0xff] }
  0xe6   : > { %1009 = vmatpush1.msra.mxu1 %v491_v0  ;;  %897 = vmatprep.subr.mxu0 %v488_v6  ;;  %v587_v0 = vld [vmem:[#allocation6 + $0x710] sm:$0xff]  ;;  %v456_v6 = vld [vmem:[#allocation6 + $0x2f8] sm:$0xff] }
  0xe7   : > { %1010 = vmatprep.subr.mxu1 %v616_v7  ;;  %898 = vmatpush2.msra.mxu0 %v487_v8  ;;  %v584_v7 = vld [vmem:[#allocation6 + $0x6f8] sm:$0xff]  ;;  %v455_v8 = vld [vmem:[#allocation6 + $0x2f0] sm:$0xff] }
  0xe8   : > { %1011 = vmatpush2.msra.mxu1 %v615_v9  ;;  %899 = vmatprep.subr.mxu0 %v484_v14  ;;  %v583_v9 = vld [vmem:[#allocation6 + $0x6f0] sm:$0xff]  ;;  %v452_v14 = vld [vmem:[#allocation6 + $0x2d8] sm:$0xff] }
  0xe9   : > { %1012 = vmatprep.subr.mxu1 %v612_v15  ;;  %900 = vmatpush2.msra.mxu0 %v483_v16  ;;  %v580_v15 = vld [vmem:[#allocation6 + $0x6d8] sm:$0xff]  ;;  %v451_v16 = vld [vmem:[#allocation6 + $0x2d0] sm:$0xff] }
  0xea   : > { %1013 = vmatpush2.msra.mxu1 %v611_v17  ;;  %901 = vmatprep.subr.mxu0 %v480_v22  ;;  %v579_v17 = vld [vmem:[#allocation6 + $0x6d0] sm:$0xff]  ;;  %v5193_v22 = vmov 0.0  }
  0xeb   : > { %1014 = vmatprep.subr.mxu1 %v608_v23  ;;  %902 = vmatpush2.msra.mxu0 %v479_v24  ;;  %1123 = vst [vmem:[#allocation2 + $0x90] sm:$0xff] %v5193_v22  ;;  %1124 = vst [vmem:[#allocation2 + $0xb0] sm:$0xff] %v5193_v22  ;;  %v448_v23 = vld [vmem:[#allocation6 + $0x2b8] sm:$0xff] }
  0xec   : > { %1015 = vmatpush2.msra.mxu1 %v607_v25  ;;  %903 = vmatprep.subr.mxu0 %v476_v30  ;;  %1125 = vst [vmem:[#allocation2 + $0x10] sm:$0xff] %v5193_v22  ;;  %1126 = vst [vmem:[#allocation2 + $0x28] sm:$0xff] %v5193_v22  ;;  %v576_v24 = vld [vmem:[#allocation6 + $0x6b8] sm:$0xff]  ;;  %v447_v25 = vld [vmem:[#allocation6 + $0x2b0] sm:$0xff] }
  0xed   : > { %1016 = vmatprep.subr.mxu1 %v604_v31  ;;  %904 = vmatpush2.msra.mxu0 %v475_v32  ;;  %1127 = vst [vmem:[#allocation2 + $0x100] sm:$0xff] %v5193_v22  ;;  %1128 = vst [vmem:[#allocation2 + $0x138] sm:$0xff] %v5193_v22  ;;  %v575_v30 = vld [vmem:[#allocation6 + $0x6b0] sm:$0xff]  ;;  %v444_v31 = vld [vmem:[#allocation6 + $0x298] sm:$0xff] }
  0xee   : > { %1017 = vmatpush2.msra.mxu1 %v603_v33  ;;  %905 = vmatprep.subr.mxu0 %v472_v38  ;;  %1129 = vst [vmem:[#allocation2 + $0xd8] sm:$0xff] %v5193_v22  ;;  %1130 = vst [vmem:[#allocation2 + $0xe0] sm:$0xff] %v5193_v22  ;;  %v572_v32 = vld [vmem:[#allocation6 + $0x698] sm:$0xff]  ;;  %v443_v33 = vld [vmem:[#allocation6 + $0x290] sm:$0xff] }
  0xef   : > { %1018 = vmatprep.subr.mxu1 %v600_v39  ;;  %906 = vmatpush2.msra.mxu0 %v471_v40  ;;  %v571_v38 = vld [vmem:[#allocation6 + $0x690] sm:$0xff]  ;;  %v440_v39 = vld [vmem:[#allocation6 + $0x278] sm:$0xff] }
  0xf0   : > { %1019 = vmatpush2.msra.mxu1 %v599_v41  ;;  %907 = vmatprep.subr.mxu0 %v468_v46  ;;  %v568_v40 = vld [vmem:[#allocation6 + $0x678] sm:$0xff]  ;;  %v439_v41 = vld [vmem:[#allocation6 + $0x270] sm:$0xff] }
  0xf1   : > { %1020 = vmatprep.subr.mxu1 %v596_v47  ;;  %908 = vmatpush2.msra.mxu0 %v467_v48  ;;  %v567_v46 = vld [vmem:[#allocation6 + $0x670] sm:$0xff]  ;;  %v436_v47 = vld [vmem:[#allocation6 + $0x258] sm:$0xff] }
  0xf2   : > { %1021 = vmatpush2.msra.mxu1 %v595_v49  ;;  %909 = vmatprep.subr.mxu0 %v464_v54  ;;  %v564_v48 = vld [vmem:[#allocation6 + $0x658] sm:$0xff]  ;;  %v435_v49 = vld [vmem:[#allocation6 + $0x250] sm:$0xff] }
  0xf3   : > { %1022 = vmatprep.subr.mxu1 %v592_v55  ;;  %910 = vmatpush2.msra.mxu0 %v463_v56  ;;  %v563_v54 = vld [vmem:[#allocation6 + $0x650] sm:$0xff]  ;;  %v432_v55 = vld [vmem:[#allocation6 + $0x238] sm:$0xff] }
  0xf4   : > { %1023 = vmatpush2.msra.mxu1 %v591_v57  ;;  %911 = vmatprep.subr.mxu0 %v460_v60  ;;  %v560_v56 = vld [vmem:[#allocation6 + $0x638] sm:$0xff]  ;;  %v431_v57 = vld [vmem:[#allocation6 + $0x230] sm:$0xff] }
  0xf5   : > { %1024 = vmatprep.subr.mxu1 %v588_v61  ;;  %912 = vmatpush2.msra.mxu0 %v459_v62  ;;  %v428_v60 = vld [vmem:[#allocation6 + $0x218] sm:$0xff]  ;;  %v559_v61 = vld [vmem:[#allocation6 + $0x630] sm:$0xff] }
  0xf6   : > { %1025 = vmatpush2.msra.mxu1 %v587_v0  ;;  %913 = vmatprep.subr.mxu0 %v456_v6  ;;  %v427_v62 = vld [vmem:[#allocation6 + $0x210] sm:$0xff]  ;;  %v556_v0 = vld [vmem:[#allocation6 + $0x618] sm:$0xff] }
  0xf7   : > { %1026 = vmatprep.subr.mxu1 %v584_v7  ;;  %914 = vmatpush2.msra.mxu0 %v455_v8  ;;  %v555_v6 = vld [vmem:[#allocation6 + $0x610] sm:$0xff] }
  0xf8   : > { %1027 = vmatpush2.msra.mxu1 %v583_v9  ;;  %915 = vmatprep.subr.mxu0 %v452_v14 }
  0xf9   : > { %1028 = vmatprep.subr.mxu1 %v580_v15  ;;  %916 = vmatpush2.msra.mxu0 %v451_v16 }
  0xfa   : > { %1029 = vmatpush2.msra.mxu1 %v579_v17  ;;  %917 = vmatprep.subr.mxu0 %v448_v23 }
  0xfb   : > { %1030 = vmatprep.subr.mxu1 %v576_v24  ;;  %918 = vmatpush2.msra.mxu0 %v447_v25 }
  0xfc   : > { %1031 = vmatpush2.msra.mxu1 %v575_v30  ;;  %919 = vmatprep.subr.mxu0 %v444_v31 }
  0xfd   : > { %1032 = vmatprep.subr.mxu1 %v572_v32  ;;  %920 = vmatpush2.msra.mxu0 %v443_v33 }
  0xfe   : > { %1033 = vmatpush2.msra.mxu1 %v571_v38  ;;  %921 = vmatprep.subr.mxu0 %v440_v39 }
  0xff   : > { %1034 = vmatprep.subr.mxu1 %v568_v40  ;;  %922 = vmatpush2.msra.mxu0 %v439_v41 }
 0x100   : > { %1035 = vmatpush2.msra.mxu1 %v567_v46  ;;  %923 = vmatprep.subr.mxu0 %v436_v47 }
 0x101   : > { %1036 = vmatprep.subr.mxu1 %v564_v48  ;;  %924 = vmatpush2.msra.mxu0 %v435_v49 }
 0x102   : > { %1037 = vmatpush2.msra.mxu1 %v563_v54  ;;  %925 = vmatprep.subr.mxu0 %v432_v55  ;;  %v5634_v54 = vld [vmem:[#allocation9] sm:$0xff] }
 0x103   : > { %1038 = vmatprep.subr.mxu1 %v560_v56  ;;  %926 = vmatpush2.msra.mxu0 %v431_v57 }
 0x104   : > { %929 = vmatprep.mubr.f32.mxu0 %v5408_v63  ;;  %927 = vmatprep.subr.mxu0 %v428_v60  ;;  %v10170_v63 = vlaneseq }
 0x105   : > { %1039 = vmatpush2.msra.mxu1 %v559_v61  ;;  %928 = vmatpush2.msra.mxu0 %v427_v62  ;;  %v5644_v62 = vld [vmem:[#allocation2 + $0x90] sm:$0x80] }
 0x106   : > { %1040 = vmatprep.subr.mxu1 %v556_v0  ;;  %930 = vmatmul.mubr.f32.vlgmr.msra.gmra.mxu0 %v5414_v2 }
 0x107   : > { %1041 = vmatpush2.msra.mxu1 %v555_v6  ;;  %1042 = vmatprep.mubr.f32.mxu1 %v5411_v1  ;;  %v5568_v1 = vshrl.u32 %v10170_v63, 7 }
 0x108   : > { %935 = vmatprep.mubr.f32.mxu0 %v5421_v4  ;;  %1043 = vmatmul.mubr.f32.vlgmr.msra.gmra.mxu1 %v5417_v3  ;;  %v5573_v3 = vld [vmem:[#allocation8] sm:$0xf] }
 0x109   : > { %1048 = vmatprep.mubr.f32.mxu1 %v5424_v5  ;;  %10470 = vst [vmem:[#allocation17_spill] sm:$0xff] %v5568_v1  ;;  %v5571_v2 = vsub.s32 0, %v5568_v1  ;;  %v5576_v4 = vsub.s32 1, %v5568_v1  ;;  %v5621_v33 = vsub.s32 7, %v5568_v1 }
 0x10a   : > { %936 = vmatmul.mubr.f32.gmra.mxu0 %v5431_v10 }
 0x10b   : > { %941 = vmatprep.mubr.f32.mxu0 %v5438_v12  ;;  %10471 = vst [vmem:[#allocation18_spill] sm:$0xff] %v5571_v2  ;;  %10472 = vst [vmem:[#allocation19_spill] sm:$0xff] %v5576_v4  ;;  %v5580_v5 = vrot.slane %v5573_v3, %v5571_v2  ;;  %v5584_v10 = vrot.slane %v5573_v3, %v5576_v4  ;;  %v5638_v57 = vrot.slane %v5634_v54, %v5621_v33 }
 0x10c   : > { %1049 = vmatmul.mubr.f32.gmra.mxu1 %v5435_v11 }
 0x10d   : > { %1054 = vmatprep.mubr.f32.mxu1 %v5441_v13 }
 0x10e   : > { %942 = vmatmul.mubr.f32.gmra.mxu0 %v5447_v18 }
 0x10f   : > { %947 = vmatprep.mubr.f32.mxu0 %v5454_v20 }
 0x110   : > { %1055 = vmatmul.mubr.f32.gmra.mxu1 %v5451_v19 }
 0x111   : > { %1060 = vmatprep.mubr.f32.mxu1 %v5457_v21 }
 0x112   : > { %948 = vmatmul.mubr.f32.gmra.mxu0 %v5463_v26 }
 0x113   : > { %953 = vmatprep.mubr.f32.mxu0 %v5470_v28 }
 0x114   : > { %1061 = vmatmul.mubr.f32.gmra.mxu1 %v5467_v27 }
 0x115   : > { %1066 = vmatprep.mubr.f32.mxu1 %v5473_v29 }
 0x116   : > { %954 = vmatmul.mubr.f32.gmra.mxu0 %v5479_v34 }
 0x117   : > { %959 = vmatprep.mubr.f32.mxu0 %v5486_v36 }
 0x118   : > { %1067 = vmatmul.mubr.f32.gmra.mxu1 %v5483_v35 }
 0x119   : > { %1072 = vmatprep.mubr.f32.mxu1 %v5489_v37 }
 0x11a   : > { %960 = vmatmul.mubr.f32.gmra.mxu0 %v5495_v42 }
 0x11b   : > { %965 = vmatprep.mubr.f32.mxu0 %v5502_v44 }
 0x11c   : > { %1073 = vmatmul.mubr.f32.gmra.mxu1 %v5499_v43 }
 0x11d   : > { %1078 = vmatprep.mubr.f32.mxu1 %v5505_v45 }
 0x11e   : > { %966 = vmatmul.mubr.f32.gmra.mxu0 %v5511_v50 }
 0x11f   : > { %971 = vmatprep.mubr.f32.mxu0 %v5518_v52 }
 0x120   : > { %1079 = vmatmul.mubr.f32.gmra.mxu1 %v5515_v51 }
 0x121   : > { %1084 = vmatprep.mubr.f32.mxu1 %v5521_v53 }
 0x122   : > { %972 = vmatmul.mubr.f32.gmra.mxu0 %v5527_v58 }
 0x124   : > { %1085 = vmatmul.mubr.f32.gmra.mxu1 %v5531_v59 }
 0x177   : > { %v705_v11 = vpop.f32.mrf.mxu0 }
 0x178   : > { %v818_v12 = vpop.f32.mrf.mxu1  ;;  %v706_v13 = vadd.f32 %v705_v11, %v5580_v5 }
 0x179   : > { %v707_v18 = vpop.f32.mrf.mxu0 }
 0x17a   : > { %v820_v19 = vpop.f32.mrf.mxu1  ;;  %v819_v20 = vadd.f32 %v818_v12, %v706_v13  ;;  %v708_v21 = vadd.f32 %v707_v18, %v5584_v10 }
 0x17b   : > { %v711_v26 = vpop.f32.mrf.mxu0 }
 0x17c   : > { %v824_v27 = vpop.f32.mrf.mxu1  ;;  %v5588_v28 = vmax.f32 %v819_v20, 0.0  ;;  %v821_v29 = vadd.f32 %v820_v19, %v708_v21  ;;  %v712_v34 = vadd.f32 %v711_v26, %v5580_v5  ;;  %v1401_v20 = vrot.slane %v5644_v62, 7 }
 0x17d   : > { %v713_v35 = vpop.f32.mrf.mxu0 }
 0x17e   : > { %v826_v36 = vpop.f32.mrf.mxu1  ;;  %1131 = vst [vmem:[#allocation2 + $0x60] sm:$0xff] %v5588_v28  ;;  %v5592_v37 = vmax.f32 %v821_v29, 0.0  ;;  %v714_v42 = vadd.f32 %v713_v35, %v5584_v10  ;;  %v825_v43 = vadd.f32 %v824_v27, %v712_v34  ;;  %2394 = vrot.lane.b32.xlu0 %v5588_v28, %s5194_s27  ;;  %v1402_v21 = vrot.slane %v5588_v28, 7 }
 0x17f   : > { %v717_v44 = vpop.f32.mrf.mxu0 }
 0x180   : > { %v830_v45 = vpop.f32.mrf.mxu1  ;;  %1132 = vst [vmem:[#allocation2 + $0xe8] sm:$0xff] %v5592_v37  ;;  %v5598_v50 = vmax.f32 %v825_v43, 0.0  ;;  %v718_v51 = vadd.f32 %v717_v44, %v5580_v5  ;;  %v827_v52 = vadd.f32 %v826_v36, %v714_v42  ;;  %2586 = vrot.lane.b32.xlu1 %v5592_v37, %s5195_s29 }
 0x181   : > { %v719_v53 = vpop.f32.mrf.mxu0 }
 0x182   : > { %v832_v58 = vpop.f32.mrf.mxu1  ;;  %1135 = vst [vmem:[#allocation2 + $0x18] sm:$0xff] %v5598_v50  ;;  %v5604_v59 = vmax.f32 %v827_v52, 0.0  ;;  %v720_v7 = vadd.f32 %v719_v53, %v5584_v10  ;;  %v831_v8 = vadd.f32 %v830_v45, %v718_v51  ;;  %2570 = vrot.lane.b32.xlu0 %v5588_v28, %s5195_s29  ;;  %v5670_v51 = vsub.s32 4, %v5568_v1 }
 0x183   : > { %v723_v9 = vpop.f32.mrf.mxu0 }
 0x184   : > { %v836_v14 = vpop.f32.mrf.mxu1  ;;  %1136 = vst [vmem:[#allocation2 + $0xa8] sm:$0xff] %v5604_v59  ;;  %v5610_v15 = vmax.f32 %v831_v8, 0.0  ;;  %v724_v16 = vadd.f32 %v723_v9, %v5580_v5  ;;  %v833_v17 = vadd.f32 %v832_v58, %v720_v7  ;;  %2572 = vrot.lane.b32.xlu1 %v5598_v50, %s5195_s29  ;;  %v1403_v7 = vsel %vm1400_vm0, %v1401_v20, %v1402_v21  ;;  %v1277_v20 = vld [vmem:[#allocation2 + $0xb0] sm:$0x80] }
 0x185   : > { %v725_v22 = vpop.f32.mrf.mxu0  ;;  %v5812_v63 = vld [vmem:[#allocation2 + $0x60] sm:$0xfe] }
 0x186   : > { %v838_v23 = vpop.f32.mrf.mxu1  ;;  %v5615_v24 = vmax.f32 %v833_v17, 0.0  ;;  %v726_v25 = vadd.f32 %v725_v22, %v5584_v10  ;;  %v837_v30 = vadd.f32 %v836_v14, %v724_v16  ;;  %2410 = vrot.lane.b32.xlu0 %v5592_v37, %s5194_s27 }
 0x187   : > { %v729_v31 = vpop.f32.mrf.mxu0 }
 0x188   : > { %v842_v32 = vpop.f32.mrf.mxu1  ;;  %1140 = vst [vmem:[#allocation2 + $0xf0] sm:$0xff] %v5615_v24  ;;  %v5624_v38 = vmax.f32 %v837_v30, 0.0  ;;  %v839_v39 = vadd.f32 %v838_v23, %v726_v25  ;;  %2412 = vrot.lane.b32.xlu1 %v5604_v59, %s5194_s27  ;;  %v730_v40 = vadd.f32 %v729_v31, %v5580_v5 }
 0x189   : > { %v731_v41 = vpop.f32.mrf.mxu0 }
 0x18a   : > { %v844_v46 = vpop.f32.mrf.mxu1  ;;  %v5629_v47 = vmax.f32 %v839_v39, 0.0  ;;  %2396 = vrot.lane.b32.xlu0 %v5598_v50, %s5194_s27  ;;  %v732_v48 = vadd.f32 %v731_v41, %v5584_v10  ;;  %v843_v49 = vadd.f32 %v842_v32, %v730_v40  ;;  %v5649_v12 = vmul.f32 %v5638_v57, %v5624_v38 }
 0x18b   : > { %v735_v55 = vpop.f32.mrf.mxu0  ;;  %v10179_v44 = vrot.slane %v5624_v38, 1 }
 0x18c   : > { %v848_v56 = vpop.f32.mrf.mxu1  ;;  %2398 = vrot.lane.b32.xlu1 %v5610_v15, %s5194_s27  ;;  %v5642_v60 = vmax.f32 %v843_v49, 0.0  ;;  %v845_v61 = vadd.f32 %v844_v46, %v732_v48  ;;  %v736_v0 = vadd.f32 %v735_v55, %v5580_v5  ;;  %10473 = vst [vmem:[#allocation20_spill] sm:$0xff] %v5649_v12  ;;  %v10178_v14 = vrot.slane %v5629_v47, 1 }
 0x18d   : > { %v737_v6 = vpop.f32.mrf.mxu0 }
 0x18e   : > { %v850_v11 = vpop.f32.mrf.mxu1  ;;  %2588 = vrot.lane.b32.xlu0 %v5604_v59, %s5195_s29  ;;  %v5653_v13 = vmax.f32 %v845_v61, 0.0  ;;  %v738_v18 = vadd.f32 %v737_v6, %v5584_v10  ;;  %v849_v19 = vadd.f32 %v848_v56, %v736_v0  ;;  %v5665_v36 = vmul.f32 %v5638_v57, %v5642_v60 }
 0x18f   : > { %v741_v26 = vpop.f32.mrf.mxu0  ;;  %v2930_v45 = vrot.slane %v5642_v60, 1  ;;  %v10175_v30 = vrot.slane %v5642_v60, 7  ;;  %v10177_v56 = vrot.slane %v5615_v24, 7  ;;  %v1431_v6 = vrot.slane %v5629_v47, 7 }
 0x190   : > { %v854_v27 = vpop.f32.mrf.mxu1  ;;  %2574 = vrot.lane.b32.xlu1 %v5610_v15, %s5195_s29  ;;  %v5660_v29 = vmax.f32 %v849_v19, 0.0  ;;  %v851_v34 = vadd.f32 %v850_v11, %v738_v18  ;;  %v742_v35 = vadd.f32 %v741_v26, %v5580_v5  ;;  %10474 = vst [vmem:[#allocation21_spill] sm:$0xff] %v5665_v36  ;;  %v10174_v17 = vrot.slane %v5653_v13, 1 }
 0x191   : > { %v743_v42 = vpop.f32.mrf.mxu0  ;;  %v5682_v16 = vsel %vm1680_vm1, %v10179_v44, %v2930_v45  ;;  %v5729_v18 = vrot.slane %v5634_v54, %v5670_v51  ;;  %v5734_v19 = vsel %vm1400_vm0, %v10177_v56, %v1431_v6 }
 0x192   : > { %v856_v43 = vpop.f32.mrf.mxu1  ;;  %2590 = vrot.lane.b32.xlu0 %v5615_v24, %s5195_s29  ;;  %v5674_v52 = vmax.f32 %v851_v34, 0.0  ;;  %v744_v53 = vadd.f32 %v743_v42, %v5584_v10  ;;  %v855_v58 = vadd.f32 %v854_v27, %v742_v35  ;;  %v5696_v39 = vsel %vm1680_vm1, %v10178_v14, %v10174_v17 }
 0x193   : > { %v747_v8 = vpop.f32.mrf.mxu0  ;;  %v10171_v40 = vrot.slane %v5660_v29, 7  ;;  %v5701_v41 = vmul.f32 %v5638_v57, %v5660_v29  ;;  %v10173_v46 = vrot.slane %v5660_v29, 1  ;;  %v5742_v27 = vmul.f32 %v5729_v18, %v5610_v15 }
 0x194   : > { %v860_v9 = vpop.f32.mrf.mxu1  ;;  %2414 = vrot.lane.b32.xlu1 %v5615_v24, %s5194_s27  ;;  %v5687_v22 = vmax.f32 %v855_v58, 0.0  ;;  %v857_v23 = vadd.f32 %v856_v43, %v744_v53  ;;  %v748_v25 = vadd.f32 %v747_v8, %v5580_v5  ;;  %v1413_v5 = vrot.slane %v5598_v50, 7  ;;  %v5756_v53 = vld [vmem:[#allocation9 + $0x8] sm:$0xff] }
 0x195   : > { %v749_v31 = vpop.f32.mrf.mxu0  ;;  %10475 = vst [vmem:[#allocation22_spill] sm:$0xff] %v5701_v41  ;;  %v5715_v61 = vsel %vm1400_vm0, %v10175_v30, %v10171_v40  ;;  %v5720_v0 = vsel %vm1680_vm1, %v2930_v45, %v10173_v46  ;;  %10476 = vst [vmem:[#allocation23_spill] sm:$0xff] %v5742_v27  ;;  %v10172_v35 = vrot.slane %v5653_v13, 7  ;;  %v1404_v42 = vrot.slane %v1277_v20, 7  ;;  %v5823_v40 = vld [vmem:[#allocation2 + $0xe8] sm:$0xfe] }
 0x196   : > { %v862_v32 = vpop.f32.mrf.mxu1  ;;  %1501 = vrot.lane.b32.xlu0 %v1403_v7, %s5194_s27  ;;  %v5706_v48 = vmax.f32 %v857_v23, 0.0  ;;  %v750_v49 = vadd.f32 %v749_v31, %v5584_v10  ;;  %v861_v55 = vadd.f32 %v860_v9, %v748_v25  ;;  %v1414_v34 = vsel %vm1400_vm0, %v1402_v21, %v1413_v5  ;;  %v5758_v21 = vld [vmem:[#allocation2 + $0x100] sm:$0x1] }
 0x197   : > { %v1405_v43 = vrot.slane %v5592_v37, 7  ;;  %v5752_v45 = vsel %vm1400_vm0, %v1431_v6, %v10172_v35  ;;  %v10176_v58 = vrot.slane %v5604_v59, 7  ;;  %v5769_v8 = vmul.f32 %v5729_v18, %v5624_v38 }
 0x198   : > { %2576 = vrot.lane.b32.xlu1 %v5624_v38, %s5195_s29  ;;  %v5725_v10 = vmax.f32 %v861_v55, 0.0  ;;  %v863_v11 = vadd.f32 %v862_v32, %v750_v49  ;;  %v5774_v23 = vmul.f32 %v5729_v18, %v5642_v60  ;;  %v5778_v25 = vmul.f32 %v5729_v18, %v5660_v29 }
 0x199   : > { %10478 = vst [vmem:[#allocation25_spill] sm:$0xff] %v5769_v8  ;;  %v1406_v9 = vsel %vm1400_vm0, %v1404_v42, %v1405_v43  ;;  %v5782_v31 = vrot.slane %v5756_v53, %v5670_v51  ;;  %v1416_v32 = vsel %vm1400_vm0, %v1405_v43, %v10176_v58  ;;  %v2914_v42 = vrot.slane %v5610_v15, 1 }
 0x19a   : > { %1813 = vrot.lane.b32.xlu0 %v1403_v7, %s5195_s29  ;;  %1159 = vst [vmem:[#allocation2 + $0x128] sm:$0xff] %v5725_v10  ;;  %v5738_v26 = vmax.f32 %v863_v11, 0.0  ;;  %v5763_v7 = vmul.f32 %v5638_v57, %v5758_v21  ;;  %10479 = vst [vmem:[#allocation26_spill] sm:$0xff] %v5774_v23  ;;  %v1421_v11 = vrot.slane %v5610_v15, 7  ;;  %v2903_v43 = vrot.slane %v5598_v50, 1 }
 0x19b   : > { %10480 = vst [vmem:[#allocation27_spill] sm:$0xff] %v5778_v25  ;;  %v5790_v49 = vmul.f32 %v5782_v31, %v5629_v47  ;;  %v5795_v55 = vmul.f32 %v5782_v31, %v5653_v13  ;;  %v5799_v6 = vmul.f32 %v5782_v31, %v5615_v24  ;;  %v2916_v35 = vrot.slane %v5615_v24, 1 }
 0x19c   : > { %1815 = vrot.lane.b32.xlu1 %v1414_v34, %s5195_s29  ;;  %1160 = vst [vmem:[#allocation2] sm:$0xff] %v5738_v26  ;;  %10477 = vst [vmem:[#allocation24_spill] sm:$0xff] %v5763_v7  ;;  %v1422_v20 = vsel %vm1400_vm0, %v1413_v5, %v1421_v11  ;;  %v2906_v46 = vrot.slane %v5604_v59, 1 }
 0x19d   : > { %10481 = vst [vmem:[#allocation28_spill] sm:$0xff] %v5790_v49  ;;  %10482 = vst [vmem:[#allocation29_spill] sm:$0xff] %v5795_v55 }
 0x19e   : > { %2400 = vrot.lane.b32.xlu0 %v5624_v38, %s5194_s27  ;;  %10483 = vst [vmem:[#allocation30_spill] sm:$0xff] %v5799_v6 }
 0x1a0   : > { %2578 = vrot.lane.b32.xlu1 %v5642_v60, %s5195_s29 }
 0x1a2   : > { %1517 = vrot.lane.b32.xlu0 %v1406_v9, %s5194_s27 }
 0x1a4   : > { %1519 = vrot.lane.b32.xlu1 %v1416_v32, %s5194_s27 }
 0x1a6   : > { %1829 = vrot.lane.b32.xlu0 %v1406_v9, %s5195_s29  ;;  %v2915_v9 = vsel %vm1680_vm1, %v2903_v43, %v2914_v42 }
 0x1a8   : > { %1831 = vrot.lane.b32.xlu1 %v1416_v32, %s5195_s29  ;;  %v2902_v32 = vrot.slane %v5812_v63, 1 }
 0x1aa   : > { %2416 = vrot.lane.b32.xlu0 %v5629_v47, %s5194_s27  ;;  %v2904_v5 = vsel %vm1680_vm1, %v2902_v32, %v2903_v43  ;;  %v2917_v43 = vsel %vm1680_vm1, %v2906_v46, %v2916_v35  ;;  %v10180_v32 = vrot.slane %v5624_v38, 7 }
 0x1ac   : > { %1505 = vrot.lane.b32.xlu1 %v1422_v20, %s5194_s27 }
 0x1ae   : > { %2592 = vrot.lane.b32.xlu0 %v5629_v47, %s5195_s29 }
 0x1b0   : > { %3004 = vrot.lane.b32.xlu1 %v2915_v9, %s5194_s27 }
 0x1b2   : > { %1503 = vrot.lane.b32.xlu0 %v1414_v34, %s5194_s27  ;;  %v2905_v34 = vrot.slane %v5823_v40, 1 }
 0x1b4   : > { %3312 = vrot.lane.b32.xlu1 %v2915_v9, %s5195_s29  ;;  %v5836_v9 = vsub.s32 2, %v5568_v1 }
 0x1b6   : > { %3002 = vrot.lane.b32.xlu0 %v2904_v5, %s5194_s27  ;;  %10484 = vst [vmem:[#allocation31_spill] sm:$0xff] %v5836_v9  ;;  %v5845_v17 = vrot.slane %v5573_v3, %v5836_v9 }
 0x1b8   : > { %1817 = vrot.lane.b32.xlu1 %v1422_v20, %s5195_s29  ;;  %v2907_v20 = vsel %vm1680_vm1, %v2905_v34, %v2906_v46  ;;  %v1430_v34 = vsel %vm1400_vm0, %v1421_v11, %v10180_v32 }
 0x1ba   : > { %3310 = vrot.lane.b32.xlu0 %v2904_v5, %s5195_s29  ;;  %v5841_v5 = vsub.s32 3, %v5568_v1 }
 0x1bc   : > { %2580 = vrot.lane.b32.xlu1 %v5660_v29, %s5195_s29  ;;  %10485 = vst [vmem:[#allocation32_spill] sm:$0xff] %v5841_v5  ;;  %v5850_v30 = vrot.slane %v5573_v3, %v5841_v5 }
 0x1be   : > { %2402 = vrot.lane.b32.xlu0 %v5642_v60, %s5194_s27 }
 0x1c0   : > { %3020 = vrot.lane.b32.xlu1 %v2917_v43, %s5194_s27 }
 0x1c2   : > { %3018 = vrot.lane.b32.xlu0 %v2907_v20, %s5194_s27 }
 0x1c4   : > { %3328 = vrot.lane.b32.xlu1 %v2917_v43, %s5195_s29 }
 0x1c6   : > { %3326 = vrot.lane.b32.xlu0 %v2907_v20, %s5195_s29  ;;  %v931_v46 = vpop.f32.mrf.mxu0  ;;  %v10486_v20 = vrot.slane %v5624_v38, 1 }
 0x1c7   : > { %v932_v58 = vadd.f32 %v931_v46, %v5845_v17 }
 0x1c8   : > { %1507 = vrot.lane.b32.xlu1 %v1430_v34, %s5194_s27  ;;  %v933_v56 = vpop.f32.mrf.mxu0  ;;  %v1044_v14 = vpop.f32.mrf.mxu1  ;;  %v5864_v55 = vsel %vm1680_vm1, %v2914_v42, %v10486_v20 }
 0x1c9   : > { %v934_v44 = vadd.f32 %v933_v56, %v5850_v30  ;;  %v1045_v43 = vadd.f32 %v1044_v14, %v932_v58 }
 0x1ca   : > { %2418 = vrot.lane.b32.xlu0 %v5653_v13, %s5194_s27  ;;  %v937_v3 = vpop.f32.mrf.mxu0  ;;  %v1046_v6 = vpop.f32.mrf.mxu1 }
 0x1cb   : > { %v5866_v11 = vmax.f32 %v1045_v43, 0.0  ;;  %v938_v46 = vadd.f32 %v937_v3, %v5845_v17  ;;  %v1047_v32 = vadd.f32 %v1046_v6, %v934_v44 }
 0x1cc   : > { %3006 = vrot.lane.b32.xlu1 %v5864_v55, %s5194_s27  ;;  %v939_v56 = vpop.f32.mrf.mxu0  ;;  %v1050_v14 = vpop.f32.mrf.mxu1 }
 0x1cd   : > { %1133 = vst [vmem:[#allocation2 + $0x118] sm:$0xff] %v5866_v11  ;;  %v5872_v58 = vmax.f32 %v1047_v32, 0.0  ;;  %v940_v7 = vadd.f32 %v939_v56, %v5850_v30  ;;  %v1051_v41 = vadd.f32 %v1050_v14, %v938_v46 }
 0x1ce   : > { %2594 = vrot.lane.b32.xlu0 %v5653_v13, %s5195_s29  ;;  %v1052_v42 = vpop.f32.mrf.mxu1  ;;  %v943_v43 = vpop.f32.mrf.mxu0 }
 0x1cf   : > { %1134 = vst [vmem:[#allocation2 + $0xd0] sm:$0xff] %v5872_v58  ;;  %v5878_v44 = vmax.f32 %v1051_v41, 0.0  ;;  %v1053_v6 = vadd.f32 %v1052_v42, %v940_v7  ;;  %v944_v3 = vadd.f32 %v943_v43, %v5845_v17  ;;  %v10487_v41 = vrot.slane %v5629_v47, 1 }
 0x1d0   : > { %1819 = vrot.lane.b32.xlu1 %v1430_v34, %s5195_s29  ;;  %v945_v20 = vpop.f32.mrf.mxu0  ;;  %v1056_v32 = vpop.f32.mrf.mxu1 }
 0x1d1   : > { %v5882_v36 = vmax.f32 %v1053_v6, 0.0  ;;  %v946_v46 = vadd.f32 %v945_v20, %v5850_v30  ;;  %v1057_v56 = vadd.f32 %v1056_v32, %v944_v3  ;;  %v5890_v7 = vsel %vm1680_vm1, %v2916_v35, %v10487_v41 }
 0x1d2   : > { %2404 = vrot.lane.b32.xlu0 %v5660_v29, %s5194_s27  ;;  %v949_v14 = vpop.f32.mrf.mxu0  ;;  %v1058_v49 = vpop.f32.mrf.mxu1  ;;  %v10488_v20 = vrot.slane %v5615_v24, 7  ;;  %v10489_v32 = vrot.slane %v5604_v59, 7 }
 0x1d3   : > { %v5892_v42 = vmax.f32 %v1057_v56, 0.0  ;;  %v950_v34 = vadd.f32 %v949_v14, %v5845_v17  ;;  %v1059_v43 = vadd.f32 %v1058_v49, %v946_v46 }
 0x1d4   : > { %3330 = vrot.lane.b32.xlu1 %v5890_v7, %s5195_s29  ;;  %v951_v6 = vpop.f32.mrf.mxu0  ;;  %v1062_v3 = vpop.f32.mrf.mxu1  ;;  %v1424_v12 = vsel %vm1400_vm0, %v10489_v32, %v10488_v20 }
 0x1d5   : > { %v5902_v25 = vmax.f32 %v1059_v43, 0.0  ;;  %v952_v35 = vadd.f32 %v951_v6, %v5850_v30  ;;  %v1063_v56 = vadd.f32 %v1062_v3, %v950_v34 }
 0x1d6   : > { %1521 = vrot.lane.b32.xlu0 %v1424_v12, %s5194_s27  ;;  %v1064_v14 = vpop.f32.mrf.mxu1  ;;  %v955_v49 = vpop.f32.mrf.mxu0 }
 0x1d7   : > { %v5906_v46 = vmax.f32 %v1063_v56, 0.0  ;;  %v1065_v41 = vadd.f32 %v1064_v14, %v952_v35  ;;  %v956_v23 = vadd.f32 %v955_v49, %v5845_v17 }
 0x1d8   : > { %2598 = vrot.lane.b32.xlu1 %v5706_v48, %s5195_s29  ;;  %v957_v8 = vpop.f32.mrf.mxu0  ;;  %v1068_v27 = vpop.f32.mrf.mxu1 }
 0x1d9   : > { %v5911_v20 = vmax.f32 %v1065_v41, 0.0  ;;  %v958_v43 = vadd.f32 %v957_v8, %v5850_v30  ;;  %v1069_v6 = vadd.f32 %v1068_v27, %v956_v23  ;;  %v10490_v23 = vrot.slane %v5642_v60, 7 }
 0x1da   : > { %1833 = vrot.lane.b32.xlu0 %v1424_v12, %s5195_s29  ;;  %v1070_v34 = vpop.f32.mrf.mxu1  ;;  %v961_v3 = vpop.f32.mrf.mxu0 }
 0x1db   : > { %v5915_v32 = vmax.f32 %v1069_v6, 0.0  ;;  %v1071_v56 = vadd.f32 %v1070_v34, %v958_v43  ;;  %v962_v35 = vadd.f32 %v961_v3, %v5845_v17  ;;  %v10491_v43 = vrot.slane %v5624_v38, 7 }
 0x1dc   : > { %3008 = vrot.lane.b32.xlu1 %v5682_v16, %s5194_s27  ;;  %v963_v14 = vpop.f32.mrf.mxu0  ;;  %v1074_v49 = vpop.f32.mrf.mxu1 }
 0x1dd   : > { %1149 = vst [vmem:[#allocation2 + $0xb8] sm:$0xff] %v5915_v32  ;;  %v5921_v41 = vmax.f32 %v1071_v56, 0.0  ;;  %v964_v27 = vadd.f32 %v963_v14, %v5850_v30  ;;  %v1075_v8 = vadd.f32 %v1074_v49, %v962_v35  ;;  %v1438_v6 = vsel %vm1400_vm0, %v10491_v43, %v10490_v23 }
 0x1de   : > { %2420 = vrot.lane.b32.xlu0 %v5674_v52, %s5194_s27  ;;  %v1076_v12 = vpop.f32.mrf.mxu1  ;;  %v967_v35 = vpop.f32.mrf.mxu0 }
 0x1df   : > { %1150 = vst [vmem:[#allocation2 + $0x80] sm:$0xff] %v5921_v41  ;;  %v5932_v34 = vmax.f32 %v1075_v8, 0.0  ;;  %v1077_v3 = vadd.f32 %v1076_v12, %v964_v27  ;;  %v968_v14 = vadd.f32 %v967_v35, %v5845_v17 }
 0x1e0   : > { %1821 = vrot.lane.b32.xlu1 %v1438_v6, %s5195_s29  ;;  %v969_v49 = vpop.f32.mrf.mxu0  ;;  %v1080_v27 = vpop.f32.mrf.mxu1 }
 0x1e1   : > { %1153 = vst [vmem:[#allocation2 + $0x30] sm:$0xff] %v5932_v34  ;;  %v5936_v56 = vmax.f32 %v1077_v3, 0.0  ;;  %v970_v8 = vadd.f32 %v969_v49, %v5850_v30  ;;  %v1081_v12 = vadd.f32 %v1080_v27, %v968_v14  ;;  %v2940_v27 = vrot.slane %v5674_v52, 1 }
 0x1e2   : > { %2596 = vrot.lane.b32.xlu0 %v5674_v52, %s5195_s29  ;;  %v1082_v23 = vpop.f32.mrf.mxu1 }
 0x1e3   : > { %1154 = vst [vmem:[#allocation2 + $0xc8] sm:$0xff] %v5936_v56  ;;  %v1083_v43 = vadd.f32 %v1082_v23, %v970_v8 }
 0x1e4   : > { %3024 = vrot.lane.b32.xlu1 %v5696_v39, %s5194_s27 }
 0x1e5   : > { %v1118_v3 = vmax.f32 %v1083_v43, 0.0 }
 0x1e6   : > { %3314 = vrot.lane.b32.xlu0 %v5864_v55, %s5195_s29  ;;  %v1117_v55 = vmax.f32 %v1081_v12, 0.0 }
 0x1e7   : > { %1158 = vst [vmem:[#allocation2 + $0x20] sm:$0xff] %v1118_v3 }
 0x1e8   : > { %3332 = vrot.lane.b32.xlu1 %v5696_v39, %s5195_s29  ;;  %1157 = vst [vmem:[#allocation2 + $0x130] sm:$0xff] %v1117_v55  ;;  %v2946_v55 = vrot.slane %v5687_v22, 1 }
 0x1ea   : > { %2406 = vrot.lane.b32.xlu0 %v5687_v22, %s5194_s27 }
 0x1ec   : > { %2424 = vrot.lane.b32.xlu1 %v5738_v26, %s5194_s27 }
 0x1ee   : > { %2582 = vrot.lane.b32.xlu0 %v5687_v22, %s5195_s29 }
 0x1f0   : > { %v5955_v39 = vpop.permute.xlu0 %2394  ;;  %1511 = vrot.lane.b32.xlu1 %v5715_v61, %s5194_s27 }
 0x1f1   : > { %10492 = vst [vmem:[#allocation33_spill] sm:$0xff] %v5955_v39  ;;  %v1086_v39 = vpop.f32.mrf.mxu1 }
 0x1f2   : > { %v5959_v35 = vpop.permute.xlu1 %2586  ;;  %3022 = vrot.lane.b32.xlu0 %v5890_v7, %s5194_s27  ;;  %v10498_v7 = vrot.slane %v5653_v13, 1 }
 0x1f3   : > { %10493 = vst [vmem:[#allocation34_spill] sm:$0xff] %v5959_v35 }
 0x1f4   : > { %v5963_v14 = vpop.permute.xlu0 %2570  ;;  %3318 = vrot.lane.b32.xlu1 %v5720_v0, %s5195_s29  ;;  %v2941_v23 = vsel %vm1680_vm1, %v10498_v7, %v2940_v27 }
 0x1f5   : > { %10494 = vst [vmem:[#allocation35_spill] sm:$0xff] %v5963_v14 }
 0x1f6   : > { %v5967_v49 = vpop.permute.xlu1 %2572  ;;  %1523 = vrot.lane.b32.xlu0 %v5734_v19, %s5194_s27 }
 0x1f7   : > { %10495 = vst [vmem:[#allocation36_spill] sm:$0xff] %v5967_v49 }
 0x1f8   : > { %v5972_v8 = vpop.permute.xlu0 %2410  ;;  %1823 = vrot.lane.b32.xlu1 %v5715_v61, %s5195_s29  ;;  %v10501_v61 = vrot.slane %v5660_v29, 1 }
 0x1f9   : > { %10496 = vst [vmem:[#allocation37_spill] sm:$0xff] %v5972_v8  ;;  %v1088_v8 = vpop.f32.mrf.mxu1 }
 0x1fa   : > { %v5976_v12 = vpop.permute.xlu1 %2412  ;;  %1835 = vrot.lane.b32.xlu0 %v5734_v19, %s5195_s29  ;;  %v5994_v49 = vsel %vm1680_vm1, %v10501_v61, %v2946_v55  ;;  %v10190_v19 = vrot.slane %v5706_v48, 1 }
 0x1fb   : > { %10497 = vst [vmem:[#allocation38_spill] sm:$0xff] %v5976_v12 }
 0x1fc   : > { %v5984_v43 = vpop.permute.xlu0 %2396  ;;  %3026 = vrot.lane.b32.xlu1 %v2941_v23, %s5194_s27 }
 0x1fd   : > { %10499 = vst [vmem:[#allocation39_spill] sm:$0xff] %v5984_v43  ;;  %v973_v43 = vpop.f32.mrf.mxu0 }
 0x1fe   : > { %v5987_v3 = vpop.permute.xlu1 %2398  ;;  %2422 = vrot.lane.b32.xlu0 %v5706_v48, %s5194_s27  ;;  %v974_v61 = vadd.f32 %v973_v43, %v5845_v17 }
 0x1ff   : > { %10500 = vst [vmem:[#allocation40_spill] sm:$0xff] %v5987_v3  ;;  %v2949_v3 = vsel %vm1680_vm1, %v2940_v27, %v10190_v19 }
 0x200   : > { %v5997_v12 = vpop.permute.xlu0 %2588  ;;  %3012 = vrot.lane.b32.xlu1 %v5994_v49, %s5194_s27  ;;  %v1087_v19 = vadd.f32 %v1086_v39, %v974_v61 }
 0x201   : > { %10502 = vst [vmem:[#allocation41_spill] sm:$0xff] %v5997_v12  ;;  %v975_v12 = vpop.f32.mrf.mxu0 }
 0x202   : > { %v6001_v7 = vpop.permute.xlu1 %2574  ;;  %1509 = vrot.lane.b32.xlu0 %v1438_v6, %s5194_s27  ;;  %v976_v6 = vadd.f32 %v975_v12, %v5850_v30  ;;  %v2954_v30 = vrot.slane %v5725_v10, 1 }
 0x203   : > { %10503 = vst [vmem:[#allocation42_spill] sm:$0xff] %v6001_v7  ;;  %v1455_v7 = vrot.slane %v5706_v48, 7 }
 0x204   : > { %v6007_v14 = vpop.permute.xlu0 %2590  ;;  %3028 = vrot.lane.b32.xlu1 %v2949_v3, %s5194_s27  ;;  %v1089_v43 = vadd.f32 %v1088_v8, %v976_v6  ;;  %v2955_v8 = vsel %vm1680_vm1, %v2946_v55, %v2954_v30 }
 0x205   : > { %10504 = vst [vmem:[#allocation43_spill] sm:$0xff] %v6007_v14  ;;  %v1447_v14 = vrot.slane %v5674_v52, 7 }
 0x206   : > { %v6011_v35 = vpop.permute.xlu1 %2414  ;;  %3316 = vrot.lane.b32.xlu0 %v5682_v16, %s5195_s29  ;;  %v1121_v16 = vmax.f32 %v1087_v19, 0.0  ;;  %v1122_v39 = vmax.f32 %v1089_v43, 0.0  ;;  %v6051_v43 = vld [vmem:[#allocation2] sm:$0x7f] }
 0x207   : > { %10505 = vst [vmem:[#allocation44_spill] sm:$0xff] %v6011_v35  ;;  %v1456_v35 = vsel %vm1400_vm0, %v1447_v14, %v1455_v7 }
 0x208   : > { %3336 = vrot.lane.b32.xlu1 %v2949_v3, %s5195_s29  ;;  %v6018_v27 = vpop.permute.xlu0 %1501  ;;  %v6030_v3 = vld [vmem:[#allocation2 + $0x128] sm:$0x7f]  ;;  %1161 = vst [vmem:[#allocation2 + $0x98] sm:$0xff] %v1121_v16  ;;  %1162 = vst [vmem:[#allocation2 + $0x40] sm:$0xff] %v1122_v39  ;;  %v10513_v39 = vrot.slane %v5653_v13, 7 }
 0x209   : > { %10506 = vst [vmem:[#allocation45_spill] sm:$0xff] %v6018_v27  ;;  %v1461_v19 = vrot.slane %v6030_v3, 7 }
 0x20a   : > { %v6021_v17 = vpop.permute.xlu1 %2576  ;;  %1525 = vrot.lane.b32.xlu0 %v5752_v45, %s5194_s27 }
 0x20b   : > { %10507 = vst [vmem:[#allocation46_spill] sm:$0xff] %v6021_v17  ;;  %v1453_v17 = vrot.slane %v5687_v22, 7 }
 0x20c   : > { %1841 = vrot.lane.b32.xlu1 %v1456_v35, %s5195_s29  ;;  %v6028_v12 = vpop.permute.xlu0 %1813 }
 0x20d   : > { %10508 = vst [vmem:[#allocation47_spill] sm:$0xff] %v6028_v12  ;;  %v1462_v16 = vsel %vm1400_vm0, %v1453_v17, %v1461_v19  ;;  %v1463_v19 = vrot.slane %v6051_v43, 7 }
 0x20e   : > { %v6032_v61 = vpop.permute.xlu1 %1815  ;;  %1837 = vrot.lane.b32.xlu0 %v5752_v45, %s5195_s29  ;;  %v2962_v45 = vrot.slane %v5758_v21, 1 }
 0x20f   : > { %10509 = vst [vmem:[#allocation48_spill] sm:$0xff] %v6032_v61  ;;  %v1464_v27 = vsel %vm1400_vm0, %v1455_v7, %v1463_v19 }
 0x210   : > { %3014 = vrot.lane.b32.xlu1 %v2955_v8, %s5194_s27  ;;  %v6039_v6 = vpop.permute.xlu0 %2400 }
 0x211   : > { %10510 = vst [vmem:[#allocation49_spill] sm:$0xff] %v6039_v6  ;;  %v1448_v6 = vsel %vm1400_vm0, %v10513_v39, %v1447_v14  ;;  %v2956_v14 = vrot.slane %v5738_v26, 1 }
 0x212   : > { %v6042_v12 = vpop.permute.xlu1 %2578  ;;  %3010 = vrot.lane.b32.xlu0 %v5720_v0, %s5194_s27  ;;  %v2963_v0 = vsel %vm1680_vm1, %v2954_v30, %v2962_v45  ;;  %v10519_v45 = vrot.slane %v5706_v48, 1 }
 0x213   : > { %10511 = vst [vmem:[#allocation50_spill] sm:$0xff] %v6042_v12 }
 0x214   : > { %1827 = vrot.lane.b32.xlu1 %v1462_v16, %s5195_s29  ;;  %v6049_v55 = vpop.permute.xlu0 %1517 }
 0x215   : > { %10512 = vst [vmem:[#allocation51_spill] sm:$0xff] %v6049_v55 }
 0x216   : > { %v6056_v61 = vpop.permute.xlu1 %1519  ;;  %1527 = vrot.lane.b32.xlu0 %v1448_v6, %s5194_s27 }
 0x217   : > { %10514 = vst [vmem:[#allocation52_spill] sm:$0xff] %v6056_v61  ;;  %v2811_v61 = vld [vmem:[#allocation2 + $0x138] sm:$0x1] }
 0x218   : > { %3016 = vrot.lane.b32.xlu1 %v2963_v0, %s5194_s27  ;;  %v6062_v21 = vpop.permute.xlu0 %1829 }
 0x219   : > { %10515 = vst [vmem:[#allocation53_spill] sm:$0xff] %v6062_v21  ;;  %v2957_v21 = vsel %vm1680_vm1, %v10519_v45, %v2956_v14 }
 0x21a   : > { %v6064_v12 = vpop.permute.xlu1 %1831  ;;  %3334 = vrot.lane.b32.xlu0 %v2941_v23, %s5195_s29 }
 0x21b   : > { %10516 = vst [vmem:[#allocation54_spill] sm:$0xff] %v6064_v12  ;;  %v2964_v12 = vrot.slane %v2811_v61, 1 }
 0x21c   : > { %1531 = vrot.lane.b32.xlu1 %v1464_v27, %s5194_s27  ;;  %v6070_v39 = vpop.permute.xlu0 %2416 }
 0x21d   : > { %10517 = vst [vmem:[#allocation55_spill] sm:$0xff] %v6070_v39  ;;  %v2965_v19 = vsel %vm1680_vm1, %v2956_v14, %v2964_v12 }
 0x21e   : > { %v6072_v30 = vpop.permute.xlu1 %1505  ;;  %1839 = vrot.lane.b32.xlu0 %v1448_v6, %s5195_s29  ;;  %v10523_v6 = vrot.slane %v5660_v29, 7 }
 0x21f   : > { %10518 = vst [vmem:[#allocation56_spill] sm:$0xff] %v6072_v30 }
 0x220   : > { %3338 = vrot.lane.b32.xlu1 %v2957_v21, %s5195_s29  ;;  %v6079_v23 = vpop.permute.xlu0 %2592  ;;  %v1454_v45 = vsel %vm1400_vm0, %v10523_v6, %v1453_v17 }
 0x221   : > { %10520 = vst [vmem:[#allocation57_spill] sm:$0xff] %v6079_v23 }
 0x222   : > { %v6081_v7 = vpop.permute.xlu1 %3004  ;;  %3320 = vrot.lane.b32.xlu0 %v5994_v49, %s5195_s29 }
 0x223   : > { %10521 = vst [vmem:[#allocation58_spill] sm:$0xff] %v6081_v7 }
 0x224   : > { %3032 = vrot.lane.b32.xlu1 %v2965_v19, %s5194_s27  ;;  %v6087_v30 = vpop.permute.xlu0 %1503 }
 0x225   : > { %10522 = vst [vmem:[#allocation59_spill] sm:$0xff] %v6087_v30 }
 0x226   : > { %v6092_v61 = vpop.permute.xlu1 %3312  ;;  %1513 = vrot.lane.b32.xlu0 %v1454_v45, %s5194_s27 }
 0x227   : > { %10524 = vst [vmem:[#allocation60_spill] sm:$0xff] %v6092_v61  ;;  %v4030_v61 = vld [vmem:[#allocation11 + $0x5e0] sm:$0xff] }
 0x228   : > { %3340 = vrot.lane.b32.xlu1 %v2965_v19, %s5195_s29  ;;  %v6096_v7 = vpop.permute.xlu0 %3002 }
 0x229   : > { %10525 = vst [vmem:[#allocation61_spill] sm:$0xff] %v6096_v7  ;;  %v4007_v7 = vld [vmem:[#allocation11 + $0x528] sm:$0xff] }
 0x22a   : > { %v6098_v23 = vpop.permute.xlu1 %1817  ;;  %1825 = vrot.lane.b32.xlu0 %v1454_v45, %s5195_s29 }
 0x22b   : > { %10526 = vst [vmem:[#allocation62_spill] sm:$0xff] %v6098_v23 }
 0x22c   : > { %2426 = vrot.lane.b32.xlu1 %v5866_v11, %s5194_s27  ;;  %v6103_v49 = vpop.permute.xlu0 %3310 }
 0x22d   : > { %10527 = vst [vmem:[#allocation63_spill] sm:$0xff] %v6103_v49  ;;  %v4026_v49 = vld [vmem:[#allocation11 + $0x5c0] sm:$0xff] }
 0x22e   : > { %v6105_v12 = vpop.permute.xlu1 %2580  ;;  %1529 = vrot.lane.b32.xlu0 %v1456_v35, %s5194_s27 }
 0x22f   : > { %10528 = vst [vmem:[#allocation64_spill] sm:$0xff] %v6105_v12 }
 0x230   : > { %2602 = vrot.lane.b32.xlu1 %v5866_v11, %s5195_s29  ;;  %v6110_v17 = vpop.permute.xlu0 %2402 }
 0x231   : > { %10529 = vst [vmem:[#allocation65_spill] sm:$0xff] %v6110_v17 }
 0x232   : > { %v6112_v14 = vpop.permute.xlu1 %3020  ;;  %3322 = vrot.lane.b32.xlu0 %v2955_v8, %s5195_s29 }
 0x233   : > { %10530 = vst [vmem:[#allocation66_spill] sm:$0xff] %v6112_v14  ;;  %v4019_v14 = vld [vmem:[#allocation11 + $0x588] sm:$0xff] }
 0x234   : > { %2442 = vrot.lane.b32.xlu1 %v5872_v58, %s5194_s27  ;;  %v6117_v19 = vpop.permute.xlu0 %3018 }
 0x235   : > { %10531 = vst [vmem:[#allocation67_spill] sm:$0xff] %v6117_v19  ;;  %v10563_v19 = vrot.slane %v5866_v11, 7 }
 0x236   : > { %v6119_v6 = vpop.permute.xlu1 %3328  ;;  %1515 = vrot.lane.b32.xlu0 %v1462_v16, %s5194_s27 }
 0x237   : > { %10532 = vst [vmem:[#allocation68_spill] sm:$0xff] %v6119_v6  ;;  %v3898_v6 = vld [vmem:[#allocation11 + $0x1c0] sm:$0xff] }
 0x238   : > { %2604 = vrot.lane.b32.xlu1 %v5878_v44, %s5195_s29  ;;  %v6124_v35 = vpop.permute.xlu0 %3326 }
 0x239   : > { %10533 = vst [vmem:[#allocation69_spill] sm:$0xff] %v6124_v35 }
 0x23a   : > { %v6126_v45 = vpop.permute.xlu1 %1507  ;;  %3324 = vrot.lane.b32.xlu0 %v2963_v0, %s5195_s29  ;;  %v10216_v0 = vrot.slane %v5866_v11, 7 }
 0x23b   : > { %10534 = vst [vmem:[#allocation70_spill] sm:$0xff] %v6126_v45  ;;  %v10215_v45 = vrot.slane %v5878_v44, 7 }
 0x23c   : > { %2622 = vrot.lane.b32.xlu1 %v5902_v25, %s5195_s29  ;;  %v6131_v8 = vpop.permute.xlu0 %2418 }
 0x23d   : > { %10535 = vst [vmem:[#allocation71_spill] sm:$0xff] %v6131_v8  ;;  %v10230_v8 = vrot.slane %v5872_v58, 7 }
 0x23e   : > { %v6133_v12 = vpop.permute.xlu1 %3006  ;;  %3030 = vrot.lane.b32.xlu0 %v2957_v21, %s5194_s27 }
 0x23f   : > { %10536 = vst [vmem:[#allocation72_spill] sm:$0xff] %v6133_v12 }
 0x240   : > { %2432 = vrot.lane.b32.xlu1 %v5906_v46, %s5194_s27  ;;  %v6138_v16 = vpop.permute.xlu0 %2594 }
 0x241   : > { %10537 = vst [vmem:[#allocation73_spill] sm:$0xff] %v6138_v16  ;;  %v3903_v16 = vld [vmem:[#allocation11 + $0x1e8] sm:$0xff] }
 0x242   : > { %v6140_v23 = vpop.permute.xlu1 %1819  ;;  %1843 = vrot.lane.b32.xlu0 %v1464_v27, %s5195_s29  ;;  %v1418_v27 = vsel %vm1400_vm0, %v10216_v0, %v10215_v45  ;;  %v3902_v45 = vld [vmem:[#allocation11 + $0x1e0] sm:$0xff]  ;;  %v4031_v0 = vld [vmem:[#allocation11 + $0x5e8] sm:$0xff]  ;;  %4120 = vmatprep.subr.mxu0 %v3903_v16 }
 0x243   : > { %10538 = vst [vmem:[#allocation74_spill] sm:$0xff] %v6140_v23  ;;  %4233 = vmatprep.subr.mxu1 %v4031_v0  ;;  %4121 = vmatpush1.msra.mxu0 %v3902_v45  ;;  %v3894_v16 = vld [vmem:[#allocation11 + $0x1a0] sm:$0xff]  ;;  %v4023_v0 = vld [vmem:[#allocation11 + $0x5a8] sm:$0xff] }
 0x244   : > { %2624 = vrot.lane.b32.xlu1 %v5911_v20, %s5195_s29  ;;  %v6147_v17 = vpop.permute.xlu0 %2404  ;;  %4234 = vmatpush1.msra.mxu1 %v4030_v61  ;;  %v3891_v45 = vld [vmem:[#allocation11 + $0x188] sm:$0xff]  ;;  %v4022_v61 = vld [vmem:[#allocation11 + $0x5a0] sm:$0xff] }
 0x245   : > { %10539 = vst [vmem:[#allocation75_spill] sm:$0xff] %v6147_v17 }
 0x246   : > { %v6149_v12 = vpop.permute.xlu1 %3330  ;;  %2618 = vrot.lane.b32.xlu0 %v5872_v58, %s5195_s29 }
 0x247   : > { %10540 = vst [vmem:[#allocation76_spill] sm:$0xff] %v6149_v12 }
 0x248   : > { %1535 = vrot.lane.b32.xlu1 %v1418_v27, %s5194_s27  ;;  %v6159_v21 = vpop.permute.xlu0 %1521 }
 0x249   : > { %10541 = vst [vmem:[#allocation77_spill] sm:$0xff] %v6159_v21  ;;  %v10229_v21 = vrot.slane %v5882_v36, 7 }
 0x24a   : > { %v6161_v23 = vpop.permute.xlu1 %2598  ;;  %2428 = vrot.lane.b32.xlu0 %v5878_v44, %s5194_s27 }
 0x24b   : > { %10542 = vst [vmem:[#allocation78_spill] sm:$0xff] %v6161_v23  ;;  %v3899_v23 = vld [vmem:[#allocation11 + $0x1c8] sm:$0xff] }
 0x24c   : > { %1847 = vrot.lane.b32.xlu1 %v1418_v27, %s5195_s29  ;;  %v6166_v12 = vpop.permute.xlu0 %1833  ;;  %4122 = vmatprep.subr.mxu0 %v3899_v23 }
 0x24d   : > { %10543 = vst [vmem:[#allocation79_spill] sm:$0xff] %v6166_v12  ;;  %v3895_v12 = vld [vmem:[#allocation11 + $0x1a8] sm:$0xff]  ;;  %4123 = vmatpush1.msra.mxu0 %v3898_v6 }
 0x24e   : > { %v6168_v17 = vpop.permute.xlu1 %3008  ;;  %2444 = vrot.lane.b32.xlu0 %v5882_v36, %s5194_s27  ;;  %4124 = vmatprep.subr.mxu0 %v3895_v12  ;;  %v4018_v12 = vld [vmem:[#allocation11 + $0x580] sm:$0xff] }
 0x24f   : > { %10544 = vst [vmem:[#allocation80_spill] sm:$0xff] %v6168_v17  ;;  %v4027_v17 = vld [vmem:[#allocation11 + $0x5c8] sm:$0xff]  ;;  %4125 = vmatpush1.msra.mxu0 %v3894_v16 }
 0x250   : > { %2434 = vrot.lane.b32.xlu1 %v5915_v32, %s5194_s27  ;;  %v6176_v27 = vpop.permute.xlu0 %2420  ;;  %4235 = vmatprep.subr.mxu1 %v4027_v17  ;;  %v3886_v17 = vld [vmem:[#allocation11 + $0x160] sm:$0xff]  ;;  %v3883_v16 = vld [vmem:[#allocation11 + $0x148] sm:$0xff] }
 0x251   : > { %10545 = vst [vmem:[#allocation81_spill] sm:$0xff] %v6176_v27  ;;  %v1420_v27 = vsel %vm1400_vm0, %v10230_v8, %v10229_v21  ;;  %4236 = vmatpush1.msra.mxu1 %v4026_v49  ;;  %4126 = vmatprep.subr.mxu0 %v3891_v45  ;;  %v3887_v21 = vld [vmem:[#allocation11 + $0x168] sm:$0xff]  ;;  %v1278_v45 = vld [vmem:[#allocation2 + $0x10] sm:$0x80] }
 0x252   : > { %v6178_v35 = vpop.permute.xlu1 %1821  ;;  %2620 = vrot.lane.b32.xlu0 %v5882_v36, %s5195_s29  ;;  %4237 = vmatprep.subr.mxu1 %v4023_v0  ;;  %v4015_v49 = vld [vmem:[#allocation11 + $0x568] sm:$0xff]  ;;  %v4014_v0 = vld [vmem:[#allocation11 + $0x560] sm:$0xff] }
 0x253   : > { %10546 = vst [vmem:[#allocation82_spill] sm:$0xff] %v6178_v35  ;;  %v3890_v35 = vld [vmem:[#allocation11 + $0x180] sm:$0xff]  ;;  %4238 = vmatpush1.msra.mxu1 %v4022_v61  ;;  %v6215_v61 = vrot.slane %v5756_v53, %v5576_v4 }
 0x254   : > { %1551 = vrot.lane.b32.xlu1 %v1420_v27, %s5194_s27  ;;  %v6188_v23 = vpop.permute.xlu0 %2596  ;;  %4127 = vmatpush1.msra.mxu0 %v3890_v35  ;;  %v6228_v35 = vrot.slane %v5756_v53, %v5621_v33 }
 0x255   : > { %10547 = vst [vmem:[#allocation83_spill] sm:$0xff] %v6188_v23  ;;  %4239 = vmatprep.subr.mxu1 %v4019_v14  ;;  %4128 = vmatprep.subr.mxu0 %v3887_v21  ;;  %v6207_v14 = vsub.s32 5, %v5568_v1  ;;  %10553 = vst [vmem:[#allocation89_spill] sm:$0xff] %v6215_v61 }
 0x256   : > { %v6190_v6 = vpop.permute.xlu1 %3024  ;;  %2430 = vrot.lane.b32.xlu0 %v5892_v42, %s5194_s27  ;;  %4240 = vmatpush1.msra.mxu1 %v4018_v12  ;;  %v10237_v12 = vrot.slane %v5878_v44, 1  ;;  %10556 = vst [vmem:[#allocation92_spill] sm:$0xff] %v6228_v35 }
 0x257   : > { %10548 = vst [vmem:[#allocation84_spill] sm:$0xff] %v6190_v6  ;;  %4129 = vmatpush1.msra.mxu0 %v3886_v17  ;;  %4241 = vmatprep.subr.mxu1 %v4015_v49  ;;  %10551 = vst [vmem:[#allocation87_spill] sm:$0xff] %v6207_v14  ;;  %v1407_v17 = vrot.slane %v1278_v45, 7  ;;  %v3882_v45 = vld [vmem:[#allocation11 + $0x140] sm:$0xff] }
 0x258   : > { %1863 = vrot.lane.b32.xlu1 %v1420_v27, %s5195_s29  ;;  %v6195_v8 = vpop.permute.xlu0 %3314  ;;  %4130 = vmatprep.subr.mxu0 %v3883_v16  ;;  %v6204_v27 = vrot.slane %v5634_v54, %v5576_v4 }
 0x259   : > { %10549 = vst [vmem:[#allocation85_spill] sm:$0xff] %v6195_v8  ;;  %4242 = vmatpush1.msra.mxu1 %v4014_v0  ;;  %v10557_v0 = vrot.slane %v5892_v42, 1  ;;  %v6245_v8 = vrot.slane %v5634_v54, %v6207_v14  ;;  %4131 = vmatpush1.msra.mxu0 %v3882_v45  ;;  %v1409_v54 = vsel %vm1400_vm0, %v1407_v17, %v10563_v19  ;;  %v3875_v14 = vld [vmem:[#allocation11 + $0x108] sm:$0xff]  ;;  %v4006_v19 = vld [vmem:[#allocation11 + $0x520] sm:$0xff] }
 0x25a   : > { %v6197_v23 = vpop.permute.xlu1 %3332  ;;  %2606 = vrot.lane.b32.xlu0 %v5892_v42, %s5195_s29  ;;  %v6224_v16 = vmul.f32 %v6204_v27, %v5644_v62  ;;  %v6237_v6 = vmul.f32 %v6204_v27, %v5588_v28  ;;  %v6241_v62 = vrot.slane %v5756_v53, %v5841_v5  ;;  %v6252_v28 = vmul.f32 %v6215_v61, %v5592_v37 }
 0x25b   : > { %10550 = vst [vmem:[#allocation86_spill] sm:$0xff] %v6197_v23  ;;  %v4011_v23 = vld [vmem:[#allocation11 + $0x548] sm:$0xff]  ;;  %10560 = vst [vmem:[#allocation95_spill] sm:$0xff] %v6245_v8  ;;  %v6262_v45 = vmul.f32 %v6204_v27, %v5598_v50  ;;  %v6276_v17 = vmul.f32 %v6215_v61, %v5604_v59  ;;  %v6295_v59 = vmul.f32 %v5638_v57, %v5812_v63 }
 0x25c   : > { %2626 = vrot.lane.b32.xlu1 %v5921_v41, %s5195_s29  ;;  %v6211_v21 = vpop.permute.xlu0 %2406  ;;  %10555 = vst [vmem:[#allocation91_spill] sm:$0xff] %v6224_v16  ;;  %10558 = vst [vmem:[#allocation93_spill] sm:$0xff] %v6237_v6  ;;  %v4919_v6 = vld [vmem:[#allocation2 + $0x60] sm:$0xff]  ;;  %4243 = vmatprep.subr.mxu1 %v4011_v23  ;;  %v4922_v63 = vld [vmem:[#allocation2 + $0xf0] sm:$0xff] }
 0x25d   : > { %10552 = vst [vmem:[#allocation88_spill] sm:$0xff] %v6211_v21  ;;  %v2919_v21 = vsel %vm1680_vm1, %v10237_v12, %v10557_v0  ;;  %10559 = vst [vmem:[#allocation94_spill] sm:$0xff] %v6241_v62  ;;  %v4010_v0 = vld [vmem:[#allocation11 + $0x540] sm:$0xff]  ;;  %v6255_v5 = vmul.f32 %v4919_v6, %v5729_v18 }
 0x25e   : > { %v6218_v49 = vpop.permute.xlu1 %2424  ;;  %2446 = vrot.lane.b32.xlu0 %v5902_v25, %s5194_s27  ;;  %v3878_v12 = vld [vmem:[#allocation11 + $0x120] sm:$0xff]  ;;  %10562 = vst [vmem:[#allocation97_spill] sm:$0xff] %v6252_v28  ;;  %10564 = vst [vmem:[#allocation98_spill] sm:$0xff] %v6262_v45  ;;  %4244 = vmatpush1.msra.mxu1 %v4010_v0  ;;  %v4003_v0 = vld [vmem:[#allocation11 + $0x508] sm:$0xff] }
 0x25f   : > { %10554 = vst [vmem:[#allocation90_spill] sm:$0xff] %v6218_v49  ;;  %v3879_v49 = vld [vmem:[#allocation11 + $0x128] sm:$0xff]  ;;  %v3874_v23 = vld [vmem:[#allocation11 + $0x100] sm:$0xff]  ;;  %10567 = vst [vmem:[#allocation101_spill] sm:$0xff] %v6276_v17  ;;  %4245 = vmatprep.subr.mxu1 %v4007_v7  ;;  %v6299_v17 = vmul.f32 %v6228_v35, %v5615_v24 }
 0x260   : > { %3036 = vrot.lane.b32.xlu1 %v2919_v21, %s5194_s27  ;;  %v6248_v16 = vpop.permute.xlu0 %2582  ;;  %4132 = vmatprep.subr.mxu0 %v3879_v49  ;;  %v4920_v6 = vld [vmem:[#allocation2 + $0xe8] sm:$0xff]  ;;  %v6280_v49 = vmul.f32 %v6204_v27, %v5610_v15 }
 0x261   : > { %10561 = vst [vmem:[#allocation96_spill] sm:$0xff] %v6248_v16  ;;  %v6266_v16 = vmul.f32 %v5638_v57, %v5598_v50  ;;  %v6272_v28 = vmul.f32 %v4920_v6, %v5782_v31  ;;  %v6282_v50 = vld [vmem:[#allocation2 + $0xa8] sm:$0xff]  ;;  %4133 = vmatpush1.msra.mxu0 %v3878_v12  ;;  %10571 = vst [vmem:[#allocation105_spill] sm:$0xff] %v6299_v17  ;;  %v6306_v6 = vmul.f32 %v6204_v27, %v5624_v38 }
 0x262   : > { %v6268_v37 = vpop.permute.xlu1 %1511  ;;  %1533 = vrot.lane.b32.xlu0 %v1409_v54, %s5194_s27  ;;  %10568 = vst [vmem:[#allocation102_spill] sm:$0xff] %v6280_v49  ;;  %4134 = vmatprep.subr.mxu0 %v3875_v14  ;;  %v3871_v12 = vld [vmem:[#allocation11 + $0xe8] sm:$0xff]  ;;  %v4002_v7 = vld [vmem:[#allocation11 + $0x500] sm:$0xff]  ;;  %v6313_v49 = vmul.f32 %v4922_v63, %v6215_v61  ;;  %v6317_v14 = vmul.f32 %v6204_v27, %v5642_v60 }
 0x263   : > { %10565 = vst [vmem:[#allocation99_spill] sm:$0xff] %v6268_v37  ;;  %10566 = vst [vmem:[#allocation100_spill] sm:$0xff] %v6272_v28  ;;  %v6286_v37 = vmul.f32 %v6282_v50, %v6228_v35  ;;  %v6291_v28 = vmul.f32 %v5638_v57, %v5610_v15  ;;  %v6310_v15 = vmul.f32 %v6228_v35, %v5629_v47  ;;  %4246 = vmatpush1.msra.mxu1 %v4006_v19  ;;  %v3870_v24 = vld [vmem:[#allocation11 + $0xe0] sm:$0xff]  ;;  %v1279_v63 = vld [vmem:[#allocation2 + $0x28] sm:$0x80] }
 0x264   : > { %3344 = vrot.lane.b32.xlu1 %v2919_v21, %s5195_s29  ;;  %10573 = vst [vmem:[#allocation107_spill] sm:$0xff] %v6306_v6  ;;  %10575 = vst [vmem:[#allocation109_spill] sm:$0xff] %v6313_v49  ;;  %4135 = vmatpush1.msra.mxu0 %v3874_v23  ;;  %v6321_v21 = vmul.f32 %v6228_v35, %v5653_v13  ;;  %v6325_v38 = vmul.f32 %v6204_v27, %v5660_v29  ;;  %v3999_v19 = vld [vmem:[#allocation11 + $0x4e8] sm:$0xff]  ;;  %v4923_v49 = vld [vmem:[#allocation2 + $0x18] sm:$0xff]  ;;  %v10582_v29 = vrot.slane %v5878_v44, 7 }
 0x265   : > { %10569 = vst [vmem:[#allocation103_spill] sm:$0xff] %v6286_v37  ;;  %10570 = vst [vmem:[#allocation104_spill] sm:$0xff] %v6291_v28  ;;  %v6302_v37 = vpop.permute.xlu0 %3022  ;;  %4247 = vmatprep.subr.mxu1 %v4003_v0  ;;  %v3867_v23 = vld [vmem:[#allocation11 + $0xc8] sm:$0xff]  ;;  %v6332_v60 = vmul.f32 %v6215_v61, %v5629_v47  ;;  %v6335_v17 = vmul.f32 %v4923_v49, %v5729_v18  ;;  %4136 = vmatprep.subr.mxu0 %v3871_v12  ;;  %v3866_v12 = vld [vmem:[#allocation11 + $0xc0] sm:$0xff]  ;;  %v10634_v28 = vrot.slane %v5882_v36, 1 }
 0x266   : > { %10572 = vst [vmem:[#allocation106_spill] sm:$0xff] %v6302_v37  ;;  %10574 = vst [vmem:[#allocation108_spill] sm:$0xff] %v6310_v15  ;;  %v6327_v15 = vpop.permute.xlu1 %3318  ;;  %1845 = vrot.lane.b32.xlu0 %v1409_v54, %s5195_s29  ;;  %4248 = vmatpush1.msra.mxu1 %v4002_v7  ;;  %v3998_v54 = vld [vmem:[#allocation11 + $0x4e0] sm:$0xff]  ;;  %v6346_v0 = vmul.f32 %v6228_v35, %v5674_v52  ;;  %v6350_v47 = vmul.f32 %v5638_v57, %v5687_v22  ;;  %v3995_v7 = vld [vmem:[#allocation11 + $0x4c8] sm:$0xff] }
 0x267   : > { %10576 = vst [vmem:[#allocation110_spill] sm:$0xff] %v6317_v14  ;;  %10577 = vst [vmem:[#allocation111_spill] sm:$0xff] %v6321_v21  ;;  %v10581_v21 = vrot.slane %v5892_v42, 7  ;;  %v6354_v49 = vmul.f32 %v6228_v35, %v5706_v48  ;;  %4137 = vmatpush1.msra.mxu0 %v3870_v24  ;;  %4249 = vmatprep.subr.mxu1 %v3999_v19  ;;  %v6374_v24 = vmul.f32 %v5638_v57, %v5725_v10  ;;  %v3862_v19 = vld [vmem:[#allocation11 + $0xa0] sm:$0xff] }
 0x268   : > { %10578 = vst [vmem:[#allocation112_spill] sm:$0xff] %v6325_v38  ;;  %10579 = vst [vmem:[#allocation113_spill] sm:$0xff] %v6327_v15  ;;  %4138 = vmatprep.subr.mxu0 %v3867_v23  ;;  %4250 = vmatpush1.msra.mxu1 %v3998_v54  ;;  %v6392_v57 = vmul.f32 %v6204_v27, %v6030_v3  ;;  %v6394_v10 = vld [vmem:[#allocation9] sm:$0xff]  ;;  %v6408_v3 = vsub.s32 6, %v5568_v1  ;;  %v10600_v1 = vrot.slane %v5872_v58, 7 }
 0x269   : > { %10580 = vst [vmem:[#allocation114_spill] sm:$0xff] %v6332_v60  ;;  %v6342_v38 = vsel %vm1400_vm0, %v10582_v29, %v10581_v21  ;;  %10583 = vst [vmem:[#allocation115_spill] sm:$0xff] %v6346_v0  ;;  %v6358_v21 = vpop.permute.xlu0 %1523  ;;  %v6362_v29 = vmul.f32 %v6215_v61, %v5653_v13  ;;  %v6366_v0 = vmul.f32 %v6215_v61, %v5674_v52  ;;  %4139 = vmatpush1.msra.mxu0 %v3866_v12  ;;  %v3990_v54 = vld [vmem:[#allocation11 + $0x4a0] sm:$0xff] }
 0x26a   : > { %10584 = vst [vmem:[#allocation116_spill] sm:$0xff] %v6350_v47  ;;  %10585 = vst [vmem:[#allocation117_spill] sm:$0xff] %v6354_v49  ;;  %1537 = vrot.lane.b32.xlu1 %v6342_v38, %s5194_s27  ;;  %v6370_v60 = vmul.f32 %v6215_v61, %v5706_v48  ;;  %v1410_v49 = vrot.slane %v1279_v63, 7  ;;  %v3863_v47 = vld [vmem:[#allocation11 + $0xa8] sm:$0xff]  ;;  %v6378_v13 = vmul.f32 %v6204_v27, %v5687_v22  ;;  %v6386_v14 = vpop.permute.xlu1 %1823  ;;  %2608 = vrot.lane.b32.xlu0 %v5906_v46, %s5195_s29  ;;  %v3994_v63 = vld [vmem:[#allocation11 + $0x4c0] sm:$0xff] }
 0x26b   : > { %10586 = vst [vmem:[#allocation118_spill] sm:$0xff] %v6358_v21  ;;  %10587 = vst [vmem:[#allocation119_spill] sm:$0xff] %v6362_v29  ;;  %v6382_v29 = vrot.slane %v5756_v53, %v5571_v2  ;;  %v6398_v23 = vrot.slane %v6394_v10, %v5836_v9  ;;  %4251 = vmatprep.subr.mxu1 %v3995_v7  ;;  %4140 = vmatprep.subr.mxu0 %v3863_v47  ;;  %v3859_v7 = vld [vmem:[#allocation11 + $0x88] sm:$0xff]  ;;  %v3846_v15 = vld [vmem:[#allocation11 + $0x20] sm:$0xff] }
 0x26c   : > { %10588 = vst [vmem:[#allocation120_spill] sm:$0xff] %v6366_v0  ;;  %10589 = vst [vmem:[#allocation121_spill] sm:$0xff] %v6370_v60  ;;  %v6384_v0 = vld [vmem:[#allocation9 + $0x10] sm:$0xff]  ;;  %v6402_v60 = vmul.f32 %v6228_v35, %v5738_v26  ;;  %v6424_v12 = vmul.f32 %v5782_v31, %v5674_v52  ;;  %4252 = vmatpush1.msra.mxu1 %v3994_v63  ;;  %4141 = vmatpush1.msra.mxu0 %v3862_v19  ;;  %v3987_v63 = vld [vmem:[#allocation11 + $0x488] sm:$0xff]  ;;  %v10605_v19 = vrot.slane %v5902_v25, 1 }
 0x26d   : > { %10590 = vst [vmem:[#allocation122_spill] sm:$0xff] %v6374_v24  ;;  %10591 = vst [vmem:[#allocation123_spill] sm:$0xff] %v6378_v13  ;;  %v6404_v24 = vld [vmem:[#allocation9 + $0x18] sm:$0xff]  ;;  %v3991_v13 = vld [vmem:[#allocation11 + $0x4a8] sm:$0xff]  ;;  %v6412_v27 = vpop.permute.xlu0 %1835  ;;  %v6428_v6 = vrot.slane %v6384_v0, %v5576_v4  ;;  %v6436_v47 = vmul.f32 %v6228_v35, %v5823_v40  ;;  %4142 = vmatprep.subr.mxu0 %v3859_v7 }
 0x26e   : > { %10592 = vst [vmem:[#allocation124_spill] sm:$0xff] %v6386_v14  ;;  %10593 = vst [vmem:[#allocation125_spill] sm:$0xff] %v6392_v57  ;;  %2436 = vrot.lane.b32.xlu1 %v5932_v34, %s5194_s27  ;;  %v6416_v57 = vmul.f32 %v5729_v18, %v5687_v22  ;;  %v1412_v22 = vsel %vm1400_vm0, %v1410_v49, %v10600_v1  ;;  %v10251_v14 = vrot.slane %v5882_v36, 1  ;;  %4253 = vmatprep.subr.mxu1 %v3991_v13  ;;  %v3855_v40 = vld [vmem:[#allocation11 + $0x68] sm:$0xff]  ;;  %v6458_v35 = vld [vmem:[#allocation2 + $0x118] sm:$0xfe] }
 0x26f   : > { %10594 = vst [vmem:[#allocation126_spill] sm:$0xff] %v6402_v60  ;;  %10595 = vst [vmem:[#allocation127_spill] sm:$0xff] %v6408_v3  ;;  %v6420_v60 = vmul.f32 %v6282_v50, %v5782_v31  ;;  %v3858_v50 = vld [vmem:[#allocation11 + $0x80] sm:$0xff]  ;;  %v6440_v52 = vrot.slane %v6404_v24, %v5576_v4  ;;  %1549 = vrot.lane.b32.xlu0 %v1412_v22, %s5194_s27  ;;  %v6447_v1 = vrot.slane %v6384_v0, %v5670_v51 }
 0x270   : > { %10596 = vst [vmem:[#allocation128_spill] sm:$0xff] %v6412_v27  ;;  %10597 = vst [vmem:[#allocation129_spill] sm:$0xff] %v6416_v57  ;;  %v6451_v49 = vrot.slane %v6404_v24, %v5670_v51  ;;  %v2921_v4 = vsel %vm1680_vm1, %v10251_v14, %v10605_v19  ;;  %4254 = vmatpush1.msra.mxu1 %v3990_v54  ;;  %v6466_v51 = vmul.f32 %v5782_v31, %v5738_v26  ;;  %v3854_v7 = vld [vmem:[#allocation11 + $0x60] sm:$0xff]  ;;  %v3983_v54 = vld [vmem:[#allocation11 + $0x468] sm:$0xff]  ;;  %v10611_v26 = vlaneseq }
 0x271   : > { %10598 = vst [vmem:[#allocation130_spill] sm:$0xff] %v6420_v60  ;;  %10599 = vst [vmem:[#allocation131_spill] sm:$0xff] %v6424_v12  ;;  %v6442_v12 = vpop.permute.xlu1 %3026  ;;  %v6462_v60 = vmul.f32 %v5782_v31, %v5706_v48  ;;  %v6470_v13 = vrot.slane %v5756_v53, %v6408_v3  ;;  %v6473_v19 = vpop.permute.xlu0 %2422  ;;  %4143 = vmatpush1.msra.mxu0 %v3858_v50  ;;  %v6477_v14 = vmul.f32 %v6215_v61, %v6051_v43  ;;  %v4925_v48 = vld [vmem:[#allocation2 + $0x128] sm:$0xff]  ;;  %v6497_v43 = vld [vmem:[#allocation2 + $0xd0] sm:$0xfe] }
 0x272   : > { %10601 = vst [vmem:[#allocation132_spill] sm:$0xff] %v6436_v47  ;;  %10602 = vst [vmem:[#allocation133_spill] sm:$0xff] %v6442_v12  ;;  %v3986_v47 = vld [vmem:[#allocation11 + $0x480] sm:$0xff]  ;;  %3052 = vrot.lane.b32.xlu1 %v2921_v4, %s5194_s27  ;;  %v6483_v31 = vand.u32 127, %v10611_v26  ;;  %v6487_v53 = vmul.f32 %v6428_v6, %v5866_v11  ;;  %v6491_v50 = vrot.slane %v6384_v0, %v5621_v33  ;;  %4255 = vmatprep.subr.mxu1 %v3987_v63 }
 0x273   : > { %10603 = vst [vmem:[#allocation134_spill] sm:$0xff] %v6447_v1  ;;  %10604 = vst [vmem:[#allocation135_spill] sm:$0xff] %v6451_v49  ;;  %4144 = vmatprep.subr.mxu0 %v3855_v40  ;;  %1861 = vrot.lane.b32.xlu0 %v1412_v22, %s5195_s29  ;;  %v3982_v63 = vld [vmem:[#allocation11 + $0x460] sm:$0xff]  ;;  %v6521_v22 = vmul.f32 %v6440_v52, %v5882_v36  ;;  %v6571_v12 = vmul.f32 %v6428_v6, %v5906_v46  ;;  %v10643_v27 = vrot.slane %v5921_v41, 1 }
 0x274   : > { %10606 = vst [vmem:[#allocation136_spill] sm:$0xff] %v6462_v60  ;;  %10607 = vst [vmem:[#allocation137_spill] sm:$0xff] %v6466_v51  ;;  %v6480_v60 = vmul.f32 %v4925_v48, %v5729_v18  ;;  %v6495_v51 = vrot.slane %v6404_v24, %v5621_v33  ;;  %v3851_v18 = vld [vmem:[#allocation11 + $0x48] sm:$0xff]  ;;  %v6501_v48 = vmul.f32 %v6440_v52, %v5872_v58  ;;  %4256 = vmatpush1.msra.mxu1 %v3986_v47  ;;  %v3850_v40 = vld [vmem:[#allocation11 + $0x40] sm:$0xff] }
 0x275   : > { %10608 = vst [vmem:[#allocation138_spill] sm:$0xff] %v6473_v19  ;;  %10609 = vst [vmem:[#allocation139_spill] sm:$0xff] %v6477_v14  ;;  %v6503_v26 = vpop.permute.xlu1 %3012  ;;  %v6509_v14 = vmul.f32 %v6447_v1, %v5866_v11  ;;  %v6513_v33 = vmul.f32 %v6451_v49, %v5872_v58  ;;  %v2926_v11 = vrot.slane %v5906_v46, 1  ;;  %4145 = vmatpush1.msra.mxu0 %v3854_v7  ;;  %4257 = vmatprep.subr.mxu1 %v3983_v54  ;;  %v3979_v58 = vld [vmem:[#allocation11 + $0x448] sm:$0xff]  ;;  %v3978_v54 = vld [vmem:[#allocation11 + $0x440] sm:$0xff] }
 0x276   : > { %10610 = vst [vmem:[#allocation140_spill] sm:$0xff] %v6480_v60  ;;  %10612 = vst [vmem:[#allocation141_spill] sm:$0xff] %v6487_v53  ;;  %v2908_v60 = vrot.slane %v6458_v35, 1  ;;  %v6525_v53 = vmul.f32 %v6491_v50, %v5878_v44  ;;  %v6530_v47 = vmul.f32 %v6491_v50, %v5892_v42  ;;  %3360 = vrot.lane.b32.xlu1 %v2921_v4, %s5195_s29  ;;  %4146 = vmatprep.subr.mxu0 %v3851_v18  ;;  %v3847_v7 = vld [vmem:[#allocation11 + $0x28] sm:$0xff] }
 0x277   : > { %10613 = vst [vmem:[#allocation142_spill] sm:$0xff] %v6491_v50  ;;  %10614 = vst [vmem:[#allocation143_spill] sm:$0xff] %v6495_v51  ;;  %v1427_v4 = vrot.slane %v5902_v25, 7  ;;  %4258 = vmatpush1.msra.mxu1 %v3982_v63  ;;  %4147 = vmatpush1.msra.mxu0 %v3850_v40  ;;  %v6557_v18 = vmul.f32 %v6491_v50, %v5906_v46  ;;  %v3975_v63 = vld [vmem:[#allocation11 + $0x428] sm:$0xff]  ;;  %vm1567_vm2 = vcmp.lt.s32.totalorder %v6483_v31, 96  ;;  %v10636_v19 = vrot.slane %v5902_v25, 1 }
 0x278   : > { %10615 = vst [vmem:[#allocation144_spill] sm:$0xff] %v6501_v48  ;;  %10616 = vst [vmem:[#allocation145_spill] sm:$0xff] %v6503_v26  ;;  %v6517_v48 = vmul.f32 %v6428_v6, %v5878_v44  ;;  %2448 = vrot.lane.b32.xlu0 %v5911_v20, %s5194_s27  ;;  %4259 = vmatprep.subr.mxu1 %v3979_v58  ;;  %v3843_v40 = vld [vmem:[#allocation11 + $0x8] sm:$0xff]  ;;  %v10633_v26 = vrot.slane %v5892_v42, 7  ;;  %vm1877_vm3 = vcmp.lt.s32.totalorder %v6483_v31, 32 }
 0x279   : > { %10617 = vst [vmem:[#allocation146_spill] sm:$0xff] %v6509_v14  ;;  %10618 = vst [vmem:[#allocation147_spill] sm:$0xff] %v6513_v33  ;;  %v1433_v33 = vrot.slane %v5906_v46, 7  ;;  %v6543_v14 = vmul.f32 %v6428_v6, %v5892_v42  ;;  %v6551_v57 = vpop.permute.xlu1 %3028  ;;  %4148 = vmatprep.subr.mxu0 %v3847_v7  ;;  %4260 = vmatpush1.msra.mxu1 %v3978_v54  ;;  %v6591_v7 = vmul.f32 %v6495_v51, %v5911_v20  ;;  %v3842_v54 = vld [vmem:[#allocation11] sm:$0xff] }
 0x27a   : > { %10619 = vst [vmem:[#allocation148_spill] sm:$0xff] %v6517_v48  ;;  %10620 = vst [vmem:[#allocation149_spill] sm:$0xff] %v6521_v22  ;;  %v6534_v48 = vmul.f32 %v6495_v51, %v5882_v36  ;;  %v6537_v22 = vpop.permute.xlu0 %1509  ;;  %4149 = vmatpush1.msra.mxu0 %v3846_v15  ;;  %4261 = vmatprep.subr.mxu1 %v3975_v63  ;;  %v3967_v15 = vld [vmem:[#allocation11 + $0x3e8] sm:$0xff]  ;;  %v1443_v63 = vrot.slane %v5921_v41, 7 }
 0x27b   : > { %10621 = vst [vmem:[#allocation150_spill] sm:$0xff] %v6525_v53  ;;  %10622 = vst [vmem:[#allocation151_spill] sm:$0xff] %v6530_v47  ;;  %v2911_v53 = vrot.slane %v6497_v43, 1  ;;  %v6547_v47 = vmul.f32 %v6495_v51, %v5902_v25  ;;  %4150 = vmatprep.subr.mxu0 %v3843_v40  ;;  %v3970_v40 = vld [vmem:[#allocation11 + $0x400] sm:$0xff] }
 0x27c   : > { %10623 = vst [vmem:[#allocation152_spill] sm:$0xff] %v6534_v48  ;;  %10624 = vst [vmem:[#allocation153_spill] sm:$0xff] %v6537_v22  ;;  %v2928_v48 = vrot.slane %v5911_v20, 1  ;;  %v10641_v22 = vrot.slane %v5915_v32, 1  ;;  %4151 = vmatpush1.msra.mxu0 %v3842_v54  ;;  %v4094_v54 = vld [vmem:[#allocation11 + $0x7e0] sm:$0xff] }
 0x27d   : > { %10625 = vst [vmem:[#allocation154_spill] sm:$0xff] %v6543_v14  ;;  %10626 = vst [vmem:[#allocation155_spill] sm:$0xff] %v6547_v47  ;;  %v10629_v14 = vrot.slane %v5878_v44, 1  ;;  %4152 = vmatprep.subr.mxu0 %v3967_v15  ;;  %v10651_v15 = vld [vmem:[#allocation37_spill] sm:$0xff] }
 0x27e   : > { %10627 = vst [vmem:[#allocation156_spill] sm:$0xff] %v6551_v57  ;;  %10628 = vst [vmem:[#allocation157_spill] sm:$0xff] %v6557_v18  ;;  %v10630_v57 = vrot.slane %v5892_v42, 1  ;;  %v6577_v58 = vpop.permute.xlu0 %3316  ;;  %v3971_v18 = vld [vmem:[#allocation11 + $0x408] sm:$0xff]  ;;  %v6597_v61 = vsel %vm1680_vm1, %v10636_v19, %v2928_v48  ;;  %v6629_v45 = vsel %vm1680_vm1, %v2928_v48, %v10643_v27  ;;  %v6645_v27 = vmul.f32 %v6428_v6, %v5915_v32  ;;  %v10652_v48 = vld [vmem:[#allocation33_spill] sm:$0xff] }
 0x27f   : > { %v2910_v47 = vsel %vm1680_vm1, %v2908_v60, %v10629_v14  ;;  %10631 = vst [vmem:[#allocation158_spill] sm:$0xff] %v6571_v12  ;;  %v1435_v14 = vrot.slane %v5911_v20, 7  ;;  %v3974_v60 = vld [vmem:[#allocation11 + $0x420] sm:$0xff]  ;;  %10632 = vst [vmem:[#allocation159_spill] sm:$0xff] %v6577_v58  ;;  %v6587_v12 = vsel %vm1680_vm1, %v2911_v53, %v10634_v28  ;;  %v10638_v28 = vrot.slane %v5882_v36, 7 }
 0x280   : > { %v6567_v3 = vsel %vm1680_vm1, %v10630_v57, %v2926_v11  ;;  %v6582_v57 = vsel %vm1400_vm0, %v10633_v26, %v1433_v33  ;;  %10635 = vst [vmem:[#allocation160_spill] sm:$0xff] %v6591_v7  ;;  %v6601_v26 = vmul.f32 %v6440_v52, %v5902_v25  ;;  %v6608_v7 = vpop.permute.xlu1 %3336  ;;  %3034 = vrot.lane.b32.xlu0 %v2910_v47, %s5194_s27  ;;  %v10640_v58 = vrot.slane %v5915_v32, 7 }
 0x281   : > { %3038 = vrot.lane.b32.xlu1 %v6567_v3, %s5194_s27  ;;  %v6606_v53 = vsel %vm1400_vm0, %v10638_v28, %v1427_v4  ;;  %10639 = vst [vmem:[#allocation162_spill] sm:$0xff] %v6608_v7  ;;  %v6623_v28 = vmul.f32 %v6440_v52, %v5911_v20  ;;  %4262 = vmatpush1.msra.mxu1 %v3974_v60  ;;  %v3966_v7 = vld [vmem:[#allocation11 + $0x3e0] sm:$0xff]  ;;  %10646 = vst [vmem:[#allocation166_spill] sm:$0xff] %v6645_v27 }
 0x282   : > { %10637 = vst [vmem:[#allocation161_spill] sm:$0xff] %v6601_v26  ;;  %v6614_v19 = vsel %vm1400_vm0, %v1433_v33, %v10640_v58  ;;  %v6619_v26 = vsel %vm1680_vm1, %v2926_v11, %v10641_v22  ;;  %v6632_v33 = vsel %vm1400_vm0, %v1427_v4, %v1435_v14  ;;  %v6637_v11 = vmul.f32 %v6447_v1, %v5878_v44  ;;  %v4095_v58 = vld [vmem:[#allocation11 + $0x7e8] sm:$0xff]  ;;  %v6641_v60 = vpop.permute.xlu0 %1525 }
 0x283   : > { %10642 = vst [vmem:[#allocation163_spill] sm:$0xff] %v6623_v28  ;;  %4263 = vmatprep.subr.mxu1 %v3971_v18  ;;  %10645 = vst [vmem:[#allocation165_spill] sm:$0xff] %v6641_v60  ;;  %v6651_v44 = vmul.f32 %v6451_v49, %v5882_v36  ;;  %v3963_v18 = vld [vmem:[#allocation11 + $0x3c8] sm:$0xff]  ;;  %v6656_v22 = vmul.f32 %v6491_v50, %v5915_v32  ;;  %v6660_v27 = vmul.f32 %v6495_v51, %v5921_v41  ;;  %v3962_v36 = vld [vmem:[#allocation11 + $0x3c0] sm:$0xff] }
 0x284   : > { %10644 = vst [vmem:[#allocation164_spill] sm:$0xff] %v6637_v11  ;;  %v6664_v4 = vmul.f32 %v6440_v52, %v5921_v41  ;;  %4264 = vmatpush1.msra.mxu1 %v3970_v40  ;;  %4153 = vmatpush2.msra.mxu0 %v3966_v7  ;;  %v2474_v28 = vsel %vm1567_vm2, %v10652_v48, %v10651_v15  ;;  %v6670_v11 = vpop.permute.xlu1 %1841  ;;  %v4091_v40 = vld [vmem:[#allocation11 + $0x7c8] sm:$0xff]  ;;  %v3958_v15 = vld [vmem:[#allocation11 + $0x3a0] sm:$0xff] }
 0x285   : > { %1539 = vrot.lane.b32.xlu1 %v6582_v57, %s5194_s27  ;;  %10647 = vst [vmem:[#allocation167_spill] sm:$0xff] %v6651_v44  ;;  %10648 = vst [vmem:[#allocation168_spill] sm:$0xff] %v6656_v22  ;;  %3342 = vrot.lane.b32.xlu0 %v2910_v47, %s5195_s29  ;;  %v6674_v22 = vsel %vm1400_vm0, %v1435_v14, %v1443_v63  ;;  %v3959_v7 = vld [vmem:[#allocation11 + $0x3a8] sm:$0xff]  ;;  %v10657_v44 = vrot.slane %v5915_v32, 7  ;;  %v6690_v47 = vmul.f32 %v6451_v49, %v5902_v25  ;;  %v4090_v14 = vld [vmem:[#allocation11 + $0x7c0] sm:$0xff] }
 0x286   : > { %10649 = vst [vmem:[#allocation169_spill] sm:$0xff] %v6660_v27  ;;  %10650 = vst [vmem:[#allocation170_spill] sm:$0xff] %v6664_v4  ;;  %v6678_v27 = vmul.f32 %v6447_v1, %v5892_v42  ;;  %4265 = vmatprep.subr.mxu1 %v4095_v58  ;;  %v10656_v4 = vrot.slane %v5932_v34, 7  ;;  %v6694_v42 = vmul.f32 %v6447_v1, %v5906_v46  ;;  %4154 = vmatprep.subr.mxu0 %v3963_v18  ;;  %v10661_v58 = vld [vmem:[#allocation34_spill] sm:$0xff] }
 0x287   : > { %10653 = vst [vmem:[#allocation171_spill] sm:$0xff] %v6670_v11  ;;  %10654 = vst [vmem:[#allocation172_spill] sm:$0xff] %v6674_v22  ;;  %4266 = vmatpush2.msra.mxu1 %v4094_v54  ;;  %v10664_v25 = vrot.slane %v5936_v56, 1  ;;  %v10667_v18 = vrot.slane %v5936_v56, 7  ;;  %4155 = vmatpush2.msra.mxu0 %v3962_v36  ;;  %v4075_v11 = vld [vmem:[#allocation11 + $0x748] sm:$0xff] }
 0x288   : > { %10655 = vst [vmem:[#allocation173_spill] sm:$0xff] %v6678_v27  ;;  %v6685_v48 = vsel %vm1400_vm0, %v10657_v44, %v10656_v4  ;;  %10659 = vst [vmem:[#allocation175_spill] sm:$0xff] %v6690_v47  ;;  %v10662_v27 = vld [vmem:[#allocation35_spill] sm:$0xff]  ;;  %v6702_v4 = vpop.permute.xlu0 %1837  ;;  %v10665_v44 = vrot.slane %v5921_v41, 1  ;;  %v2506_v47 = vmul.f32 %v6245_v8, %v2474_v28  ;;  %4267 = vmatprep.subr.mxu1 %v4091_v40  ;;  %4156 = vmatprep.subr.mxu0 %v3959_v7  ;;  %v3955_v41 = vld [vmem:[#allocation11 + $0x388] sm:$0xff]  ;;  %v6729_v36 = vpop.permute.xlu1 %3014 }
 0x289   : > { %10658 = vst [vmem:[#allocation174_spill] sm:$0xff] %v6685_v48  ;;  %10660 = vst [vmem:[#allocation176_spill] sm:$0xff] %v6694_v42  ;;  %v2650_v22 = vsel %vm1877_vm3, %v10662_v27, %v10661_v58  ;;  %3346 = vrot.lane.b32.xlu1 %v6567_v3, %s5195_s29  ;;  %v6714_v54 = vsel %vm1400_vm0, %v1443_v63, %v10667_v18  ;;  %v4087_v42 = vld [vmem:[#allocation11 + $0x7a8] sm:$0xff]  ;;  %v6719_v3 = vmul.f32 %v6451_v49, %v5911_v20  ;;  %v10672_v58 = vld [vmem:[#allocation39_spill] sm:$0xff] }
 0x28a   : > { %10663 = vst [vmem:[#allocation177_spill] sm:$0xff] %v6702_v4  ;;  %v6709_v46 = vsel %vm1680_vm1, %v10665_v44, %v10664_v25  ;;  %10668 = vst [vmem:[#allocation179_spill] sm:$0xff] %v6714_v54  ;;  %v6723_v25 = vmul.f32 %v6491_v50, %v6458_v35  ;;  %v10671_v44 = vld [vmem:[#allocation38_spill] sm:$0xff]  ;;  %2610 = vrot.lane.b32.xlu0 %v5915_v32, %s5195_s29  ;;  %4268 = vmatpush2.msra.mxu1 %v4090_v14  ;;  %v4086_v20 = vld [vmem:[#allocation11 + $0x7a0] sm:$0xff] }
 0x28b   : > { %10666 = vst [vmem:[#allocation178_spill] sm:$0xff] %v6709_v46  ;;  %10669 = vst [vmem:[#allocation180_spill] sm:$0xff] %v6719_v3  ;;  %v2475_v63 = vsel %vm1567_vm2, %v10672_v58, %v10671_v44  ;;  %v3954_v28 = vld [vmem:[#allocation11 + $0x380] sm:$0xff]  ;;  %v6735_v40 = vmul.f32 %v6495_v51, %v6497_v43  ;;  %v4926_v7 = vld [vmem:[#allocation2 + $0xb8] sm:$0xff]  ;;  %v6741_v18 = vmul.f32 %v6241_v62, %v2650_v22  ;;  %v10678_v3 = vrot.slane %v5915_v32, 1 }
 0x28c   : > { %10670 = vst [vmem:[#allocation181_spill] sm:$0xff] %v6723_v25  ;;  %10673 = vst [vmem:[#allocation182_spill] sm:$0xff] %v6729_v36  ;;  %v6738_v35 = vmul.f32 %v4926_v7, %v6447_v1  ;;  %v10677_v25 = vrot.slane %v5932_v34, 1  ;;  %4157 = vmatpush2.msra.mxu0 %v3958_v15  ;;  %4269 = vmatprep.subr.mxu1 %v4087_v42  ;;  %v4083_v14 = vld [vmem:[#allocation11 + $0x788] sm:$0xff]  ;;  %v6750_v36 = vld [vmem:[#allocation2 + $0x80] sm:$0xff] }
 0x28d   : > { %10674 = vst [vmem:[#allocation183_spill] sm:$0xff] %v6735_v40  ;;  %10676 = vst [vmem:[#allocation185_spill] sm:$0xff] %v6741_v18  ;;  %v6754_v43 = vmul.f32 %v6750_v36, %v6451_v49  ;;  %v10681_v7 = vld [vmem:[#allocation44_spill] sm:$0xff]  ;;  %v10683_v40 = vld [vmem:[#allocation45_spill] sm:$0xff]  ;;  %1851 = vrot.lane.b32.xlu1 %v6582_v57, %s5195_s29  ;;  %4158 = vmatprep.subr.mxu0 %v3955_v41 }
 0x28e   : > { %10675 = vst [vmem:[#allocation184_spill] sm:$0xff] %v6738_v35  ;;  %v6748_v58 = vsel %vm1680_vm1, %v10678_v3, %v10677_v25  ;;  %v10682_v35 = vld [vmem:[#allocation40_spill] sm:$0xff]  ;;  %v1584_v32 = vsel %vm1567_vm2, %v10683_v40, %v6049_v55  ;;  %v10684_v3 = vld [vmem:[#allocation54_spill] sm:$0xff]  ;;  %v6770_v25 = vpop.permute.xlu0 %3010  ;;  %v4082_v18 = vld [vmem:[#allocation11 + $0x780] sm:$0xff]  ;;  %4270 = vmatpush2.msra.mxu1 %v4086_v20  ;;  %4159 = vmatpush2.msra.mxu0 %v3954_v28 }
 0x28f   : > { %10679 = vst [vmem:[#allocation186_spill] sm:$0xff] %v6748_v58  ;;  %10680 = vst [vmem:[#allocation187_spill] sm:$0xff] %v6754_v43  ;;  %v2476_v22 = vsel %vm1567_vm2, %v10682_v35, %v10681_v7  ;;  %v10685_v15 = vld [vmem:[#allocation48_spill] sm:$0xff]  ;;  %v3951_v43 = vld [vmem:[#allocation11 + $0x368] sm:$0xff]  ;;  %v6773_v35 = vadd.f32 %v2506_v47, %v6255_v5  ;;  %v2510_v7 = vmul.f32 %v6245_v8, %v2475_v63  ;;  %3050 = vrot.lane.b32.xlu0 %v6587_v12, %s5194_s27 }
 0x290   : > { %v1895_v42 = vsel %vm1877_vm3, %v10685_v15, %v10684_v3  ;;  %10686 = vst [vmem:[#allocation188_spill] sm:$0xff] %v6770_v25  ;;  %v6776_v58 = vld [vmem:[#allocation2 + $0x30] sm:$0xff]  ;;  %v3950_v15 = vld [vmem:[#allocation11 + $0x360] sm:$0xff]  ;;  %v10690_v55 = vld [vmem:[#allocation36_spill] sm:$0xff]  ;;  %4271 = vmatprep.subr.mxu1 %v4083_v14  ;;  %4160 = vmatprep.subr.mxu0 %v3951_v43 }
 0x291   : > { %10687 = vst [vmem:[#allocation189_spill] sm:$0xff] %v6773_v35  ;;  %v6780_v40 = vmul.f32 %v6776_v58, %v6428_v6  ;;  %v10689_v57 = vld [vmem:[#allocation41_spill] sm:$0xff]  ;;  %v10691_v3 = vld [vmem:[#allocation43_spill] sm:$0xff]  ;;  %v10692_v44 = vld [vmem:[#allocation42_spill] sm:$0xff]  ;;  %v6794_v35 = vpop.permute.xlu1 %1827  ;;  %4272 = vmatpush2.msra.mxu1 %v4082_v18  ;;  %4161 = vmatpush2.msra.mxu0 %v3950_v15  ;;  %v6826_v27 = vadd.f32 %v2510_v7, %v6335_v17 }
 0x292   : > { %v2651_v41 = vsel %vm1877_vm3, %v10690_v55, %v10689_v57  ;;  %v2652_v5 = vsel %vm1877_vm3, %v10692_v44, %v10691_v3  ;;  %v10693_v47 = vld [vmem:[#allocation53_spill] sm:$0xff]  ;;  %v10694_v63 = vld [vmem:[#allocation47_spill] sm:$0xff]  ;;  %10695 = vst [vmem:[#allocation191_spill] sm:$0xff] %v6794_v35  ;;  %v4079_v20 = vld [vmem:[#allocation11 + $0x768] sm:$0xff]  ;;  %v6800_v57 = vmul.f32 %v6398_v23, %v1584_v32  ;;  %v6803_v3 = vmul.f32 %v6382_v29, %v1895_v42 }
 0x293   : > { %10688 = vst [vmem:[#allocation190_spill] sm:$0xff] %v6780_v40  ;;  %v1894_v54 = vsel %vm1877_vm3, %v10694_v63, %v10693_v47  ;;  %v3947_v28 = vld [vmem:[#allocation11 + $0x348] sm:$0xff]  ;;  %v2514_v40 = vmul.f32 %v6245_v8, %v2476_v22  ;;  %v4078_v55 = vld [vmem:[#allocation11 + $0x760] sm:$0xff]  ;;  %v6809_v47 = vpop.permute.xlu0 %1527  ;;  %10699 = vst [vmem:[#allocation195_spill] sm:$0xff] %v6826_v27  ;;  %4273 = vmatprep.subr.mxu1 %v4079_v20  ;;  %v6837_v15 = vmul.f32 %v6241_v62, %v2651_v41 }
 0x294   : > { %v6805_v63 = vld [vmem:[#allocation2 + $0x130] sm:$0xff]  ;;  %10696 = vst [vmem:[#allocation192_spill] sm:$0xff] %v6809_v47  ;;  %v6811_v14 = vld [vmem:[#allocation2 + $0xc8] sm:$0xff]  ;;  %v6822_v43 = vld [vmem:[#allocation2 + $0x20] sm:$0xff]  ;;  %v6829_v46 = vmul.f32 %v6382_v29, %v1894_v54  ;;  %4162 = vmatprep.subr.mxu0 %v3947_v28  ;;  %v6840_v42 = vmul.f32 %v6241_v62, %v2652_v5  ;;  %3358 = vrot.lane.b32.xlu0 %v6587_v12, %s5195_s29 }
 0x295   : > { %2438 = vrot.lane.b32.xlu1 %v6805_v63, %s5194_s27  ;;  %v6815_v22 = vmul.f32 %v6811_v14, %v6495_v51  ;;  %v6819_v32 = vmul.f32 %v6811_v14, %v6440_v52  ;;  %v3946_v35 = vld [vmem:[#allocation11 + $0x340] sm:$0xff]  ;;  %v3943_v48 = vld [vmem:[#allocation11 + $0x328] sm:$0xff]  ;;  %10702 = vst [vmem:[#allocation197_spill] sm:$0xff] %v6837_v15  ;;  %v10704_v17 = vld [vmem:[#allocation52_spill] sm:$0xff]  ;;  %v6846_v7 = vpop.permute.xlu1 %3016  ;;  %4274 = vmatpush2.msra.mxu1 %v4078_v55  ;;  %v10713_v5 = vrot.slane %v6822_v43, 1 }
 0x296   : > { %10700 = vst [vmem:[#allocation196_spill] sm:$0xff] %v6829_v46  ;;  %10703 = vst [vmem:[#allocation198_spill] sm:$0xff] %v6840_v42  ;;  %v1585_v54 = vsel %vm1567_vm2, %v6087_v30, %v10704_v17  ;;  %v4074_v28 = vld [vmem:[#allocation11 + $0x740] sm:$0xff]  ;;  %v10706_v41 = vld [vmem:[#allocation23_spill] sm:$0xff]  ;;  %v6858_v15 = vmul.f32 %v6776_v58, %v6491_v50  ;;  %4163 = vmatpush2.msra.mxu0 %v3946_v35  ;;  %4275 = vmatprep.subr.mxu1 %v4075_v11  ;;  %v10714_v35 = vrot.slane %v5936_v56, 1 }
 0x297   : > { %10697 = vst [vmem:[#allocation193_spill] sm:$0xff] %v6815_v22  ;;  %10698 = vst [vmem:[#allocation194_spill] sm:$0xff] %v6819_v32  ;;  %v10701_v22 = vld [vmem:[#allocation49_spill] sm:$0xff]  ;;  %v4071_v30 = vld [vmem:[#allocation11 + $0x728] sm:$0xff]  ;;  %v6863_v55 = vpop.permute.xlu0 %3334  ;;  %4164 = vmatprep.subr.mxu0 %v3943_v48  ;;  %4276 = vmatpush2.msra.mxu1 %v4074_v28 }
 0x298   : > { %v2477_v32 = vsel %vm1567_vm2, %v10701_v22, %v6070_v39  ;;  %10705 = vst [vmem:[#allocation199_spill] sm:$0xff] %v6846_v7  ;;  %v3942_v18 = vld [vmem:[#allocation11 + $0x320] sm:$0xff]  ;;  %v6852_v22 = vadd.f32 %v2514_v40, %v10706_v41  ;;  %10708 = vst [vmem:[#allocation200_spill] sm:$0xff] %v6858_v15  ;;  %v10710_v40 = vrot.slane %v6805_v63, 7  ;;  %v10711_v41 = vrot.slane %v5932_v34, 7  ;;  %v10717_v27 = vld [vmem:[#allocation46_spill] sm:$0xff]  ;;  %2450 = vrot.lane.b32.xlu0 %v6750_v36, %s5194_s27 }
 0x299   : > { %v2518_v12 = vmul.f32 %v6245_v8, %v2477_v32  ;;  %2614 = vrot.lane.b32.xlu1 %v6805_v63, %s5195_s29  ;;  %10709 = vst [vmem:[#allocation201_spill] sm:$0xff] %v6863_v55  ;;  %v6877_v11 = vsel %vm1680_vm1, %v10714_v35, %v10713_v5  ;;  %v3939_v32 = vld [vmem:[#allocation11 + $0x308] sm:$0xff]  ;;  %v4070_v20 = vld [vmem:[#allocation11 + $0x720] sm:$0xff]  ;;  %4165 = vmatpush2.msra.mxu0 %v3942_v18  ;;  %v10721_v35 = vld [vmem:[#allocation67_spill] sm:$0xff]  ;;  %v6898_v39 = vpop.permute.xlu1 %1531  ;;  %v10731_v36 = vrot.slane %v6803_v3, 1 }
 0x29a   : > { %10707 = vst [vmem:[#allocation23_spill] sm:$0xff] %v6852_v22  ;;  %v6870_v42 = vsel %vm1400_vm0, %v10711_v41, %v10710_v40  ;;  %10715 = vst [vmem:[#allocation203_spill] sm:$0xff] %v6877_v11  ;;  %v10716_v17 = vld [vmem:[#allocation57_spill] sm:$0xff]  ;;  %v6885_v40 = vmul.f32 %v6398_v23, %v1585_v54  ;;  %v10718_v41 = vrot.slane %v6822_v43, 7  ;;  %v10724_v54 = vrot.slane %v6805_v63, 1  ;;  %4277 = vmatprep.subr.mxu1 %v4071_v30  ;;  %v4067_v18 = vld [vmem:[#allocation11 + $0x708] sm:$0xff] }
 0x29b   : > { %10712 = vst [vmem:[#allocation202_spill] sm:$0xff] %v6870_v42  ;;  %v2653_v7 = vsel %vm1877_vm3, %v10717_v27, %v10716_v17  ;;  %v10719_v42 = vrot.slane %v5936_v56, 7  ;;  %v3938_v48 = vld [vmem:[#allocation11 + $0x300] sm:$0xff]  ;;  %10723 = vst [vmem:[#allocation205_spill] sm:$0xff] %v6898_v39  ;;  %v10725_v56 = vrot.slane %v5932_v34, 1  ;;  %v3935_v28 = vld [vmem:[#allocation11 + $0x2e8] sm:$0xff]  ;;  %4166 = vmatprep.subr.mxu0 %v3939_v32  ;;  %4278 = vmatpush2.msra.mxu1 %v4070_v20  ;;  %v6943_v20 = vpop.permute.xlu0 %1839 }
 0x29c   : > { %v10722_v15 = vld [vmem:[#allocation61_spill] sm:$0xff]  ;;  %10740 = vst [vmem:[#allocation211_spill] sm:$0xff] %v6943_v20  ;;  %4167 = vmatpush2.msra.mxu0 %v3938_v48  ;;  %4279 = vmatprep.subr.mxu1 %v4067_v18  ;;  %v3931_v48 = vld [vmem:[#allocation11 + $0x2c8] sm:$0xff] }
 0x29d   : > { %v6892_v5 = vsel %vm1400_vm0, %v10719_v42, %v10718_v41  ;;  %v3082_v11 = vsel %vm1567_vm2, %v10722_v15, %v10721_v35  ;;  %v6907_v42 = vsel %vm1680_vm1, %v10725_v56, %v10724_v54  ;;  %v6911_v41 = vmul.f32 %v6776_v58, %v6447_v1  ;;  %v10728_v15 = vld [vmem:[#allocation91_spill] sm:$0xff]  ;;  %v4066_v30 = vld [vmem:[#allocation11 + $0x700] sm:$0xff]  ;;  %3054 = vrot.lane.b32.xlu1 %v6597_v61, %s5194_s27  ;;  %v6965_v39 = vpop.permute.xlu1 %3338  ;;  %v3927_v55 = vld [vmem:[#allocation11 + $0x2a8] sm:$0xff] }
 0x29e   : > { %10720 = vst [vmem:[#allocation204_spill] sm:$0xff] %v6892_v5  ;;  %10726 = vst [vmem:[#allocation206_spill] sm:$0xff] %v6907_v42  ;;  %v10729_v35 = vrot.slane %v6800_v57, 1  ;;  %v10732_v5 = vrot.slane %v6829_v46, 1  ;;  %v6927_v54 = vmul.f32 %v6811_v14, %v6451_v49  ;;  %v10735_v56 = vld [vmem:[#allocation25_spill] sm:$0xff]  ;;  %v10739_v46 = vld [vmem:[#allocation58_spill] sm:$0xff]  ;;  %4168 = vmatprep.subr.mxu0 %v3935_v28  ;;  %1849 = vrot.lane.b32.xlu0 %v6342_v38, %s5195_s29 }
 0x29f   : > { %10727 = vst [vmem:[#allocation207_spill] sm:$0xff] %v6911_v41  ;;  %v6930_v41 = vadd.f32 %v2518_v12, %v10735_v56  ;;  %v3934_v32 = vld [vmem:[#allocation11 + $0x2e0] sm:$0xff]  ;;  %v6949_v56 = vld [vmem:[#allocation9 + $0x8] sm:$0xff]  ;;  %v6959_v42 = vld [vmem:[#allocation2 + $0x98] sm:$0x7f]  ;;  %4280 = vmatpush2.msra.mxu1 %v4066_v30  ;;  %v6986_v38 = vmul.f32 %v6805_v63, %v6491_v50 }
 0x2a0   : > { %v6916_v17 = vadd.f32 %v10729_v35, %v10728_v15  ;;  %v6923_v34 = vsel %vm1680_vm1, %v10732_v5, %v10731_v36  ;;  %10734 = vst [vmem:[#allocation209_spill] sm:$0xff] %v6927_v54  ;;  %v6933_v15 = vmul.f32 %v6241_v62, %v2653_v7  ;;  %v6935_v35 = vld [vmem:[#allocation9 + $0x20] ss:$0 sm:$0xff]  ;;  %v4063_v36 = vld [vmem:[#allocation11 + $0x6e8] sm:$0xff]  ;;  %v10741_v54 = vld [vmem:[#allocation87_spill] sm:$0xff]  ;;  %4169 = vmatpush2.msra.mxu0 %v3934_v32 }
 0x2a1   : > { %10733 = vst [vmem:[#allocation208_spill] sm:$0xff] %v6923_v34  ;;  %10736 = vst [vmem:[#allocation25_spill] sm:$0xff] %v6930_v41  ;;  %v6947_v7 = vmul.f32 %v6935_v35, %v3082_v11  ;;  %v6953_v34 = vrot.slane %v6949_v56, %v10741_v54  ;;  %v10747_v12 = vld [vmem:[#allocation63_spill] sm:$0xff]  ;;  %v6971_v41 = vmul.f32 %v6805_v63, %v6428_v6  ;;  %v4062_v18 = vld [vmem:[#allocation11 + $0x6e0] sm:$0xff]  ;;  %4281 = vmatprep.subr.mxu1 %v4063_v36 }
 0x2a2   : > { %10730 = vst [vmem:[#allocation91_spill] sm:$0xff] %v6916_v17  ;;  %10737 = vst [vmem:[#allocation210_spill] sm:$0xff] %v6933_v15  ;;  %v10738_v17 = vld [vmem:[#allocation66_spill] sm:$0xff]  ;;  %v10746_v15 = vld [vmem:[#allocation69_spill] sm:$0xff]  ;;  %3362 = vrot.lane.b32.xlu1 %v6597_v61, %s5195_s29  ;;  %4170 = vmatprep.subr.mxu0 %v3931_v48  ;;  %v7020_v36 = vmul.f32 %v6805_v63, %v6447_v1  ;;  %v7022_v48 = vpop.permute.xlu1 %3032 }
 0x2a3   : > { %v3083_v5 = vsel %vm1567_vm2, %v10739_v46, %v10738_v17  ;;  %10742 = vst [vmem:[#allocation87_spill] sm:$0xff] %v6953_v34  ;;  %v10743_v46 = vld [vmem:[#allocation32_spill] sm:$0xff]  ;;  %10745 = vst [vmem:[#allocation213_spill] sm:$0xff] %v6959_v42  ;;  %v3390_v11 = vsel %vm1877_vm3, %v10747_v12, %v10746_v15  ;;  %v3930_v28 = vld [vmem:[#allocation11 + $0x2c0] sm:$0xff]  ;;  %v6982_v12 = vmul.f32 %v6822_v43, %v6440_v52  ;;  %4282 = vmatpush2.msra.mxu1 %v4062_v18 }
 0x2a4   : > { %v6957_v17 = vrot.slane %v6384_v0, %v10743_v46  ;;  %10748 = vst [vmem:[#allocation214_spill] sm:$0xff] %v6965_v39  ;;  %10749 = vst [vmem:[#allocation215_spill] sm:$0xff] %v6971_v41  ;;  %v6978_v27 = vmul.f32 %v6935_v35, %v3083_v5  ;;  %v6988_v15 = vld [vmem:[#allocation2 + $0x98] sm:$0xff]  ;;  %v6991_v39 = vld [vmem:[#allocation2 + $0x40] sm:$0x7f]  ;;  %v1465_v41 = vrot.slane %v6959_v42, 7  ;;  %v7016_v61 = vmul.f32 %v6470_v13, %v3390_v11 }
 0x2a5   : > { %10751 = vst [vmem:[#allocation217_spill] sm:$0xff] %v6982_v12  ;;  %10752 = vst [vmem:[#allocation218_spill] sm:$0xff] %v6986_v38  ;;  %v4059_v30 = vld [vmem:[#allocation11 + $0x6c8] sm:$0xff]  ;;  %v10755_v5 = vld [vmem:[#allocation60_spill] sm:$0xff]  ;;  %v7003_v38 = vpop.permute.xlu0 %3320  ;;  %4171 = vmatpush2.msra.mxu0 %v3930_v28  ;;  %2612 = vrot.lane.b32.xlu0 %v6776_v58, %s5195_s29  ;;  %v7037_v28 = vmul.f32 %v6822_v43, %v6451_v49 }
 0x2a6   : > { %10744 = vst [vmem:[#allocation212_spill] sm:$0xff] %v6957_v17  ;;  %v6975_v17 = vmul.f32 %v6822_v43, %v6495_v51  ;;  %10753 = vst [vmem:[#allocation219_spill] sm:$0xff] %v6991_v39  ;;  %v10756_v20 = vld [vmem:[#allocation77_spill] sm:$0xff]  ;;  %v10757_v12 = vld [vmem:[#allocation56_spill] sm:$0xff]  ;;  %4283 = vmatprep.subr.mxu1 %v4059_v30  ;;  %4172 = vmatprep.subr.mxu0 %v3927_v55 }
 0x2a7   : > { %v1586_v22 = vsel %vm1567_vm2, %v10757_v12, %v10756_v20  ;;  %10758 = vst [vmem:[#allocation220_spill] sm:$0xff] %v7003_v38  ;;  %v7006_v32 = vld [vmem:[#allocation2 + $0x40] sm:$0xff]  ;;  %v3178_v20 = vrot.slane %v6947_v7, 7  ;;  %10761 = vst [vmem:[#allocation221_spill] sm:$0xff] %v7016_v61  ;;  %v1467_v7 = vrot.slane %v6991_v39, 7  ;;  %v4055_v11 = vld [vmem:[#allocation11 + $0x6a8] sm:$0xff]  ;;  %2454 = vrot.lane.b32.xlu1 %v6822_v43, %s5194_s27 }
 0x2a8   : > { %10750 = vst [vmem:[#allocation216_spill] sm:$0xff] %v6975_v17  ;;  %v10754_v17 = vld [vmem:[#allocation68_spill] sm:$0xff]  ;;  %v4058_v44 = vld [vmem:[#allocation11 + $0x6c0] sm:$0xff]  ;;  %10762 = vst [vmem:[#allocation222_spill] sm:$0xff] %v7020_v36 }
 0x2a9   : > { %v3391_v34 = vsel %vm1877_vm3, %v10755_v5, %v10754_v17  ;;  %v10759_v5 = vrot.slane %v6885_v40, 1  ;;  %v10760_v17 = vrot.slane %v6800_v57, 1  ;;  %v3926_v42 = vld [vmem:[#allocation11 + $0x2a0] sm:$0xff]  ;;  %10763 = vst [vmem:[#allocation223_spill] sm:$0xff] %v7022_v48  ;;  %v7028_v57 = vrot.slane %v6384_v0, %v10741_v54  ;;  %v3923_v18 = vld [vmem:[#allocation11 + $0x288] sm:$0xff]  ;;  %10766 = vst [vmem:[#allocation226_spill] sm:$0xff] %v7037_v28  ;;  %4284 = vmatpush2.msra.mxu1 %v4058_v44 }
 0x2aa   : > { %v7041_v58 = vmul.f32 %v6470_v13, %v3391_v34  ;;  %v10767_v36 = vld [vmem:[#allocation71_spill] sm:$0xff]  ;;  %v4054_v30 = vld [vmem:[#allocation11 + $0x6a0] sm:$0xff]  ;;  %v10772_v34 = vrot.slane %v6988_v15, 1  ;;  %v10773_v28 = vrot.slane %v6805_v63, 1  ;;  %4173 = vmatpush2.msra.mxu0 %v3926_v42  ;;  %v4051_v55 = vld [vmem:[#allocation11 + $0x688] sm:$0xff]  ;;  %4285 = vmatprep.subr.mxu1 %v4055_v11 }
 0x2ab   : > { %v1686_v12 = vsel %vm1680_vm1, %v10760_v17, %v10759_v5  ;;  %10764 = vst [vmem:[#allocation224_spill] sm:$0xff] %v7028_v57  ;;  %v7032_v17 = vrot.slane %v6404_v24, %v10741_v54  ;;  %v10768_v57 = vld [vmem:[#allocation65_spill] sm:$0xff]  ;;  %v7055_v5 = vpop.permute.xlu0 %1513  ;;  %v10779_v49 = vld [vmem:[#allocation62_spill] sm:$0xff]  ;;  %4174 = vmatprep.subr.mxu0 %v3923_v18  ;;  %1553 = vrot.lane.b32.xlu0 %v6606_v53, %s5194_s27 }
 0x2ac   : > { %v2478_v54 = vsel %vm1567_vm2, %v10768_v57, %v10767_v36  ;;  %v10769_v39 = vld [vmem:[#allocation93_spill] sm:$0xff]  ;;  %10771 = vst [vmem:[#allocation227_spill] sm:$0xff] %v7055_v5  ;;  %v7062_v57 = vsel %vm1680_vm1, %v10773_v28, %v10772_v34  ;;  %v10778_v5 = vld [vmem:[#allocation79_spill] sm:$0xff]  ;;  %v10780_v34 = vrot.slane %v7006_v32, 1  ;;  %v3919_v42 = vld [vmem:[#allocation11 + $0x268] sm:$0xff]  ;;  %v7091_v36 = vrot.slane %v6394_v10, %v10743_v46  ;;  %4286 = vmatpush2.msra.mxu1 %v4054_v30 }
 0x2ad   : > { %10765 = vst [vmem:[#allocation225_spill] sm:$0xff] %v7032_v17  ;;  %v7048_v17 = vmul.f32 %v6398_v23, %v1586_v22  ;;  %v7051_v1 = vadd.f32 %v1686_v12, %v10769_v39  ;;  %10774 = vst [vmem:[#allocation228_spill] sm:$0xff] %v7062_v57  ;;  %v10775_v22 = vrot.slane %v6805_v63, 7  ;;  %v3922_v39 = vld [vmem:[#allocation11 + $0x280] sm:$0xff]  ;;  %v10777_v12 = vrot.slane %v6978_v27, 7  ;;  %4287 = vmatprep.subr.mxu1 %v4051_v55  ;;  %v3915_v30 = vld [vmem:[#allocation11 + $0x248] sm:$0xff] }
 0x2ae   : > { %v1896_v28 = vsel %vm1877_vm3, %v10779_v49, %v10778_v5  ;;  %v10781_v63 = vrot.slane %v6822_v43, 1  ;;  %10784 = vst [vmem:[#allocation232_spill] sm:$0xff] %v7091_v36  ;;  %v10785_v49 = vrot.slane %v6822_v43, 7  ;;  %v4050_v11 = vld [vmem:[#allocation11 + $0x680] sm:$0xff]  ;;  %4175 = vmatpush2.msra.mxu0 %v3922_v39  ;;  %1541 = vrot.lane.b32.xlu1 %v6614_v19, %s5194_s27 }
 0x2af   : > { %10770 = vst [vmem:[#allocation93_spill] sm:$0xff] %v7051_v1  ;;  %v7067_v44 = vsel %vm1400_vm0, %v10775_v22, %v1465_v41  ;;  %v3183_v1 = vsel %vm1400_vm0, %v3178_v20, %v10777_v12  ;;  %v2522_v22 = vmul.f32 %v6245_v8, %v2478_v54  ;;  %v7085_v12 = vpop.permute.xlu1 %3340  ;;  %v3918_v18 = vld [vmem:[#allocation11 + $0x260] sm:$0xff]  ;;  %v10299_v54 = vrot.slane %v7041_v58, 7  ;;  %4176 = vmatprep.subr.mxu0 %v3919_v42 }
 0x2b0   : > { %10776 = vst [vmem:[#allocation229_spill] sm:$0xff] %v7067_v44  ;;  %v7082_v41 = vsel %vm1680_vm1, %v10781_v63, %v10780_v34  ;;  %10783 = vst [vmem:[#allocation231_spill] sm:$0xff] %v7085_v12  ;;  %v7096_v5 = vsel %vm1400_vm0, %v10785_v49, %v1467_v7  ;;  %v7099_v34 = vadd.f32 %v3178_v20, %v6295_v59  ;;  %v10788_v63 = vld [vmem:[#allocation73_spill] sm:$0xff]  ;;  %v4047_v12 = vld [vmem:[#allocation11 + $0x668] sm:$0xff]  ;;  %v7115_v59 = vpop.permute.xlu0 %1825  ;;  %4288 = vmatpush2.msra.mxu1 %v4050_v11 }
 0x2b1   : > { %10782 = vst [vmem:[#allocation230_spill] sm:$0xff] %v7082_v41  ;;  %10786 = vst [vmem:[#allocation233_spill] sm:$0xff] %v7096_v5  ;;  %v10789_v41 = vld [vmem:[#allocation50_spill] sm:$0xff]  ;;  %v7108_v49 = vadd.f32 %v3183_v1, %v6266_v16  ;;  %v7111_v7 = vmul.f32 %v6382_v29, %v1896_v28  ;;  %v7119_v20 = vrot.slane %v6404_v24, %v10743_v46  ;;  %v4046_v39 = vld [vmem:[#allocation11 + $0x660] sm:$0xff]  ;;  %v10793_v16 = vrot.slane %v7016_v61, 7 }
 0x2b2   : > { %10787 = vst [vmem:[#allocation234_spill] sm:$0xff] %v7099_v34  ;;  %v2654_v44 = vsel %vm1877_vm3, %v10789_v41, %v10788_v63  ;;  %10791 = vst [vmem:[#allocation235_spill] sm:$0xff] %v7115_v59  ;;  %v10795_v55 = vld [vmem:[#allocation81_spill] sm:$0xff]  ;;  %v10796_v28 = vld [vmem:[#allocation75_spill] sm:$0xff]  ;;  %4177 = vmatpush2.msra.mxu0 %v3918_v18  ;;  %1865 = vrot.lane.b32.xlu0 %v6606_v53, %s5195_s29  ;;  %v10803_v18 = vrot.slane %v7048_v17, 1 }
 0x2b3   : > { %10790 = vst [vmem:[#allocation50_spill] sm:$0xff] %v7108_v49  ;;  %10792 = vst [vmem:[#allocation236_spill] sm:$0xff] %v7119_v20  ;;  %v7126_v1 = vsel %vm1400_vm0, %v10793_v16, %v10299_v54  ;;  %v2479_v57 = vsel %vm1567_vm2, %v10796_v28, %v10795_v55  ;;  %v7134_v49 = vrot.slane %v6949_v56, %v5836_v9  ;;  %v3914_v42 = vld [vmem:[#allocation11 + $0x240] sm:$0xff]  ;;  %v10798_v46 = vld [vmem:[#allocation26_spill] sm:$0xff]  ;;  %v7146_v61 = vpop.permute.xlu1 %2426  ;;  %4289 = vmatprep.subr.mxu1 %v4047_v12 }
 0x2b4   : > { %10794 = vst [vmem:[#allocation237_spill] sm:$0xff] %v7126_v1  ;;  %v7137_v34 = vadd.f32 %v2522_v22, %v10798_v46  ;;  %v7140_v63 = vmul.f32 %v6241_v62, %v2654_v44  ;;  %v10801_v16 = vld [vmem:[#allocation76_spill] sm:$0xff]  ;;  %v10802_v54 = vld [vmem:[#allocation85_spill] sm:$0xff]  ;;  %v4043_v56 = vld [vmem:[#allocation11 + $0x648] sm:$0xff]  ;;  %v10804_v46 = vrot.slane %v6885_v40, 1  ;;  %v7157_v22 = vrot.slane %v6384_v0, %v5571_v2  ;;  %4178 = vmatprep.subr.mxu0 %v3915_v30  ;;  %v7175_v30 = vpop.permute.xlu0 %1529 }
 0x2b5   : > { %10797 = vst [vmem:[#allocation238_spill] sm:$0xff] %v7134_v49  ;;  %v3392_v1 = vsel %vm1877_vm3, %v10802_v54, %v10801_v16  ;;  %v3911_v11 = vld [vmem:[#allocation11 + $0x228] sm:$0xff]  ;;  %v7161_v28 = vrot.slane %v6384_v0, %v5836_v9  ;;  %4290 = vmatpush2.msra.mxu1 %v4046_v39  ;;  %v4042_v53 = vld [vmem:[#allocation11 + $0x640] sm:$0xff]  ;;  %v2526_v54 = vmul.f32 %v6245_v8, %v2479_v57  ;;  %v10807_v16 = vld [vmem:[#allocation84_spill] sm:$0xff] }
 0x2b6   : > { %10799 = vst [vmem:[#allocation26_spill] sm:$0xff] %v7137_v34  ;;  %10800 = vst [vmem:[#allocation239_spill] sm:$0xff] %v7140_v63  ;;  %v1694_v44 = vsel %vm1680_vm1, %v10804_v46, %v10803_v18  ;;  %v10808_v5 = vld [vmem:[#allocation80_spill] sm:$0xff]  ;;  %3348 = vrot.lane.b32.xlu1 %v6619_v26, %s5195_s29  ;;  %4179 = vmatpush2.msra.mxu0 %v3914_v42  ;;  %v3910_v39 = vld [vmem:[#allocation11 + $0x220] sm:$0xff]  ;;  %v7178_v57 = vmul.f32 %v6470_v13, %v3392_v1 }
 0x2b7   : > { %10805 = vst [vmem:[#allocation240_spill] sm:$0xff] %v7157_v22  ;;  %10806 = vst [vmem:[#allocation241_spill] sm:$0xff] %v7161_v28  ;;  %v3085_v40 = vsel %vm1567_vm2, %v10808_v5, %v10807_v16  ;;  %v10809_v18 = vld [vmem:[#allocation72_spill] sm:$0xff]  ;;  %v4039_v12 = vld [vmem:[#allocation11 + $0x628] sm:$0xff]  ;;  %v7186_v5 = vrot.slane %v6404_v24, %v5836_v9  ;;  %4291 = vmatprep.subr.mxu1 %v4043_v56  ;;  %4180 = vmatprep.subr.mxu0 %v3911_v11  ;;  %v7191_v28 = vpop.permute.xlu1 %2602 }
 0x2b8   : > { %v3084_v46 = vsel %vm1567_vm2, %v10809_v18, %v6302_v37  ;;  %10810 = vst [vmem:[#allocation242_spill] sm:$0xff] %v7175_v30  ;;  %v10811_v55 = vld [vmem:[#allocation70_spill] sm:$0xff]  ;;  %v2812_v18 = vld [vmem:[#allocation2 + $0xd8] sm:$0x1]  ;;  %2452 = vrot.lane.b32.xlu0 %v6811_v14, %s5194_s27  ;;  %v7197_v1 = vrot.slane %v6394_v10, %v5571_v2  ;;  %v7201_v9 = vrot.slane %v6404_v24, %v5571_v2  ;;  %v4038_v56 = vld [vmem:[#allocation11 + $0x620] sm:$0xff]  ;;  %v10819_v2 = vrot.slane %v7111_v7, 1 }
 0x2b9   : > { %v1587_v16 = vsel %vm1567_vm2, %v10811_v55, %v6358_v21  ;;  %10812 = vst [vmem:[#allocation243_spill] sm:$0xff] %v7186_v5  ;;  %v3907_v37 = vld [vmem:[#allocation11 + $0x208] sm:$0xff]  ;;  %v2813_v55 = vld [vmem:[#allocation2 + $0xe0] sm:$0x1]  ;;  %4292 = vmatpush2.msra.mxu1 %v4042_v53  ;;  %v3906_v11 = vld [vmem:[#allocation11 + $0x200] sm:$0xff]  ;;  %v3122_v5 = vmul.f32 %v6935_v35, %v3084_v46  ;;  %4181 = vmatpush2.msra.mxu0 %v3910_v39 }
 0x2ba   : > { %v10813_v63 = vld [vmem:[#allocation98_spill] sm:$0xff]  ;;  %10815 = vst [vmem:[#allocation244_spill] sm:$0xff] %v7197_v1  ;;  %10816 = vst [vmem:[#allocation245_spill] sm:$0xff] %v7201_v9  ;;  %v10817_v21 = vld [vmem:[#allocation83_spill] sm:$0xff]  ;;  %4293 = vmatprep.subr.mxu1 %v4039_v12  ;;  %v10820_v9 = vrot.slane %v6803_v3, 1  ;;  %1853 = vrot.lane.b32.xlu1 %v6614_v19, %s5195_s29  ;;  %v7246_v46 = vmul.f32 %v6988_v15, %v6491_v50 }
 0x2bb   : > { %v7189_v42 = vadd.f32 %v1694_v44, %v10813_v63  ;;  %v10818_v63 = vld [vmem:[#allocation64_spill] sm:$0xff]  ;;  %v4035_v1 = vld [vmem:[#allocation11 + $0x608] sm:$0xff]  ;;  %v10821_v22 = vld [vmem:[#allocation27_spill] sm:$0xff]  ;;  %4182 = vmatprep.subr.mxu0 %v3907_v37  ;;  %4294 = vmatpush2.msra.mxu1 %v4038_v56 }
 0x2bc   : > { %v2655_v44 = vsel %vm1877_vm3, %v10818_v63, %v10817_v21  ;;  %v7216_v53 = vsel %vm1680_vm1, %v10820_v9, %v10819_v2  ;;  %v7219_v34 = vadd.f32 %v2526_v54, %v10821_v22  ;;  %v7222_v63 = vmul.f32 %v6398_v23, %v1587_v16  ;;  %v4034_v12 = vld [vmem:[#allocation11 + $0x600] sm:$0xff]  ;;  %v10824_v39 = vld [vmem:[#allocation128_spill] sm:$0xff]  ;;  %v10825_v3 = vld [vmem:[#allocation74_spill] sm:$0xff]  ;;  %4183 = vmatpush2.msra.mxu0 %v3906_v11  ;;  %v7240_v22 = vpop.permute.xlu1 %2442 }
 0x2bd   : > { %10814 = vst [vmem:[#allocation98_spill] sm:$0xff] %v7189_v42  ;;  %v7208_v42 = vmul.f32 %v6935_v35, %v3085_v40  ;;  %v7226_v40 = vpop.permute.xlu0 %3322  ;;  %v1897_v2 = vsel %vm1877_vm3, %v10825_v3, %v10824_v39  ;;  %v2966_v9 = vrot.slane %v2812_v18, 1  ;;  %v2968_v54 = vrot.slane %v2813_v55, 1  ;;  %v10826_v19 = vld [vmem:[#allocation153_spill] sm:$0xff]  ;;  %2628 = vrot.lane.b32.xlu0 %v6811_v14, %s5195_s29  ;;  %10827 = vst [vmem:[#allocation247_spill] sm:$0xff] %v7246_v46  ;;  %v10828_v56 = vld [vmem:[#allocation86_spill] sm:$0xff] }
 0x2be   : > { %10822 = vst [vmem:[#allocation27_spill] sm:$0xff] %v7219_v34  ;;  %10823 = vst [vmem:[#allocation246_spill] sm:$0xff] %v7226_v40  ;;  %v7234_v16 = vmul.f32 %v6241_v62, %v2655_v44  ;;  %v1588_v37 = vsel %vm1567_vm2, %v10826_v19, %v6641_v60  ;;  %4295 = vmatprep.subr.mxu1 %v4035_v1  ;;  %v3190_v18 = vrot.slane %v3122_v5, 7  ;;  %v10829_v11 = vld [vmem:[#allocation159_spill] sm:$0xff]  ;;  %v10830_v19 = vld [vmem:[#allocation89_spill] sm:$0xff]  ;;  %v1701_v1 = vrot.slane %v7222_v63, 1 }
 0x2bf   : > { %v3393_v44 = vsel %vm1877_vm3, %v10829_v11, %v10828_v56  ;;  %v4935_v3 = vld [vmem:[#allocation2 + $0xb0] sm:$0x80]  ;;  %4296 = vmatpush2.msra.mxu1 %v4034_v12  ;;  %v10831_v60 = vld [vmem:[#allocation78_spill] sm:$0xff]  ;;  %v10832_v14 = vld [vmem:[#allocation96_spill] sm:$0xff]  ;;  %v7262_v55 = vmul.f32 %v6382_v29, %v1897_v2  ;;  %3056 = vrot.lane.b32.xlu1 %v6629_v45, %s5194_s27  ;;  %v10835_v12 = vrot.slane %v7178_v57, 7  ;;  %v7280_v63 = vmul.f32 %v6398_v23, %v1588_v37 }
 0x2c0   : > { %v7254_v34 = vmul.f32 %v4935_v3, %v10830_v19  ;;  %v2656_v50 = vsel %vm1877_vm3, %v10832_v14, %v10831_v60  ;;  %v7270_v3 = vmul.f32 %v7006_v32, %v6495_v51  ;;  %v10836_v19 = vrot.slane %v7041_v58, 7  ;;  %v10842_v56 = vld [vmem:[#allocation88_spill] sm:$0xff]  ;;  %v10843_v37 = vld [vmem:[#allocation133_spill] sm:$0xff] }
 0x2c1   : > { %v7266_v5 = vpop.permute.xlu0 %1515  ;;  %v10838_v2 = vrot.slane %v6988_v15, 1  ;;  %v10839_v11 = vrot.slane %v7006_v32, 1  ;;  %1555 = vrot.lane.b32.xlu0 %v6632_v33, %s5194_s27  ;;  %v10848_v21 = vld [vmem:[#allocation156_spill] sm:$0xff]  ;;  %v10849_v60 = vld [vmem:[#allocation145_spill] sm:$0xff]  ;;  %v10850_v39 = vrot.slane %v7208_v42, 7 }
 0x2c2   : > { %10833 = vst [vmem:[#allocation89_spill] sm:$0xff] %v7266_v5  ;;  %10834 = vst [vmem:[#allocation248_spill] sm:$0xff] %v7270_v3  ;;  %v7277_v46 = vsel %vm1400_vm0, %v10836_v19, %v10835_v12  ;;  %v10841_v3 = vld [vmem:[#allocation138_spill] sm:$0xff]  ;;  %v7297_v12 = vmul.f32 %v6470_v13, %v3393_v44  ;;  %v3086_v19 = vsel %vm1567_vm2, %v6770_v25, %v10843_v37  ;;  %v10847_v44 = vrot.slane %v6978_v27, 7  ;;  %v4936_v37 = vld [vmem:[#allocation2 + $0x10] sm:$0x80] }
 0x2c3   : > { %10837 = vst [vmem:[#allocation249_spill] sm:$0xff] %v7277_v46  ;;  %v7285_v14 = vsel %vm1680_vm1, %v10838_v2, %v2966_v9  ;;  %v7290_v51 = vsel %vm1680_vm1, %v10839_v11, %v2968_v54  ;;  %v2480_v58 = vsel %vm1567_vm2, %v10842_v56, %v10841_v3  ;;  %v7303_v9 = vpop.permute.xlu1 %2604  ;;  %v10844_v54 = vld [vmem:[#allocation127_spill] sm:$0xff]  ;;  %v7312_v2 = vmul.f32 %v6241_v62, %v2656_v50 }
 0x2c4   : > { %10840 = vst [vmem:[#allocation250_spill] sm:$0xff] %v7290_v51  ;;  %v7309_v11 = vrot.slane %v6384_v0, %v10844_v54  ;;  %v3191_v56 = vsel %vm1400_vm0, %v10847_v44, %v3190_v18  ;;  %v3087_v25 = vsel %vm1567_vm2, %v10849_v60, %v10848_v21  ;;  %v7322_v3 = vmul.f32 %v4936_v37, %v6428_v6  ;;  %v10852_v44 = vld [vmem:[#allocation82_spill] sm:$0xff]  ;;  %v10918_v46 = vld [vmem:[#allocation219_spill] sm:$0xff] }
 0x2c5   : > { %10846 = vst [vmem:[#allocation251_spill] sm:$0xff] %v7312_v2  ;;  %v3199_v0 = vsel %vm1400_vm0, %v3190_v18, %v10850_v39  ;;  %v10851_v50 = vrot.slane %v7048_v17, 1  ;;  %v2012_v27 = vrot.slane %v7262_v55, 1  ;;  %v1898_v2 = vsel %vm1877_vm3, %v10852_v44, %v6702_v4  ;;  %3364 = vrot.lane.b32.xlu1 %v6629_v45, %s5195_s29  ;;  %v7337_v37 = vpop.permute.xlu0 %3324  ;;  %v4937_v18 = vld [vmem:[#allocation2 + $0x28] sm:$0x80]  ;;  %v10855_v55 = vld [vmem:[#allocation104_spill] sm:$0xff]  ;;  %1867 = vrot.lane.b32.xlu0 %v6632_v33, %s5195_s29 }
 0x2c6   : > { %10845 = vst [vmem:[#allocation127_spill] sm:$0xff] %v7309_v11  ;;  %10853 = vst [vmem:[#allocation252_spill] sm:$0xff] %v7337_v37  ;;  %v2530_v21 = vmul.f32 %v6245_v8, %v2480_v58  ;;  %v1709_v39 = vrot.slane %v7280_v63, 1  ;;  %v3130_v17 = vmul.f32 %v6935_v35, %v3086_v19  ;;  %v7346_v60 = vadd.f32 %v3191_v56, %v10855_v55  ;;  %v10857_v4 = vld [vmem:[#allocation99_spill] sm:$0xff]  ;;  %v10858_v19 = vld [vmem:[#allocation20_spill] sm:$0xff] }
 0x2c7   : > { %v1702_v62 = vsel %vm1680_vm1, %v10851_v50, %v1701_v1  ;;  %v7343_v50 = vmul.f32 %v4937_v18, %v6440_v52  ;;  %v7349_v44 = vmul.f32 %v6935_v35, %v3087_v25  ;;  %v1589_v58 = vsel %vm1567_vm2, %v10857_v4, %v6809_v47  ;;  %v7356_v63 = vpop.permute.xlu1 %2622  ;;  %v10860_v56 = vld [vmem:[#allocation102_spill] sm:$0xff] }
 0x2c8   : > { %10856 = vst [vmem:[#allocation104_spill] sm:$0xff] %v7346_v60  ;;  %v7361_v18 = vadd.f32 %v3199_v0, %v10858_v19  ;;  %v7364_v55 = vadd.f32 %v1702_v62, %v10860_v56  ;;  %v7367_v25 = vmul.f32 %v6382_v29, %v1898_v2  ;;  %v10862_v45 = vld [vmem:[#allocation42_spill] sm:$0xff]  ;;  %v10863_v4 = vrot.slane %v7111_v7, 1 }
 0x2c9   : > { %10854 = vst [vmem:[#allocation253_spill] sm:$0xff] %v7343_v50  ;;  %v2660_v8 = vsel %vm1877_vm3, %v7356_v63, %v10862_v45  ;;  %v10865_v0 = vld [vmem:[#allocation174_spill] sm:$0xff]  ;;  %v7381_v62 = vpop.permute.xlu0 %3030  ;;  %v7385_v2 = vrot.slane %v6394_v10, %v10844_v54  ;;  %v7389_v19 = vrot.slane %v6404_v24, %v10844_v54  ;;  %v10869_v45 = vld [vmem:[#allocation129_spill] sm:$0xff]  ;;  %v3206_v56 = vrot.slane %v3130_v17, 7  ;;  %2630 = vrot.lane.b32.xlu0 %v6822_v43, %s5195_s29  ;;  %v10961_v50 = vld [vmem:[#allocation203_spill] sm:$0xff] }
 0x2ca   : > { %10859 = vst [vmem:[#allocation20_spill] sm:$0xff] %v7361_v18  ;;  %10861 = vst [vmem:[#allocation102_spill] sm:$0xff] %v7364_v55  ;;  %v7376_v47 = vsel %vm1680_vm1, %v10863_v4, %v2012_v27  ;;  %v2690_v33 = vmul.f32 %v7091_v36, %v2660_v8  ;;  %1543 = vrot.lane.b32.xlu1 %v10865_v0, %s5194_s27  ;;  %v7392_v7 = vadd.f32 %v2530_v21, %v10869_v45  ;;  %v10874_v24 = vld [vmem:[#allocation201_spill] sm:$0xff]  ;;  %v10876_v45 = vld [vmem:[#allocation23_spill] sm:$0xff] }
 0x2cb   : > { %10864 = vst [vmem:[#allocation42_spill] sm:$0xff] %v7376_v47  ;;  %10866 = vst [vmem:[#allocation174_spill] sm:$0xff] %v7381_v62  ;;  %v1710_v4 = vsel %vm1680_vm1, %v1701_v1, %v1709_v39  ;;  %v7396_v8 = vmul.f32 %v6398_v23, %v1589_v58  ;;  %v10871_v18 = vrot.slane %v7297_v12, 7  ;;  %v10872_v10 = vrot.slane %v7178_v57, 7  ;;  %v10875_v54 = vld [vmem:[#allocation113_spill] sm:$0xff]  ;;  %v7413_v17 = vpop.permute.xlu1 %2432  ;;  %v10879_v55 = vld [vmem:[#allocation211_spill] sm:$0xff] }
 0x2cc   : > { %10867 = vst [vmem:[#allocation254_spill] sm:$0xff] %v7385_v2  ;;  %10868 = vst [vmem:[#allocation255_spill] sm:$0xff] %v7389_v19  ;;  %v3394_v21 = vsel %vm1877_vm3, %v10875_v54, %v10874_v24  ;;  %v7411_v1 = vadd.f32 %v2690_v33, %v10876_v45  ;;  %v2020_v58 = vrot.slane %v7367_v25, 1  ;;  %v10880_v57 = vld [vmem:[#allocation124_spill] sm:$0xff]  ;;  %v10883_v45 = vld [vmem:[#allocation107_spill] sm:$0xff]  ;;  %v10890_v33 = vrot.slane %v7349_v44, 7 }
 0x2cd   : > { %10870 = vst [vmem:[#allocation129_spill] sm:$0xff] %v7392_v7  ;;  %v7404_v60 = vsel %vm1400_vm0, %v10872_v10, %v10871_v18  ;;  %10878 = vst [vmem:[#allocation257_spill] sm:$0xff] %v7413_v17  ;;  %v1899_v18 = vsel %vm1877_vm3, %v10880_v57, %v10879_v55  ;;  %v10881_v10 = vld [vmem:[#allocation55_spill] sm:$0xff]  ;;  %v10885_v54 = vld [vmem:[#allocation162_spill] sm:$0xff]  ;;  %3040 = vrot.lane.b32.xlu0 %v6619_v26, %s5194_s27 }
 0x2ce   : > { %10873 = vst [vmem:[#allocation256_spill] sm:$0xff] %v7404_v60  ;;  %10877 = vst [vmem:[#allocation23_spill] sm:$0xff] %v7411_v1  ;;  %v2469_v24 = vsel %vm1567_vm2, %v10881_v10, %v7413_v17  ;;  %v10882_v60 = vld [vmem:[#allocation17_spill] sm:$0xff]  ;;  %v7428_v1 = vadd.f32 %v1710_v4, %v10883_v45  ;;  %v3395_v43 = vsel %vm1877_vm3, %v7003_v38, %v10885_v54  ;;  %v10886_v25 = vld [vmem:[#allocation199_spill] sm:$0xff]  ;;  %1855 = vrot.lane.b32.xlu1 %v10865_v0, %s5195_s29  ;;  %v7441_v10 = vpop.permute.xlu0 %1843 }
 0x2cf   : > { %v3089_v57 = vsel %vm1567_vm2, %v10886_v25, %v7022_v48  ;;  %v10887_v7 = vld [vmem:[#allocation87_spill] sm:$0xff]  ;;  %10888 = vst [vmem:[#allocation107_spill] sm:$0xff] %v7441_v10  ;;  %v10889_v4 = vrot.slane %v7208_v42, 7  ;;  %v3215_v38 = vsel %vm1400_vm0, %v3206_v56, %v10890_v33  ;;  %v7452_v25 = vmul.f32 %v6382_v29, %v1899_v18  ;;  %v7457_v0 = vpop.permute.xlu1 %2624  ;;  %v10892_v42 = vld [vmem:[#allocation134_spill] sm:$0xff] }
 0x2d0   : > { %10884 = vst [vmem:[#allocation55_spill] sm:$0xff] %v7428_v1  ;;  %v2519_v55 = vmul.f32 %v10887_v7, %v2469_v24  ;;  %v3439_v1 = vmul.f32 %v6470_v13, %v3394_v21  ;;  %v10891_v24 = vld [vmem:[#allocation28_spill] sm:$0xff]  ;;  %v7470_v21 = vsel %vm1680_vm1, %v2012_v27, %v2020_v58  ;;  %v7473_v18 = vmul.f32 %v6470_v13, %v3395_v43  ;;  %v10902_v27 = vld [vmem:[#allocation227_spill] sm:$0xff] }
 0x2d1   : > { %v3207_v45 = vsel %vm1400_vm0, %v10889_v4, %v3206_v56  ;;  %v7463_v4 = vmul.f32 %v6988_v15, %v10892_v42  ;;  %v10894_v56 = vld [vmem:[#allocation135_spill] sm:$0xff]  ;;  %v10898_v42 = vld [vmem:[#allocation21_spill] sm:$0xff]  ;;  %v1590_v43 = vsel %vm1567_vm2, %v10902_v27, %v7175_v30  ;;  %2440 = vrot.lane.b32.xlu0 %v6988_v15, %s5194_s27  ;;  %v10954_v2 = vrot.slane %v7452_v25, 1 }
 0x2d2   : > { %v7455_v48 = vadd.f32 %v2519_v55, %v10891_v24  ;;  %v7467_v33 = vmul.f32 %v7006_v32, %v10894_v56  ;;  %10896 = vst [vmem:[#allocation135_spill] sm:$0xff] %v7470_v21  ;;  %v7476_v55 = vmul.f32 %v6935_v35, %v3089_v57  ;;  %v10897_v24 = vld [vmem:[#allocation46_spill] sm:$0xff]  ;;  %v7483_v54 = vadd.f32 %v3207_v45, %v10898_v42  ;;  %v10908_v30 = vld [vmem:[#allocation25_spill] sm:$0xff]  ;;  %v10915_v15 = vld [vmem:[#allocation179_spill] sm:$0xff] }
 0x2d3   : > { %10893 = vst [vmem:[#allocation28_spill] sm:$0xff] %v7463_v4  ;;  %v2661_v26 = vsel %vm1877_vm3, %v7457_v0, %v10897_v24  ;;  %v10900_v4 = vld [vmem:[#allocation22_spill] sm:$0xff]  ;;  %v10904_v24 = vrot.slane %v7396_v8, 1  ;;  %v3516_v42 = vrot.slane %v3439_v1, 7  ;;  %v7516_v1 = vpop.permute.xlu1 %1535 }
 0x2d4   : > { %10895 = vst [vmem:[#allocation134_spill] sm:$0xff] %v7467_v33  ;;  %10899 = vst [vmem:[#allocation46_spill] sm:$0xff] %v7483_v54  ;;  %v7486_v32 = vadd.f32 %v3215_v38, %v10900_v4  ;;  %v2694_v56 = vmul.f32 %v7091_v36, %v2661_v26  ;;  %v10903_v57 = vld [vmem:[#allocation178_spill] sm:$0xff]  ;;  %v7495_v33 = vpop.permute.xlu0 %2618  ;;  %v10905_v54 = vld [vmem:[#allocation35_spill] sm:$0xff]  ;;  %v7505_v4 = vadd.s32 8, %v10882_v60 }
 0x2d5   : > { %3366 = vrot.lane.b32.xlu1 %v10903_v57, %s5195_s29  ;;  %v1718_v45 = vsel %vm1680_vm1, %v1709_v39, %v10904_v24  ;;  %v2658_v38 = vsel %vm1877_vm3, %v7495_v33, %v10905_v54  ;;  %v10910_v26 = vld [vmem:[#allocation37_spill] sm:$0xff] }
 0x2d6   : > { %10901 = vst [vmem:[#allocation21_spill] sm:$0xff] %v7486_v32  ;;  %10906 = vst [vmem:[#allocation22_spill] sm:$0xff] %v7505_v4  ;;  %v10907_v32 = vld [vmem:[#allocation171_spill] sm:$0xff]  ;;  %v7513_v21 = vadd.f32 %v2694_v56, %v10908_v30  ;;  %v2682_v39 = vmul.f32 %v7091_v36, %v2658_v38  ;;  %v2466_v47 = vsel %vm1567_vm2, %v10910_v26, %v7146_v61  ;;  %v10911_v30 = vld [vmem:[#allocation110_spill] sm:$0xff] }
 0x2d7   : > { %v1900_v27 = vsel %vm1877_vm3, %v7115_v59, %v10907_v32  ;;  %v7527_v59 = vmul.f32 %v6398_v23, %v1590_v43  ;;  %v7530_v56 = vadd.f32 %v1718_v45, %v10911_v30  ;;  %v10913_v38 = vld [vmem:[#allocation189_spill] sm:$0xff]  ;;  %v7543_v26 = vmul.f32 %v6440_v52, %v10918_v46 }
 0x2d8   : > { %10909 = vst [vmem:[#allocation178_spill] sm:$0xff] %v7513_v21  ;;  %v7533_v21 = vadd.f32 %v2682_v39, %v10913_v38  ;;  %v2429_v54 = vpop.permute.xlu0 %2428  ;;  %v10916_v32 = vld [vmem:[#allocation213_spill] sm:$0xff]  ;;  %v10920_v43 = vrot.slane %v7297_v12, 7  ;;  %v7551_v39 = vmul.f32 %v6382_v29, %v1900_v27  ;;  %v10924_v52 = vrot.slane %v7452_v25, 1  ;;  %v7567_v27 = vpop.permute.xlu1 %1847 }
 0x2d9   : > { %10912 = vst [vmem:[#allocation35_spill] sm:$0xff] %v7530_v56  ;;  %1871 = vrot.lane.b32.xlu1 %v10915_v15, %s5195_s29  ;;  %v7539_v24 = vmul.f32 %v6428_v6, %v10916_v32  ;;  %10919 = vst [vmem:[#allocation110_spill] sm:$0xff] %v7543_v26  ;;  %v10922_v30 = vld [vmem:[#allocation205_spill] sm:$0xff]  ;;  %v10923_v56 = vld [vmem:[#allocation38_spill] sm:$0xff]  ;;  %v2507_v12 = vmul.f32 %v10887_v7, %v2466_v47  ;;  %v1725_v47 = vrot.slane %v7527_v59, 1 }
 0x2da   : > { %10914 = vst [vmem:[#allocation25_spill] sm:$0xff] %v7533_v21  ;;  %v7548_v45 = vsel %vm1400_vm0, %v10920_v43, %v3516_v42  ;;  %v1591_v38 = vsel %vm1567_vm2, %v7266_v5, %v10922_v30  ;;  %v2467_v6 = vsel %vm1567_vm2, %v10923_v56, %v2429_v54  ;;  %v7563_v46 = vsel %vm1680_vm1, %v2020_v58, %v10924_v52  ;;  %v10926_v43 = vld [vmem:[#allocation172_spill] sm:$0xff]  ;;  %v10933_v30 = vld [vmem:[#allocation214_spill] sm:$0xff] }
 0x2db   : > { %10917 = vst [vmem:[#allocation37_spill] sm:$0xff] %v7539_v24  ;;  %10921 = vst [vmem:[#allocation189_spill] sm:$0xff] %v7548_v45  ;;  %v2511_v32 = vmul.f32 %v10887_v7, %v2467_v6  ;;  %1557 = vrot.lane.b32.xlu0 %v10926_v43, %s5194_s27  ;;  %v10927_v24 = vrot.slane %v7473_v18, 7  ;;  %v10929_v5 = vld [vmem:[#allocation24_spill] sm:$0xff]  ;;  %v10930_v58 = vrot.slane %v7476_v55, 7  ;;  %v7584_v6 = vadd.s32 16, %v10882_v60 }
 0x2dc   : > { %10925 = vst [vmem:[#allocation179_spill] sm:$0xff] %v7563_v46  ;;  %v3396_v26 = vsel %vm1877_vm3, %v7226_v40, %v10933_v30  ;;  %v7591_v45 = vmul.f32 %v6398_v23, %v1591_v38  ;;  %v10936_v59 = vld [vmem:[#allocation202_spill] sm:$0xff]  ;;  %v2458_v23 = vsel %vm1567_vm2, %v7146_v61, %v7240_v22  ;;  %v10937_v30 = vld [vmem:[#allocation39_spill] sm:$0xff]  ;;  %v10941_v46 = vld [vmem:[#allocation225_spill] sm:$0xff] }
 0x2dd   : > { %v7575_v56 = vsel %vm1400_vm0, %v3516_v42, %v10927_v24  ;;  %v7580_v52 = vadd.f32 %v10930_v58, %v10929_v5  ;;  %10932 = vst [vmem:[#allocation38_spill] sm:$0xff] %v7584_v6  ;;  %v10934_v42 = vld [vmem:[#allocation182_spill] sm:$0xff]  ;;  %1545 = vrot.lane.b32.xlu1 %v10936_v59, %s5194_s27  ;;  %v10946_v21 = vld [vmem:[#allocation224_spill] sm:$0xff] }
 0x2de   : > { %10928 = vst [vmem:[#allocation213_spill] sm:$0xff] %v7575_v56  ;;  %v3088_v24 = vsel %vm1567_vm2, %v10934_v42, %v7381_v62  ;;  %v10935_v5 = vld [vmem:[#allocation130_spill] sm:$0xff]  ;;  %v10940_v62 = vld [vmem:[#allocation231_spill] sm:$0xff] }
 0x2df   : > { %10931 = vst [vmem:[#allocation219_spill] sm:$0xff] %v7580_v52  ;;  %v7598_v58 = vadd.f32 %v2511_v32, %v10935_v5  ;;  %v2445_v52 = vpop.permute.xlu0 %2444  ;;  %v10938_v5 = vld [vmem:[#allocation100_spill] sm:$0xff]  ;;  %v10939_v42 = vld [vmem:[#allocation34_spill] sm:$0xff]  ;;  %v3397_v61 = vsel %vm1877_vm3, %v7337_v37, %v10940_v62  ;;  %1869 = vrot.lane.b32.xlu0 %v10926_v43, %s5195_s29  ;;  %v10945_v62 = vld [vmem:[#allocation33_spill] sm:$0xff]  ;;  %v2508_v43 = vmul.f32 %v10946_v21, %v2458_v23 }
 0x2e0   : > { %v7609_v38 = vsel %vm1567_vm2, %v2429_v54, %v2445_v52  ;;  %v2483_v32 = vsel %vm1567_vm2, %v2445_v52, %v10937_v30  ;;  %v2539_v40 = vadd.f32 %v2507_v12, %v10938_v5  ;;  %v2642_v56 = vsel %vm1877_vm3, %v10939_v42, %v7191_v28  ;;  %v7624_v54 = vpop.permute.xlu1 %2434  ;;  %v10944_v5 = vld [vmem:[#allocation71_spill] sm:$0xff] }
 0x2e1   : > { %v2513_v4 = vmul.f32 %v10941_v46, %v2483_v32  ;;  %10942 = vst [vmem:[#allocation172_spill] sm:$0xff] %v7624_v54  ;;  %v10943_v30 = vrot.slane %v7396_v8, 1  ;;  %v3447_v52 = vmul.f32 %v6470_v13, %v3396_v26  ;;  %v3138_v42 = vmul.f32 %v6935_v35, %v3088_v24  ;;  %1857 = vrot.lane.b32.xlu1 %v10936_v59, %s5195_s29  ;;  %v10948_v24 = vld [vmem:[#allocation191_spill] sm:$0xff]  ;;  %v10951_v59 = vld [vmem:[#allocation29_spill] sm:$0xff] }
 0x2e2   : > { %v2470_v37 = vsel %vm1567_vm2, %v10944_v5, %v7624_v54  ;;  %v2482_v32 = vsel %vm1567_vm2, %v7240_v22, %v10945_v62  ;;  %v1733_v8 = vrot.slane %v7591_v45, 1  ;;  %v7647_v26 = vmul.f32 %v6470_v13, %v3397_v61  ;;  %v10949_v62 = vld [vmem:[#allocation36_spill] sm:$0xff]  ;;  %v10950_v45 = vld [vmem:[#allocation167_spill] sm:$0xff] }
 0x2e3   : > { %v1726_v12 = vsel %vm1680_vm1, %v10943_v30, %v1725_v47  ;;  %v2523_v30 = vmul.f32 %v10887_v7, %v2470_v37  ;;  %v2621_v35 = vpop.permute.xlu0 %2620  ;;  %v1901_v5 = vsel %vm1877_vm3, %v10948_v24, %v7441_v10  ;;  %v2545_v23 = vadd.f32 %v2513_v4, %v10950_v45  ;;  %v10952_v24 = vld [vmem:[#allocation186_spill] sm:$0xff] }
 0x2e4   : > { %10947 = vst [vmem:[#allocation24_spill] sm:$0xff] %v7647_v26  ;;  %v2635_v22 = vsel %vm1877_vm3, %v7303_v9, %v2621_v35  ;;  %v2659_v37 = vsel %vm1877_vm3, %v2621_v35, %v10949_v62  ;;  %v7665_v51 = vpop.permute.xlu1 %1551  ;;  %3042 = vrot.lane.b32.xlu0 %v10952_v24, %s5194_s27  ;;  %v10953_v10 = vrot.slane %v7551_v39, 1  ;;  %v3532_v4 = vrot.slane %v3447_v52, 7  ;;  %v10956_v45 = vld [vmem:[#allocation146_spill] sm:$0xff]  ;;  %v10964_v52 = vld [vmem:[#allocation212_spill] sm:$0xff] }
 0x2e5   : > { %v7661_v54 = vadd.f32 %v2523_v30, %v10951_v59  ;;  %v2686_v13 = vmul.f32 %v7091_v36, %v2659_v37  ;;  %v2689_v61 = vmul.f32 %v7119_v20, %v2635_v22  ;;  %v2509_v30 = vmul.f32 %v10941_v46, %v2482_v32  ;;  %v10958_v59 = vld [vmem:[#allocation195_spill] sm:$0xff]  ;;  %3060 = vrot.lane.b32.xlu1 %v10961_v50, %s5194_s27 }
 0x2e6   : > { %v7674_v35 = vsel %vm1680_vm1, %v10954_v2, %v10953_v10  ;;  %v3222_v62 = vrot.slane %v3138_v42, 7  ;;  %v2540_v37 = vadd.f32 %v2508_v43, %v10956_v45  ;;  %v7679_v22 = vmul.f32 %v6382_v29, %v1901_v5  ;;  %v10962_v2 = vld [vmem:[#allocation112_spill] sm:$0xff]  ;;  %v10966_v29 = vld [vmem:[#allocation185_spill] sm:$0xff] }
 0x2e7   : > { %10955 = vst [vmem:[#allocation130_spill] sm:$0xff] %v7674_v35  ;;  %v7682_v17 = vadd.f32 %v2686_v13, %v10958_v59  ;;  %v7684_v19 = vadd.f32 %v2689_v61, %v2545_v23  ;;  %v2431_v25 = vpop.permute.xlu0 %2430  ;;  %v7689_v10 = vadd.f32 %v1726_v12, %v10962_v2  ;;  %v2684_v32 = vmul.f32 %v10964_v52, %v2642_v56  ;;  %v10965_v42 = vld [vmem:[#allocation44_spill] sm:$0xff]  ;;  %v10967_v23 = vld [vmem:[#allocation41_spill] sm:$0xff]  ;;  %v10970_v2 = vld [vmem:[#allocation147_spill] sm:$0xff] }
 0x2e8   : > { %10957 = vst [vmem:[#allocation202_spill] sm:$0xff] %v7679_v22  ;;  %v2468_v43 = vsel %vm1567_vm2, %v10965_v42, %v2431_v25  ;;  %v7696_v5 = vadd.f32 %v10966_v29, %v2539_v40  ;;  %v1734_v13 = vsel %vm1680_vm1, %v1725_v47, %v1733_v8  ;;  %v2643_v61 = vsel %vm1877_vm3, %v10967_v23, %v7303_v9  ;;  %v1864_v59 = vpop.permute.xlu1 %1863 }
 0x2e9   : > { %10959 = vst [vmem:[#allocation39_spill] sm:$0xff] %v7682_v17  ;;  %10960 = vst [vmem:[#allocation100_spill] sm:$0xff] %v7684_v19  ;;  %v2515_v12 = vmul.f32 %v10887_v7, %v2468_v43  ;;  %3350 = vrot.lane.b32.xlu0 %v10952_v24, %s5195_s29  ;;  %v10968_v56 = vrot.slane %v7473_v18, 7  ;;  %v2541_v47 = vadd.f32 %v2509_v30, %v10970_v2  ;;  %v10971_v42 = vrot.slane %v7349_v44, 7  ;;  %v10973_v24 = vld [vmem:[#allocation30_spill] sm:$0xff]  ;;  %v10974_v44 = vld [vmem:[#allocation204_spill] sm:$0xff] }
 0x2ea   : > { %10963 = vst [vmem:[#allocation34_spill] sm:$0xff] %v7689_v10  ;;  %v10972_v9 = vrot.slane %v7476_v55, 7  ;;  %v7719_v43 = vadd.f32 %v2684_v32, %v2540_v37  ;;  %v10334_v45 = vrot.slane %v7679_v22, 1  ;;  %v2634_v18 = vsel %vm1877_vm3, %v7191_v28, %v7495_v33  ;;  %1561 = vrot.lane.b32.xlu1 %v10974_v44, %s5194_s27  ;;  %v10975_v2 = vld [vmem:[#allocation123_spill] sm:$0xff] }
 0x2eb   : > { %v7710_v40 = vsel %vm1400_vm0, %v10968_v56, %v3532_v4  ;;  %v3223_v29 = vsel %vm1400_vm0, %v10971_v42, %v3222_v62  ;;  %v7727_v56 = vadd.f32 %v2515_v12, %v10973_v24  ;;  %v2607_v30 = vpop.permute.xlu0 %2606  ;;  %v7732_v55 = vadd.f32 %v1734_v13, %v10975_v2  ;;  %v10981_v12 = vld [vmem:[#allocation116_spill] sm:$0xff]  ;;  %v10983_v24 = vld [vmem:[#allocation122_spill] sm:$0xff] }
 0x2ec   : > { %10969 = vst [vmem:[#allocation71_spill] sm:$0xff] %v7710_v40  ;;  %v3231_v23 = vsel %vm1400_vm0, %v3222_v62, %v10972_v9  ;;  %v10977_v62 = vld [vmem:[#allocation125_spill] sm:$0xff]  ;;  %v2688_v32 = vmul.f32 %v10964_v52, %v2643_v61  ;;  %v2636_v42 = vsel %vm1877_vm3, %v2607_v30, %v7356_v63  ;;  %v10979_v28 = vrot.slane %v7647_v26, 7  ;;  %v7756_v2 = vpop.permute.xlu1 %2626  ;;  %v10986_v63 = vld [vmem:[#allocation210_spill] sm:$0xff] }
 0x2ed   : > { %10976 = vst [vmem:[#allocation33_spill] sm:$0xff] %v7732_v55  ;;  %v7735_v37 = vadd.f32 %v1733_v8, %v10977_v62  ;;  %v7747_v9 = vadd.f32 %v3223_v29, %v10981_v12  ;;  %v7750_v13 = vadd.f32 %v3231_v23, %v10983_v24  ;;  %v10985_v8 = vld [vmem:[#allocation52_spill] sm:$0xff]  ;;  %3058 = vrot.lane.b32.xlu0 %v10903_v57, %s5194_s27  ;;  %v10988_v12 = vrot.slane %v7551_v39, 1  ;;  %v11008_v55 = vld [vmem:[#allocation243_spill] sm:$0xff]  ;;  %v11024_v40 = vld [vmem:[#allocation97_spill] sm:$0xff] }
 0x2ee   : > { %v7744_v33 = vsel %vm1400_vm0, %v3532_v4, %v10979_v28  ;;  %v1577_v61 = vsel %vm1567_vm2, %v10985_v8, %v7516_v1  ;;  %v7762_v4 = vadd.f32 %v10986_v63, %v7455_v48  ;;  %v2685_v29 = vmul.f32 %v7119_v20, %v2634_v18  ;;  %v3905_v28 = vld [vmem:[#allocation11 + $0x1f8] sm:$0xff]  ;;  %v10990_v48 = vld [vmem:[#allocation54_spill] sm:$0xff]  ;;  %1873 = vrot.lane.b32.xlu1 %v10974_v44, %s5195_s29  ;;  %v10991_v63 = vld [vmem:[#allocation43_spill] sm:$0xff] }
 0x2ef   : > { %10978 = vst [vmem:[#allocation36_spill] sm:$0xff] %v7735_v37  ;;  %10980 = vst [vmem:[#allocation167_spill] sm:$0xff] %v7744_v33  ;;  %v2512_v23 = vmul.f32 %v10946_v21, %v7609_v38  ;;  %v2662_v62 = vsel %vm1877_vm3, %v7756_v2, %v10789_v41  ;;  %v7776_v57 = vsel %vm1680_vm1, %v10988_v12, %v10334_v45  ;;  %v2447_v24 = vpop.permute.xlu0 %2446  ;;  %4346 = vmatprep.subr.mxu0 %v3905_v28  ;;  %v4033_v8 = vld [vmem:[#allocation11 + $0x5f8] sm:$0xff]  ;;  %v10993_v28 = vld [vmem:[#allocation26_spill] sm:$0xff] }
 0x2f0   : > { %10982 = vst [vmem:[#allocation29_spill] sm:$0xff] %v7747_v9  ;;  %10984 = vst [vmem:[#allocation186_spill] sm:$0xff] %v7750_v13  ;;  %v1887_v18 = vsel %vm1877_vm3, %v10990_v48, %v7567_v27  ;;  %v2698_v38 = vmul.f32 %v7091_v36, %v2662_v62  ;;  %v7787_v39 = vmul.f32 %v7134_v49, %v1577_v61  ;;  %v10992_v45 = vld [vmem:[#allocation40_spill] sm:$0xff]  ;;  %4459 = vmatprep.subr.mxu1 %v4033_v8 }
 0x2f1   : > { %10987 = vst [vmem:[#allocation146_spill] sm:$0xff] %v7762_v4  ;;  %10989 = vst [vmem:[#allocation195_spill] sm:$0xff] %v7776_v57  ;;  %v2644_v12 = vsel %vm1877_vm3, %v10991_v63, %v2607_v30  ;;  %v2460_v48 = vsel %vm1567_vm2, %v2431_v25, %v2447_v24  ;;  %v2484_v62 = vsel %vm1567_vm2, %v2447_v24, %v10992_v45  ;;  %v7806_v63 = vpop.permute.xlu1 %3036  ;;  %1559 = vrot.lane.b32.xlu0 %v10915_v15, %s5194_s27  ;;  %v10995_v45 = vld [vmem:[#allocation240_spill] sm:$0xff] }
 0x2f2   : > { %v1569_v44 = vsel %vm1567_vm2, %v7516_v1, %v7665_v51  ;;  %v7802_v61 = vadd.f32 %v2698_v38, %v10993_v28  ;;  %v2516_v41 = vmul.f32 %v10946_v21, %v2460_v48  ;;  %v2517_v30 = vmul.f32 %v10941_v46, %v2484_v62  ;;  %v10996_v8 = vld [vmem:[#allocation164_spill] sm:$0xff]  ;;  %v10997_v1 = vld [vmem:[#allocation59_spill] sm:$0xff]  ;;  %v10998_v28 = vld [vmem:[#allocation173_spill] sm:$0xff] }
 0x2f3   : > { %v7810_v25 = vadd.f32 %v2685_v29, %v2541_v47  ;;  %v7813_v24 = vmul.f32 %v10995_v45, %v1887_v18  ;;  %v2544_v33 = vadd.f32 %v2512_v23, %v10996_v8  ;;  %v1593_v38 = vsel %vm1567_vm2, %v7665_v51, %v10997_v1  ;;  %v11000_v47 = vld [vmem:[#allocation228_spill] sm:$0xff]  ;;  %v7826_v29 = vpop.permute.xlu0 %1533  ;;  %v11001_v18 = vld [vmem:[#allocation241_spill] sm:$0xff] }
 0x2f4   : > { %10994 = vst [vmem:[#allocation203_spill] sm:$0xff] %v7802_v61  ;;  %v2692_v48 = vmul.f32 %v10964_v52, %v2644_v12  ;;  %v2693_v62 = vmul.f32 %v7119_v20, %v2636_v42  ;;  %v2548_v13 = vadd.f32 %v2516_v41, %v10998_v28  ;;  %v10999_v61 = vld [vmem:[#allocation175_spill] sm:$0xff]  ;;  %3046 = vrot.lane.b32.xlu1 %v11000_v47, %s5194_s27  ;;  %v1687_v23 = vrot.slane %v7787_v39, 1  ;;  %v11003_v12 = vld [vmem:[#allocation48_spill] sm:$0xff]  ;;  %v11006_v28 = vld [vmem:[#allocation206_spill] sm:$0xff] }
 0x2f5   : > { %v2549_v15 = vadd.f32 %v2517_v30, %v10999_v61  ;;  %v7830_v8 = vmul.f32 %v11001_v18, %v1569_v44  ;;  %v1879_v51 = vsel %vm1877_vm3, %v7567_v27, %v1864_v59  ;;  %v11002_v42 = vld [vmem:[#allocation51_spill] sm:$0xff]  ;;  %v1903_v61 = vsel %vm1877_vm3, %v1864_v59, %v11003_v12  ;;  %v7847_v44 = vpop.permute.xlu1 %3344  ;;  %3044 = vrot.lane.b32.xlu0 %v11006_v28, %s5194_s27  ;;  %v11007_v27 = vld [vmem:[#allocation197_spill] sm:$0xff]  ;;  %v7859_v59 = vld [vmem:[#allocation9 + $0x28] ss:$0 sm:$0xff] }
 0x2f6   : > { %v1576_v41 = vsel %vm1567_vm2, %v11002_v42, %v7826_v29  ;;  %v7842_v30 = vadd.f32 %v2692_v48, %v2548_v13  ;;  %v7853_v26 = vadd.f32 %v11007_v27, %v7598_v58  ;;  %v7857_v37 = vmul.f32 %v11008_v55, %v1593_v38  ;;  %v11010_v13 = vld [vmem:[#allocation66_spill] sm:$0xff]  ;;  %v11017_v27 = vld [vmem:[#allocation68_spill] sm:$0xff] }
 0x2f7   : > { %v7844_v1 = vadd.f32 %v2693_v62, %v2549_v15  ;;  %v1617_v39 = vmul.f32 %v7134_v49, %v1576_v41  ;;  %v3075_v48 = vsel %vm1567_vm2, %v11010_v13, %v7806_v63  ;;  %v11011_v62 = vand.u32 15, %v10882_v60  ;;  %v11015_v41 = vld [vmem:[#allocation239_spill] sm:$0xff]  ;;  %v11018_v13 = vld [vmem:[#allocation229_spill] sm:$0xff]  ;;  %v7883_v9 = vpop.permute.xlu0 %1845  ;;  %v11019_v57 = vld [vmem:[#allocation244_spill] sm:$0xff] }
 0x2f8   : > { %11004 = vst [vmem:[#allocation112_spill] sm:$0xff] %v7842_v30  ;;  %11009 = vst [vmem:[#allocation185_spill] sm:$0xff] %v7857_v37  ;;  %v7871_v58 = vadd.f32 %v2688_v32, %v2544_v33  ;;  %v7875_v12 = vadd.f32 %v11015_v41, %v7661_v54  ;;  %v3383_v42 = vsel %vm1877_vm3, %v11017_v27, %v7847_v44  ;;  %1859 = vrot.lane.b32.xlu1 %v11018_v13, %s5195_s29  ;;  %v11021_v33 = vld [vmem:[#allocation245_spill] sm:$0xff]  ;;  %v11028_v60 = vld [vmem:[#allocation196_spill] sm:$0xff] }
 0x2f9   : > { %11005 = vst [vmem:[#allocation44_spill] sm:$0xff] %v7844_v1  ;;  %vm7867_vm4 = vcmp.ge.s32.totalorder %v11011_v62, 1  ;;  %v1682_v38 = vrot.slane %v1617_v39, 1  ;;  %v7887_v32 = vmul.f32 %v11019_v57, %v1903_v61  ;;  %v7890_v22 = vmul.f32 %v11021_v33, %v1879_v51  ;;  %v11023_v54 = vld [vmem:[#allocation53_spill] sm:$0xff]  ;;  %v7904_v61 = vpop.permute.xlu1 %1537  ;;  %3352 = vrot.lane.b32.xlu0 %v11006_v28, %s5195_s29  ;;  %v3888_v15 = vld [vmem:[#allocation11 + $0x170] sm:$0xff] }
 0x2fa   : > { %11014 = vst [vmem:[#allocation41_spill] sm:$0xff] %v7871_v58  ;;  %11016 = vst [vmem:[#allocation147_spill] sm:$0xff] %v7875_v12  ;;  %v1886_v39 = vsel %vm1877_vm3, %v11023_v54, %v7883_v9  ;;  %v7897_v41 = vmul.f32 %v7859_v59, %v3075_v48  ;;  %v7911_v54 = vmul.f32 %v7309_v11, %v3383_v42  ;;  %v11025_v48 = vld [vmem:[#allocation77_spill] sm:$0xff]  ;;  %v11029_v10 = vrot.slane %v11028_v60, 1  ;;  %v11035_v42 = vld [vmem:[#allocation230_spill] sm:$0xff] }
 0x2fb   : > { %11020 = vst [vmem:[#allocation30_spill] sm:$0xff] %v7887_v32  ;;  %11022 = vst [vmem:[#allocation204_spill] sm:$0xff] %v7890_v22  ;;  %v1688_v27 = vsel %vm1680_vm1, %v1682_v38, %v1687_v23  ;;  %v1778_v12 = vadd.f32 %v1682_v38, %v7254_v34  ;;  %v7902_v62 = vmul.f32 %v10995_v45, %v1886_v39  ;;  %v11026_v38 = vld [vmem:[#allocation198_spill] sm:$0xff]  ;;  %v11031_v60 = vld [vmem:[#allocation57_spill] sm:$0xff] }
 0x2fc   : > { %v1782_v4 = vadd.f32 %v1688_v27, %v11024_v40  ;;  %v1578_v34 = vsel %vm1567_vm2, %v11025_v48, %v7904_v61  ;;  %v7919_v39 = vadd.f32 %v11026_v38, %v7727_v56  ;;  %3356 = vrot.lane.b32.xlu1 %v7285_v14, %s5195_s29  ;;  %v2609_v40 = vpop.permute.xlu0 %2608  ;;  %v11030_v27 = vld [vmem:[#allocation208_spill] sm:$0xff]  ;;  %v11037_v1 = vld [vmem:[#allocation45_spill] sm:$0xff] }
 0x2fd   : > { %v2087_v35 = vadd.f32 %v11029_v10, %v1778_v12  ;;  %v1992_v28 = vrot.slane %v7902_v62, 1  ;;  %v7925_v51 = vmul.f32 %v7134_v49, %v1578_v34  ;;  %v2637_v56 = vsel %vm1877_vm3, %v2609_v40, %v7457_v0  ;;  %3368 = vrot.lane.b32.xlu0 %v10961_v50, %s5195_s29 }
 0x2fe   : > { %11027 = vst [vmem:[#allocation123_spill] sm:$0xff] %v7919_v39  ;;  %v7931_v48 = vadd.f32 %v11030_v27, %v1782_v4  ;;  %v2645_v10 = vsel %vm1877_vm3, %v11031_v60, %v2609_v40  ;;  %v7942_v39 = vpop.permute.xlu1 %2436  ;;  %v11033_v27 = vrot.slane %v7813_v24, 1  ;;  %v11034_v60 = vld [vmem:[#allocation81_spill] sm:$0xff]  ;;  %v7962_v50 = vmul.f32 %v7119_v20, %v2637_v56 }
 0x2ff   : > { %v2185_v34 = vrot.slane %v2087_v35, 7  ;;  %v10338_v38 = vrot.slane %v7925_v51, 1  ;;  %11032 = vst [vmem:[#allocation125_spill] sm:$0xff] %v7942_v39  ;;  %v2471_v35 = vsel %vm1567_vm2, %v11034_v60, %v7942_v39  ;;  %v7959_v12 = vmul.f32 %v10964_v52, %v2645_v10  ;;  %v11036_v4 = vld [vmem:[#allocation101_spill] sm:$0xff]  ;;  %v7974_v10 = vld [vmem:[#allocation9 + $0x30] ss:$0 sm:$0xff] }
 0x300   : > { %v1999_v40 = vsel %vm1680_vm1, %v1992_v28, %v11033_v27  ;;  %v2527_v0 = vmul.f32 %v10887_v7, %v2471_v35  ;;  %3062 = vrot.lane.b32.xlu1 %v11035_v42, %s5194_s27  ;;  %v1550_v27 = vpop.permute.xlu0 %1549  ;;  %v11038_v56 = vrot.slane %v7931_v48, 7 }
 0x301   : > { %v1696_v62 = vsel %vm1680_vm1, %v1687_v23, %v10338_v38  ;;  %v1568_v60 = vsel %vm1567_vm2, %v7826_v29, %v1550_v27  ;;  %v1592_v23 = vsel %vm1567_vm2, %v1550_v27, %v11037_v1  ;;  %v11039_v38 = vld [vmem:[#allocation131_spill] sm:$0xff]  ;;  %1547 = vrot.lane.b32.xlu0 %v11018_v13, %s5194_s27 }
 0x302   : > { %v1786_v30 = vadd.f32 %v1696_v62, %v11036_v4  ;;  %v2187_v35 = vsel %vm1400_vm0, %v2185_v34, %v11038_v56  ;;  %v2559_v6 = vadd.f32 %v2527_v0, %v11039_v38  ;;  %v1618_v58 = vmul.f32 %v11001_v18, %v1568_v60  ;;  %v7982_v4 = vld [vmem:[#allocation9 + $0x38] ss:$0 sm:$0xff]  ;;  %v3053_v17 = vpop.permute.xlu1 %3052  ;;  %v11041_v38 = vld [vmem:[#allocation58_spill] sm:$0xff] }
 0x303   : > { %v1619_v62 = vmul.f32 %v11008_v55, %v1592_v23  ;;  %v2283_v29 = vsel %vm7867_vm4, %v2187_v35, 0.0  ;;  %v3067_v34 = vsel %vm1567_vm2, %v7806_v63, %v3053_v17  ;;  %v3091_v0 = vsel %vm1567_vm2, %v3053_v17, %v11041_v38  ;;  %v11048_v63 = vld [vmem:[#allocation144_spill] sm:$0xff] }
 0x304   : > { %v7989_v1 = vadd.f32 %v7216_v53, %v1786_v30  ;;  %v7998_v27 = vadd.f32 %v7696_v5, %v2283_v29  ;;  %v8001_v60 = vadd.f32 %v7234_v16, %v2559_v6  ;;  %v1683_v13 = vrot.slane %v1618_v58, 1  ;;  %3370 = vrot.lane.b32.xlu1 %v11035_v42, %s5195_s29  ;;  %v1862_v53 = vpop.permute.xlu0 %1861  ;;  %v11043_v16 = vld [vmem:[#allocation47_spill] sm:$0xff]  ;;  %v11046_v29 = vld [vmem:[#allocation253_spill] sm:$0xff] }
 0x305   : > { %v1684_v23 = vrot.slane %v1619_v62, 1  ;;  %v8004_v56 = vmul.f32 %v7974_v10, %v3067_v34  ;;  %v8010_v30 = vmul.f32 %v7982_v4, %v3091_v0  ;;  %v1878_v17 = vsel %vm1877_vm3, %v7883_v9, %v1862_v53  ;;  %3354 = vrot.lane.b32.xlu0 %v11000_v47, %s5195_s29  ;;  %v11047_v9 = vld [vmem:[#allocation141_spill] sm:$0xff] }
 0x306   : > { %11040 = vst [vmem:[#allocation116_spill] sm:$0xff] %v7989_v1  ;;  %11042 = vst [vmem:[#allocation122_spill] sm:$0xff] %v8001_v60  ;;  %v1902_v6 = vsel %vm1877_vm3, %v1862_v53, %v11043_v16  ;;  %v11044_v5 = vrot.slane %v7830_v8, 1  ;;  %v11045_v42 = vrot.slane %v7857_v37, 1  ;;  %v1779_v62 = vadd.f32 %v1683_v13, %v7322_v3  ;;  %v3361_v38 = vpop.permute.xlu1 %3360 }
 0x307   : > { %v1780_v34 = vadd.f32 %v1684_v23, %v11046_v29  ;;  %v1926_v19 = vmul.f32 %v11019_v57, %v1902_v6  ;;  %v3375_v3 = vsel %vm1877_vm3, %v7847_v44, %v3361_v38  ;;  %v11053_v6 = vld [vmem:[#allocation257_spill] sm:$0xff] }
 0x308   : > { %v1690_v58 = vsel %vm1680_vm1, %v1683_v13, %v11044_v5  ;;  %v1692_v35 = vsel %vm1680_vm1, %v1684_v23, %v11045_v42  ;;  %v2088_v60 = vadd.f32 %v1992_v28, %v1779_v62  ;;  %v1929_v42 = vmul.f32 %v11021_v33, %v1878_v17  ;;  %v11049_v13 = vld [vmem:[#allocation233_spill] sm:$0xff]  ;;  %v2449_v47 = vpop.permute.xlu0 %2448 }
 0x309   : > { %v1783_v0 = vadd.f32 %v1690_v58, %v11047_v9  ;;  %v1784_v53 = vadd.f32 %v1692_v35, %v11048_v63  ;;  %1875 = vrot.lane.b32.xlu1 %v11049_v13, %s5195_s29  ;;  %v11051_v63 = vld [vmem:[#allocation60_spill] sm:$0xff]  ;;  %v11052_v35 = vld [vmem:[#allocation255_spill] sm:$0xff]  ;;  %v2461_v17 = vsel %vm1567_vm2, %v11053_v6, %v2449_v47  ;;  %v1990_v29 = vrot.slane %v1926_v19, 1  ;;  %v11054_v9 = vld [vmem:[#allocation254_spill] sm:$0xff]  ;;  %3048 = vrot.lane.b32.xlu0 %v7285_v14, %s5194_s27 }
 0x30a   : > { %v3399_v58 = vsel %vm1877_vm3, %v3361_v38, %v11051_v63  ;;  %v8045_v28 = vmul.f32 %v11052_v35, %v3375_v3  ;;  %v2188_v62 = vrot.slane %v2088_v60, 7  ;;  %v1993_v44 = vrot.slane %v1929_v42, 1  ;;  %v8053_v16 = vpop.permute.xlu1 %3038  ;;  %v11058_v6 = vld [vmem:[#allocation91_spill] sm:$0xff] }
 0x30b   : > { %v8039_v23 = vadd.f32 %v1999_v40, %v1783_v0  ;;  %v8051_v5 = vmul.f32 %v11054_v9, %v3399_v58  ;;  %v11055_v0 = vld [vmem:[#allocation49_spill] sm:$0xff]  ;;  %v2520_v60 = vmul.f32 %v10946_v21, %v2461_v17  ;;  %v11056_v19 = vrot.slane %v7887_v32, 1  ;;  %v11059_v40 = vld [vmem:[#allocation250_spill] sm:$0xff] }
 0x30c   : > { %v2485_v3 = vsel %vm1567_vm2, %v2449_v47, %v11055_v0  ;;  %v11057_v63 = vrot.slane %v7890_v22, 1  ;;  %v2086_v14 = vadd.f32 %v1990_v29, %v11058_v6  ;;  %v2089_v36 = vadd.f32 %v1993_v44, %v1780_v34  ;;  %v8072_v38 = vpop.permute.xlu0 %3034  ;;  %v11061_v0 = vld [vmem:[#allocation93_spill] sm:$0xff] }
 0x30d   : > { %11050 = vst [vmem:[#allocation52_spill] sm:$0xff] %v8039_v23  ;;  %v1995_v42 = vsel %vm1680_vm1, %v1990_v29, %v11056_v19  ;;  %3064 = vrot.lane.b32.xlu1 %v11059_v40, %s5194_s27  ;;  %v11060_v47 = vrot.slane %v8039_v23, 7  ;;  %v2521_v34 = vmul.f32 %v10941_v46, %v2485_v3  ;;  %1563 = vrot.lane.b32.xlu0 %v11049_v13, %s5194_s27  ;;  %v11079_v23 = vld [vmem:[#allocation105_spill] sm:$0xff] }
 0x30e   : > { %v2001_v58 = vsel %vm1680_vm1, %v1993_v44, %v11057_v63  ;;  %v8080_v32 = vadd.f32 %v1995_v42, %v11061_v0  ;;  %v2182_v22 = vrot.slane %v2086_v14, 7  ;;  %v2191_v29 = vrot.slane %v2089_v36, 7  ;;  %v11064_v44 = vld [vmem:[#allocation176_spill] sm:$0xff]  ;;  %v8087_v39 = vpop.permute.xlu1 %1539  ;;  %v11067_v36 = vld [vmem:[#allocation67_spill] sm:$0xff] }
 0x30f   : > { %v8077_v17 = vsel %vm1400_vm0, %v2188_v62, %v11060_v47  ;;  %v8082_v19 = vadd.f32 %v2001_v58, %v1784_v53  ;;  %v2552_v6 = vadd.f32 %v2520_v60, %v11064_v44  ;;  %11065 = vst [vmem:[#allocation43_spill] sm:$0xff] %v8087_v39  ;;  %v11066_v53 = vld [vmem:[#allocation106_spill] sm:$0xff]  ;;  %v3074_v3 = vsel %vm1567_vm2, %v11067_v36, %v8072_v38  ;;  %v11068_v60 = vld [vmem:[#allocation180_spill] sm:$0xff] }
 0x310   : > { %11062 = vst [vmem:[#allocation210_spill] sm:$0xff] %v8080_v32  ;;  %v10345_v62 = vrot.slane %v8080_v32, 7  ;;  %v3076_v58 = vsel %vm1567_vm2, %v11066_v53, %v8053_v16  ;;  %v2553_v14 = vadd.f32 %v2521_v34, %v11068_v60  ;;  %v3115_v0 = vmul.f32 %v7859_v59, %v3074_v3  ;;  %v8111_v44 = vpop.permute.xlu0 %3342  ;;  %v11071_v36 = vld [vmem:[#allocation118_spill] sm:$0xff]  ;;  %v11072_v34 = vld [vmem:[#allocation69_spill] sm:$0xff]  ;;  %v11078_v63 = vld [vmem:[#allocation132_spill] sm:$0xff] }
 0x311   : > { %11063 = vst [vmem:[#allocation54_spill] sm:$0xff] %v8082_v19  ;;  %v10346_v42 = vrot.slane %v8082_v19, 7  ;;  %v8103_v47 = vadd.f32 %v7959_v12, %v2552_v6  ;;  %v8106_v13 = vmul.f32 %v7859_v59, %v3076_v58  ;;  %3372 = vrot.lane.b32.xlu1 %v11059_v40, %s5195_s29  ;;  %v1579_v12 = vsel %vm1567_vm2, %v11071_v36, %v8087_v39  ;;  %v4938_v36 = vld [vmem:[#allocation2 + $0x128] sm:$0xff]  ;;  %v11080_v32 = vld [vmem:[#allocation103_spill] sm:$0xff] }
 0x312   : > { %v2184_v53 = vsel %vm1400_vm0, %v2182_v22, %v10345_v62  ;;  %v3382_v6 = vsel %vm1877_vm3, %v11072_v34, %v8111_v44  ;;  %v8128_v40 = vadd.f32 %v7962_v50, %v2553_v14  ;;  %v3179_v22 = vrot.slane %v3115_v0, 7  ;;  %v8134_v60 = vpop.permute.xlu1 %3346  ;;  %2408 = vrot.lane.b32.xlu0 %v4938_v36, %s5194_s27  ;;  %v11075_v62 = vld [vmem:[#allocation76_spill] sm:$0xff] }
 0x313   : > { %11069 = vst [vmem:[#allocation40_spill] sm:$0xff] %v8103_v47  ;;  %11070 = vst [vmem:[#allocation26_spill] sm:$0xff] %v8106_v13  ;;  %v2193_v59 = vsel %vm1400_vm0, %v2191_v29, %v10346_v42  ;;  %v10351_v58 = vrot.slane %v8106_v13, 7  ;;  %v8132_v3 = vmul.f32 %v7134_v49, %v1579_v12  ;;  %v8138_v34 = vmul.f32 %v7309_v11, %v3382_v6 }
 0x314   : > { %11073 = vst [vmem:[#allocation240_spill] sm:$0xff] %v8128_v40  ;;  %v3384_v50 = vsel %vm1877_vm3, %v11075_v62, %v8134_v60  ;;  %v2282_v29 = vsel %vm7867_vm4, %v2184_v53, 0.0  ;;  %v2285_v14 = vsel %vm7867_vm4, %v2193_v59, 0.0  ;;  %v11076_v0 = vrot.slane %v7897_v41, 7  ;;  %v4939_v40 = vld [vmem:[#allocation2 + $0x40] sm:$0xff]  ;;  %v2611_v53 = vpop.permute.xlu0 %2610 }
 0x315   : > { %11074 = vst [vmem:[#allocation164_spill] sm:$0xff] %v8132_v3  ;;  %v3275_v47 = vadd.f32 %v3179_v22, %v11078_v63  ;;  %v10352_v62 = vrot.slane %v8132_v3, 1  ;;  %2456 = vrot.lane.b32.xlu1 %v4939_v40, %s5194_s27  ;;  %v3488_v19 = vrot.slane %v8138_v34, 7  ;;  %v11082_v41 = vld [vmem:[#allocation221_spill] sm:$0xff]  ;;  %v11084_v63 = vrot.slane %v7925_v51, 1 }
 0x316   : > { %v3193_v12 = vsel %vm1400_vm0, %v11076_v0, %v10351_v58  ;;  %v11077_v6 = vmov %v11076_v0  ;;  %v8163_v0 = vmul.f32 %v7309_v11, %v3384_v50  ;;  %v11083_v58 = vrot.slane %v11082_v41, 7  ;;  %2584 = vrot.lane.b32.xlu0 %v4938_v36, %s5195_s29  ;;  %v11087_v34 = vld [vmem:[#allocation249_spill] sm:$0xff]  ;;  %v11091_v36 = vld [vmem:[#allocation128_spill] sm:$0xff] }
 0x317   : > { %v3185_v42 = vsel %vm1400_vm0, %v3179_v22, %v11077_v6  ;;  %v3283_v59 = vadd.f32 %v3193_v12, %v11079_v23  ;;  %v1704_v22 = vsel %vm1680_vm1, %v11084_v63, %v10352_v62  ;;  %v2638_v23 = vsel %vm1877_vm3, %v2611_v53, %v7756_v2  ;;  %v11085_v12 = vld [vmem:[#allocation73_spill] sm:$0xff] }
 0x318   : > { %v3279_v13 = vadd.f32 %v3185_v42, %v11080_v32  ;;  %11081 = vst [vmem:[#allocation59_spill] sm:$0xff] %v8163_v0  ;;  %v3583_v6 = vadd.f32 %v11083_v58, %v3275_v47  ;;  %v2646_v32 = vsel %vm1877_vm3, %v11085_v12, %v2611_v53  ;;  %v8178_v42 = vpop.permute.xlu1 %1851  ;;  %v11089_v58 = vld [vmem:[#allocation109_spill] sm:$0xff]  ;;  %v11090_v51 = vrot.slane %v7911_v54, 7 }
 0x319   : > { %11086 = vst [vmem:[#allocation173_spill] sm:$0xff] %v8178_v42  ;;  %v8182_v47 = vadd.f32 %v11087_v34, %v3283_v59  ;;  %v1790_v50 = vadd.f32 %v1704_v22, %v11089_v58  ;;  %v10353_v63 = vrot.slane %v8163_v0, 7  ;;  %v8190_v62 = vmul.f32 %v10964_v52, %v2646_v32  ;;  %v4940_v12 = vld [vmem:[#allocation2] sm:$0xff]  ;;  %v3051_v22 = vpop.permute.xlu0 %3050  ;;  %v11092_v34 = vld [vmem:[#allocation42_spill] sm:$0xff] }
 0x31a   : > { %v3495_v41 = vsel %vm1400_vm0, %v3488_v19, %v11090_v51  ;;  %v3681_v2 = vrot.slane %v3583_v6, 1  ;;  %v8193_v53 = vmul.f32 %v7119_v20, %v2638_v23  ;;  %v1889_v59 = vsel %vm1877_vm3, %v11091_v36, %v8178_v42  ;;  %2600 = vrot.lane.b32.xlu1 %v4940_v12, %s5195_s29  ;;  %v11095_v36 = vld [vmem:[#allocation61_spill] sm:$0xff]  ;;  %2632 = vrot.lane.b32.xlu0 %v4939_v40, %s5195_s29  ;;  %v4941_v20 = vld [vmem:[#allocation2 + $0x98] sm:$0xff] }
 0x31b   : > { %11088 = vst [vmem:[#allocation175_spill] sm:$0xff] %v8182_v47  ;;  %v8201_v58 = vadd.f32 %v11092_v34, %v1790_v50  ;;  %v11094_v6 = vmov %v11090_v51  ;;  %v8211_v23 = vmul.f32 %v10995_v45, %v1889_v59  ;;  %v3066_v51 = vsel %vm1567_vm2, %v8072_v38, %v3051_v22  ;;  %v11096_v54 = vld [vmem:[#allocation237_spill] sm:$0xff]  ;;  %v11099_v42 = vld [vmem:[#allocation63_spill] sm:$0xff] }
 0x31c   : > { %v8208_v32 = vsel %vm1400_vm0, %v11094_v6, %v10353_v63  ;;  %v3090_v12 = vsel %vm1567_vm2, %v3051_v22, %v11095_v36  ;;  %v3116_v50 = vmul.f32 %v7974_v10, %v3066_v51  ;;  %v8220_v34 = vpop.permute.xlu1 %2438  ;;  %v8224_v6 = vadd.f32 %v11096_v54, %v3279_v13  ;;  %v11097_v63 = vld [vmem:[#allocation25_spill] sm:$0xff]  ;;  %v11098_v22 = vld [vmem:[#allocation138_spill] sm:$0xff]  ;;  %v11104_v13 = vld [vmem:[#allocation136_spill] sm:$0xff] }
 0x31d   : > { %11093 = vst [vmem:[#allocation228_spill] sm:$0xff] %v8201_v58  ;;  %v8227_v59 = vadd.f32 %v11097_v63, %v2282_v29  ;;  %v3117_v39 = vmul.f32 %v7982_v4, %v3090_v12  ;;  %v2472_v51 = vsel %vm1567_vm2, %v11098_v22, %v8220_v34  ;;  %v3359_v29 = vpop.permute.xlu0 %3358  ;;  %v8240_v63 = vadd.f32 %v7810_v25, %v2285_v14 }
 0x31e   : > { %v3180_v36 = vrot.slane %v3116_v50, 7  ;;  %v2531_v40 = vmul.f32 %v10887_v7, %v2472_v51  ;;  %2616 = vrot.lane.b32.xlu1 %v4941_v20, %s5195_s29  ;;  %v3374_v12 = vsel %vm1877_vm3, %v8111_v44, %v3359_v29  ;;  %v3398_v50 = vsel %vm1877_vm3, %v3359_v29, %v11099_v42 }
 0x31f   : > { %v3181_v54 = vrot.slane %v3117_v39, 7  ;;  %v11100_v22 = vrot.slane %v7989_v1, 7  ;;  %v11101_v51 = vrot.slane %v7931_v48, 7  ;;  %v11102_v38 = vrot.slane %v8004_v56, 7  ;;  %v11103_v39 = vld [vmem:[#allocation181_spill] sm:$0xff]  ;;  %v11109_v1 = vld [vmem:[#allocation150_spill] sm:$0xff] }
 0x320   : > { %v3276_v14 = vadd.f32 %v3180_v36, %v11103_v39  ;;  %v2563_v58 = vadd.f32 %v2531_v40, %v11104_v13  ;;  %v11105_v44 = vrot.slane %v8224_v6, 1  ;;  %v8263_v42 = vpop.permute.xlu1 %2614  ;;  %v11107_v29 = vrot.slane %v8010_v30, 7  ;;  %v11112_v13 = vld [vmem:[#allocation251_spill] sm:$0xff] }
 0x321   : > { %v8253_v20 = vsel %vm1400_vm0, %v11101_v51, %v11100_v22  ;;  %v3187_v25 = vsel %vm1400_vm0, %v3180_v36, %v11102_v38  ;;  %11106 = vst [vmem:[#allocation51_spill] sm:$0xff] %v8263_v42  ;;  %v11108_v22 = vld [vmem:[#allocation183_spill] sm:$0xff]  ;;  %v11111_v36 = vld [vmem:[#allocation152_spill] sm:$0xff] }
 0x322   : > { %v3683_v7 = vsel %vm1680_vm1, %v3681_v2, %v11105_v44  ;;  %v3189_v48 = vsel %vm1400_vm0, %v3181_v54, %v11107_v29  ;;  %v3277_v51 = vadd.f32 %v3181_v54, %v11108_v22  ;;  %v3280_v0 = vadd.f32 %v3187_v25, %v11109_v1  ;;  %v2451_v44 = vpop.permute.xlu0 %2450  ;;  %v11115_v1 = vld [vmem:[#allocation78_spill] sm:$0xff] }
 0x323   : > { %v8271_v38 = vadd.f32 %v3683_v7, %v7998_v27  ;;  %v3281_v39 = vadd.f32 %v3189_v48, %v11111_v36  ;;  %v3584_v40 = vadd.f32 %v3488_v19, %v3276_v14  ;;  %v8275_v3 = vadd.f32 %v11112_v13, %v2563_v58  ;;  %v11116_v27 = vld [vmem:[#allocation172_spill] sm:$0xff]  ;;  %v11119_v13 = vld [vmem:[#allocation234_spill] sm:$0xff] }
 0x324   : > { %v3422_v2 = vmul.f32 %v11054_v9, %v3398_v50  ;;  %v8278_v37 = vadd.f32 %v3495_v41, %v3280_v0  ;;  %v3425_v54 = vmul.f32 %v11052_v35, %v3374_v12  ;;  %v2648_v7 = vsel %vm1877_vm3, %v11115_v1, %v8263_v42  ;;  %v11117_v0 = vld [vmem:[#allocation65_spill] sm:$0xff]  ;;  %v3055_v14 = vpop.permute.xlu1 %3054 }
 0x325   : > { %11110 = vst [vmem:[#allocation48_spill] sm:$0xff] %v8271_v38  ;;  %11113 = vst [vmem:[#allocation206_spill] sm:$0xff] %v8275_v3  ;;  %4184 = vmatprep.mubr.f32.mxu0 %v8271_v38  ;;  %v2462_v19 = vsel %vm1567_vm2, %v11116_v27, %v2451_v44  ;;  %v3684_v58 = vrot.slane %v3584_v40, 1  ;;  %v8290_v50 = vmul.f32 %v10964_v52, %v2648_v7  ;;  %v11118_v36 = vrot.slane %v8051_v5, 7  ;;  %v11120_v7 = vld [vmem:[#allocation72_spill] sm:$0xff] }
 0x326   : > { %11114 = vst [vmem:[#allocation197_spill] sm:$0xff] %v8278_v37  ;;  %v3486_v25 = vrot.slane %v3422_v2, 7  ;;  %v2486_v41 = vsel %vm1567_vm2, %v2451_v44, %v11117_v0  ;;  %v10368_v12 = vrot.slane %v8278_v37, 1  ;;  %v3489_v29 = vrot.slane %v3425_v54, 7  ;;  %v8308_v27 = vpop.permute.xlu0 %1849  ;;  %v11123_v38 = vld [vmem:[#allocation184_spill] sm:$0xff] }
 0x327   : > { %v2524_v48 = vmul.f32 %v10946_v21, %v2462_v19  ;;  %v2525_v22 = vmul.f32 %v10941_v46, %v2486_v41  ;;  %v3068_v1 = vsel %vm1567_vm2, %v8053_v16, %v3055_v14  ;;  %v3092_v44 = vsel %vm1567_vm2, %v3055_v14, %v11120_v7  ;;  %v11122_v41 = vld [vmem:[#allocation50_spill] sm:$0xff]  ;;  %v11124_v7 = vld [vmem:[#allocation187_spill] sm:$0xff] }
 0x328   : > { %v3491_v40 = vsel %vm1400_vm0, %v3486_v25, %v11118_v36  ;;  %v3582_v2 = vadd.f32 %v3486_v25, %v11119_v13  ;;  %v8313_v54 = vsel %vm1680_vm1, %v3684_v58, %v10368_v12  ;;  %v11121_v19 = vrot.slane %v8045_v28, 7  ;;  %v3363_v42 = vpop.permute.xlu1 %3362 }
 0x329   : > { %v3585_v25 = vadd.f32 %v3489_v29, %v3277_v51  ;;  %v8319_v36 = vadd.f32 %v3491_v40, %v11122_v41  ;;  %v2556_v14 = vadd.f32 %v2524_v48, %v11123_v38  ;;  %v2557_v3 = vadd.f32 %v2525_v22, %v11124_v7  ;;  %v11127_v38 = vld [vmem:[#allocation79_spill] sm:$0xff]  ;;  %v11133_v41 = vld [vmem:[#allocation85_spill] sm:$0xff] }
 0x32a   : > { %v3497_v0 = vsel %vm1400_vm0, %v3489_v29, %v11121_v19  ;;  %v3678_v13 = vrot.slane %v3582_v2, 1  ;;  %v8327_v12 = vmul.f32 %v7974_v10, %v3068_v1  ;;  %v8330_v19 = vmul.f32 %v7982_v4, %v3092_v44  ;;  %v8343_v22 = vpop.permute.xlu0 %2612  ;;  %v11128_v44 = vld [vmem:[#allocation22_spill] sm:$0xff]  ;;  %v11138_v51 = vld [vmem:[#allocation155_spill] sm:$0xff] }
 0x32b   : > { %v8321_v16 = vadd.f32 %v3497_v0, %v3281_v39  ;;  %v10369_v37 = vrot.slane %v8319_v36, 1  ;;  %v3687_v58 = vrot.slane %v3585_v25, 1  ;;  %v8334_v39 = vadd.f32 %v8190_v62, %v2556_v14  ;;  %v11134_v14 = vld [vmem:[#allocation83_spill] sm:$0xff] }
 0x32c   : > { %v8337_v29 = vadd.f32 %v8193_v53, %v2557_v3  ;;  %v1888_v48 = vsel %vm1877_vm3, %v11127_v38, %v8308_v27  ;;  %v10370_v2 = vrot.slane %v8327_v12, 7  ;;  %v10371_v1 = vrot.slane %v8330_v19, 7  ;;  %v2455_v38 = vpop.permute.xlu1 %2454 }
 0x32d   : > { %11125 = vst [vmem:[#allocation243_spill] sm:$0xff] %v8334_v39  ;;  %v3680_v40 = vsel %vm1680_vm1, %v3678_v13, %v10369_v37  ;;  %v1936_v62 = vmul.f32 %v10995_v45, %v1888_v48  ;;  %v11129_v3 = vand.u32 15, %v11128_v44  ;;  %v3376_v25 = vsel %vm1877_vm3, %v8134_v60, %v3363_v42  ;;  %v3904_v48 = vld [vmem:[#allocation11 + $0x1f0] sm:$0xff] }
 0x32e   : > { %11126 = vst [vmem:[#allocation66_spill] sm:$0xff] %v8337_v29  ;;  %v8358_v0 = vadd.f32 %v3680_v40, %v8227_v59  ;;  %v3400_v13 = vsel %vm1877_vm3, %v3363_v42, %v11133_v41  ;;  %v2647_v7 = vsel %vm1877_vm3, %v11134_v14, %v8343_v22  ;;  %v11135_v59 = vrot.slane %v8004_v56, 7  ;;  %v3901_v41 = vld [vmem:[#allocation11 + $0x1d8] sm:$0xff]  ;;  %v11137_v14 = vld [vmem:[#allocation151_spill] sm:$0xff] }
 0x32f   : > { %vm8353_vm5 = vcmp.le.s32.totalorder %v11129_v3, 14  ;;  %v11136_v60 = vrot.slane %v8010_v30, 7  ;;  %v2006_v42 = vrot.slane %v1936_v62, 1  ;;  %v8381_v3 = vmul.f32 %v11054_v9, %v3400_v13  ;;  %v1554_v30 = vpop.permute.xlu0 %1553 }
 0x330   : > { %11132 = vst [vmem:[#allocation239_spill] sm:$0xff] %v8358_v0  ;;  %v3195_v40 = vsel %vm1400_vm0, %v11135_v59, %v10370_v2  ;;  %v8386_v29 = vmul.f32 %v11052_v35, %v3376_v25  ;;  %v8389_v56 = vmul.f32 %v10964_v52, %v2647_v7  ;;  %4185 = vmatmul.mubr.f32.vlgmr.msra.gmra.mxu0 %v8358_v0  ;;  %v3900_v59 = vld [vmem:[#allocation11 + $0x1d0] sm:$0xff]  ;;  %v11139_v62 = vrot.slane %v7813_v24, 1  ;;  %v3897_v7 = vld [vmem:[#allocation11 + $0x1b8] sm:$0xff] }
 0x331   : > { %v3197_v44 = vsel %vm1400_vm0, %v11136_v60, %v10371_v1  ;;  %v3284_v37 = vadd.f32 %v3195_v40, %v11137_v14  ;;  %v11140_v60 = vrot.slane %v8211_v23, 1  ;;  %v2464_v25 = vsel %vm1567_vm2, %v8220_v34, %v2455_v38  ;;  %4347 = vmatpush1.msra.mxu0 %v3904_v48  ;;  %v11141_v14 = vld [vmem:[#allocation88_spill] sm:$0xff]  ;;  %v3896_v2 = vld [vmem:[#allocation11 + $0x1b0] sm:$0xff] }
 0x332   : > { %v3285_v39 = vadd.f32 %v3197_v44, %v11138_v51  ;;  %v8395_v13 = vsel %vm1680_vm1, %v11139_v62, %v2006_v42  ;;  %v10373_v51 = vrot.slane %v8381_v3, 7  ;;  %v10375_v24 = vrot.slane %v8386_v29, 7  ;;  %4348 = vmatprep.subr.mxu0 %v3901_v41 }
 0x333   : > { %v8400_v40 = vsel %vm1680_vm1, %v2006_v42, %v11140_v60  ;;  %v8407_v44 = vadd.f32 %v8208_v32, %v3284_v37  ;;  %v2488_v62 = vsel %vm1567_vm2, %v2455_v38, %v11141_v14  ;;  %v2532_v42 = vmul.f32 %v10946_v21, %v2464_v25  ;;  %v8414_v60 = vpop.permute.xlu1 %1541  ;;  %4349 = vmatpush1.msra.mxu0 %v3900_v59  ;;  %v3893_v25 = vld [vmem:[#allocation11 + $0x198] sm:$0xff] }
 0x334   : > { %v11142_v34 = vrot.slane %v8051_v5, 7  ;;  %v2533_v37 = vmul.f32 %v10941_v46, %v2488_v62  ;;  %v11143_v32 = vrot.slane %v8321_v16, 1  ;;  %v2751_v38 = vadd.f32 %v7853_v26, %v8253_v20  ;;  %v11145_v5 = vld [vmem:[#allocation104_spill] sm:$0xff]  ;;  %4350 = vmatprep.subr.mxu0 %v3897_v7  ;;  %v11148_v20 = vld [vmem:[#allocation226_spill] sm:$0xff] }
 0x335   : > { %v11144_v41 = vrot.slane %v8045_v28, 7  ;;  %v10374_v28 = vrot.slane %v8182_v47, 1  ;;  %4351 = vmatpush1.msra.mxu0 %v3896_v2  ;;  %v11150_v2 = vrot.slane %v8224_v6, 1  ;;  %v11153_v6 = vld [vmem:[#allocation165_spill] sm:$0xff]  ;;  %v11177_v47 = vld [vmem:[#allocation135_spill] sm:$0xff] }
 0x336   : > { %v3499_v48 = vsel %vm1400_vm0, %v11142_v34, %v10373_v51  ;;  %v3689_v1 = vsel %vm1680_vm1, %v3687_v58, %v11143_v32  ;;  %v11146_v34 = vld [vmem:[#allocation222_spill] sm:$0xff]  ;;  %v1866_v58 = vpop.permute.xlu0 %1865  ;;  %v3892_v32 = vld [vmem:[#allocation11 + $0x190] sm:$0xff]  ;;  %v8442_v59 = vadd.f32 %v2533_v37, %v11148_v20  ;;  %4352 = vmatprep.subr.mxu0 %v3893_v25  ;;  %v11151_v37 = vld [vmem:[#allocation56_spill] sm:$0xff] }
 0x337   : > { %v3505_v14 = vsel %vm1400_vm0, %v11144_v41, %v10375_v24  ;;  %v8433_v0 = vadd.f32 %v3499_v48, %v11145_v5  ;;  %v2564_v62 = vadd.f32 %v2532_v42, %v11146_v34  ;;  %v8437_v51 = vadd.f32 %v3689_v1, %v8240_v63  ;;  %v3889_v41 = vld [vmem:[#allocation11 + $0x178] sm:$0xff]  ;;  %v8457_v7 = vpop.permute.xlu1 %3348  ;;  %4353 = vmatpush1.msra.mxu0 %v3892_v32  ;;  %v4032_v20 = vld [vmem:[#allocation11 + $0x5f0] sm:$0xff] }
 0x338   : > { %v8439_v26 = vadd.f32 %v3505_v14, %v3285_v39  ;;  %v2284_v48 = vsel %vm7867_vm4, %v8077_v17, 0.0  ;;  %v1570_v1 = vsel %vm1567_vm2, %v7904_v61, %v1554_v30  ;;  %v3885_v61 = vld [vmem:[#allocation11 + $0x158] sm:$0xff]  ;;  %4354 = vmatprep.subr.mxu0 %v3889_v41 }
 0x339   : > { %11147 = vst [vmem:[#allocation68_spill] sm:$0xff] %v8437_v51  ;;  %v8450_v63 = vadd.f32 %v8290_v50, %v2564_v62  ;;  %4297 = vmatprep.mubr.f32.mxu1 %v8437_v51  ;;  %v2748_v39 = vadd.f32 %v7719_v43, %v2284_v48  ;;  %v3693_v50 = vsel %vm1680_vm1, %v11150_v2, %v10374_v28  ;;  %v3884_v2 = vld [vmem:[#allocation11 + $0x150] sm:$0xff]  ;;  %v4025_v28 = vld [vmem:[#allocation11 + $0x5b8] sm:$0xff] }
 0x33a   : > { %v1594_v43 = vsel %vm1567_vm2, %v1554_v30, %v11151_v37  ;;  %v8469_v14 = vmul.f32 %v11001_v18, %v1570_v1  ;;  %v3783_v25 = vsel %vm8353_vm5, %v3693_v50, 0.0  ;;  %v1580_v62 = vsel %vm1567_vm2, %v11153_v6, %v8414_v60  ;;  %v2453_v30 = vpop.permute.xlu0 %2452  ;;  %4355 = vmatpush1.msra.mxu0 %v3888_v15  ;;  %v11155_v37 = vld [vmem:[#allocation62_spill] sm:$0xff]  ;;  %v4028_v15 = vld [vmem:[#allocation11 + $0x5d0] sm:$0xff]  ;;  %v3881_v6 = vld [vmem:[#allocation11 + $0x138] sm:$0xff] }
 0x33b   : > { %11149 = vst [vmem:[#allocation229_spill] sm:$0xff] %v8450_v63  ;;  %v8474_v5 = vadd.f32 %v8313_v54, %v2748_v39  ;;  %v8477_v34 = vmul.f32 %v11008_v55, %v1594_v43  ;;  %v8483_v48 = vadd.f32 %v3783_v25, %v2751_v38  ;;  %v8487_v1 = vmul.f32 %v7134_v49, %v1580_v62  ;;  %v4029_v39 = vld [vmem:[#allocation11 + $0x5d8] sm:$0xff]  ;;  %v11156_v43 = vld [vmem:[#allocation86_spill] sm:$0xff] }
 0x33c   : > { %v10376_v32 = vrot.slane %v8469_v14, 1  ;;  %v1880_v54 = vsel %vm1877_vm3, %v8308_v27, %v1866_v58  ;;  %v1904_v38 = vsel %vm1877_vm3, %v1866_v58, %v11155_v37  ;;  %v3385_v25 = vsel %vm1877_vm3, %v11156_v43, %v8457_v7  ;;  %v8504_v27 = vpop.permute.xlu1 %1853  ;;  %4356 = vmatprep.subr.mxu0 %v3885_v61  ;;  %v11159_v61 = vld [vmem:[#allocation185_spill] sm:$0xff]  ;;  %v11161_v17 = vld [vmem:[#allocation148_spill] sm:$0xff] }
 0x33d   : > { %11152 = vst [vmem:[#allocation53_spill] sm:$0xff] %v8474_v5  ;;  %11154 = vst [vmem:[#allocation97_spill] sm:$0xff] %v8483_v48  ;;  %4298 = vmatmul.mubr.f32.vlgmr.msra.gmra.mxu1 %v8474_v5  ;;  %v10380_v50 = vrot.slane %v8477_v34, 1  ;;  %v8498_v41 = vmul.f32 %v11021_v33, %v1880_v54  ;;  %4190 = vmatprep.mubr.f32.mxu0 %v8483_v48  ;;  %v11157_v62 = vrot.slane %v7830_v8, 1  ;;  %v11160_v42 = vrot.slane %v11159_v61, 1  ;;  %v11165_v48 = vld [vmem:[#allocation164_spill] sm:$0xff] }
 0x33e   : > { %v8514_v37 = vmul.f32 %v11019_v57, %v1904_v38  ;;  %v8517_v43 = vmul.f32 %v7309_v11, %v3385_v25  ;;  %4460 = vmatpush1.msra.mxu1 %v4032_v20  ;;  %v2629_v54 = vpop.permute.xlu0 %2628  ;;  %v4024_v25 = vld [vmem:[#allocation11 + $0x5b0] sm:$0xff]  ;;  %4357 = vmatpush1.msra.mxu0 %v3884_v2  ;;  %v11163_v20 = vld [vmem:[#allocation149_spill] sm:$0xff]  ;;  %v11164_v51 = vrot.slane %v8487_v1, 1  ;;  %v11166_v61 = vrot.slane %v11165_v48, 1  ;;  %v11167_v2 = vld [vmem:[#allocation114_spill] sm:$0xff] }
 0x33f   : > { %v1698_v58 = vsel %vm1680_vm1, %v11157_v62, %v10376_v32  ;;  %v1700_v24 = vsel %vm1680_vm1, %v11160_v42, %v10380_v50  ;;  %v11162_v32 = vld [vmem:[#allocation125_spill] sm:$0xff]  ;;  %4461 = vmatprep.subr.mxu1 %v4029_v39  ;;  %v4021_v50 = vld [vmem:[#allocation11 + $0x598] sm:$0xff]  ;;  %4358 = vmatprep.subr.mxu0 %v3881_v6 }
 0x340   : > { %11158 = vst [vmem:[#allocation77_spill] sm:$0xff] %v8517_v43  ;;  %v1787_v8 = vadd.f32 %v1698_v58, %v11161_v17  ;;  %v2463_v38 = vsel %vm1567_vm2, %v11162_v32, %v2453_v30  ;;  %v1788_v5 = vadd.f32 %v1700_v24, %v11163_v20  ;;  %v1712_v42 = vsel %vm1680_vm1, %v11166_v61, %v11164_v51  ;;  %v3880_v32 = vld [vmem:[#allocation11 + $0x130] sm:$0xff]  ;;  %v11169_v20 = vld [vmem:[#allocation204_spill] sm:$0xff]  ;;  %v8549_v58 = vpop.permute.xlu1 %3056 }
 0x341   : > { %v10385_v17 = vrot.slane %v8514_v37, 1  ;;  %4462 = vmatpush1.msra.mxu1 %v4028_v15  ;;  %v1794_v62 = vadd.f32 %v1712_v42, %v11167_v2  ;;  %v11168_v24 = vrot.slane %v8498_v41, 1  ;;  %v11170_v63 = vrot.slane %v11169_v20, 1  ;;  %v11171_v51 = vld [vmem:[#allocation75_spill] sm:$0xff]  ;;  %v3877_v6 = vld [vmem:[#allocation11 + $0x118] sm:$0xff]  ;;  %4359 = vmatpush1.msra.mxu0 %v3880_v32 }
 0x342   : > { %v8538_v39 = vadd.f32 %v8395_v13, %v1787_v8  ;;  %v2487_v61 = vsel %vm1567_vm2, %v2453_v30, %v11171_v51  ;;  %4463 = vmatprep.subr.mxu1 %v4025_v28  ;;  %v4020_v15 = vld [vmem:[#allocation11 + $0x590] sm:$0xff]  ;;  %v11172_v13 = vld [vmem:[#allocation30_spill] sm:$0xff]  ;;  %v11174_v20 = vrot.slane %v8517_v43, 7  ;;  %v2528_v30 = vmul.f32 %v10946_v21, %v2463_v38  ;;  %v4017_v28 = vld [vmem:[#allocation11 + $0x578] sm:$0xff]  ;;  %4360 = vmatprep.subr.mxu0 %v3877_v6 }
 0x343   : > { %v2009_v48 = vsel %vm1680_vm1, %v11170_v63, %v11168_v24  ;;  %v11173_v8 = vrot.slane %v11172_v13, 1  ;;  %v11175_v63 = vld [vmem:[#allocation59_spill] sm:$0xff]  ;;  %4464 = vmatpush1.msra.mxu1 %v4024_v25  ;;  %v8568_v13 = vadd.f32 %v11177_v47, %v1794_v62  ;;  %v2639_v47 = vsel %vm1877_vm3, %v8343_v22, %v2629_v54  ;;  %v4013_v62 = vld [vmem:[#allocation11 + $0x558] sm:$0xff] }
 0x344   : > { %v8556_v2 = vadd.f32 %v2009_v48, %v1788_v5  ;;  %v11176_v24 = vrot.slane %v11175_v63, 7  ;;  %v3876_v51 = vld [vmem:[#allocation11 + $0x110] sm:$0xff]  ;;  %v2529_v48 = vmul.f32 %v10941_v46, %v2487_v61  ;;  %4465 = vmatprep.subr.mxu1 %v4021_v50  ;;  %v3873_v61 = vld [vmem:[#allocation11 + $0xf8] sm:$0xff]  ;;  %v11202_v21 = vrot.slane %v8330_v19, 7 }
 0x345   : > { %v2003_v42 = vsel %vm1680_vm1, %v11173_v8, %v10385_v17  ;;  %11178 = vst [vmem:[#allocation198_spill] sm:$0xff] %v8568_v13  ;;  %v11179_v8 = vld [vmem:[#allocation98_spill] sm:$0xff]  ;;  %v1556_v17 = vpop.permute.xlu0 %1555  ;;  %v4016_v63 = vld [vmem:[#allocation11 + $0x570] sm:$0xff]  ;;  %4466 = vmatpush1.msra.mxu1 %v4020_v15  ;;  %4361 = vmatpush1.msra.mxu0 %v3876_v51  ;;  %v11184_v22 = vld [vmem:[#allocation64_spill] sm:$0xff]  ;;  %v11206_v19 = vrot.slane %v8469_v14, 1 }
 0x346   : > { %v8563_v52 = vsel %vm1400_vm0, %v11176_v24, %v11174_v20  ;;  %v8571_v5 = vadd.f32 %v2003_v42, %v11179_v8  ;;  %v11180_v38 = vld [vmem:[#allocation207_spill] sm:$0xff]  ;;  %v11181_v24 = vld [vmem:[#allocation177_spill] sm:$0xff]  ;;  %4467 = vmatprep.subr.mxu1 %v4017_v28  ;;  %v2663_v15 = vsel %vm1877_vm3, %v2629_v54, %v11184_v22  ;;  %v11185_v6 = vld [vmem:[#allocation236_spill] sm:$0xff]  ;;  %4362 = vmatprep.subr.mxu0 %v3873_v61  ;;  %v11193_v61 = vrot.slane %v8211_v23, 1 }
 0x347   : > { %v2560_v25 = vadd.f32 %v2528_v30, %v11180_v38  ;;  %v1890_v11 = vsel %vm1877_vm3, %v11181_v24, %v8504_v27  ;;  %v11182_v42 = vld [vmem:[#allocation209_spill] sm:$0xff]  ;;  %v3365_v38 = vpop.permute.xlu1 %3364  ;;  %v4012_v24 = vld [vmem:[#allocation11 + $0x550] sm:$0xff]  ;;  %v2705_v50 = vmul.f32 %v11185_v6, %v2639_v47  ;;  %v11186_v46 = vld [vmem:[#allocation80_spill] sm:$0xff]  ;;  %4468 = vmatpush1.msra.mxu1 %v4016_v63 }
 0x348   : > { %v2561_v8 = vadd.f32 %v2529_v48, %v11182_v42  ;;  %v8587_v30 = vmul.f32 %v10995_v45, %v1890_v11  ;;  %v3093_v48 = vsel %vm1567_vm2, %v8549_v58, %v11186_v46  ;;  %v4009_v11 = vld [vmem:[#allocation11 + $0x538] sm:$0xff]  ;;  %v3872_v42 = vld [vmem:[#allocation11 + $0xf0] sm:$0xff]  ;;  %4469 = vmatprep.subr.mxu1 %v4013_v62  ;;  %v11191_v63 = vld [vmem:[#allocation70_spill] sm:$0xff] }
 0x349   : > { %v8590_v20 = vadd.f32 %v8389_v56, %v2560_v25  ;;  %v11187_v51 = vld [vmem:[#allocation232_spill] sm:$0xff]  ;;  %v8603_v56 = vmul.f32 %v7982_v4, %v3093_v48  ;;  %v11189_v25 = vld [vmem:[#allocation43_spill] sm:$0xff]  ;;  %v1868_v47 = vpop.permute.xlu0 %1867  ;;  %v1595_v28 = vsel %vm1567_vm2, %v1556_v17, %v11191_v63  ;;  %v3377_v4 = vsel %vm1877_vm3, %v8457_v7, %v3365_v38  ;;  %4470 = vmatpush1.msra.mxu1 %v4012_v24  ;;  %v11211_v14 = vld [vmem:[#allocation154_spill] sm:$0xff] }
 0x34a   : > { %v2702_v32 = vmul.f32 %v11187_v51, %v2663_v15  ;;  %v1571_v54 = vsel %vm1567_vm2, %v11189_v25, %v1556_v17  ;;  %v4008_v22 = vld [vmem:[#allocation11 + $0x530] sm:$0xff]  ;;  %v8608_v46 = vadd.f32 %v2705_v50, %v2561_v8  ;;  %v4005_v48 = vld [vmem:[#allocation11 + $0x518] sm:$0xff]  ;;  %v11192_v62 = vrot.slane %v8587_v30, 1  ;;  %4471 = vmatprep.subr.mxu1 %v4009_v11  ;;  %4363 = vmatpush1.msra.mxu0 %v3872_v42 }
 0x34b   : > { %11183 = vst [vmem:[#allocation196_spill] sm:$0xff] %v8590_v20  ;;  %11188 = vst [vmem:[#allocation208_spill] sm:$0xff] %v8603_v56  ;;  %v3869_v20 = vld [vmem:[#allocation11 + $0xd8] sm:$0xff]  ;;  %v8614_v15 = vmul.f32 %v11001_v18, %v1571_v54  ;;  %v3868_v25 = vld [vmem:[#allocation11 + $0xd0] sm:$0xff]  ;;  %v8631_v54 = vmul.f32 %v11008_v55, %v1595_v28  ;;  %v8633_v63 = vpop.permute.xlu1 %1543  ;;  %4472 = vmatpush1.msra.mxu1 %v4008_v22 }
 0x34c   : > { %11190 = vst [vmem:[#allocation57_spill] sm:$0xff] %v8608_v46  ;;  %v8624_v50 = vsel %vm1680_vm1, %v11193_v61, %v11192_v62  ;;  %v11194_v8 = vld [vmem:[#allocation27_spill] sm:$0xff]  ;;  %11196 = vst [vmem:[#allocation230_spill] sm:$0xff] %v8633_v63  ;;  %v3865_v24 = vld [vmem:[#allocation11 + $0xb8] sm:$0xff]  ;;  %v11198_v61 = vrot.slane %v8556_v2, 7  ;;  %4364 = vmatprep.subr.mxu0 %v3869_v20  ;;  %4473 = vmatprep.subr.mxu1 %v4005_v48 }
 0x34d   : > { %v8627_v46 = vadd.f32 %v2702_v32, %v11194_v8  ;;  %v4004_v7 = vld [vmem:[#allocation11 + $0x510] sm:$0xff]  ;;  %v8640_v32 = vmul.f32 %v11052_v35, %v3377_v4  ;;  %v11199_v8 = vld [vmem:[#allocation54_spill] sm:$0xff]  ;;  %v4001_v11 = vld [vmem:[#allocation11 + $0x4f8] sm:$0xff]  ;;  %4365 = vmatpush1.msra.mxu0 %v3868_v25  ;;  %v11209_v25 = vrot.slane %v8631_v54, 1 }
 0x34e   : > { %v11197_v23 = vld [vmem:[#allocation159_spill] sm:$0xff]  ;;  %v11200_v28 = vrot.slane %v11199_v8, 7  ;;  %v8657_v8 = vpop.permute.xlu0 %2630  ;;  %v11204_v22 = vld [vmem:[#allocation160_spill] sm:$0xff]  ;;  %4474 = vmatpush1.msra.mxu1 %v4004_v7  ;;  %4366 = vmatprep.subr.mxu0 %v3865_v24 }
 0x34f   : > { %11195 = vst [vmem:[#allocation81_spill] sm:$0xff] %v8627_v46  ;;  %v3401_v62 = vsel %vm1877_vm3, %v3365_v38, %v11197_v23  ;;  %v3864_v42 = vld [vmem:[#allocation11 + $0xb0] sm:$0xff]  ;;  %v11201_v46 = vrot.slane %v8603_v56, 7  ;;  %v11203_v23 = vld [vmem:[#allocation100_spill] sm:$0xff]  ;;  %v11208_v38 = vrot.slane %v8321_v16, 1  ;;  %4475 = vmatprep.subr.mxu1 %v4001_v11  ;;  %v11212_v16 = vld [vmem:[#allocation161_spill] sm:$0xff] }
 0x350   : > { %v2201_v17 = vsel %vm1400_vm0, %v11200_v28, %v11198_v61  ;;  %v8654_v4 = vmul.f32 %v11054_v9, %v3401_v62  ;;  %v4000_v20 = vld [vmem:[#allocation11 + $0x4f0] sm:$0xff]  ;;  %v11205_v28 = vrot.slane %v8614_v15, 1  ;;  %v11207_v62 = vrot.slane %v8439_v26, 1  ;;  %v3997_v48 = vld [vmem:[#allocation11 + $0x4d8] sm:$0xff]  ;;  %4367 = vmatpush1.msra.mxu0 %v3864_v42  ;;  %v11238_v56 = vld [vmem:[#allocation102_spill] sm:$0xff] }
 0x351   : > { %v3205_v13 = vsel %vm1400_vm0, %v11202_v21, %v11201_v46  ;;  %v2753_v43 = vadd.f32 %v11203_v23, %v2201_v17  ;;  %v8680_v46 = vpop.permute.xlu1 %1855  ;;  %v11213_v24 = vrot.slane %v8640_v32, 7  ;;  %4476 = vmatpush1.msra.mxu1 %v4000_v20  ;;  %v11218_v42 = vrot.slane %v8381_v3, 7  ;;  %v3860_v20 = vld [vmem:[#allocation11 + $0x90] sm:$0xff] }
 0x352   : > { %v3289_v61 = vadd.f32 %v3205_v13, %v11204_v22  ;;  %v1706_v21 = vsel %vm1680_vm1, %v11206_v19, %v11205_v28  ;;  %v3697_v17 = vsel %vm1680_vm1, %v11208_v38, %v11207_v62  ;;  %v11210_v13 = vrot.slane %v8477_v34, 1  ;;  %4477 = vmatprep.subr.mxu1 %v3997_v48  ;;  %v3857_v48 = vld [vmem:[#allocation11 + $0x78] sm:$0xff] }
 0x353   : > { %v1791_v22 = vadd.f32 %v1706_v21, %v11211_v14  ;;  %v10391_v28 = vrot.slane %v8654_v4, 7  ;;  %v3785_v19 = vsel %vm8353_vm5, %v3697_v17, 0.0  ;;  %v11214_v38 = vrot.slane %v8386_v29, 7  ;;  %v11216_v21 = vld [vmem:[#allocation173_spill] sm:$0xff]  ;;  %v3996_v17 = vld [vmem:[#allocation11 + $0x4d0] sm:$0xff] }
 0x354   : > { %v1708_v23 = vsel %vm1680_vm1, %v11210_v13, %v11209_v25  ;;  %v8688_v62 = vadd.f32 %v3785_v19, %v2753_v43  ;;  %v1881_v25 = vsel %vm1877_vm3, %v11216_v21, %v1868_v47  ;;  %v3861_v13 = vld [vmem:[#allocation11 + $0x98] sm:$0xff]  ;;  %v11220_v43 = vld [vmem:[#allocation74_spill] sm:$0xff]  ;;  %v8706_v19 = vpop.permute.xlu0 %3040  ;;  %v3992_v21 = vld [vmem:[#allocation11 + $0x4b0] sm:$0xff]  ;;  %4478 = vmatpush1.msra.mxu1 %v3996_v17 }
 0x355   : > { %v1792_v7 = vadd.f32 %v1708_v23, %v11212_v16  ;;  %v3513_v34 = vsel %vm1400_vm0, %v11214_v38, %v11213_v24  ;;  %v8694_v11 = vadd.f32 %v8400_v40, %v1791_v22  ;;  %v3507_v29 = vsel %vm1400_vm0, %v11218_v42, %v10391_v28  ;;  %v3993_v16 = vld [vmem:[#allocation11 + $0x4b8] sm:$0xff]  ;;  %v11223_v38 = vld [vmem:[#allocation210_spill] sm:$0xff]  ;;  %4368 = vmatprep.subr.mxu0 %v3861_v13 }
 0x356   : > { %11215 = vst [vmem:[#allocation101_spill] sm:$0xff] %v8688_v62  ;;  %v8701_v23 = vadd.f32 %v3513_v34, %v3289_v61  ;;  %v1905_v14 = vsel %vm1877_vm3, %v1868_v47, %v11220_v43  ;;  %v11221_v24 = vld [vmem:[#allocation20_spill] sm:$0xff]  ;;  %4303 = vmatprep.mubr.f32.mxu1 %v8688_v62  ;;  %v8716_v61 = vmul.f32 %v11021_v33, %v1881_v25  ;;  %v11222_v22 = vrot.slane %v8571_v5, 7  ;;  %v11225_v43 = vld [vmem:[#allocation39_spill] sm:$0xff]  ;;  %v8731_v62 = vpop.permute.xlu1 %3366 }
 0x357   : > { %11217 = vst [vmem:[#allocation45_spill] sm:$0xff] %v8694_v11  ;;  %v8709_v40 = vadd.f32 %v3507_v29, %v11221_v24  ;;  %v8713_v3 = vmul.f32 %v11019_v57, %v1905_v14  ;;  %v11224_v47 = vrot.slane %v11223_v38, 7  ;;  %v11226_v14 = vrot.slane %v8433_v0, 1  ;;  %v3856_v38 = vld [vmem:[#allocation11 + $0x70] sm:$0xff]  ;;  %4369 = vmatpush1.msra.mxu0 %v3860_v20  ;;  %4479 = vmatprep.subr.mxu1 %v3993_v16  ;;  %v3989_v20 = vld [vmem:[#allocation11 + $0x498] sm:$0xff] }
 0x358   : > { %11219 = vst [vmem:[#allocation131_spill] sm:$0xff] %v8701_v23  ;;  %v11227_v28 = vrot.slane %v8319_v36, 1  ;;  %v11229_v36 = vrot.slane %v8538_v39, 7  ;;  %v8750_v42 = vpop.permute.xlu0 %2440  ;;  %4370 = vmatprep.subr.mxu0 %v3857_v48  ;;  %4480 = vmatpush1.msra.mxu1 %v3992_v21  ;;  %v3853_v16 = vld [vmem:[#allocation11 + $0x58] sm:$0xff]  ;;  %v3988_v48 = vld [vmem:[#allocation11 + $0x490] sm:$0xff] }
 0x359   : > { %v2195_v34 = vsel %vm1400_vm0, %v11224_v47, %v11222_v22  ;;  %v10395_v47 = vrot.slane %v8713_v3, 1  ;;  %v11232_v22 = vld [vmem:[#allocation192_spill] sm:$0xff]  ;;  %11233 = vst [vmem:[#allocation47_spill] sm:$0xff] %v8750_v42  ;;  %4371 = vmatpush1.msra.mxu0 %v3856_v38  ;;  %v3852_v21 = vld [vmem:[#allocation11 + $0x50] sm:$0xff]  ;;  %4481 = vmatprep.subr.mxu1 %v3989_v20 }
 0x35a   : > { %v2750_v24 = vadd.f32 %v11225_v43, %v2195_v34  ;;  %v3691_v25 = vsel %vm1680_vm1, %v11227_v28, %v11226_v14  ;;  %v11230_v28 = vld [vmem:[#allocation52_spill] sm:$0xff]  ;;  %v1581_v29 = vsel %vm1567_vm2, %v11232_v22, %v8633_v63  ;;  %v1872_v38 = vpop.permute.xlu1 %1871  ;;  %4372 = vmatprep.subr.mxu0 %v3853_v16  ;;  %4482 = vmatpush1.msra.mxu1 %v3988_v48 }
 0x35b   : > { %v3782_v34 = vsel %vm8353_vm5, %v3691_v25, 0.0  ;;  %v11231_v14 = vrot.slane %v11230_v28, 7  ;;  %v8764_v13 = vmul.f32 %v7134_v49, %v1581_v29  ;;  %4373 = vmatpush1.msra.mxu0 %v3852_v21  ;;  %v3069_v48 = vsel %vm1567_vm2, %v8706_v19, %v8549_v58  ;;  %v3984_v21 = vld [vmem:[#allocation11 + $0x470] sm:$0xff] }
 0x35c   : > { %v8738_v43 = vadd.f32 %v3782_v34, %v2750_v24  ;;  %v11234_v24 = vrot.slane %v8514_v37, 1  ;;  %v11235_v34 = vrot.slane %v8716_v61, 1 }
 0x35d   : > { %v2199_v17 = vsel %vm1400_vm0, %v11231_v14, %v11229_v36  ;;  %v11236_v36 = vrot.slane %v8498_v41, 1  ;;  %v11237_v14 = vld [vmem:[#allocation41_spill] sm:$0xff] }
 0x35e   : > { %11228 = vst [vmem:[#allocation58_spill] sm:$0xff] %v8738_v43  ;;  %v2011_v25 = vsel %vm1680_vm1, %v11234_v24, %v10395_v47  ;;  %v2752_v22 = vadd.f32 %v11237_v14, %v2199_v17  ;;  %4191 = vmatmul.mubr.f32.gmra.mxu0 %v8738_v43  ;;  %v11240_v24 = vrot.slane %v8407_v44, 1  ;;  %v11241_v41 = vld [vmem:[#allocation197_spill] sm:$0xff]  ;;  %v11243_v17 = vld [vmem:[#allocation51_spill] sm:$0xff] }
 0x35f   : > { %v2017_v28 = vsel %vm1680_vm1, %v11236_v36, %v11235_v34  ;;  %v8767_v63 = vadd.f32 %v2011_v25, %v11238_v56  ;;  %v11242_v47 = vrot.slane %v11241_v41, 1  ;;  %v2640_v29 = vsel %vm1877_vm3, %v11243_v17, %v8657_v8  ;;  %v3985_v36 = vld [vmem:[#allocation11 + $0x478] sm:$0xff]  ;;  %v11259_v43 = vld [vmem:[#allocation179_spill] sm:$0xff] }
 0x360   : > { %v8769_v37 = vadd.f32 %v2017_v28, %v1792_v7  ;;  %v10396_v7 = vrot.slane %v8764_v13, 1  ;;  %v11244_v25 = vld [vmem:[#allocation96_spill] sm:$0xff]  ;;  %v2709_v14 = vmul.f32 %v11185_v6, %v2640_v29  ;;  %v11248_v29 = vld [vmem:[#allocation211_spill] sm:$0xff]  ;;  %4483 = vmatprep.subr.mxu1 %v3985_v36 }
 0x361   : > { %v3695_v34 = vsel %vm1680_vm1, %v11242_v47, %v11240_v24  ;;  %v2664_v28 = vsel %vm1877_vm3, %v8657_v8, %v11244_v25  ;;  %v3849_v17 = vld [vmem:[#allocation11 + $0x38] sm:$0xff]  ;;  %v11246_v8 = vrot.slane %v8487_v1, 1  ;;  %v11249_v1 = vld [vmem:[#allocation119_spill] sm:$0xff]  ;;  %v11253_v47 = vld [vmem:[#allocation38_spill] sm:$0xff]  ;;  %4484 = vmatpush1.msra.mxu1 %v3984_v21  ;;  %v11264_v21 = vrot.slane %v8587_v30, 1 }
 0x362   : > { %11239 = vst [vmem:[#allocation253_spill] sm:$0xff] %v8769_v37  ;;  %v3784_v56 = vsel %vm8353_vm5, %v3695_v34, 0.0  ;;  %v2706_v53 = vmul.f32 %v11187_v51, %v2664_v28  ;;  %v8794_v34 = vpop.permute.xlu0 %1557  ;;  %v8802_v16 = vadd.f32 %v2709_v14, %v8442_v59  ;;  %v11250_v28 = vld [vmem:[#allocation129_spill] sm:$0xff]  ;;  %v11254_v58 = vand.u32 15, %v11253_v47  ;;  %v11258_v47 = vld [vmem:[#allocation90_spill] sm:$0xff]  ;;  %4374 = vmatprep.subr.mxu0 %v3849_v17 }
 0x363   : > { %v8791_v41 = vadd.f32 %v3784_v56, %v2752_v22  ;;  %v1720_v20 = vsel %vm1680_vm1, %v11246_v8, %v10396_v7  ;;  %v1891_v22 = vsel %vm1877_vm3, %v11248_v29, %v8680_v46  ;;  %v3848_v56 = vld [vmem:[#allocation11 + $0x30] sm:$0xff]  ;;  %v11252_v8 = vld [vmem:[#allocation84_spill] sm:$0xff]  ;;  %v8830_v7 = vpop.permute.xlu1 %1545  ;;  %v11257_v24 = vld [vmem:[#allocation113_spill] sm:$0xff] }
 0x364   : > { %11247 = vst [vmem:[#allocation144_spill] sm:$0xff] %v8802_v16  ;;  %v1798_v25 = vadd.f32 %v1720_v20, %v11249_v1  ;;  %v8815_v59 = vadd.f32 %v2706_v53, %v11250_v28  ;;  %v8818_v14 = vmul.f32 %v10995_v45, %v1891_v22  ;;  %v3077_v29 = vsel %vm1567_vm2, %v11252_v8, %v8706_v19  ;;  %v3981_v20 = vld [vmem:[#allocation11 + $0x458] sm:$0xff]  ;;  %v8832_v53 = vld [vmem:[#allocation9 + $0x28] ss:$0 sm:$0xff]  ;;  %v11265_v51 = vld [vmem:[#allocation137_spill] sm:$0xff] }
 0x365   : > { %11245 = vst [vmem:[#allocation141_spill] sm:$0xff] %v8791_v41  ;;  %4304 = vmatmul.mubr.f32.gmra.mxu1 %v8791_v41  ;;  %vm8826_vm6 = vcmp.ge.s32.totalorder %v11254_v58, 1  ;;  %v3845_v1 = vld [vmem:[#allocation11 + $0x18] sm:$0xff]  ;;  %v8835_v22 = vmul.f32 %v8832_v53, %v3077_v29  ;;  %v8838_v28 = vmul.f32 %v7974_v10, %v3069_v48  ;;  %v3402_v19 = vsel %vm1877_vm3, %v8731_v62, %v11257_v24  ;;  %v3980_v58 = vld [vmem:[#allocation11 + $0x450] sm:$0xff] }
 0x366   : > { %11251 = vst [vmem:[#allocation233_spill] sm:$0xff] %v8815_v59  ;;  %v2473_v8 = vsel %vm1567_vm2, %v11258_v47, %v8750_v42  ;;  %v3844_v41 = vld [vmem:[#allocation11 + $0x10] sm:$0xff]  ;;  %v8849_v16 = vadd.f32 %v11259_v43, %v1798_v25  ;;  %v10402_v29 = vrot.slane %v8818_v14, 1  ;;  %v8853_v10 = vmul.f32 %v11054_v9, %v3402_v19  ;;  %v8856_v6 = vpop.permute.xlu0 %1869  ;;  %4375 = vmatpush1.msra.mxu0 %v3848_v56  ;;  %v3977_v24 = vld [vmem:[#allocation11 + $0x438] sm:$0xff] }
 0x367   : > { %v11262_v48 = vld [vmem:[#allocation87_spill] sm:$0xff]  ;;  %v1883_v43 = vsel %vm1877_vm3, %v8680_v46, %v1872_v38  ;;  %v11263_v25 = vld [vmem:[#allocation124_spill] sm:$0xff]  ;;  %4485 = vmatprep.subr.mxu1 %v3981_v20  ;;  %4376 = vmatprep.subr.mxu0 %v3845_v1  ;;  %v11267_v1 = vrot.slane %v8835_v22, 7  ;;  %v11270_v30 = vrot.slane %v8838_v28, 7 }
 0x368   : > { %11260 = vst [vmem:[#allocation60_spill] sm:$0xff] %v8849_v16  ;;  %11261 = vst [vmem:[#allocation255_spill] sm:$0xff] %v8853_v10  ;;  %v2535_v59 = vmul.f32 %v11262_v48, %v2473_v8  ;;  %v1907_v19 = vsel %vm1877_vm3, %v1872_v38, %v11263_v25  ;;  %v3969_v8 = vld [vmem:[#allocation11 + $0x3f8] sm:$0xff]  ;;  %v8872_v56 = vsel %vm1680_vm1, %v11264_v21, %v10402_v29  ;;  %4486 = vmatpush1.msra.mxu1 %v3980_v58  ;;  %v3976_v38 = vld [vmem:[#allocation11 + $0x430] sm:$0xff] }
 0x369   : > { %4377 = vmatpush1.msra.mxu0 %v3844_v41  ;;  %v3968_v20 = vld [vmem:[#allocation11 + $0x3f0] sm:$0xff]  ;;  %v11268_v25 = vld [vmem:[#allocation26_spill] sm:$0xff]  ;;  %v11271_v21 = vrot.slane %v8327_v12, 7  ;;  %v8889_v17 = vmul.f32 %v11019_v57, %v1907_v19  ;;  %v8894_v41 = vpop.permute.xlu1 %1857  ;;  %4487 = vmatprep.subr.mxu1 %v3977_v24  ;;  %v11272_v58 = vld [vmem:[#allocation108_spill] sm:$0xff]  ;;  %v11274_v12 = vrot.slane %v8853_v10, 7 }
 0x36a   : > { %v8876_v46 = vadd.f32 %v2535_v59, %v11265_v51  ;;  %v11269_v48 = vrot.slane %v11268_v25, 7  ;;  %v8892_v51 = vmul.f32 %v11021_v33, %v1883_v43  ;;  %v3973_v59 = vld [vmem:[#allocation11 + $0x418] sm:$0xff]  ;;  %v1572_v43 = vsel %vm1567_vm2, %v8414_v60, %v8794_v34  ;;  %4378 = vmatprep.subr.mxu0 %v3969_v8  ;;  %v3972_v24 = vld [vmem:[#allocation11 + $0x410] sm:$0xff]  ;;  %4488 = vmatpush1.msra.mxu1 %v3976_v38  ;;  %v11286_v10 = vld [vmem:[#allocation82_spill] sm:$0xff] }
 0x36b   : > { %v3203_v29 = vsel %vm1400_vm0, %v11271_v21, %v11270_v30  ;;  %v11275_v30 = vrot.slane %v8654_v4, 7  ;;  %v8911_v21 = vpop.permute.xlu0 %3042  ;;  %v11278_v4 = vld [vmem:[#allocation153_spill] sm:$0xff]  ;;  %4379 = vmatpush2.msra.mxu0 %v3968_v20  ;;  %v3964_v60 = vld [vmem:[#allocation11 + $0x3d0] sm:$0xff]  ;;  %v8923_v8 = vmul.f32 %v11001_v18, %v1572_v43  ;;  %4489 = vmatprep.subr.mxu1 %v3973_v59  ;;  %v3961_v20 = vld [vmem:[#allocation11 + $0x3b8] sm:$0xff] }
 0x36c   : > { %11266 = vst [vmem:[#allocation257_spill] sm:$0xff] %v8876_v46  ;;  %v3201_v42 = vsel %vm1400_vm0, %v11269_v48, %v11267_v1  ;;  %v11273_v48 = vld [vmem:[#allocation157_spill] sm:$0xff]  ;;  %4490 = vmatpush1.msra.mxu1 %v3972_v24  ;;  %v3960_v59 = vld [vmem:[#allocation11 + $0x3b0] sm:$0xff]  ;;  %v3957_v16 = vld [vmem:[#allocation11 + $0x398] sm:$0xff] }
 0x36d   : > { %v8897_v25 = vadd.f32 %v3201_v42, %v11272_v58  ;;  %v8900_v1 = vadd.f32 %v3203_v29, %v11273_v48  ;;  %v3515_v19 = vsel %vm1400_vm0, %v11275_v30, %v11274_v12  ;;  %v3965_v42 = vld [vmem:[#allocation11 + $0x3d8] sm:$0xff]  ;;  %v11276_v58 = vld [vmem:[#allocation46_spill] sm:$0xff]  ;;  %v1596_v12 = vsel %vm1567_vm2, %v8794_v34, %v11278_v4 }
 0x36e   : > { %v8914_v46 = vadd.f32 %v3515_v19, %v11276_v58  ;;  %v4097_v30 = vld [vmem:[#allocation11 + $0x7f8] sm:$0xff]  ;;  %v8926_v47 = vmul.f32 %v11008_v55, %v1596_v12  ;;  %v11279_v19 = vrot.slane %v8769_v37, 7  ;;  %v11280_v58 = vrot.slane %v8556_v2, 7  ;;  %v11283_v12 = vld [vmem:[#allocation242_spill] sm:$0xff]  ;;  %4380 = vmatprep.subr.mxu0 %v3965_v42  ;;  %v11287_v42 = vld [vmem:[#allocation171_spill] sm:$0xff] }
 0x36f   : > { %v11281_v48 = vrot.slane %v8701_v23, 1  ;;  %v11282_v34 = vrot.slane %v8439_v26, 1  ;;  %v1582_v2 = vsel %vm1567_vm2, %v11283_v12, %v8830_v7  ;;  %v4096_v26 = vld [vmem:[#allocation11 + $0x7f0] sm:$0xff]  ;;  %4381 = vmatpush2.msra.mxu0 %v3964_v60  ;;  %4491 = vmatprep.subr.mxu1 %v4097_v30  ;;  %v4093_v12 = vld [vmem:[#allocation11 + $0x7d8] sm:$0xff]  ;;  %v8969_v30 = vpop.permute.xlu1 %3060  ;;  %v11295_v23 = vld [vmem:[#allocation158_spill] sm:$0xff] }
 0x370   : > { %11277 = vst [vmem:[#allocation49_spill] sm:$0xff] %v8914_v46  ;;  %v2209_v29 = vsel %vm1400_vm0, %v11280_v58, %v11279_v19  ;;  %v1882_v19 = vsel %vm1877_vm3, %v8504_v27, %v8856_v6  ;;  %v8953_v43 = vmul.f32 %v7134_v49, %v1582_v2  ;;  %v1906_v27 = vsel %vm1877_vm3, %v8856_v6, %v11286_v10  ;;  %v11296_v37 = vld [vmem:[#allocation163_spill] sm:$0xff] }
 0x371   : > { %v3705_v38 = vsel %vm1680_vm1, %v11282_v34, %v11281_v48  ;;  %v2293_v4 = vsel %vm8826_vm6, %v2209_v29, 0.0  ;;  %v11284_v34 = vld [vmem:[#allocation44_spill] sm:$0xff]  ;;  %v1945_v24 = vmul.f32 %v11021_v33, %v1882_v19  ;;  %v1892_v58 = vsel %vm1877_vm3, %v11287_v42, %v8894_v41  ;;  %4382 = vmatprep.subr.mxu0 %v3961_v20  ;;  %v4092_v48 = vld [vmem:[#allocation11 + $0x7d0] sm:$0xff]  ;;  %4492 = vmatpush2.msra.mxu1 %v4096_v26 }
 0x372   : > { %v2757_v29 = vadd.f32 %v11284_v34, %v2293_v4  ;;  %11285 = vst [vmem:[#allocation91_spill] sm:$0xff] %v8953_v43  ;;  %v11288_v4 = vrot.slane %v8694_v11, 7  ;;  %v11289_v2 = vrot.slane %v8538_v39, 7  ;;  %v8971_v34 = vpop.permute.xlu0 %3350  ;;  %v11290_v6 = vrot.slane %v8923_v8, 1  ;;  %4383 = vmatpush2.msra.mxu0 %v3960_v59  ;;  %v3956_v20 = vld [vmem:[#allocation11 + $0x390] sm:$0xff]  ;;  %4493 = vmatprep.subr.mxu1 %v4093_v12  ;;  %v4085_v59 = vld [vmem:[#allocation11 + $0x798] sm:$0xff] }
 0x373   : > { %v11291_v10 = vrot.slane %v8614_v15, 1  ;;  %v11292_v42 = vrot.slane %v8926_v47, 1  ;;  %v11293_v49 = vrot.slane %v8631_v54, 1  ;;  %4384 = vmatprep.subr.mxu0 %v3957_v16  ;;  %v3953_v54 = vld [vmem:[#allocation11 + $0x378] sm:$0xff]  ;;  %v4088_v46 = vld [vmem:[#allocation11 + $0x7b0] sm:$0xff]  ;;  %v8996_v26 = vmul.f32 %v10995_v45, %v1892_v58  ;;  %4494 = vmatpush2.msra.mxu1 %v4092_v48 }
 0x374   : > { %v2207_v60 = vsel %vm1400_vm0, %v11289_v2, %v11288_v4  ;;  %v8983_v11 = vadd.f32 %v3705_v38, %v2757_v29  ;;  %v10413_v4 = vrot.slane %v8953_v43, 1  ;;  %v4089_v2 = vld [vmem:[#allocation11 + $0x7b8] sm:$0xff]  ;;  %v3952_v16 = vld [vmem:[#allocation11 + $0x370] sm:$0xff]  ;;  %4385 = vmatpush2.msra.mxu0 %v3956_v20  ;;  %v3378_v36 = vsel %vm1877_vm3, %v8971_v34, %v8731_v62  ;;  %v11327_v62 = vld [vmem:[#allocation201_spill] sm:$0xff] }
 0x375   : > { %v1714_v19 = vsel %vm1680_vm1, %v11291_v10, %v11290_v6  ;;  %v1716_v39 = vsel %vm1680_vm1, %v11293_v49, %v11292_v42  ;;  %v1942_v6 = vmul.f32 %v11019_v57, %v1906_v27  ;;  %v2024_v10 = vrot.slane %v1945_v24, 1  ;;  %v11299_v12 = vld [vmem:[#allocation120_spill] sm:$0xff]  ;;  %4495 = vmatprep.subr.mxu1 %v4089_v2  ;;  %4386 = vmatprep.subr.mxu0 %v3953_v54  ;;  %v11303_v2 = vld [vmem:[#allocation130_spill] sm:$0xff]  ;;  %v4080_v54 = vld [vmem:[#allocation11 + $0x770] sm:$0xff] }
 0x376   : > { %11294 = vst [vmem:[#allocation250_spill] sm:$0xff] %v8983_v11  ;;  %v1795_v9 = vadd.f32 %v1714_v19, %v11295_v23  ;;  %v1796_v15 = vadd.f32 %v1716_v39, %v11296_v37  ;;  %4309 = vmatprep.mubr.f32.mxu1 %v8983_v11  ;;  %v11297_v49 = vrot.slane %v8764_v13, 1  ;;  %v2292_v23 = vsel %vm8826_vm6, %v2207_v60, 0.0  ;;  %v4084_v60 = vld [vmem:[#allocation11 + $0x790] sm:$0xff]  ;;  %v3949_v19 = vld [vmem:[#allocation11 + $0x358] sm:$0xff]  ;;  %4496 = vmatpush2.msra.mxu1 %v4088_v46 }
 0x377   : > { %v9002_v37 = vadd.f32 %v8563_v52, %v8900_v1  ;;  %v2018_v27 = vrot.slane %v1942_v6, 1  ;;  %v11300_v24 = vrot.slane %v8716_v61, 1  ;;  %v11301_v52 = vrot.slane %v8892_v51, 1  ;;  %v3948_v61 = vld [vmem:[#allocation11 + $0x350] sm:$0xff]  ;;  %v4081_v39 = vld [vmem:[#allocation11 + $0x778] sm:$0xff]  ;;  %4387 = vmatpush2.msra.mxu0 %v3952_v16  ;;  %4497 = vmatprep.subr.mxu1 %v4085_v59 }
 0x378   : > { %v1728_v38 = vsel %vm1680_vm1, %v11297_v49, %v10413_v4  ;;  %v9005_v29 = vadd.f32 %v8624_v50, %v1795_v9  ;;  %v10414_v9 = vrot.slane %v8996_v26, 1  ;;  %v11302_v50 = vld [vmem:[#allocation112_spill] sm:$0xff]  ;;  %v11305_v49 = vrot.slane %v8713_v3, 1  ;;  %4498 = vmatpush2.msra.mxu1 %v4084_v60  ;;  %4388 = vmatprep.subr.mxu0 %v3949_v19  ;;  %v3944_v16 = vld [vmem:[#allocation11 + $0x330] sm:$0xff] }
 0x379   : > { %11298 = vst [vmem:[#allocation93_spill] sm:$0xff] %v9002_v37  ;;  %v1802_v13 = vadd.f32 %v1728_v38, %v11299_v12  ;;  %v2025_v58 = vsel %vm1680_vm1, %v11300_v24, %v2024_v10  ;;  %v9014_v1 = vsel %vm1680_vm1, %v2024_v10, %v11301_v52  ;;  %v2756_v42 = vadd.f32 %v11302_v50, %v2292_v23  ;;  %v9030_v12 = vpop.permute.xlu1 %1561  ;;  %v9032_v23 = vpop.permute.xlu0 %3058  ;;  %v3945_v46 = vld [vmem:[#allocation11 + $0x338] sm:$0xff]  ;;  %v11307_v24 = vld [vmem:[#allocation55_spill] sm:$0xff] }
 0x37a   : > { %v9016_v48 = vadd.f32 %v2025_v58, %v1796_v15  ;;  %v2019_v10 = vsel %vm1680_vm1, %v11305_v49, %v2018_v27  ;;  %v11306_v15 = vrot.slane %v8889_v17, 1  ;;  %v11311_v49 = vld [vmem:[#allocation133_spill] sm:$0xff]  ;;  %4389 = vmatpush2.msra.mxu0 %v3948_v61  ;;  %4499 = vmatprep.subr.mxu1 %v4081_v39  ;;  %v4077_v60 = vld [vmem:[#allocation11 + $0x758] sm:$0xff]  ;;  %v4076_v20 = vld [vmem:[#allocation11 + $0x750] sm:$0xff]  ;;  %v11316_v61 = vrot.slane %v8407_v44, 1 }
 0x37b   : > { %v9022_v6 = vadd.f32 %v11303_v2, %v1802_v13  ;;  %v9035_v58 = vadd.f32 %v2019_v10, %v11307_v24  ;;  %v11308_v13 = vld [vmem:[#allocation35_spill] sm:$0xff]  ;;  %v10415_v2 = vrot.slane %v9002_v37, 1  ;;  %v3078_v10 = vsel %vm1567_vm2, %v11311_v49, %v8911_v21  ;;  %v11314_v24 = vld [vmem:[#allocation116_spill] sm:$0xff]  ;;  %4390 = vmatprep.subr.mxu0 %v3945_v46  ;;  %4500 = vmatpush2.msra.mxu1 %v4080_v54 }
 0x37c   : > { %v2027_v38 = vsel %vm1680_vm1, %v2018_v27, %v11306_v15  ;;  %v11310_v27 = vrot.slane %v8818_v14, 1  ;;  %v11312_v15 = vld [vmem:[#allocation228_spill] sm:$0xff]  ;;  %v9062_v4 = vmul.f32 %v8832_v53, %v3078_v10  ;;  %v11319_v10 = vrot.slane %v8767_v63, 7  ;;  %4391 = vmatpush2.msra.mxu0 %v3944_v16  ;;  %4501 = vmatprep.subr.mxu1 %v4077_v60 }
 0x37d   : > { %11304 = vst [vmem:[#allocation176_spill] sm:$0xff] %v9022_v6  ;;  %v9038_v52 = vadd.f32 %v2027_v38, %v11308_v13  ;;  %v11313_v38 = vrot.slane %v11312_v15, 7  ;;  %v11315_v13 = vrot.slane %v11314_v24, 7  ;;  %v3941_v19 = vld [vmem:[#allocation11 + $0x318] sm:$0xff]  ;;  %v3940_v24 = vld [vmem:[#allocation11 + $0x310] sm:$0xff]  ;;  %v3703_v39 = vsel %vm1680_vm1, %v11316_v61, %v10415_v2  ;;  %4502 = vmatpush2.msra.mxu1 %v4076_v20 }
 0x37e   : > { %v9046_v50 = vsel %vm1680_vm1, %v11310_v27, %v10414_v9  ;;  %v11318_v59 = vld [vmem:[#allocation256_spill] sm:$0xff]  ;;  %v9081_v54 = vadd.f32 %v3703_v39, %v2756_v42  ;;  %v10416_v3 = vrot.slane %v9062_v4, 7  ;;  %v11323_v61 = vrot.slane %v8433_v0, 1  ;;  %4392 = vmatprep.subr.mxu0 %v3941_v19  ;;  %v11325_v42 = vld [vmem:[#allocation145_spill] sm:$0xff]  ;;  %v1874_v0 = vpop.permute.xlu1 %1873  ;;  %v4072_v19 = vld [vmem:[#allocation11 + $0x730] sm:$0xff] }
 0x37f   : > { %11309 = vst [vmem:[#allocation106_spill] sm:$0xff] %v9038_v52  ;;  %v2205_v14 = vsel %vm1400_vm0, %v11315_v13, %v11313_v38  ;;  %v11317_v38 = vld [vmem:[#allocation123_spill] sm:$0xff]  ;;  %v9074_v9 = vadd.f32 %v11318_v59, %v8897_v25  ;;  %v4073_v59 = vld [vmem:[#allocation11 + $0x738] sm:$0xff]  ;;  %v3095_v39 = vsel %vm1567_vm2, %v8969_v30, %v11325_v42  ;;  %4393 = vmatpush2.msra.mxu0 %v3940_v24 }
 0x380   : > { %v2291_v49 = vsel %vm8826_vm6, %v2205_v14, 0.0  ;;  %v11320_v14 = vrot.slane %v8571_v5, 7  ;;  %11321 = vst [vmem:[#allocation67_spill] sm:$0xff] %v9081_v54  ;;  %v3937_v60 = vld [vmem:[#allocation11 + $0x2f8] sm:$0xff]  ;;  %4310 = vmatmul.mubr.f32.gmra.mxu1 %v9081_v54  ;;  %v3386_v20 = vsel %vm1877_vm3, %v11327_v62, %v8971_v34  ;;  %v9119_v24 = vmul.f32 %v11052_v35, %v3378_v36  ;;  %v11328_v42 = vld [vmem:[#allocation111_spill] sm:$0xff]  ;;  %4503 = vmatprep.subr.mxu1 %v4073_v59 }
 0x381   : > { %v2755_v13 = vadd.f32 %v11317_v38, %v2291_v49  ;;  %v11322_v49 = vrot.slane %v8709_v40, 1  ;;  %v10419_v5 = vrot.slane %v9074_v9, 1  ;;  %v11324_v38 = vld [vmem:[#allocation23_spill] sm:$0xff]  ;;  %4394 = vmatprep.subr.mxu0 %v3937_v60  ;;  %4504 = vmatpush2.msra.mxu1 %v4072_v19 }
 0x382   : > { %v2203_v46 = vsel %vm1400_vm0, %v11320_v14, %v11319_v10  ;;  %v9101_v10 = vpop.permute.xlu0 %1559  ;;  %v11326_v14 = vrot.slane %v8835_v22, 7  ;;  %v11329_v22 = vld [vmem:[#allocation175_spill] sm:$0xff]  ;;  %v10418_v62 = vrot.slane %v9119_v24, 7 }
 0x383   : > { %v2290_v44 = vsel %vm8826_vm6, %v2203_v46, 0.0  ;;  %v3699_v25 = vsel %vm1680_vm1, %v11323_v61, %v11322_v49  ;;  %v3936_v61 = vld [vmem:[#allocation11 + $0x2f0] sm:$0xff] }
 0x384   : > { %v2754_v16 = vadd.f32 %v11324_v38, %v2290_v44  ;;  %v3209_v46 = vsel %vm1400_vm0, %v11326_v14, %v10416_v3  ;;  %v9109_v44 = vld [vmem:[#allocation9 + $0x38] ss:$0 sm:$0xff]  ;;  %v11330_v14 = vrot.slane %v11329_v22, 1  ;;  %v11332_v3 = vld [vmem:[#allocation127_spill] sm:$0xff]  ;;  %4395 = vmatpush2.msra.mxu0 %v3936_v61 }
 0x385   : > { %v9112_v49 = vmul.f32 %v9109_v44, %v3095_v39  ;;  %v4069_v38 = vld [vmem:[#allocation11 + $0x718] sm:$0xff]  ;;  %v3291_v2 = vadd.f32 %v3209_v46, %v11328_v42  ;;  %v9130_v54 = vmul.f32 %v11332_v3, %v3386_v20  ;;  %v1574_v46 = vsel %vm1567_vm2, %v8830_v7, %v9030_v12  ;;  %v4068_v42 = vld [vmem:[#allocation11 + $0x710] sm:$0xff] }
 0x386   : > { %v3701_v27 = vsel %vm1680_vm1, %v11330_v14, %v10419_v5  ;;  %v9127_v39 = vadd.f32 %v3699_v25, %v2754_v16  ;;  %v11334_v25 = vld [vmem:[#allocation189_spill] sm:$0xff]  ;;  %v11335_v59 = vld [vmem:[#allocation227_spill] sm:$0xff]  ;;  %4505 = vmatprep.subr.mxu1 %v4069_v38  ;;  %v3933_v22 = vld [vmem:[#allocation11 + $0x2d8] sm:$0xff] }
 0x387   : > { %v9132_v34 = vadd.f32 %v3701_v27, %v2755_v13  ;;  %v9141_v16 = vadd.f32 %v11334_v25, %v3291_v2  ;;  %v10420_v20 = vrot.slane %v9130_v54, 7  ;;  %v1598_v27 = vsel %vm1567_vm2, %v9030_v12, %v11335_v59  ;;  %v4065_v7 = vld [vmem:[#allocation11 + $0x6f8] sm:$0xff]  ;;  %v3932_v14 = vld [vmem:[#allocation11 + $0x2d0] sm:$0xff]  ;;  %4506 = vmatpush2.msra.mxu1 %v4068_v42  ;;  %4396 = vmatprep.subr.mxu0 %v3933_v22 }
 0x388   : > { %11331 = vst [vmem:[#allocation180_spill] sm:$0xff] %v9127_v39  ;;  %v9149_v13 = vmul.f32 %v11001_v18, %v1574_v46  ;;  %v11336_v2 = vrot.slane %v8640_v32, 7  ;;  %v9160_v19 = vmul.f32 %v11008_v55, %v1598_v27  ;;  %v3070_v12 = vsel %vm1567_vm2, %v8911_v21, %v9032_v23  ;;  %v11337_v61 = vld [vmem:[#allocation188_spill] sm:$0xff]  ;;  %v4064_v46 = vld [vmem:[#allocation11 + $0x6f0] sm:$0xff]  ;;  %v11338_v32 = vld [vmem:[#allocation77_spill] sm:$0xff]  ;;  %4507 = vmatprep.subr.mxu1 %v4065_v7 }
 0x389   : > { %11333 = vst [vmem:[#allocation118_spill] sm:$0xff] %v9132_v34  ;;  %4196 = vmatprep.mubr.f32.mxu0 %v9132_v34  ;;  %v3094_v38 = vsel %vm1567_vm2, %v9032_v23, %v11337_v61  ;;  %v11339_v25 = vrot.slane %v11338_v32, 7  ;;  %v9183_v23 = vpop.permute.xlu1 %3046  ;;  %v9185_v61 = vpop.permute.xlu0 %3044  ;;  %v3929_v5 = vld [vmem:[#allocation11 + $0x2b8] sm:$0xff]  ;;  %v1884_v32 = vsel %vm1877_vm3, %v8894_v41, %v1874_v0  ;;  %v3928_v27 = vld [vmem:[#allocation11 + $0x2b0] sm:$0xff]  ;;  %4397 = vmatpush2.msra.mxu0 %v3932_v14 }
 0x38a   : > { %v9157_v60 = vsel %vm1400_vm0, %v11336_v2, %v10418_v62  ;;  %4197 = vmatmul.mubr.f32.gmra.mxu0 %v9127_v39  ;;  %v9177_v2 = vld [vmem:[#allocation9 + $0x30] ss:$0 sm:$0xff]  ;;  %v3133_v62 = vmul.f32 %v9109_v44, %v3094_v38  ;;  %v4061_v42 = vld [vmem:[#allocation11 + $0x6d8] sm:$0xff]  ;;  %v9203_v41 = vmul.f32 %v11021_v33, %v1884_v32  ;;  %4508 = vmatpush2.msra.mxu1 %v4064_v46  ;;  %v11344_v32 = vrot.slane %v8838_v28, 7  ;;  %v11349_v33 = vld [vmem:[#allocation169_spill] sm:$0xff] }
 0x38b   : > { %v3519_v59 = vsel %vm1400_vm0, %v11339_v25, %v10420_v20  ;;  %v9180_v21 = vmul.f32 %v9177_v2, %v3070_v12  ;;  %v11340_v25 = vld [vmem:[#allocation235_spill] sm:$0xff]  ;;  %v11341_v12 = vld [vmem:[#allocation230_spill] sm:$0xff]  ;;  %4398 = vmatprep.subr.mxu0 %v3929_v5  ;;  %v4057_v46 = vld [vmem:[#allocation11 + $0x6b8] sm:$0xff]  ;;  %4509 = vmatprep.subr.mxu1 %v4061_v42 }
 0x38c   : > { %v1908_v20 = vsel %vm1877_vm3, %v1874_v0, %v11340_v25  ;;  %v1573_v38 = vsel %vm1567_vm2, %v11341_v12, %v9101_v10  ;;  %v3212_v36 = vrot.slane %v3133_v62, 7  ;;  %v3925_v0 = vld [vmem:[#allocation11 + $0x298] sm:$0xff]  ;;  %v4060_v25 = vld [vmem:[#allocation11 + $0x6d0] sm:$0xff]  ;;  %v11343_v12 = vld [vmem:[#allocation174_spill] sm:$0xff]  ;;  %4399 = vmatpush2.msra.mxu0 %v3928_v27 }
 0x38d   : > { %v3210_v11 = vrot.slane %v9180_v21, 7  ;;  %v9200_v39 = vmul.f32 %v11019_v57, %v1908_v20  ;;  %v11342_v34 = vld [vmem:[#allocation99_spill] sm:$0xff]  ;;  %v1638_v7 = vmul.f32 %v11001_v18, %v1573_v38  ;;  %v3080_v62 = vsel %vm1567_vm2, %v11343_v12, %v9183_v23  ;;  %v11348_v5 = vld [vmem:[#allocation168_spill] sm:$0xff]  ;;  %v11350_v28 = vld [vmem:[#allocation193_spill] sm:$0xff]  ;;  %4400 = vmatprep.subr.mxu0 %v3925_v0  ;;  %4510 = vmatpush2.msra.mxu1 %v4060_v25 }
 0x38e   : > { %v1597_v22 = vsel %vm1567_vm2, %v9101_v10, %v11342_v34  ;;  %v3071_v20 = vsel %vm1567_vm2, %v9185_v61, %v8969_v30  ;;  %v3924_v14 = vld [vmem:[#allocation11 + $0x290] sm:$0xff]  ;;  %v11345_v34 = vld [vmem:[#allocation208_spill] sm:$0xff]  ;;  %v11347_v12 = vrot.slane %v9112_v49, 7  ;;  %4511 = vmatprep.subr.mxu1 %v4057_v46 }
 0x38f   : > { %v3211_v10 = vsel %vm1400_vm0, %v11344_v32, %v3210_v11  ;;  %v11346_v38 = vrot.slane %v11345_v34, 7  ;;  %v10433_v52 = vrot.slane %v9200_v39, 1  ;;  %v3921_v30 = vld [vmem:[#allocation11 + $0x278] sm:$0xff]  ;;  %v10434_v32 = vrot.slane %v9203_v41, 1  ;;  %v4056_v34 = vld [vmem:[#allocation11 + $0x6b0] sm:$0xff]  ;;  %4401 = vmatpush2.msra.mxu0 %v3924_v14 }
 0x390   : > { %v3221_v6 = vsel %vm1400_vm0, %v3212_v36, %v11347_v12  ;;  %v3292_v57 = vadd.f32 %v3211_v10, %v11348_v5  ;;  %v1639_v42 = vmul.f32 %v11008_v55, %v1597_v22  ;;  %v1721_v10 = vrot.slane %v1638_v7, 1  ;;  %v11353_v22 = vld [vmem:[#allocation34_spill] sm:$0xff]  ;;  %4402 = vmatprep.subr.mxu0 %v3921_v30  ;;  %v9265_v5 = vpop.permute.xlu1 %1859  ;;  %4512 = vmatpush2.msra.mxu1 %v4056_v34  ;;  %v11371_v21 = vld [vmem:[#allocation200_spill] sm:$0xff] }
 0x391   : > { %v3213_v18 = vsel %vm1400_vm0, %v11346_v38, %v3212_v36  ;;  %v9233_v37 = vadd.f32 %v3221_v6, %v11350_v28  ;;  %v3920_v38 = vld [vmem:[#allocation11 + $0x270] sm:$0xff]  ;;  %v11351_v36 = vrot.slane %v8889_v17, 1  ;;  %v3917_v6 = vld [vmem:[#allocation11 + $0x258] sm:$0xff]  ;;  %v11352_v17 = vrot.slane %v8892_v51, 1  ;;  %v11356_v30 = vld [vmem:[#allocation166_spill] sm:$0xff]  ;;  %v9292_v28 = vpop.permute.xlu0 %3352 }
 0x392   : > { %v3293_v43 = vadd.f32 %v3213_v18, %v11349_v33  ;;  %v9243_v18 = vmul.f32 %v8832_v53, %v3080_v62  ;;  %v4053_v33 = vld [vmem:[#allocation11 + $0x698] sm:$0xff]  ;;  %v9245_v0 = vadd.f32 %v3519_v59, %v3292_v57  ;;  %v4052_v62 = vld [vmem:[#allocation11 + $0x690] sm:$0xff]  ;;  %v11354_v14 = vrot.slane %v8923_v8, 1  ;;  %4403 = vmatpush2.msra.mxu0 %v3920_v38 }
 0x393   : > { %v2035_v27 = vsel %vm1680_vm1, %v11351_v36, %v10433_v52  ;;  %v2041_v12 = vsel %vm1680_vm1, %v11352_v17, %v10434_v32  ;;  %v1723_v57 = vrot.slane %v1639_v42, 1  ;;  %v11355_v59 = vrot.slane %v9149_v13, 1  ;;  %v3916_v51 = vld [vmem:[#allocation11 + $0x250] sm:$0xff]  ;;  %v11358_v17 = vld [vmem:[#allocation156_spill] sm:$0xff]  ;;  %4513 = vmatprep.subr.mxu1 %v4053_v33  ;;  %4404 = vmatprep.subr.mxu0 %v3917_v6  ;;  %v11361_v33 = vld [vmem:[#allocation170_spill] sm:$0xff] }
 0x394   : > { %v9248_v25 = vadd.f32 %v9157_v60, %v3293_v43  ;;  %v9256_v7 = vadd.f32 %v2035_v27, %v11353_v22  ;;  %v1722_v46 = vsel %vm1680_vm1, %v11354_v14, %v1721_v10  ;;  %v10436_v60 = vrot.slane %v9243_v18, 7  ;;  %v11357_v27 = vld [vmem:[#allocation190_spill] sm:$0xff]  ;;  %v3913_v22 = vld [vmem:[#allocation11 + $0x238] sm:$0xff]  ;;  %4514 = vmatpush2.msra.mxu1 %v4052_v62  ;;  %4405 = vmatpush2.msra.mxu0 %v3916_v51 }
 0x395   : > { %v1730_v43 = vsel %vm1680_vm1, %v1721_v10, %v11355_v59  ;;  %v1799_v36 = vadd.f32 %v1722_v46, %v11356_v30  ;;  %v3079_v42 = vsel %vm1567_vm2, %v11358_v17, %v9185_v61  ;;  %v4049_v10 = vld [vmem:[#allocation11 + $0x678] sm:$0xff]  ;;  %v11359_v14 = vrot.slane %v8926_v47, 1  ;;  %v4048_v30 = vld [vmem:[#allocation11 + $0x670] sm:$0xff]  ;;  %v11365_v32 = vld [vmem:[#allocation198_spill] sm:$0xff]  ;;  %4406 = vmatprep.subr.mxu0 %v3913_v22  ;;  %v9319_v22 = vpop.permute.xlu1 %3356 }
 0x396   : > { %v1803_v8 = vadd.f32 %v1730_v43, %v11357_v27  ;;  %v11360_v38 = vrot.slane %v9160_v19, 1  ;;  %v3135_v46 = vmul.f32 %v8832_v53, %v3079_v42  ;;  %v9282_v43 = vmul.f32 %v9177_v2, %v3071_v20  ;;  %v3912_v61 = vld [vmem:[#allocation11 + $0x230] sm:$0xff]  ;;  %v11362_v27 = vld [vmem:[#allocation194_spill] sm:$0xff]  ;;  %v3909_v42 = vld [vmem:[#allocation11 + $0x218] sm:$0xff]  ;;  %4515 = vmatprep.subr.mxu1 %v4049_v10 }
 0x397   : > { %v1724_v34 = vsel %vm1680_vm1, %v11359_v14, %v1723_v57  ;;  %v9287_v47 = vadd.f32 %v8872_v56, %v1799_v36  ;;  %v3908_v36 = vld [vmem:[#allocation11 + $0x210] sm:$0xff]  ;;  %4516 = vmatpush2.msra.mxu1 %v4048_v30  ;;  %4407 = vmatpush2.msra.mxu0 %v3912_v61 }
 0x398   : > { %v1732_v59 = vsel %vm1680_vm1, %v1723_v57, %v11360_v38  ;;  %v1800_v6 = vadd.f32 %v1724_v34, %v11361_v33  ;;  %v9290_v14 = vadd.f32 %v9046_v50, %v1803_v8  ;;  %v4045_v57 = vld [vmem:[#allocation11 + $0x658] sm:$0xff]  ;;  %v3216_v20 = vrot.slane %v3135_v46, 7  ;;  %v11364_v38 = vld [vmem:[#allocation17_spill] sm:$0xff]  ;;  %v4044_v50 = vld [vmem:[#allocation11 + $0x650] sm:$0xff]  ;;  %4408 = vmatprep.subr.mxu0 %v3909_v42 }
 0x399   : > { %v1804_v17 = vadd.f32 %v1732_v59, %v11362_v27  ;;  %v10440_v62 = vrot.slane %v9282_v43, 7  ;;  %v1175_v52 = vadd.s32 24, %v11364_v38  ;;  %v11366_v34 = vrot.slane %v11365_v32, 7  ;;  %v4041_v27 = vld [vmem:[#allocation11 + $0x638] sm:$0xff]  ;;  %4517 = vmatprep.subr.mxu1 %v4045_v57  ;;  %v4040_v30 = vld [vmem:[#allocation11 + $0x630] sm:$0xff]  ;;  %4409 = vmatpush2.msra.mxu0 %v3908_v36 }
 0x39a   : > { %11363 = vst [vmem:[#allocation69_spill] sm:$0xff] %v9290_v14  ;;  %v11367_v59 = vrot.slane %v11312_v15, 7  ;;  %v9302_v8 = vadd.f32 %v9014_v1, %v1800_v6  ;;  %v11369_v15 = vrot.slane %v9062_v4, 7  ;;  %v11370_v6 = vld [vmem:[#allocation115_spill] sm:$0xff]  ;;  %4518 = vmatpush2.msra.mxu1 %v4044_v50  ;;  %v10437_v42 = vrot.slane %v9141_v16, 1 }
 0x39b   : > { %v9304_v51 = vadd.f32 %v2041_v12, %v1804_v17  ;;  %v3219_v1 = vsel %vm1400_vm0, %v3210_v11, %v10440_v62  ;;  %v3225_v12 = vsel %vm1400_vm0, %v3216_v20, %v10436_v60  ;;  %v1205_v10 = vand.u32 15, %v1175_v52  ;;  %v4037_v11 = vld [vmem:[#allocation11 + $0x618] sm:$0xff]  ;;  %v11373_v52 = vld [vmem:[#allocation146_spill] sm:$0xff]  ;;  %4519 = vmatprep.subr.mxu1 %v4041_v27  ;;  %v4036_v61 = vld [vmem:[#allocation11 + $0x610] sm:$0xff] }
 0x39c   : > { %v2213_v56 = vsel %vm1400_vm0, %v11367_v59, %v11366_v34  ;;  %v3217_v34 = vsel %vm1400_vm0, %v11369_v15, %v3216_v20  ;;  %v3296_v59 = vadd.f32 %v3219_v1, %v11371_v21  ;;  %v11372_v15 = vld [vmem:[#allocation117_spill] sm:$0xff]  ;;  %v11377_v50 = vrot.slane %v9035_v58, 7  ;;  %v11382_v27 = vld [vmem:[#allocation162_spill] sm:$0xff]  ;;  %4520 = vmatpush2.msra.mxu1 %v4040_v30 }
 0x39d   : > { %11368 = vst [vmem:[#allocation76_spill] sm:$0xff] %v9304_v51  ;;  %v9324_v17 = vadd.f32 %v3217_v34, %v11370_v6  ;;  %v3299_v20 = vadd.f32 %v3225_v12, %v11372_v15  ;;  %v2759_v33 = vadd.f32 %v11373_v52, %v2213_v56  ;;  %vm9329_vm7 = vcmp.le.s32.totalorder %v1205_v10, 14  ;;  %v11376_v34 = vld [vmem:[#allocation107_spill] sm:$0xff]  ;;  %v11379_v56 = vld [vmem:[#allocation49_spill] sm:$0xff]  ;;  %v3369_v52 = vpop.permute.xlu0 %3368  ;;  %4521 = vmatprep.subr.mxu1 %v4037_v11  ;;  %v11397_v60 = vld [vmem:[#allocation182_spill] sm:$0xff] }
 0x39e   : > { %v1893_v1 = vsel %vm1877_vm3, %v11376_v34, %v9265_v5  ;;  %v11378_v36 = vrot.slane %v8767_v63, 7  ;;  %v11380_v10 = vrot.slane %v11379_v56, 1  ;;  %v11381_v6 = vrot.slane %v8709_v40, 1  ;;  %v11383_v34 = vld [vmem:[#allocation71_spill] sm:$0xff]  ;;  %4522 = vmatpush2.msra.mxu1 %v4036_v61  ;;  %v11409_v62 = vld [vmem:[#allocation205_spill] sm:$0xff] }
 0x39f   : > { %v3387_v15 = vsel %vm1877_vm3, %v11382_v27, %v9292_v28  ;;  %v9353_v46 = vadd.f32 %v11383_v34, %v3299_v20  ;;  %v11384_v63 = vrot.slane %v9074_v9, 1  ;;  %v9361_v40 = vmul.f32 %v10995_v45, %v1893_v1  ;;  %v11386_v27 = vld [vmem:[#allocation231_spill] sm:$0xff]  ;;  %v3063_v34 = vpop.permute.xlu1 %3062 }
 0x3a0   : > { %v2211_v12 = vsel %vm1400_vm0, %v11378_v36, %v11377_v50  ;;  %v3707_v21 = vsel %vm1680_vm1, %v11381_v6, %v11380_v10  ;;  %v11385_v36 = vld [vmem:[#allocation178_spill] sm:$0xff]  ;;  %v9369_v20 = vmul.f32 %v11332_v3, %v3387_v15  ;;  %v3389_v9 = vsel %vm1877_vm3, %v11386_v27, %v9319_v22 }
 0x3a1   : > { %v3709_v50 = vsel %vm1680_vm1, %v11384_v63, %v10437_v42  ;;  %v2758_v10 = vadd.f32 %v11385_v36, %v2211_v12  ;;  %v3790_v30 = vsel %vm9329_vm7, %v3707_v21, 0.0  ;;  %v10435_v1 = vrot.slane %v9361_v40, 1  ;;  %v11389_v63 = vld [vmem:[#allocation220_spill] sm:$0xff]  ;;  %v11394_v27 = vld [vmem:[#allocation254_spill] sm:$0xff] }
 0x3a2   : > { %v3791_v6 = vsel %vm9329_vm7, %v3709_v50, 0.0  ;;  %v9381_v12 = vmul.f32 %v11332_v3, %v3389_v9  ;;  %v10439_v21 = vrot.slane %v9369_v20, 7  ;;  %v3379_v15 = vsel %vm1877_vm3, %v9292_v28, %v3369_v52  ;;  %v11391_v50 = vld [vmem:[#allocation253_spill] sm:$0xff] }
 0x3a3   : > { %v9375_v45 = vadd.f32 %v3791_v6, %v2759_v33  ;;  %v9378_v11 = vadd.f32 %v3790_v30, %v2758_v10  ;;  %v3403_v61 = vsel %vm1877_vm3, %v3369_v52, %v11389_v63  ;;  %v11390_v33 = vrot.slane %v9016_v48, 7 }
 0x3a4   : > { %v11392_v36 = vrot.slane %v11391_v50, 7  ;;  %v11393_v6 = vrot.slane %v8996_v26, 1  ;;  %v3442_v9 = vmul.f32 %v11394_v27, %v3403_v61  ;;  %v9406_v52 = vmul.f32 %v11052_v35, %v3379_v15  ;;  %v11396_v50 = vld [vmem:[#allocation240_spill] sm:$0xff]  ;;  %v9419_v61 = vpop.permute.xlu0 %1547 }
 0x3a5   : > { %11387 = vst [vmem:[#allocation132_spill] sm:$0xff] %v9375_v45  ;;  %11388 = vst [vmem:[#allocation105_spill] sm:$0xff] %v9378_v11  ;;  %4202 = vmatprep.mubr.f32.mxu0 %v9375_v45  ;;  %v11395_v63 = vrot.slane %v9130_v54, 7  ;;  %v3096_v54 = vsel %vm1567_vm2, %v3063_v34, %v11397_v60  ;;  %v11408_v60 = vld [vmem:[#allocation40_spill] sm:$0xff] }
 0x3a6   : > { %v2217_v10 = vsel %vm1400_vm0, %v11392_v36, %v11390_v33  ;;  %v9401_v30 = vsel %vm1680_vm1, %v11393_v6, %v10435_v1  ;;  %4203 = vmatmul.mubr.f32.gmra.mxu0 %v9378_v11  ;;  %v10438_v36 = vrot.slane %v9248_v25, 1  ;;  %v3072_v6 = vsel %vm1567_vm2, %v9183_v23, %v3063_v34  ;;  %v11403_v34 = vld [vmem:[#allocation255_spill] sm:$0xff] }
 0x3a7   : > { %v3527_v33 = vsel %vm1400_vm0, %v11395_v63, %v10439_v21  ;;  %v2761_v26 = vadd.f32 %v11396_v50, %v2217_v10  ;;  %v3522_v1 = vrot.slane %v3442_v9, 7  ;;  %v3528_v4 = vrot.slane %v9406_v52, 7  ;;  %v11398_v10 = vld [vmem:[#allocation131_spill] sm:$0xff]  ;;  %v11401_v9 = vld [vmem:[#allocation45_spill] sm:$0xff] }
 0x3a8   : > { %v9421_v15 = vadd.f32 %v3527_v33, %v3296_v59  ;;  %v11399_v63 = vrot.slane %v11398_v10, 1  ;;  %v9433_v42 = vmul.f32 %v9177_v2, %v3072_v6  ;;  %v9436_v23 = vmul.f32 %v9109_v44, %v3096_v54 }
 0x3a9   : > { %v11400_v59 = vrot.slane %v9005_v29, 7  ;;  %v11402_v52 = vrot.slane %v11401_v9, 7  ;;  %v11404_v28 = vrot.slane %v11403_v34, 7  ;;  %v3371_v34 = vpop.permute.xlu1 %3370 }
 0x3aa   : > { %v3713_v50 = vsel %vm1680_vm1, %v11399_v63, %v10438_v36  ;;  %v11405_v63 = vrot.slane %v9119_v24, 7  ;;  %v11406_v36 = vld [vmem:[#allocation21_spill] sm:$0xff] }
 0x3ab   : > { %v2215_v33 = vsel %vm1400_vm0, %v11402_v52, %v11400_v59  ;;  %v3523_v10 = vsel %vm1400_vm0, %v11404_v28, %v3522_v1  ;;  %v3793_v54 = vsel %vm9329_vm7, %v3713_v50, 0.0  ;;  %v10444_v52 = vrot.slane %v9433_v42, 7  ;;  %v11413_v50 = vld [vmem:[#allocation218_spill] sm:$0xff] }
 0x3ac   : > { %v3529_v6 = vsel %vm1400_vm0, %v11405_v63, %v3528_v4  ;;  %v9453_v21 = vadd.f32 %v3523_v10, %v11406_v36  ;;  %v9458_v59 = vadd.f32 %v3793_v54, %v2761_v26  ;;  %v10445_v28 = vrot.slane %v9436_v23, 7 }
 0x3ad   : > { %v9456_v9 = vadd.f32 %v3529_v6, %v9233_v37  ;;  %v2760_v24 = vadd.f32 %v11408_v60, %v2215_v33  ;;  %v1583_v36 = vsel %vm1567_vm2, %v11409_v62, %v9419_v61  ;;  %v11410_v26 = vrot.slane %v9282_v43, 7  ;;  %v11411_v33 = vld [vmem:[#allocation238_spill] sm:$0xff]  ;;  %v3355_v6 = vpop.permute.xlu0 %3354  ;;  %v1876_v14 = vpop.permute.xlu1 %1875 }
 0x3ae   : > { %11407 = vst [vmem:[#allocation103_spill] sm:$0xff] %v9458_v59  ;;  %4315 = vmatprep.mubr.f32.mxu1 %v9458_v59  ;;  %v1645_v60 = vmul.f32 %v11411_v33, %v1583_v36  ;;  %v11412_v54 = vrot.slane %v9112_v49, 7  ;;  %v11414_v37 = vrot.slane %v9245_v0, 1  ;;  %v11415_v59 = vld [vmem:[#allocation93_spill] sm:$0xff]  ;;  %v11417_v43 = vld [vmem:[#allocation246_spill] sm:$0xff]  ;;  %v11418_v36 = vld [vmem:[#allocation216_spill] sm:$0xff] }
 0x3af   : > { %v3227_v10 = vsel %vm1400_vm0, %v11410_v26, %v10444_v52  ;;  %v11416_v11 = vrot.slane %v11415_v59, 1  ;;  %v3404_v26 = vsel %vm1877_vm3, %v3371_v34, %v11417_v43  ;;  %v3380_v59 = vsel %vm1877_vm3, %v3355_v6, %v3371_v34  ;;  %v11421_v43 = vld [vmem:[#allocation91_spill] sm:$0xff] }
 0x3b0   : > { %v3229_v62 = vsel %vm1400_vm0, %v11412_v54, %v10445_v28  ;;  %v3300_v63 = vadd.f32 %v3227_v10, %v11413_v50  ;;  %v1735_v49 = vrot.slane %v1645_v60, 1  ;;  %v9495_v54 = vmul.f32 %v11394_v27, %v3404_v26  ;;  %v11420_v10 = vld [vmem:[#allocation214_spill] sm:$0xff] }
 0x3b1   : > { %v3711_v45 = vsel %vm1680_vm1, %v11416_v11, %v11414_v37  ;;  %v3301_v33 = vadd.f32 %v3229_v62, %v11418_v36  ;;  %v3388_v11 = vsel %vm1877_vm3, %v11420_v10, %v3355_v6  ;;  %v1176_v37 = vadd.s32 32, %v11364_v38  ;;  %v11425_v10 = vld [vmem:[#allocation60_spill] sm:$0xff] }
 0x3b2   : > { %v3792_v52 = vsel %vm9329_vm7, %v3711_v45, 0.0  ;;  %v11422_v62 = vrot.slane %v11421_v43, 1  ;;  %v11423_v45 = vld [vmem:[#allocation139_spill] sm:$0xff]  ;;  %v9514_v36 = vmul.f32 %v11052_v35, %v3380_v59  ;;  %v11426_v28 = vrot.slane %v11425_v10, 7  ;;  %v11432_v59 = vld [vmem:[#allocation213_spill] sm:$0xff] }
 0x3b3   : > { %v9497_v50 = vadd.f32 %v3792_v52, %v2760_v24  ;;  %v1810_v60 = vadd.f32 %v1735_v49, %v11423_v45  ;;  %v3448_v52 = vmul.f32 %v11332_v3, %v3388_v11  ;;  %v11424_v24 = vld [vmem:[#allocation121_spill] sm:$0xff]  ;;  %v1212_v6 = vand.u32 15, %v1176_v37  ;;  %v11433_v37 = vld [vmem:[#allocation195_spill] sm:$0xff] }
 0x3b4   : > { %v1736_v57 = vsel %vm1680_vm1, %v11422_v62, %v1735_v49  ;;  %v11427_v43 = vrot.slane %v11365_v32, 7  ;;  %v11428_v49 = vld [vmem:[#allocation202_spill] sm:$0xff]  ;;  %v11431_v3 = vrot.slane %v9495_v54, 7  ;;  %v11435_v32 = vld [vmem:[#allocation29_spill] sm:$0xff] }
 0x3b5   : > { %11419 = vst [vmem:[#allocation221_spill] sm:$0xff] %v9497_v50  ;;  %4316 = vmatmul.mubr.f32.gmra.mxu1 %v9497_v50  ;;  %v1806_v34 = vadd.f32 %v1736_v57, %v11424_v24  ;;  %v11429_v45 = vrot.slane %v11428_v49, 1  ;;  %v3534_v57 = vrot.slane %v3448_v52, 7  ;;  %v9530_v24 = vadd.f32 %v11432_v59, %v9324_v17 }
 0x3b6   : > { %v2221_v62 = vsel %vm1400_vm0, %v11427_v43, %v11426_v28  ;;  %v3531_v11 = vsel %vm1400_vm0, %v3522_v1, %v11431_v3  ;;  %v10451_v28 = vrot.slane %v9514_v36, 7  ;;  %vm9539_vm8 = vcmp.ge.s32.totalorder %v1212_v6, 1 }
 0x3b7   : > { %v9523_v26 = vadd.f32 %v11429_v45, %v1810_v60  ;;  %v9533_v50 = vadd.f32 %v11433_v37, %v1806_v34  ;;  %v9536_v51 = vadd.f32 %v3531_v11, %v11435_v32  ;;  %v11438_v1 = vrot.slane %v9369_v20, 7  ;;  %v3049_v20 = vpop.permute.xlu0 %3048  ;;  %v11441_v37 = vld [vmem:[#allocation147_spill] sm:$0xff]  ;;  %v3065_v45 = vpop.permute.xlu1 %3064 }
 0x3b8   : > { %v11439_v17 = vrot.slane %v9381_v12, 7  ;;  %v2299_v49 = vsel %vm9539_vm8, %v2221_v62, 0.0  ;;  %v3537_v3 = vsel %vm1400_vm0, %v3528_v4, %v10451_v28  ;;  %v1885_v62 = vsel %vm1877_vm3, %v9265_v5, %v1876_v14  ;;  %v11443_v4 = vld [vmem:[#allocation245_spill] sm:$0xff]  ;;  %v11447_v28 = vld [vmem:[#allocation223_spill] sm:$0xff] }
 0x3b9   : > { %11430 = vst [vmem:[#allocation73_spill] sm:$0xff] %v9523_v26  ;;  %11434 = vst [vmem:[#allocation249_spill] sm:$0xff] %v9533_v50  ;;  %v3535_v52 = vsel %vm1400_vm0, %v11438_v1, %v3534_v57  ;;  %v9561_v59 = vadd.f32 %v3537_v3, %v3301_v33  ;;  %v2763_v32 = vadd.f32 %v11441_v37, %v2299_v49  ;;  %v11444_v33 = vld [vmem:[#allocation92_spill] sm:$0xff]  ;;  %v11445_v37 = vrot.slane %v9141_v16, 1  ;;  %v11449_v16 = vld [vmem:[#allocation143_spill] sm:$0xff] }
 0x3ba   : > { %v9550_v34 = vsel %vm1400_vm0, %v3534_v57, %v11439_v17  ;;  %v9559_v11 = vadd.f32 %v3535_v52, %v3300_v63  ;;  %v3716_v57 = vrot.slane %v9530_v24, 1  ;;  %v11442_v17 = vld [vmem:[#allocation191_spill] sm:$0xff]  ;;  %v9573_v63 = vmul.f32 %v11443_v4, %v1885_v62  ;;  %v11446_v1 = vld [vmem:[#allocation244_spill] sm:$0xff]  ;;  %v11487_v24 = vld [vmem:[#allocation241_spill] sm:$0xff] }
 0x3bb   : > { %11440 = vst [vmem:[#allocation109_spill] sm:$0xff] %v9550_v34  ;;  %v1909_v43 = vsel %vm1877_vm3, %v1876_v14, %v11442_v17  ;;  %v4945_v52 = vld [vmem:[#allocation2 + $0x138] sm:$0x1]  ;;  %v3081_v14 = vsel %vm1567_vm2, %v11447_v28, %v3049_v20  ;;  %v4947_v26 = vld [vmem:[#allocation2 + $0xe0] sm:$0x1]  ;;  %v11537_v31 = vrot.slane %v9536_v51, 1 }
 0x3bc   : > { %v2863_v3 = vmul.f32 %v4945_v52, %v11444_v33  ;;  %v3717_v5 = vsel %vm1680_vm1, %v11445_v37, %v3716_v57  ;;  %v1954_v6 = vmul.f32 %v11446_v1, %v1909_v43  ;;  %v2048_v17 = vrot.slane %v9573_v63, 1  ;;  %v4946_v52 = vld [vmem:[#allocation2 + $0xd8] sm:$0x1]  ;;  %v11448_v33 = vld [vmem:[#allocation142_spill] sm:$0xff] }
 0x3bd   : > { %v9586_v62 = vadd.f32 %v3717_v5, %v2763_v32  ;;  %v3143_v4 = vmul.f32 %v8832_v53, %v3081_v14  ;;  %v2864_v49 = vmul.f32 %v4946_v52, %v11448_v33  ;;  %v2865_v50 = vmul.f32 %v4947_v26, %v11449_v16  ;;  %v11450_v1 = vld [vmem:[#allocation199_spill] sm:$0xff]  ;;  %v11453_v14 = vld [vmem:[#allocation36_spill] sm:$0xff]  ;;  %v11454_v52 = vld [vmem:[#allocation106_spill] sm:$0xff] }
 0x3be   : > { %v2042_v34 = vrot.slane %v1954_v6, 1  ;;  %v3073_v43 = vsel %vm1567_vm2, %v3049_v20, %v3065_v45  ;;  %v3097_v28 = vsel %vm1567_vm2, %v3065_v45, %v11450_v1  ;;  %v11451_v53 = vrot.slane %v9203_v41, 1 }
 0x3bf   : > { %4208 = vmatprep.mubr.f32.mxu0 %v9586_v62  ;;  %v3232_v6 = vrot.slane %v3143_v4, 7  ;;  %v3144_v37 = vmul.f32 %v9177_v2, %v3073_v43  ;;  %v3145_v26 = vmul.f32 %v9109_v44, %v3097_v28  ;;  %v11452_v20 = vrot.slane %v9200_v39, 1  ;;  %v11459_v44 = vld [vmem:[#allocation33_spill] sm:$0xff] }
 0x3c0   : > { %v9603_v32 = vsel %vm1680_vm1, %v11451_v53, %v2048_v17  ;;  %v9611_v45 = vadd.f32 %v2042_v34, %v11453_v14  ;;  %v11455_v33 = vrot.slane %v11454_v52, 7  ;;  %v11456_v16 = vrot.slane %v9035_v58, 7  ;;  %v11461_v58 = vld [vmem:[#allocation126_spill] sm:$0xff] }
 0x3c1   : > { %v2043_v5 = vsel %vm1680_vm1, %v11452_v20, %v2042_v34  ;;  %v11457_v1 = vrot.slane %v9453_v21, 1  ;;  %v11458_v4 = vrot.slane %v11379_v56, 1  ;;  %v11460_v39 = vrot.slane %v9243_v18, 7  ;;  %v1564_v20 = vpop.permute.xlu0 %1563 }
 0x3c2   : > { %v2219_v41 = vsel %vm1400_vm0, %v11456_v16, %v11455_v33  ;;  %v9624_v43 = vadd.f32 %v2043_v5, %v11459_v44  ;;  %v3307_v28 = vadd.f32 %v3232_v6, %v2863_v3  ;;  %v3234_v53 = vrot.slane %v3144_v37, 7 }
 0x3c3   : > { %v3715_v2 = vsel %vm1680_vm1, %v11458_v4, %v11457_v1  ;;  %v3233_v34 = vsel %vm1400_vm0, %v11460_v39, %v3232_v6  ;;  %v3236_v33 = vrot.slane %v3145_v26, 7  ;;  %v2298_v56 = vsel %vm9539_vm8, %v2219_v41, 0.0  ;;  %v11462_v1 = vld [vmem:[#allocation24_spill] sm:$0xff]  ;;  %v11466_v39 = vld [vmem:[#allocation247_spill] sm:$0xff] }
 0x3c4   : > { %v9631_v14 = vadd.f32 %v3233_v34, %v11461_v58  ;;  %v2234_v16 = vrot.slane %v9624_v43, 7  ;;  %v11463_v5 = vrot.slane %v11462_v1, 7  ;;  %v11464_v18 = vrot.slane %v9433_v42, 7  ;;  %v11467_v41 = vld [vmem:[#allocation203_spill] sm:$0xff]  ;;  %v11468_v1 = vld [vmem:[#allocation248_spill] sm:$0xff] }
 0x3c5   : > { %v3308_v6 = vadd.f32 %v3234_v53, %v2864_v49  ;;  %v11465_v37 = vrot.slane %v9436_v23, 7  ;;  %v9649_v34 = vadd.f32 %v3236_v33, %v2865_v50  ;;  %v2762_v58 = vadd.f32 %v11467_v41, %v2298_v56  ;;  %v11475_v41 = vld [vmem:[#allocation176_spill] sm:$0xff] }
 0x3c6   : > { %v9638_v4 = vadd.f32 %v11463_v5, %v3307_v28  ;;  %v3235_v3 = vsel %vm1400_vm0, %v11464_v18, %v3234_v53  ;;  %v11469_v42 = vrot.slane %v9381_v12, 7  ;;  %v11470_v23 = vrot.slane %v9302_v8, 7 }
 0x3c7   : > { %v3237_v44 = vsel %vm1400_vm0, %v11465_v37, %v3236_v33  ;;  %v9647_v26 = vadd.f32 %v3235_v3, %v11466_v39  ;;  %v11471_v49 = vrot.slane %v9016_v48, 7  ;;  %v9663_v3 = vadd.f32 %v3715_v2, %v2762_v58  ;;  %v11474_v39 = vld [vmem:[#allocation66_spill] sm:$0xff] }
 0x3c8   : > { %v3740_v28 = vrot.slane %v9638_v4, 1  ;;  %v3305_v5 = vadd.f32 %v3237_v44, %v11468_v1  ;;  %v9656_v18 = vadd.f32 %v11469_v42, %v3308_v6  ;;  %v11472_v33 = vrot.slane %v9456_v9, 1  ;;  %v3373_v6 = vpop.permute.xlu1 %3372 }
 0x3c9   : > { %v2225_v53 = vsel %vm1400_vm0, %v11471_v49, %v11470_v23  ;;  %v11473_v56 = vrot.slane %v9248_v25, 1  ;;  %v1177_v12 = vadd.s32 40, %v11364_v38  ;;  %v11476_v1 = vrot.slane %v11475_v41, 7  ;;  %4209 = vmatmul.mubr.f32.gmra.mxu0 %v9663_v3  ;;  %v11478_v23 = vld [vmem:[#allocation122_spill] sm:$0xff] }
 0x3ca   : > { %v2301_v50 = vsel %vm9539_vm8, %v2225_v53, 0.0  ;;  %v11477_v2 = vrot.slane %v11425_v10, 7  ;;  %v3724_v42 = vrot.slane %v9353_v46, 1  ;;  %v11479_v53 = vrot.slane %v9287_v47, 7 }
 0x3cb   : > { %v3721_v37 = vsel %vm1680_vm1, %v11473_v56, %v11472_v33  ;;  %v2765_v48 = vadd.f32 %v11474_v39, %v2301_v50  ;;  %v1219_v25 = vand.u32 15, %v1177_v12  ;;  %v11480_v33 = vrot.slane %v9005_v29, 7 }
 0x3cc   : > { %v2229_v58 = vsel %vm1400_vm0, %v11477_v2, %v11476_v1  ;;  %v11481_v50 = vrot.slane %v9421_v15, 1  ;;  %v11482_v39 = vrot.slane %v9245_v0, 1  ;;  %v3725_v12 = vsel %vm1680_vm1, %v3716_v57, %v3724_v42  ;;  %v11485_v0 = vld [vmem:[#allocation243_spill] sm:$0xff]  ;;  %v2409_v57 = vpop.permute.xlu0 %2408 }
 0x3cd   : > { %v2767_v49 = vadd.f32 %v11478_v23, %v2229_v58  ;;  %v2223_v56 = vsel %vm1400_vm0, %v11480_v33, %v11479_v53  ;;  %v9693_v1 = vadd.f32 %v3721_v37, %v2765_v48  ;;  %v1575_v29 = vsel %vm1567_vm2, %v9419_v61, %v1564_v20  ;;  %v11486_v48 = vld [vmem:[#allocation89_spill] sm:$0xff]  ;;  %v11488_v33 = vld [vmem:[#allocation252_spill] sm:$0xff] }
 0x3ce   : > { %v3719_v10 = vsel %vm1680_vm1, %v11482_v39, %v11481_v50  ;;  %v2300_v2 = vsel %vm9539_vm8, %v2223_v56, 0.0  ;;  %vm9705_vm9 = vcmp.le.s32.totalorder %v1219_v25, 14  ;;  %v1599_v23 = vsel %vm1567_vm2, %v1564_v20, %v11486_v48 }
 0x3cf   : > { %v2764_v37 = vadd.f32 %v11485_v0, %v2300_v2  ;;  %v1646_v53 = vmul.f32 %v11487_v24, %v1575_v29  ;;  %4321 = vmatprep.mubr.f32.mxu1 %v9693_v1  ;;  %v3799_v60 = vsel %vm9705_vm9, %v3725_v12, 0.0  ;;  %v1647_v61 = vmul.f32 %v11008_v55, %v1599_v23  ;;  %v2457_v29 = vpop.permute.xlu1 %2456  ;;  %v11489_v55 = vld [vmem:[#allocation90_spill] sm:$0xff]  ;;  %v11494_v24 = vld [vmem:[#allocation95_spill] sm:$0xff] }
 0x3d0   : > { %v3381_v25 = vsel %vm1877_vm3, %v9319_v22, %v3373_v6  ;;  %v3405_v56 = vsel %vm1877_vm3, %v3373_v6, %v11488_v33  ;;  %v9724_v50 = vadd.f32 %v3799_v60, %v2767_v49  ;;  %v2481_v48 = vsel %vm1567_vm2, %v2409_v57, %v11489_v55  ;;  %v11497_v33 = vld [vmem:[#allocation110_spill] sm:$0xff] }
 0x3d1   : > { %v9726_v20 = vadd.f32 %v3719_v10, %v2764_v37  ;;  %v1737_v39 = vrot.slane %v1646_v53, 1  ;;  %v3450_v2 = vmul.f32 %v11394_v27, %v3405_v56  ;;  %v1739_v0 = vrot.slane %v1647_v61, 1  ;;  %v11493_v10 = vld [vmem:[#allocation37_spill] sm:$0xff] }
 0x3d2   : > { %v3453_v12 = vmul.f32 %v11052_v35, %v3381_v25  ;;  %v11490_v22 = vrot.slane %v9256_v7, 7  ;;  %v11491_v23 = vrot.slane %v11454_v52, 7  ;;  %4214 = vmatprep.mubr.f32.mxu0 %v9724_v50  ;;  %v11492_v27 = vrot.slane %v9149_v13, 1  ;;  %v11496_v52 = vld [vmem:[#allocation215_spill] sm:$0xff] }
 0x3d3   : > { %4322 = vmatmul.mubr.f32.gmra.mxu1 %v9726_v20  ;;  %v1811_v35 = vadd.f32 %v1737_v39, %v11493_v10  ;;  %v3538_v37 = vrot.slane %v3450_v2, 7  ;;  %v2534_v53 = vmul.f32 %v11494_v24, %v2481_v48  ;;  %v11495_v60 = vrot.slane %v9160_v19, 1  ;;  %v11501_v48 = vld [vmem:[#allocation219_spill] sm:$0xff]  ;;  %v2585_v19 = vpop.permute.xlu0 %2584  ;;  %v2601_v63 = vpop.permute.xlu1 %2600 }
 0x3d4   : > { %v2227_v6 = vsel %vm1400_vm0, %v11491_v23, %v11490_v22  ;;  %v1738_v49 = vsel %vm1680_vm1, %v11492_v27, %v1737_v39  ;;  %v1812_v56 = vadd.f32 %v1739_v0, %v11497_v33  ;;  %v3544_v55 = vrot.slane %v3453_v12, 7  ;;  %v11498_v22 = vld [vmem:[#allocation217_spill] sm:$0xff] }
 0x3d5   : > { %v1740_v61 = vsel %vm1680_vm1, %v11495_v60, %v1739_v0  ;;  %v1807_v25 = vadd.f32 %v1738_v49, %v11496_v52  ;;  %v11499_v13 = vrot.slane %v9361_v40, 1  ;;  %v11500_v39 = vrot.slane %v9495_v54, 7  ;;  %v11503_v49 = vld [vmem:[#allocation186_spill] sm:$0xff] }
 0x3d6   : > { %v1808_v23 = vadd.f32 %v1740_v61, %v11498_v22  ;;  %v9759_v27 = vadd.f32 %v3538_v37, %v11501_v48  ;;  %v9766_v0 = vadd.f32 %v2048_v17, %v1812_v56  ;;  %v11502_v12 = vrot.slane %v9514_v36, 7  ;;  %v11505_v56 = vld [vmem:[#allocation81_spill] sm:$0xff]  ;;  %v11533_v36 = vld [vmem:[#allocation236_spill] sm:$0xff] }
 0x3d7   : > { %v9753_v44 = vadd.f32 %v11499_v13, %v1811_v35  ;;  %v3539_v2 = vsel %vm1400_vm0, %v11500_v39, %v3538_v37  ;;  %v9762_v10 = vadd.f32 %v9401_v30, %v1807_v25  ;;  %v9781_v30 = vadd.f32 %v3544_v55, %v9649_v34  ;;  %v11508_v13 = vld [vmem:[#allocation47_spill] sm:$0xff] }
 0x3d8   : > { %v3545_v40 = vsel %vm1400_vm0, %v11502_v12, %v3544_v55  ;;  %v9772_v35 = vadd.f32 %v3539_v2, %v11503_v49  ;;  %v9775_v54 = vadd.f32 %v9603_v32, %v1808_v23  ;;  %v3738_v61 = vrot.slane %v9759_v27, 1  ;;  %v11509_v12 = vld [vmem:[#allocation224_spill] sm:$0xff] }
 0x3d9   : > { %v9778_v24 = vadd.f32 %v3545_v40, %v3305_v5  ;;  %v2238_v17 = vrot.slane %v9762_v10, 7  ;;  %v11504_v5 = vld [vmem:[#allocation140_spill] sm:$0xff]  ;;  %v2766_v34 = vadd.f32 %v11505_v56, %v2227_v6  ;;  %v11506_v55 = vrot.slane %v9536_v51, 1  ;;  %v11510_v40 = vld [vmem:[#allocation225_spill] sm:$0xff] }
 0x3da   : > { %v3730_v60 = vrot.slane %v9772_v35, 1  ;;  %v2240_v52 = vrot.slane %v9775_v54, 7  ;;  %v2566_v33 = vadd.f32 %v2534_v53, %v11504_v5  ;;  %v11507_v22 = vrot.slane %v9453_v21, 1  ;;  %v11511_v49 = vld [vmem:[#allocation76_spill] sm:$0xff] }
 0x3db   : > { %v3736_v32 = vrot.slane %v9778_v24, 1  ;;  %v2465_v39 = vsel %vm1567_vm2, %v11508_v13, %v2457_v29  ;;  %v2489_v2 = vsel %vm1567_vm2, %v2457_v29, %v2409_v57  ;;  %v11512_v5 = vrot.slane %v11511_v49, 7  ;;  %v11514_v13 = vld [vmem:[#allocation57_spill] sm:$0xff] }
 0x3dc   : > { %v3723_v23 = vsel %vm1680_vm1, %v11507_v22, %v11506_v55  ;;  %v2536_v53 = vmul.f32 %v11509_v12, %v2465_v39  ;;  %v2537_v6 = vmul.f32 %v11510_v40, %v2489_v2  ;;  %v11513_v21 = vrot.slane %v9302_v8, 7  ;;  %v2633_v55 = vpop.permute.xlu0 %2632  ;;  %v11517_v39 = vld [vmem:[#allocation69_spill] sm:$0xff]  ;;  %v11520_v8 = vld [vmem:[#allocation28_spill] sm:$0xff] }
 0x3dd   : > { %v3798_v48 = vsel %vm9705_vm9, %v3723_v23, 0.0  ;;  %v11515_v57 = vrot.slane %v9561_v59, 1  ;;  %v11516_v29 = vrot.slane %v9456_v9, 1  ;;  %v11518_v12 = vrot.slane %v11517_v39, 7 }
 0x3de   : > { %v2233_v56 = vsel %vm1400_vm0, %v11513_v21, %v11512_v5  ;;  %v9811_v22 = vadd.f32 %v3798_v48, %v2766_v34  ;;  %v11519_v2 = vrot.slane %v9287_v47, 7  ;;  %v2568_v25 = vadd.f32 %v2536_v53, %v11520_v8  ;;  %v11521_v5 = vld [vmem:[#allocation134_spill] sm:$0xff]  ;;  %v11522_v48 = vld [vmem:[#allocation196_spill] sm:$0xff] }
 0x3df   : > { %v2769_v37 = vadd.f32 %v11514_v13, %v2233_v56  ;;  %v3729_v23 = vsel %vm1680_vm1, %v11516_v29, %v11515_v57  ;;  %v2569_v21 = vadd.f32 %v2537_v6, %v11521_v5  ;;  %v2617_v13 = vpop.permute.xlu1 %2616  ;;  %v11523_v57 = vrot.slane %v9559_v11, 1  ;;  %v11527_v5 = vld [vmem:[#allocation249_spill] sm:$0xff] }
 0x3e0   : > { %v2231_v40 = vsel %vm1400_vm0, %v11519_v2, %v11518_v12  ;;  %v3801_v34 = vsel %vm9705_vm9, %v3729_v23, 0.0  ;;  %4215 = vmatmul.mubr.f32.gmra.mxu0 %v9811_v22  ;;  %v11524_v47 = vrot.slane %v9421_v15, 1  ;;  %v2657_v53 = vsel %vm1877_vm3, %v2585_v19, %v2601_v63  ;;  %v11525_v12 = vld [vmem:[#allocation94_spill] sm:$0xff] }
 0x3e1   : > { %v2768_v56 = vadd.f32 %v11522_v48, %v2231_v40  ;;  %v9830_v9 = vadd.f32 %v3801_v34, %v2769_v37  ;;  %v2665_v6 = vsel %vm1877_vm3, %v2633_v55, %v2585_v19  ;;  %v2711_v2 = vmul.f32 %v11525_v12, %v2657_v53  ;;  %v11526_v40 = vld [vmem:[#allocation232_spill] sm:$0xff]  ;;  %v11530_v19 = vld [vmem:[#allocation167_spill] sm:$0xff] }
 0x3e2   : > { %v3727_v29 = vsel %vm1680_vm1, %v11524_v47, %v11523_v57  ;;  %v2710_v37 = vmul.f32 %v11526_v40, %v2665_v6  ;;  %v1178_v8 = vadd.s32 48, %v11364_v38  ;;  %v11528_v34 = vrot.slane %v11527_v5, 7  ;;  %v11532_v40 = vld [vmem:[#allocation212_spill] sm:$0xff] }
 0x3e3   : > { %v3800_v23 = vsel %vm9705_vm9, %v3727_v29, 0.0  ;;  %4327 = vmatprep.mubr.f32.mxu1 %v9830_v9  ;;  %v11529_v48 = vrot.slane %v11475_v41, 7  ;;  %v3611_v58 = vadd.f32 %v11530_v19, %v9631_v14  ;;  %v2641_v47 = vsel %vm1877_vm3, %v2617_v13, %v2633_v55  ;;  %v11531_v29 = vld [vmem:[#allocation257_spill] sm:$0xff]  ;;  %v11540_v19 = vld [vmem:[#allocation206_spill] sm:$0xff] }
 0x3e4   : > { %v9847_v15 = vadd.f32 %v3800_v23, %v2768_v56  ;;  %v2743_v53 = vadd.f32 %v2711_v2, %v11531_v29  ;;  %v2742_v6 = vadd.f32 %v2710_v37, %v2566_v33  ;;  %v1226_v12 = vand.u32 15, %v1178_v8  ;;  %v11541_v29 = vld [vmem:[#allocation233_spill] sm:$0xff] }
 0x3e5   : > { %v2237_v57 = vsel %vm1400_vm0, %v11529_v48, %v11528_v34  ;;  %v2649_v56 = vsel %vm1877_vm3, %v2601_v63, %v2617_v13  ;;  %v3732_v23 = vrot.slane %v3611_v58, 1  ;;  %v2713_v34 = vmul.f32 %v11533_v36, %v2641_v47 }
 0x3e6   : > { %4328 = vmatmul.mubr.f32.gmra.mxu1 %v9847_v15  ;;  %v2712_v41 = vmul.f32 %v11532_v40, %v2649_v56  ;;  %v11534_v14 = vrot.slane %v9256_v7, 7  ;;  %vm9869_vm10 = vcmp.ge.s32.totalorder %v1226_v12, 1  ;;  %v3731_v63 = vsel %vm1680_vm1, %v11537_v31, %v3730_v60  ;;  %v11542_v56 = vld [vmem:[#allocation144_spill] sm:$0xff]  ;;  %v11543_v40 = vld [vmem:[#allocation73_spill] sm:$0xff] }
 0x3e7   : > { %v11538_v36 = vrot.slane %v11511_v49, 7  ;;  %v11539_v7 = vrot.slane %v9561_v59, 1  ;;  %v2307_v37 = vsel %vm9869_vm10, %v2237_v57, 0.0  ;;  %v3733_v51 = vsel %vm1680_vm1, %v3724_v42, %v3732_v23 }
 0x3e8   : > { %v2235_v55 = vsel %vm1400_vm0, %v11534_v14, %v2234_v16  ;;  %v2744_v8 = vadd.f32 %v2712_v41, %v2568_v25  ;;  %v2745_v48 = vadd.f32 %v2713_v34, %v2569_v21  ;;  %v2771_v58 = vadd.f32 %v11540_v19, %v2307_v37 }
 0x3e9   : > { %v2241_v33 = vsel %vm1400_vm0, %v11538_v36, %v2240_v52  ;;  %v3737_v13 = vsel %vm1680_vm1, %v11539_v7, %v3736_v32  ;;  %v2306_v49 = vsel %vm9869_vm10, %v2235_v55, 0.0  ;;  %v1179_v59 = vadd.s32 56, %v11364_v38 }
 0x3ea   : > { %v2309_v47 = vsel %vm9869_vm10, %v2241_v33, 0.0  ;;  %v2770_v12 = vadd.f32 %v11541_v29, %v2306_v49  ;;  %v11544_v46 = vrot.slane %v11543_v40, 7  ;;  %v11545_v42 = vrot.slane %v11527_v5, 7  ;;  %v11547_v33 = vld [vmem:[#allocation109_spill] sm:$0xff]  ;;  %v11565_v29 = vld [vmem:[#allocation180_spill] sm:$0xff] }
 0x3eb   : > { %v2773_v57 = vadd.f32 %v11542_v56, %v2309_v47  ;;  %v3741_v21 = vsel %vm1680_vm1, %v3732_v23, %v3740_v28  ;;  %v3835_v41 = vadd.f32 %v3733_v51, %v2771_v58  ;;  %v1233_v34 = vand.u32 15, %v1179_v59  ;;  %v11550_v28 = vld [vmem:[#allocation229_spill] sm:$0xff]  ;;  %v11563_v47 = vld [vmem:[#allocation118_spill] sm:$0xff]  ;;  %v11567_v56 = vld [vmem:[#allocation132_spill] sm:$0xff] }
 0x3ec   : > { %v2245_v25 = vsel %vm1400_vm0, %v11545_v42, %v11544_v46  ;;  %v11546_v38 = vrot.slane %v11517_v39, 7  ;;  %v3834_v31 = vadd.f32 %v3731_v63, %v2770_v12  ;;  %v3612_v7 = vadd.f32 %v11547_v33, %v9647_v26  ;;  %v11559_v58 = vld [vmem:[#allocation97_spill] sm:$0xff]  ;;  %v11570_v46 = vld [vmem:[#allocation67_spill] sm:$0xff] }
 0x3ed   : > { %v2775_v14 = vadd.f32 %v2743_v53, %v2245_v25  ;;  %v3837_v36 = vadd.f32 %v3737_v13, %v2773_v57  ;;  %4220 = vmatprep.mubr.f32.mxu0 %v3835_v41  ;;  %vm9918_vm11 = vcmp.le.s32.totalorder %v1233_v34, 14  ;;  %v11551_v23 = vrot.slane %v9611_v45, 7  ;;  %v11562_v49 = vld [vmem:[#allocation53_spill] sm:$0xff]  ;;  %v11568_v57 = vld [vmem:[#allocation250_spill] sm:$0xff]  ;;  %v11571_v42 = vld [vmem:[#allocation103_spill] sm:$0xff] }
 0x3ee   : > { %v2239_v55 = vsel %vm1400_vm0, %v11546_v38, %v2238_v17  ;;  %v3739_v2 = vsel %vm1680_vm1, %v3730_v60, %v3738_v61  ;;  %4221 = vmatmul.mubr.f32.gmra.mxu0 %v3834_v31  ;;  %v3807_v26 = vsel %vm9918_vm11, %v3741_v21, 0.0  ;;  %v3734_v63 = vrot.slane %v3612_v7, 1  ;;  %v11564_v59 = vld [vmem:[#allocation101_spill] sm:$0xff] }
 0x3ef   : > { %v2308_v5 = vsel %vm9869_vm10, %v2239_v55, 0.0  ;;  %v2243_v39 = vsel %vm1400_vm0, %v2234_v16, %v11551_v23  ;;  %4333 = vmatprep.mubr.f32.mxu1 %v3837_v36  ;;  %v3839_v37 = vadd.f32 %v3807_v26, %v2775_v14  ;;  %v3806_v45 = vsel %vm9918_vm11, %v3739_v2, 0.0  ;;  %v11566_v12 = vld [vmem:[#allocation141_spill] sm:$0xff] }
 0x3f0   : > { %v2772_v53 = vadd.f32 %v11550_v28, %v2308_v5  ;;  %v2774_v13 = vadd.f32 %v2742_v6, %v2243_v39  ;;  %v11552_v43 = vrot.slane %v9766_v0, 7  ;;  %v11553_v27 = vrot.slane %v9781_v30, 1  ;;  %v11569_v40 = vld [vmem:[#allocation105_spill] sm:$0xff] }
 0x3f1   : > { %v11554_v60 = vrot.slane %v9559_v11, 1  ;;  %v11555_v19 = vrot.slane %v9753_v44, 7  ;;  %4226 = vmatprep.mubr.f32.mxu0 %v3839_v37  ;;  %v11557_v44 = vld [vmem:[#allocation48_spill] sm:$0xff]  ;;  %v11572_v25 = vld [vmem:[#allocation221_spill] sm:$0xff] }
 0x3f2   : > { %v2249_v16 = vsel %vm1400_vm0, %v2240_v52, %v11552_v43  ;;  %v3745_v35 = vsel %vm1680_vm1, %v3736_v32, %v11553_v27  ;;  %v3838_v6 = vadd.f32 %v3806_v45, %v2774_v13  ;;  %v11556_v52 = vrot.slane %v9656_v18, 1  ;;  %v11561_v18 = vld [vmem:[#allocation58_spill] sm:$0xff]  ;;  %v4948_v38 = vld [vmem:[%s5393_s13] sm:$0xff] }
 0x3f3   : > { %v3735_v61 = vsel %vm1680_vm1, %v11554_v60, %v3734_v63  ;;  %v2777_v51 = vadd.f32 %v2745_v48, %v2249_v16  ;;  %v2247_v0 = vsel %vm1400_vm0, %v2238_v17, %v11555_v19  ;;  %v3809_v30 = vsel %vm9918_vm11, %v3745_v35, 0.0  ;;  %v11558_v17 = vld [vmem:[#allocation239_spill] sm:$0xff]  ;;  %v4949_v5 = vld [vmem:[%s5393_s13 + $0x8] sm:$0xff] }
 0x3f4   : > { %v3836_v54 = vadd.f32 %v3735_v61, %v2772_v53  ;;  %v2776_v24 = vadd.f32 %v2744_v8, %v2247_v0  ;;  %v3743_v11 = vsel %vm1680_vm1, %v3734_v63, %v11556_v52  ;;  %4227 = vmatmul.mubr.f32.gmra.mxu0 %v3838_v6  ;;  %v11560_v8 = vld [vmem:[#allocation68_spill] sm:$0xff]  ;;  %v4951_v43 = vld [vmem:[%s5393_s13 + $0x28] sm:$0xff] }
 0x3f5   : > { %v3841_v32 = vadd.f32 %v3809_v30, %v2777_v51  ;;  %v3808_v48 = vsel %vm9918_vm11, %v3743_v11, 0.0  ;;  %4410 = vmatprep.mubr.f32.mxu0 %v11557_v44  ;;  %v4950_v63 = vld [vmem:[%s5393_s13 + $0x20] sm:$0xff]  ;;  %v4953_v11 = vld [vmem:[%s5393_s13 + $0x48] sm:$0xff] }
 0x3f6   : > { %4334 = vmatmul.mubr.f32.gmra.mxu1 %v3836_v54  ;;  %v3840_v10 = vadd.f32 %v3808_v48, %v2776_v24 }
 0x3f7   : > { %4339 = vmatprep.mubr.f32.mxu1 %v3841_v32 }
 0x3f8   : > { %4411 = vmatmul.mubr.f32.vlgmr.msra.gmra.mxu0 %v11558_v17 }
 0x3f9   : > { %4416 = vmatprep.mubr.f32.mxu0 %v11559_v58 }
 0x3fa   : > { %4340 = vmatmul.mubr.f32.gmra.mxu1 %v3840_v10 }
 0x3fb   : > { %4523 = vmatprep.mubr.f32.mxu1 %v11560_v8 }
 0x3fc   : > { %4417 = vmatmul.mubr.f32.gmra.mxu0 %v11561_v18 }
 0x3fd   : > { %4422 = vmatprep.mubr.f32.mxu0 %v11563_v47  ;;  %v4954_v47 = vld [vmem:[%s5393_s13 + $0x60] sm:$0xff] }
 0x3fe   : > { %4524 = vmatmul.mubr.f32.vlgmr.msra.gmra.mxu1 %v11562_v49 }
 0x3ff   : > { %4529 = vmatprep.mubr.f32.mxu1 %v11564_v59 }
 0x400   : > { %4423 = vmatmul.mubr.f32.gmra.mxu0 %v11565_v29 }
 0x401   : > { %4428 = vmatprep.mubr.f32.mxu0 %v11567_v56  ;;  %v4955_v56 = vld [vmem:[%s5393_s13 + $0x68] sm:$0xff] }
 0x402   : > { %4530 = vmatmul.mubr.f32.gmra.mxu1 %v11566_v12 }
 0x403   : > { %4535 = vmatprep.mubr.f32.mxu1 %v11568_v57 }
 0x404   : > { %4429 = vmatmul.mubr.f32.gmra.mxu0 %v11569_v40 }
 0x405   : > { %4434 = vmatprep.mubr.f32.mxu0 %v9586_v62  ;;  %v9989_v62 = vld [vmem:[%s10162_s5] sm:$0xf] }
 0x406   : > { %4536 = vmatmul.mubr.f32.gmra.mxu1 %v11570_v46 }
 0x407   : > { %4541 = vmatprep.mubr.f32.mxu1 %v11571_v42 }
 0x408   : > { %4435 = vmatmul.mubr.f32.gmra.mxu0 %v9663_v3  ;;  %v4186_v3 = vpop.f32.mrf.mxu0 }
 0x409   : > { %4440 = vmatprep.mubr.f32.mxu0 %v9724_v50 }
 0x40a   : > { %4542 = vmatmul.mubr.f32.gmra.mxu1 %v11572_v25 }
 0x40b   : > { %4547 = vmatprep.mubr.f32.mxu1 %v9693_v1  ;;  %v11573_v1 = vld [vmem:[#allocation18_spill] sm:$0xff] }
 0x40c   : > { %4441 = vmatmul.mubr.f32.gmra.mxu0 %v9811_v22  ;;  %v9993_v50 = vrot.slane %v9989_v62, %v11573_v1 }
 0x40d   : > { %4446 = vmatprep.mubr.f32.mxu0 %v3835_v41  ;;  %v4299_v41 = vpop.f32.mrf.mxu1 }
 0x40e   : > { %4548 = vmatmul.mubr.f32.gmra.mxu1 %v9726_v20  ;;  %v11574_v20 = vld [vmem:[#allocation19_spill] sm:$0xff] }
 0x40f   : > { %4553 = vmatprep.mubr.f32.mxu1 %v9830_v9  ;;  %v9997_v22 = vrot.slane %v9989_v62, %v11574_v20  ;;  %v4188_v9 = vpop.f32.mrf.mxu0  ;;  %v4301_v14 = vpop.f32.mrf.mxu1 }
 0x410   : > { %4447 = vmatmul.mubr.f32.gmra.mxu0 %v3834_v31 }
 0x411   : > { %4452 = vmatprep.mubr.f32.mxu0 %v3839_v37  ;;  %v4189_v21 = vadd.f32 %v4188_v9, %v9997_v22 }
 0x412   : > { %4554 = vmatmul.mubr.f32.gmra.mxu1 %v9847_v15  ;;  %v4187_v15 = vadd.f32 %v4186_v3, %v9993_v50 }
 0x413   : > { %4559 = vmatprep.mubr.f32.mxu1 %v3837_v36  ;;  %v4302_v31 = vadd.f32 %v4301_v14, %v4189_v21  ;;  %v4957_v14 = vld [vmem:[%s5393_s13 + $0x88] sm:$0xff] }
 0x414   : > { %4453 = vmatmul.mubr.f32.gmra.mxu0 %v3838_v6  ;;  %v4300_v34 = vadd.f32 %v4299_v41, %v4187_v15  ;;  %v4956_v15 = vld [vmem:[%s5393_s13 + $0x80] sm:$0xff] }
 0x415   : > { %v4573_v33 = vadd.f32 %v4949_v5, %v4302_v31 }
 0x416   : > { %4560 = vmatmul.mubr.f32.gmra.mxu1 %v3836_v54  ;;  %v4572_v55 = vadd.f32 %v4948_v38, %v4300_v34  ;;  %v4952_v54 = vld [vmem:[%s5393_s13 + $0x40] sm:$0xff] }
 0x417   : > { %4565 = vmatprep.mubr.f32.mxu1 %v3841_v32  ;;  %v4605_v7 = vmax.f32 %v4573_v33, 0.0 }
 0x418   : > { %v4604_v36 = vmax.f32 %v4572_v55, 0.0 }
 0x419   : > { %4637 = vst [vmem:[%s10005_s8 + $0x8] sm:$0xff] %v4605_v7 }
 0x41a   : > { %4566 = vmatmul.mubr.f32.gmra.mxu1 %v3840_v10  ;;  %4636 = vst [vmem:[%s10005_s8] sm:$0xff] %v4604_v36 }
 0x41e   : > { %v4192_v4 = vpop.f32.mrf.mxu0 }
 0x41f   : > { %v4193_v28 = vadd.f32 %v4192_v4, %v9993_v50 }
 0x420   : > { %v4194_v53 = vpop.f32.mrf.mxu0 }
 0x421   : > { %v4195_v23 = vadd.f32 %v4194_v53, %v9997_v22  ;;  %v4958_v53 = vld [vmem:[%s5393_s13 + $0xa0] sm:$0xff] }
 0x425   : > { %v4305_v39 = vpop.f32.mrf.mxu1 }
 0x426   : > { %v4306_v2 = vadd.f32 %v4305_v39, %v4193_v28 }
 0x427   : > { %v4307_v26 = vpop.f32.mrf.mxu1 }
 0x428   : > { %v4576_v13 = vadd.f32 %v4950_v63, %v4306_v2  ;;  %v4308_v37 = vadd.f32 %v4307_v26, %v4195_v23  ;;  %v4959_v26 = vld [vmem:[%s5393_s13 + $0xa8] sm:$0xff] }
 0x42a   : > { %v4608_v45 = vmax.f32 %v4576_v13, 0.0  ;;  %v4577_v16 = vadd.f32 %v4951_v43, %v4308_v37 }
 0x42c   : > { %4640 = vst [vmem:[%s10005_s8 + $0x20] sm:$0xff] %v4608_v45  ;;  %v4609_v27 = vmax.f32 %v4577_v16, 0.0 }
 0x42e   : > { %4641 = vst [vmem:[%s10005_s8 + $0x28] sm:$0xff] %v4609_v27 }
 0x440   : > { %v4311_v35 = vpop.f32.mrf.mxu1 }
 0x442   : > { %v4313_v0 = vpop.f32.mrf.mxu1 }
 0x44a   : > { %v4198_v60 = vpop.f32.mrf.mxu0 }
 0x44b   : > { %v4199_v61 = vadd.f32 %v4198_v60, %v9993_v50 }
 0x44c   : > { %v4200_v6 = vpop.f32.mrf.mxu0 }
 0x44d   : > { %v4312_v51 = vadd.f32 %v4311_v35, %v4199_v61  ;;  %v4201_v19 = vadd.f32 %v4200_v6, %v9997_v22 }
 0x44f   : > { %v4580_v30 = vadd.f32 %v4952_v54, %v4312_v51  ;;  %v4314_v24 = vadd.f32 %v4313_v0, %v4201_v19  ;;  %v11575_v51 = vld [vmem:[#allocation31_spill] sm:$0xff]  ;;  %v4960_v54 = vld [vmem:[%s5393_s13 + $0xc0] sm:$0xff] }
 0x450   : > { %v10044_v19 = vrot.slane %v9989_v62, %v11575_v51 }
 0x451   : > { %v4612_v52 = vmax.f32 %v4580_v30, 0.0  ;;  %v4581_v32 = vadd.f32 %v4953_v11, %v4314_v24 }
 0x453   : > { %4644 = vst [vmem:[%s10005_s8 + $0x40] sm:$0xff] %v4612_v52  ;;  %v4613_v48 = vmax.f32 %v4581_v32, 0.0  ;;  %v11576_v32 = vld [vmem:[#allocation32_spill] sm:$0xff] }
 0x455   : > { %4645 = vst [vmem:[%s10005_s8 + $0x48] sm:$0xff] %v4613_v48  ;;  %v10050_v48 = vrot.slane %v9989_v62, %v11576_v32 }
 0x466   : > { %v4204_v44 = vpop.f32.mrf.mxu0 }
 0x467   : > { %v4205_v17 = vadd.f32 %v4204_v44, %v9993_v50 }
 0x468   : > { %v4206_v10 = vpop.f32.mrf.mxu0 }
 0x469   : > { %v4207_v8 = vadd.f32 %v4206_v10, %v9997_v22  ;;  %v4961_v10 = vld [vmem:[%s5393_s13 + $0xc8] sm:$0xff] }
 0x475   : > { %v4317_v58 = vpop.f32.mrf.mxu1 }
 0x476   : > { %v4318_v18 = vadd.f32 %v4317_v58, %v4205_v17 }
 0x477   : > { %v4319_v49 = vpop.f32.mrf.mxu1 }
 0x478   : > { %v4584_v59 = vadd.f32 %v4954_v47, %v4318_v18  ;;  %v4320_v29 = vadd.f32 %v4319_v49, %v4207_v8 }
 0x47a   : > { %v4616_v12 = vmax.f32 %v4584_v59, 0.0  ;;  %v4585_v57 = vadd.f32 %v4955_v56, %v4320_v29 }
 0x47c   : > { %4648 = vst [vmem:[%s10005_s8 + $0x60] sm:$0xff] %v4616_v12  ;;  %v4617_v40 = vmax.f32 %v4585_v57, 0.0 }
 0x47e   : > { %4649 = vst [vmem:[%s10005_s8 + $0x68] sm:$0xff] %v4617_v40  ;;  %v4963_v40 = vld [vmem:[%s5393_s13 + $0xe8] sm:$0xff] }
 0x489   : > { %v4210_v46 = vpop.f32.mrf.mxu0 }
 0x48a   : > { %v4211_v25 = vadd.f32 %v4210_v46, %v9993_v50 }
 0x48b   : > { %v4212_v42 = vpop.f32.mrf.mxu0 }
 0x48c   : > { %v4213_v3 = vadd.f32 %v4212_v42, %v9997_v22 }
 0x493   : > { %v4323_v1 = vpop.f32.mrf.mxu1 }
 0x494   : > { %v4324_v20 = vadd.f32 %v4323_v1, %v4211_v25 }
 0x495   : > { %v4325_v9 = vpop.f32.mrf.mxu1 }
 0x496   : > { %v4588_v21 = vadd.f32 %v4956_v15, %v4324_v20  ;;  %v4326_v41 = vadd.f32 %v4325_v9, %v4213_v3  ;;  %v4964_v9 = vld [vmem:[%s5393_s13 + $0x10] sm:$0xff] }
 0x498   : > { %v4620_v34 = vmax.f32 %v4588_v21, 0.0  ;;  %v4589_v38 = vadd.f32 %v4957_v14, %v4326_v41 }
 0x49a   : > { %4652 = vst [vmem:[%s10005_s8 + $0x80] sm:$0xff] %v4620_v34  ;;  %v4621_v55 = vmax.f32 %v4589_v38, 0.0 }
 0x49c   : > { %4653 = vst [vmem:[%s10005_s8 + $0x88] sm:$0xff] %v4621_v55  ;;  %v4965_v55 = vld [vmem:[%s5393_s13 + $0x18] sm:$0xff] }
 0x4a0   : > { %v4216_v31 = vpop.f32.mrf.mxu0 }
 0x4a1   : > { %v4217_v36 = vadd.f32 %v4216_v31, %v9993_v50 }
 0x4a2   : > { %v4218_v5 = vpop.f32.mrf.mxu0 }
 0x4a3   : > { %v4219_v33 = vadd.f32 %v4218_v5, %v9997_v22 }
 0x4a6   : > { %v4329_v7 = vpop.f32.mrf.mxu1 }
 0x4a7   : > { %v4330_v4 = vadd.f32 %v4329_v7, %v4217_v36 }
 0x4a8   : > { %v4331_v28 = vpop.f32.mrf.mxu1 }
 0x4a9   : > { %v4592_v23 = vadd.f32 %v4958_v53, %v4330_v4  ;;  %v4332_v39 = vadd.f32 %v4331_v28, %v4219_v33  ;;  %v4966_v28 = vld [vmem:[%s5393_s13 + $0x30] sm:$0xff] }
 0x4ab   : > { %v4624_v2 = vmax.f32 %v4592_v23, 0.0  ;;  %v4593_v63 = vadd.f32 %v4959_v26, %v4332_v39 }
 0x4ad   : > { %4656 = vst [vmem:[%s10005_s8 + $0xa0] sm:$0xff] %v4624_v2  ;;  %v4625_v13 = vmax.f32 %v4593_v63, 0.0 }
 0x4ae   : > { %v4222_v37 = vpop.f32.mrf.mxu0 }
 0x4af   : > { %4657 = vst [vmem:[%s10005_s8 + $0xa8] sm:$0xff] %v4625_v13  ;;  %v4223_v43 = vadd.f32 %v4222_v37, %v9993_v50  ;;  %v4967_v13 = vld [vmem:[%s5393_s13 + $0x38] sm:$0xff] }
 0x4b0   : > { %v4224_v45 = vpop.f32.mrf.mxu0 }
 0x4b1   : > { %v4225_v35 = vadd.f32 %v4224_v45, %v9997_v22 }
 0x4b4   : > { %v4228_v16 = vpop.f32.mrf.mxu0 }
 0x4b5   : > { %v4229_v61 = vadd.f32 %v4228_v16, %v9993_v50 }
 0x4b6   : > { %v4335_v27 = vpop.f32.mrf.mxu1  ;;  %v4230_v6 = vpop.f32.mrf.mxu0 }
 0x4b7   : > { %v4336_v60 = vadd.f32 %v4335_v27, %v4223_v43  ;;  %v4231_v52 = vadd.f32 %v4230_v6, %v9997_v22  ;;  %v4962_v22 = vld [vmem:[%s5393_s13 + $0xe0] sm:$0xff] }
 0x4b8   : > { %v4337_v0 = vpop.f32.mrf.mxu1  ;;  %v4412_v11 = vpop.f32.mrf.mxu0 }
 0x4b9   : > { %v4596_v30 = vadd.f32 %v4960_v54, %v4336_v60  ;;  %v4338_v24 = vadd.f32 %v4337_v0, %v4225_v35  ;;  %v4413_v8 = vadd.f32 %v4412_v11, %v10044_v19  ;;  %v4968_v60 = vld [vmem:[%s5393_s13 + $0x50] sm:$0xff] }
 0x4ba   : > { %v4341_v44 = vpop.f32.mrf.mxu1  ;;  %v4414_v18 = vpop.f32.mrf.mxu0 }
 0x4bb   : > { %v4628_v50 = vmax.f32 %v4596_v30, 0.0  ;;  %v4597_v17 = vadd.f32 %v4961_v10, %v4338_v24  ;;  %v4342_v58 = vadd.f32 %v4341_v44, %v4229_v61  ;;  %v4415_v62 = vadd.f32 %v4414_v18, %v10050_v48  ;;  %v4969_v24 = vld [vmem:[%s5393_s13 + $0x58] sm:$0xff] }
 0x4bc   : > { %v4343_v49 = vpop.f32.mrf.mxu1  ;;  %v4418_v12 = vpop.f32.mrf.mxu0 }
 0x4bd   : > { %4660 = vst [vmem:[%s10005_s8 + $0xc0] sm:$0xff] %v4628_v50  ;;  %v4629_v47 = vmax.f32 %v4597_v17, 0.0  ;;  %v4600_v59 = vadd.f32 %v4962_v22, %v4342_v58  ;;  %v4344_v29 = vadd.f32 %v4343_v49, %v4231_v52  ;;  %v4419_v25 = vadd.f32 %v4418_v12, %v10044_v19  ;;  %v4970_v17 = vld [vmem:[%s5393_s13 + $0x70] sm:$0xff] }
 0x4be   : > { %v4525_v56 = vpop.f32.mrf.mxu1  ;;  %v4420_v3 = vpop.f32.mrf.mxu0 }
 0x4bf   : > { %4661 = vst [vmem:[%s10005_s8 + $0xc8] sm:$0xff] %v4629_v47  ;;  %v4632_v57 = vmax.f32 %v4600_v59, 0.0  ;;  %v4601_v46 = vadd.f32 %v4963_v40, %v4344_v29  ;;  %v4526_v42 = vadd.f32 %v4525_v56, %v4413_v8  ;;  %v4421_v41 = vadd.f32 %v4420_v3, %v10050_v48  ;;  %v4971_v59 = vld [vmem:[%s5393_s13 + $0x78] sm:$0xff] }
 0x4c0   : > { %v4527_v1 = vpop.f32.mrf.mxu1  ;;  %v4424_v34 = vpop.f32.mrf.mxu0 }
 0x4c1   : > { %4664 = vst [vmem:[%s10005_s8 + $0xe0] sm:$0xff] %v4632_v57  ;;  %v4633_v20 = vmax.f32 %v4601_v46, 0.0  ;;  %v4574_v15 = vadd.f32 %v4964_v9, %v4526_v42  ;;  %v4528_v21 = vadd.f32 %v4527_v1, %v4415_v62  ;;  %v4425_v5 = vadd.f32 %v4424_v34, %v10044_v19  ;;  %v4972_v46 = vld [vmem:[%s5393_s13 + $0x90] sm:$0xff] }
 0x4c2   : > { %v4531_v14 = vpop.f32.mrf.mxu1  ;;  %v4426_v33 = vpop.f32.mrf.mxu0 }
 0x4c3   : > { %4665 = vst [vmem:[%s10005_s8 + $0xe8] sm:$0xff] %v4633_v20  ;;  %v4606_v38 = vmax.f32 %v4574_v15, 0.0  ;;  %v4575_v31 = vadd.f32 %v4965_v55, %v4528_v21  ;;  %v4532_v36 = vadd.f32 %v4531_v14, %v4419_v25  ;;  %v4427_v39 = vadd.f32 %v4426_v33, %v10050_v48  ;;  %v4973_v15 = vld [vmem:[%s5393_s13 + $0x98] sm:$0xff] }
 0x4c4   : > { %v4533_v7 = vpop.f32.mrf.mxu1  ;;  %v4430_v2 = vpop.f32.mrf.mxu0 }
 0x4c5   : > { %4638 = vst [vmem:[%s10005_s8 + $0x10] sm:$0xff] %v4606_v38  ;;  %v4607_v4 = vmax.f32 %v4575_v31, 0.0  ;;  %v4578_v53 = vadd.f32 %v4966_v28, %v4532_v36  ;;  %v4534_v23 = vadd.f32 %v4533_v7, %v4421_v41  ;;  %v4431_v43 = vadd.f32 %v4430_v2, %v10044_v19  ;;  %v4974_v31 = vld [vmem:[%s5393_s13 + $0xb0] sm:$0xff] }
 0x4c6   : > { %v4537_v26 = vpop.f32.mrf.mxu1  ;;  %v4432_v16 = vpop.f32.mrf.mxu0 }
 0x4c7   : > { %4639 = vst [vmem:[%s10005_s8 + $0x18] sm:$0xff] %v4607_v4  ;;  %v4610_v63 = vmax.f32 %v4578_v53, 0.0  ;;  %v4579_v37 = vadd.f32 %v4967_v13, %v4534_v23  ;;  %v4538_v45 = vadd.f32 %v4537_v26, %v4425_v5  ;;  %v4433_v51 = vadd.f32 %v4432_v16, %v10050_v48  ;;  %v4975_v53 = vld [vmem:[%s5393_s13 + $0xb8] sm:$0xff] }
 0x4c8   : > { %v4539_v27 = vpop.f32.mrf.mxu1  ;;  %v4436_v0 = vpop.f32.mrf.mxu0 }
 0x4c9   : > { %4642 = vst [vmem:[%s10005_s8 + $0x30] sm:$0xff] %v4610_v63  ;;  %v4611_v35 = vmax.f32 %v4579_v37, 0.0  ;;  %v4582_v61 = vadd.f32 %v4968_v60, %v4538_v45  ;;  %v4540_v6 = vadd.f32 %v4539_v27, %v4427_v39  ;;  %v4437_v32 = vadd.f32 %v4436_v0, %v10044_v19  ;;  %v4976_v37 = vld [vmem:[%s5393_s13 + $0xd0] sm:$0xff]  ;;  %v4977_v60 = vld [vmem:[%s5393_s13 + $0xd8] sm:$0xff] }
 0x4ca   : > { %v4543_v54 = vpop.f32.mrf.mxu1  ;;  %v4438_v44 = vpop.f32.mrf.mxu0  ;;  %v4978_v0 = vld [vmem:[%s5393_s13 + $0xf0] sm:$0xff] }
 0x4cb   : > { %4643 = vst [vmem:[%s10005_s8 + $0x38] sm:$0xff] %v4611_v35  ;;  %v4614_v30 = vmax.f32 %v4582_v61, 0.0  ;;  %v4583_v52 = vadd.f32 %v4969_v24, %v4540_v6  ;;  %v4544_v11 = vadd.f32 %v4543_v54, %v4431_v43  ;;  %v4439_v18 = vadd.f32 %v4438_v44, %v10050_v48  ;;  %v4979_v24 = vld [vmem:[%s5393_s13 + $0xf8] sm:$0xff]  ;;  %s5118_s13 = scalar_lea.vmem %s5117_s26, 8192 }
 0x4cc   : > { %v4545_v50 = vpop.f32.mrf.mxu1  ;;  %v4442_v49 = vpop.f32.mrf.mxu0  ;;  %p5120_p12 = scmp.lt.s32.totalorder %s5118_s13, %s5112_s25 }
 0x4cd   : > { %4646 = vst [vmem:[%s10005_s8 + $0x50] sm:$0xff] %v4614_v30  ;;  %v4615_v10 = vmax.f32 %v4583_v52, 0.0  ;;  %v4586_v58 = vadd.f32 %v4970_v17, %v4544_v11  ;;  %v4546_v8 = vadd.f32 %v4545_v50, %v4433_v51  ;;  %v4443_v12 = vadd.f32 %v4442_v49, %v10044_v19 }
 0x4ce   : > { %v4549_v47 = vpop.f32.mrf.mxu1  ;;  %v4444_v56 = vpop.f32.mrf.mxu0  ;;  %p5121_p0 = por %p5120_p12, %p5119_p1 }
 0x4cf   : > { %4647 = vst [vmem:[%s10005_s8 + $0x58] sm:$0xff] %v4615_v10  ;;  %v4618_v22 = vmax.f32 %v4586_v58, 0.0  ;;  %v4587_v29 = vadd.f32 %v4971_v59, %v4546_v8  ;;  %v4550_v62 = vadd.f32 %v4549_v47, %v4437_v32  ;;  %v4445_v3 = vadd.f32 %v4444_v56, %v10050_v48 }
 0x4d0   : > { %v4551_v57 = vpop.f32.mrf.mxu1  ;;  %v4448_v1 = vpop.f32.mrf.mxu0  ;;  %p5122_p3 = pnand %p5121_p0, %p5115_p7 }
 0x4d1   : > { %4650 = vst [vmem:[%s10005_s8 + $0x70] sm:$0xff] %v4618_v22  ;;  %v4619_v40 = vmax.f32 %v4587_v29, 0.0  ;;  %v4590_v42 = vadd.f32 %v4972_v46, %v4550_v62  ;;  %v4552_v25 = vadd.f32 %v4551_v57, %v4439_v18  ;;  %v4449_v34 = vadd.f32 %v4448_v1, %v10044_v19 }
 0x4d2   : > { %v4555_v20 = vpop.f32.mrf.mxu1  ;;  %v4450_v14 = vpop.f32.mrf.mxu0 }
 0x4d3   : > { %4651 = vst [vmem:[%s10005_s8 + $0x78] sm:$0xff] %v4619_v40  ;;  %v4622_v9 = vmax.f32 %v4590_v42, 0.0  ;;  %v4591_v21 = vadd.f32 %v4973_v15, %v4552_v25  ;;  %v4556_v41 = vadd.f32 %v4555_v20, %v4443_v12  ;;  %v4451_v33 = vadd.f32 %v4450_v14, %v10050_v48 }
 0x4d4   : > { %v4557_v38 = vpop.f32.mrf.mxu1  ;;  %v4454_v7 = vpop.f32.mrf.mxu0 }
 0x4d5   : > { %4654 = vst [vmem:[%s10005_s8 + $0x90] sm:$0xff] %v4622_v9  ;;  %v4623_v55 = vmax.f32 %v4591_v21, 0.0  ;;  %v4594_v36 = vadd.f32 %v4974_v31, %v4556_v41  ;;  %v4558_v5 = vadd.f32 %v4557_v38, %v4445_v3  ;;  %v4455_v2 = vadd.f32 %v4454_v7, %v10044_v19 }
 0x4d6   : > { %v4561_v4 = vpop.f32.mrf.mxu1  ;;  %v4456_v26 = vpop.f32.mrf.mxu0 }
 0x4d7   : > { %4655 = vst [vmem:[%s10005_s8 + $0x98] sm:$0xff] %v4623_v55  ;;  %v4626_v28 = vmax.f32 %v4594_v36, 0.0  ;;  %v4595_v23 = vadd.f32 %v4975_v53, %v4558_v5  ;;  %v4562_v39 = vadd.f32 %v4561_v4, %v4449_v34  ;;  %v4457_v16 = vadd.f32 %v4456_v26, %v10050_v48 }
 0x4d8   : > { %v4563_v63 = vpop.f32.mrf.mxu1 }
 0x4d9   : > { %4658 = vst [vmem:[%s10005_s8 + $0xb0] sm:$0xff] %v4626_v28  ;;  %v4627_v13 = vmax.f32 %v4595_v23, 0.0  ;;  %v4598_v45 = vadd.f32 %v4976_v37, %v4562_v39  ;;  %v4564_v43 = vadd.f32 %v4563_v63, %v4451_v33 }
 0x4da   : > { %v4567_v27 = vpop.f32.mrf.mxu1 }
 0x4db   : > { %4659 = vst [vmem:[%s10005_s8 + $0xb8] sm:$0xff] %v4627_v13  ;;  %v4630_v35 = vmax.f32 %v4598_v45, 0.0  ;;  %v4599_v19 = vadd.f32 %v4977_v60, %v4564_v43  ;;  %v4568_v61 = vadd.f32 %v4567_v27, %v4455_v2 }
 0x4dc   : > { %v4569_v6 = vpop.f32.mrf.mxu1 }
 0x4dd   : > { %4662 = vst [vmem:[%s10005_s8 + $0xd0] sm:$0xff] %v4630_v35  ;;  %v4631_v51 = vmax.f32 %v4599_v19, 0.0  ;;  %v4602_v54 = vadd.f32 %v4978_v0, %v4568_v61  ;;  %v4570_v30 = vadd.f32 %v4569_v6, %v4457_v16 }
 0x4df   : > { %4663 = vst [vmem:[%s10005_s8 + $0xd8] sm:$0xff] %v4631_v51  ;;  %v4634_v48 = vmax.f32 %v4602_v54, 0.0  ;;  %v4603_v52 = vadd.f32 %v4979_v24, %v4570_v30 }
 0x4e1   : > { %4666 = vst [vmem:[%s10005_s8 + $0xf0] sm:$0xff] %v4634_v48  ;;  %v4635_v11 = vmax.f32 %v4603_v52, 0.0 }
 0x4e3   : > { %4667 = vst [vmem:[%s10005_s8 + $0xf8] sm:$0xff] %v4635_v11 }
 0x4e4   : > { %5125 = shalt.err (!%p5122_p3)
}
 0x4e5   : > { %s5126_s27 = scalar_lea.hbm %s10110_s17, 4096  ;;  %s5130_s8 = scalar_lea.hbm %s10163_s6, 16384 }
 0x4e6   : > { %p5127_p6 = scmp.ne.s32.totalorder %s10110_s17, %s5126_s27  ;;  %p5131_p9 = scmp.lt.s32.totalorder %s10110_s17, %s10163_s6 }
 0x4e7   : > { %p5132_p10 = scmp.lt.s32.totalorder %s5130_s8, %s5126_s27 }
 0x4e8   : > { %p5128_p4 = pnand %p5127_p6, %p11577_p11 }
 0x4e9   : > { %p5133_p13 = por %p5132_p10, %p5131_p9 }
 0x4ea   : > { %p5129_p8 = pneg %p5128_p4 }
 0x4ec   : > { %p5134_p2 = pnand %p5133_p13, %p5129_p8 }
 0x4ee   : > { %5137 = shalt.err (!%p5134_p2)
}
 0x4ef   : > { %s5197_s30 = smov 512  }
 0x4f0   : > { %4844 = dma.vmem_to_hbm [thread:$0]  (%p11577_p11), %s10113_s11, 4096, %s10110_s17, %s4669_s7, %s5197_s30, %s5197_s30, %s5195_s29  }
 0x4f1 PF: > { %p4876_p5 = scmp.ge.s32.totalorder %s5184_s24, 2  ;;  %s4698_s25 = sand.u32 1, %s5172_s21  }
 0x4f2   : > { %p11578_p7 = scmp.ne.s32.totalorder %s10456_s28, 0  ;;  %s4699_s15 = scalar_lea.sflag [#allocation5], %s4698_s25 }
 0x4f4   : > { %p4864_p1 = pnand %p4876_p5, %p11578_p7 }
 0x4f6   : > { %p4865_p12 = pneg %p4864_p1 }
 0x4f8   : > { %5167 = dma.done.wait (%p4865_p12), %s4699_s15, 4096  }
 0x4f9   : > { %5169 = vsyncadd (%p4865_p12), %s4699_s15, 4294963200  ;;  %p21_p0 = scmp.ge.s32.totalorder %s5329_s16, 6   ;;  %s11579_s21 = smov %s5176_s22 }
 0x4fa   : > { %s11580_s22 = smov %s5180_s23  ;;  %s11581_s23 = smov %s5345_s19 }
 0x4fb   : > { %s11582_s24 = smov %s5329_s16  ;;  %23 = sbr.rel (!%p21_p0) target bundleno = 7 (0x7), region = 105 }
 0x500   :  { %4704 = vsyncpa [#allocation4], 1 }
 0x501   :  { %4706 = vsyncpa [#allocation4 + $0x1], 1 }
 0x502   :  { %4707 = vsyncpa [#allocation7], 1 }
 0x503   :  { %4708 = vsyncpa [#allocation10], 1 }
 0x504   :  { %4709 = vsyncpa [#allocation5], 1 }
 0x505   :  { %4711 = vsyncpa [#allocation5 + $0x1], 1 }

</bundles_post_ra>
